<compile_context>
chip_gen: v6e
topology: v6e:2x2x1
jax: 0.10.0
libtpu: 0.0.40
codegen_flags: <defaults>
</compile_context>

<pallas_src>
import functools
import math

import jax
import jax.numpy as jnp
from jax.experimental import pallas as pl
from jax.experimental.pallas import tpu as pltpu

INPUT_SIZE = 163
L_DIM = 20
H1 = 163
H2 = 128

# lane-padded widths
F_PAD = 256     # 163 -> 2*128
H1_PAD = 256    # 163 -> 2*128
L_PAD = 128     # 20  -> 128 (mu half / logvar half of the fused projection)


def _vae_kernel(x_ref, eps_ref,
                w1, b1, w2, b2, w3, b3,                 # encoder (fused mu|logvar)
                w4, b4, w5, b5, w6, b6,                 # decoder
                recon_ref, kl_ref,
                bce_acc, kl_acc,
                *, true_batch, block_b, n_per_core):
    c = pl.program_id(0)          # TensorCore split ("parallel")
    j = pl.program_id(1)          # batch blocks per core ("arbitrary")
    n_j = pl.num_programs(1)

    @pl.when(j == 0)
    def _init():
        bce_acc[...] = jnp.zeros_like(bce_acc)
        kl_acc[...] = jnp.zeros_like(kl_acc)

    x = x_ref[...]                                    # (block_b, F_PAD) f32
    xb = x.astype(jnp.bfloat16)

    # ----- encoder -----
    h = jnp.dot(xb, w1[...], preferred_element_type=jnp.float32) + b1[...]
    h = jnp.maximum(h, 0.0)
    h = jnp.dot(h.astype(jnp.bfloat16), w2[...],
                preferred_element_type=jnp.float32) + b2[...]
    h = jnp.maximum(h, 0.0)

    # fused mu|logvar projection: one (H2 x 256) matmul, split at lane 128
    dist = jnp.dot(h.astype(jnp.bfloat16), w3[...],
                   preferred_element_type=jnp.float32) + b3[...]
    mu = dist[:, :L_PAD]
    logvar = dist[:, L_PAD:]

    # ----- reparametrize -----
    std = jnp.exp(0.5 * logvar)
    z = mu + std * eps_ref[...]

    # ----- decoder -----
    d = jnp.dot(z.astype(jnp.bfloat16), w4[...],
                preferred_element_type=jnp.float32) + b4[...]
    d = jnp.maximum(d, 0.0)
    d = jnp.dot(d.astype(jnp.bfloat16), w5[...],
                preferred_element_type=jnp.float32) + b5[...]
    d = jnp.maximum(d, 0.0)
    x_recon = jnp.dot(d.astype(jnp.bfloat16), w6[...],
                      preferred_element_type=jnp.float32) + b6[...]

    # row-validity mask (only padded batch rows need masking; padded latent lanes
    # give exactly 0 KL, padded BCE feature columns give exactly log(2) per valid
    # row and are corrected analytically in the wrapper).
    row0 = (c * n_per_core + j) * block_b
    row_ok = (jax.lax.broadcasted_iota(jnp.int32, (block_b, 1), 0) + row0) < true_batch

    # ----- reconstruction loss: BCE-with-logits (stable form), raw sum per lane -----
    bce = (jnp.maximum(x_recon, 0.0) - x_recon * x
           + jnp.log1p(jnp.exp(-jnp.abs(x_recon))))
    bce = jnp.where(row_ok, bce, 0.0)
    bce_acc[...] += jnp.sum(bce, axis=0, keepdims=True)

    # ----- KL divergence: exp(logvar) reused as std*std; padded lanes exactly 0 -----
    klds = -0.5 * (1.0 + logvar - mu * mu - std * std)
    klds = jnp.where(row_ok, klds, 0.0)
    kl_acc[...] += jnp.sum(klds, axis=0, keepdims=True)

    # single cross-lane reduce + scalar write only at the last step of this core
    @pl.when(j == n_j - 1)
    def _finalize():
        recon_ref[...] = jnp.reshape(jnp.sum(bce_acc[...]), (1, 1, 1))
        kl_ref[...] = jnp.reshape(jnp.sum(kl_acc[...]), (1, 1, 1))


def vae_neural_forward(x, eps, prepared_params, *, block_b=512):
    """x: (B,163) f32, eps: (B,20) f32, prepared_params: output of prepare_params.
    Returns (recon_loss: f32 scalar, kl_loss: f32 shape (1,))."""
    B = x.shape[0]
    n_blocks = -(-B // block_b)
    splits = 2 if n_blocks >= 2 else 1        # v7x: 2 TensorCores; harmless elsewhere
    n_per_core = -(-n_blocks // splits)
    b_pad = splits * n_per_core * block_b

    x_pad = jnp.pad(x.astype(jnp.float32),
                    ((0, b_pad - B), (0, F_PAD - INPUT_SIZE)))
    eps_pad = jnp.pad(eps.astype(jnp.float32),
                      ((0, b_pad - B), (0, L_PAD - L_DIM)))

    kernel = functools.partial(_vae_kernel, true_batch=B, block_b=block_b,
                               n_per_core=n_per_core)

    in_specs = [
        pl.BlockSpec((block_b, F_PAD), lambda c, j: (c * n_per_core + j, 0)),  # x
        pl.BlockSpec((block_b, L_PAD), lambda c, j: (c * n_per_core + j, 0)),  # eps
    ]
    # weights/biases: constant index_map -> VMEM-resident across the whole grid
    for p in prepared_params:
        in_specs.append(pl.BlockSpec(p.shape, lambda c, j: (0, 0)))

    recon_parts, kl_parts = pl.pallas_call(
        kernel,
        grid=(splits, n_per_core),
        out_shape=(jax.ShapeDtypeStruct((splits, 1, 1), jnp.float32),
                   jax.ShapeDtypeStruct((splits, 1, 1), jnp.float32)),
        in_specs=in_specs,
        out_specs=(pl.BlockSpec((1, 1, 1), lambda c, j: (c, 0, 0)),
                   pl.BlockSpec((1, 1, 1), lambda c, j: (c, 0, 0))),
        scratch_shapes=[pltpu.VMEM((1, F_PAD), jnp.float32),   # per-lane BCE sums
                        pltpu.VMEM((1, L_PAD), jnp.float32)],  # per-lane KL sums
        compiler_params=pltpu.CompilerParams(
            dimension_semantics=("parallel", "arbitrary")),
    )(x_pad, eps_pad, *prepared_params)

    inv_b = 1.0 / B
    # padded feature columns (x_recon == 0, x == 0) contribute exactly log(2) per
    # valid row to the raw BCE sum -> subtract once here instead of masking per step.
    recon = jnp.sum(recon_parts) * inv_b - (F_PAD - INPUT_SIZE) * math.log(2.0)
    kl = jnp.reshape(jnp.sum(kl_parts) * inv_b, (1,))
    return recon, kl


def init_params(key):
    """PyTorch-equivalent init: kaiming_normal (fan_in, gain sqrt(2)), zero biases.
    Weights stored (in, out) unpadded f32; biases (out,) f32."""
    dims = [(INPUT_SIZE, H1), (H1, H2), (H2, 2 * L_DIM),      # encoder
            (L_DIM, H2), (H2, H1), (H1, INPUT_SIZE)]           # decoder
    keys = jax.random.split(key, len(dims))
    params = []
    for k, (fi, fo) in zip(keys, dims):
        std = (2.0 / fi) ** 0.5
        w = std * jax.random.normal(k, (fi, fo), dtype=jnp.float32)
        b = jnp.zeros((fo,), dtype=jnp.float32)
        params.append((w, b))
    return params


def prepare_params(params):
    """Zero-pad to lane-aligned widths, fuse the mu/logvar projection into one
    (H2, 256) matrix (mu -> lanes [0,20), logvar -> lanes [128,148)), cast weights
    to bf16. Biases stay f32 as (1, out_pad) rows. Returns flat list in kernel order."""
    (w1, b1), (w2, b2), (w3, b3), (w4, b4), (w5, b5), (w6, b6) = params

    def pad_w(w, rows, cols):
        out = jnp.zeros((rows, cols), jnp.float32)
        out = out.at[:w.shape[0], :w.shape[1]].set(w)
        return out.astype(jnp.bfloat16)

    def pad_b(b, cols):
        out = jnp.zeros((1, cols), jnp.float32)
        return out.at[0, :b.shape[0]].set(b)

    # fused mu|logvar projection, split exactly at the lane-128 boundary
    w3_f = jnp.zeros((H2, 2 * L_PAD), jnp.float32)
    w3_f = w3_f.at[:, :L_DIM].set(w3[:, :L_DIM])
    w3_f = w3_f.at[:, L_PAD:L_PAD + L_DIM].set(w3[:, L_DIM:])
    b3_f = jnp.zeros((1, 2 * L_PAD), jnp.float32)
    b3_f = b3_f.at[0, :L_DIM].set(b3[:L_DIM])
    b3_f = b3_f.at[0, L_PAD:L_PAD + L_DIM].set(b3[L_DIM:])

    return [
        pad_w(w1, F_PAD, H1_PAD),  pad_b(b1, H1_PAD),
        pad_w(w2, H1_PAD, H2),     pad_b(b2, H2),
        w3_f.astype(jnp.bfloat16), b3_f,
        pad_w(w4, L_PAD, H2),      pad_b(b4, H2),
        pad_w(w5, H2, F_PAD),      pad_b(b5, F_PAD),
        pad_w(w6, F_PAD, F_PAD),   pad_b(b6, F_PAD),
    ]


def vae_reference(x, eps, params):
    """Pure-JAX reference with the same bf16-weight / f32-accumulate numerics."""
    B = x.shape[0]

    def lin(h, w, b):
        return jnp.dot(h.astype(jnp.bfloat16), w.astype(jnp.bfloat16),
                       preferred_element_type=jnp.float32) + b

    (w1, b1), (w2, b2), (w3, b3), (w4, b4), (w5, b5), (w6, b6) = params
    h = jnp.maximum(lin(x, w1, b1), 0.0)
    h = jnp.maximum(lin(h, w2, b2), 0.0)
    dist = lin(h, w3, b3)
    mu, logvar = dist[:, :L_DIM], dist[:, L_DIM:]
    std = jnp.exp(0.5 * logvar)
    z = mu + std * eps
    d = jnp.maximum(lin(z, w4, b4), 0.0)
    d = jnp.maximum(lin(d, w5, b5), 0.0)
    xr = lin(d, w6, b6)
    bce = jnp.maximum(xr, 0.0) - xr * x + jnp.log1p(jnp.exp(-jnp.abs(xr)))
    recon = jnp.sum(bce) / B
    klds = -0.5 * (1.0 + logvar - mu * mu - jnp.exp(logvar))
    kl = jnp.sum(klds) / B
    return recon, jnp.reshape(kl, (1,))


if __name__ == "__main__":
    # B not a multiple of block_b: exercises row masking, multi-block accumulation,
    # the dual-core split, and a fully padded trailing block.
    B = 1100
    key = jax.random.PRNGKey(0)
    k_x, k_eps, k_params = jax.random.split(key, 3)

    x = jax.random.uniform(k_x, (B, INPUT_SIZE), dtype=jnp.float32)   # data in [0,1]
    eps = jax.random.normal(k_eps, (B, L_DIM), dtype=jnp.float32)     # reparam noise
    params = init_params(k_params)
    prepared = prepare_params(params)

    fwd = jax.jit(vae_neural_forward)
    recon_loss, kl_loss = fwd(x, eps, prepared)
    jax.block_until_ready((recon_loss, kl_loss))

    recon_ref, kl_ref = jax.jit(vae_reference)(x, eps, params)

    assert recon_loss.shape == ()
    assert kl_loss.shape == (1,)
    assert jnp.isfinite(recon_loss) and jnp.all(jnp.isfinite(kl_loss))
    assert jnp.allclose(recon_loss, recon_ref, rtol=5e-3, atol=1e-2), (recon_loss, recon_ref)
    assert jnp.allclose(kl_loss, kl_ref, rtol=5e-3, atol=1e-2), (kl_loss, kl_ref)
    print("KERNEL_OK")
</pallas_src>

<mosaic_0001>
module attributes {stable_mosaic.version = 11 : i64} {
  func.func @_vae_kernel(%arg0: i32, %arg1: i32, %arg2: memref<512x256xf32, #tpu.memory_space<vmem>>, %arg3: memref<512x128xf32, #tpu.memory_space<vmem>>, %arg4: memref<256x256xbf16, #tpu.memory_space<vmem>>, %arg5: memref<1x256xf32, #tpu.memory_space<vmem>>, %arg6: memref<256x128xbf16, #tpu.memory_space<vmem>>, %arg7: memref<1x128xf32, #tpu.memory_space<vmem>>, %arg8: memref<128x256xbf16, #tpu.memory_space<vmem>>, %arg9: memref<1x256xf32, #tpu.memory_space<vmem>>, %arg10: memref<128x128xbf16, #tpu.memory_space<vmem>>, %arg11: memref<1x128xf32, #tpu.memory_space<vmem>>, %arg12: memref<128x256xbf16, #tpu.memory_space<vmem>>, %arg13: memref<1x256xf32, #tpu.memory_space<vmem>>, %arg14: memref<256x256xbf16, #tpu.memory_space<vmem>>, %arg15: memref<1x256xf32, #tpu.memory_space<vmem>>, %arg16: memref<1x1x1xf32, #tpu.memory_space<vmem>>, %arg17: memref<1x1x1xf32, #tpu.memory_space<vmem>>, %arg18: memref<1x256xf32, #tpu.memory_space<vmem>>, %arg19: memref<1x128xf32, #tpu.memory_space<vmem>>) attributes {dimension_semantics = [#tpu.dimension_semantics<parallel>, #tpu.dimension_semantics<arbitrary>], iteration_bounds = array<i64: 2, 2>, scalar_prefetch = 0 : i64, scratch_operands = 2 : i64, tpu.core_type = #tpu.core_type<tc>, window_params = [{transform_indices = @transform_0, window_bounds = array<i64: 512, 256>}, {transform_indices = @transform_1, window_bounds = array<i64: 512, 128>}, {pipeline_mode = #tpu.pipeline_mode<synchronous>, transform_indices = @transform_2, window_bounds = array<i64: 256, 256>}, {pipeline_mode = #tpu.pipeline_mode<synchronous>, transform_indices = @transform_3, window_bounds = array<i64: 1, 256>}, {pipeline_mode = #tpu.pipeline_mode<synchronous>, transform_indices = @transform_4, window_bounds = array<i64: 256, 128>}, {pipeline_mode = #tpu.pipeline_mode<synchronous>, transform_indices = @transform_5, window_bounds = array<i64: 1, 128>}, {pipeline_mode = #tpu.pipeline_mode<synchronous>, transform_indices = @transform_6, window_bounds = array<i64: 128, 256>}, {pipeline_mode = #tpu.pipeline_mode<synchronous>, transform_indices = @transform_7, window_bounds = array<i64: 1, 256>}, {pipeline_mode = #tpu.pipeline_mode<synchronous>, transform_indices = @transform_8, window_bounds = array<i64: 128, 128>}, {pipeline_mode = #tpu.pipeline_mode<synchronous>, transform_indices = @transform_9, window_bounds = array<i64: 1, 128>}, {pipeline_mode = #tpu.pipeline_mode<synchronous>, transform_indices = @transform_10, window_bounds = array<i64: 128, 256>}, {pipeline_mode = #tpu.pipeline_mode<synchronous>, transform_indices = @transform_11, window_bounds = array<i64: 1, 256>}, {pipeline_mode = #tpu.pipeline_mode<synchronous>, transform_indices = @transform_12, window_bounds = array<i64: 256, 256>}, {pipeline_mode = #tpu.pipeline_mode<synchronous>, transform_indices = @transform_13, window_bounds = array<i64: 1, 256>}, {transform_indices = @transform_14, window_bounds = array<i64: 1, 1, 1>}, {transform_indices = @transform_15, window_bounds = array<i64: 1, 1, 1>}]} {
    %c0_i32 = arith.constant 0 : i32
    %0 = arith.cmpi eq, %arg1, %c0_i32 : i32
    %1 = arith.extui %0 : i1 to i32
    %c0_i32_0 = arith.constant 0 : i32
    %2 = arith.cmpi ne, %1, %c0_i32_0 : i32
    scf.if %2 {
      %cst_55 = arith.constant 0.000000e+00 : f32
      %103 = vector.broadcast %cst_55 : f32 to vector<1x256xf32>
      %c0_56 = arith.constant 0 : index
      %c0_57 = arith.constant 0 : index
      %104 = vector.load %arg18[%c0_56, %c0_57] : memref<1x256xf32, #tpu.memory_space<vmem>>, vector<1x256xf32>
      tpu.vector_store %arg18[%c0_56, %c0_57], %103 {strides = array<i32>} : memref<1x256xf32, #tpu.memory_space<vmem>>, vector<1x256xf32>,
      %cst_58 = arith.constant 0.000000e+00 : f32
      %105 = vector.broadcast %cst_58 : f32 to vector<1x128xf32>
      %c0_59 = arith.constant 0 : index
      %c0_60 = arith.constant 0 : index
      %106 = vector.load %arg19[%c0_59, %c0_60] : memref<1x128xf32, #tpu.memory_space<vmem>>, vector<1x128xf32>
      tpu.vector_store %arg19[%c0_59, %c0_60], %105 {strides = array<i32>} : memref<1x128xf32, #tpu.memory_space<vmem>>, vector<1x128xf32>,
    } else {
    }
    %c0 = arith.constant 0 : index
    %c0_1 = arith.constant 0 : index
    %3 = vector.load %arg2[%c0, %c0_1] : memref<512x256xf32, #tpu.memory_space<vmem>>, vector<512x256xf32>
    %4 = arith.truncf %3 : vector<512x256xf32> to vector<512x256xbf16>
    %c0_2 = arith.constant 0 : index
    %c0_3 = arith.constant 0 : index
    %5 = vector.load %arg4[%c0_2, %c0_3] : memref<256x256xbf16, #tpu.memory_space<vmem>>, vector<256x256xbf16>
    %cst = arith.constant dense<0.000000e+00> : vector<512x256xf32>
    %6 = tpu.matmul %4, %5, %cst {dimension_numbers = #tpu.dot_dimension_numbers<[1], [0], [0], [1], [0, 0, 1, 1], [], []>} : vector<512x256xbf16>, vector<256x256xbf16>, vector<512x256xf32> -> vector<512x256xf32>
    %c0_4 = arith.constant 0 : index
    %c0_5 = arith.constant 0 : index
    %7 = vector.load %arg5[%c0_4, %c0_5] : memref<1x256xf32, #tpu.memory_space<vmem>>, vector<1x256xf32>
    %8 = vector.broadcast %7 : vector<1x256xf32> to vector<512x256xf32>
    %9 = arith.addf %6, %8 : vector<512x256xf32>
    %cst_6 = arith.constant 0.000000e+00 : f32
    %10 = vector.broadcast %cst_6 : f32 to vector<512x256xf32>
    %11 = arith.maximumf %9, %10 : vector<512x256xf32>
    %12 = arith.truncf %11 : vector<512x256xf32> to vector<512x256xbf16>
    %c0_7 = arith.constant 0 : index
    %c0_8 = arith.constant 0 : index
    %13 = vector.load %arg6[%c0_7, %c0_8] : memref<256x128xbf16, #tpu.memory_space<vmem>>, vector<256x128xbf16>
    %cst_9 = arith.constant dense<0.000000e+00> : vector<512x128xf32>
    %14 = tpu.matmul %12, %13, %cst_9 {dimension_numbers = #tpu.dot_dimension_numbers<[1], [0], [0], [1], [0, 0, 1, 1], [], []>} : vector<512x256xbf16>, vector<256x128xbf16>, vector<512x128xf32> -> vector<512x128xf32>
    %c0_10 = arith.constant 0 : index
    %c0_11 = arith.constant 0 : index
    %15 = vector.load %arg7[%c0_10, %c0_11] : memref<1x128xf32, #tpu.memory_space<vmem>>, vector<1x128xf32>
    %16 = vector.broadcast %15 : vector<1x128xf32> to vector<512x128xf32>
    %17 = arith.addf %14, %16 : vector<512x128xf32>
    %cst_12 = arith.constant 0.000000e+00 : f32
    %18 = vector.broadcast %cst_12 : f32 to vector<512x128xf32>
    %19 = arith.maximumf %17, %18 : vector<512x128xf32>
    %20 = arith.truncf %19 : vector<512x128xf32> to vector<512x128xbf16>
    %c0_13 = arith.constant 0 : index
    %c0_14 = arith.constant 0 : index
    %21 = vector.load %arg8[%c0_13, %c0_14] : memref<128x256xbf16, #tpu.memory_space<vmem>>, vector<128x256xbf16>
    %cst_15 = arith.constant dense<0.000000e+00> : vector<512x256xf32>
    %22 = tpu.matmul %20, %21, %cst_15 {dimension_numbers = #tpu.dot_dimension_numbers<[1], [0], [0], [1], [0, 0, 1, 1], [], []>} : vector<512x128xbf16>, vector<128x256xbf16>, vector<512x256xf32> -> vector<512x256xf32>
    %c0_16 = arith.constant 0 : index
    %c0_17 = arith.constant 0 : index
    %23 = vector.load %arg9[%c0_16, %c0_17] : memref<1x256xf32, #tpu.memory_space<vmem>>, vector<1x256xf32>
    %24 = vector.broadcast %23 : vector<1x256xf32> to vector<512x256xf32>
    %25 = arith.addf %22, %24 : vector<512x256xf32>
    %26 = vector.extract_strided_slice %25 {offsets = [0, 0], sizes = [512, 128], strides = [1, 1]} : vector<512x256xf32> to vector<512x128xf32>
    %27 = vector.extract_strided_slice %25 {offsets = [0, 128], sizes = [512, 128], strides = [1, 1]} : vector<512x256xf32> to vector<512x128xf32>
    %cst_18 = arith.constant 5.000000e-01 : f32
    %28 = vector.broadcast %cst_18 : f32 to vector<512x128xf32>
    %29 = arith.mulf %28, %27 : vector<512x128xf32>
    %30 = math.exp %29 : vector<512x128xf32>
    %c0_19 = arith.constant 0 : index
    %c0_20 = arith.constant 0 : index
    %31 = vector.load %arg3[%c0_19, %c0_20] : memref<512x128xf32, #tpu.memory_space<vmem>>, vector<512x128xf32>
    %32 = arith.mulf %30, %31 : vector<512x128xf32>
    %33 = arith.addf %26, %32 : vector<512x128xf32>
    %34 = arith.truncf %33 : vector<512x128xf32> to vector<512x128xbf16>
    %c0_21 = arith.constant 0 : index
    %c0_22 = arith.constant 0 : index
    %35 = vector.load %arg10[%c0_21, %c0_22] : memref<128x128xbf16, #tpu.memory_space<vmem>>, vector<128x128xbf16>
    %cst_23 = arith.constant dense<0.000000e+00> : vector<512x128xf32>
    %36 = tpu.matmul %34, %35, %cst_23 {dimension_numbers = #tpu.dot_dimension_numbers<[1], [0], [0], [1], [0, 0, 1, 1], [], []>} : vector<512x128xbf16>, vector<128x128xbf16>, vector<512x128xf32> -> vector<512x128xf32>
    %c0_24 = arith.constant 0 : index
    %c0_25 = arith.constant 0 : index
    %37 = vector.load %arg11[%c0_24, %c0_25] : memref<1x128xf32, #tpu.memory_space<vmem>>, vector<1x128xf32>
    %38 = vector.broadcast %37 : vector<1x128xf32> to vector<512x128xf32>
    %39 = arith.addf %36, %38 : vector<512x128xf32>
    %cst_26 = arith.constant 0.000000e+00 : f32
    %40 = vector.broadcast %cst_26 : f32 to vector<512x128xf32>
    %41 = arith.maximumf %39, %40 : vector<512x128xf32>
    %42 = arith.truncf %41 : vector<512x128xf32> to vector<512x128xbf16>
    %c0_27 = arith.constant 0 : index
    %c0_28 = arith.constant 0 : index
    %43 = vector.load %arg12[%c0_27, %c0_28] : memref<128x256xbf16, #tpu.memory_space<vmem>>, vector<128x256xbf16>
    %cst_29 = arith.constant dense<0.000000e+00> : vector<512x256xf32>
    %44 = tpu.matmul %42, %43, %cst_29 {dimension_numbers = #tpu.dot_dimension_numbers<[1], [0], [0], [1], [0, 0, 1, 1], [], []>} : vector<512x128xbf16>, vector<128x256xbf16>, vector<512x256xf32> -> vector<512x256xf32>
    %c0_30 = arith.constant 0 : index
    %c0_31 = arith.constant 0 : index
    %45 = vector.load %arg13[%c0_30, %c0_31] : memref<1x256xf32, #tpu.memory_space<vmem>>, vector<1x256xf32>
    %46 = vector.broadcast %45 : vector<1x256xf32> to vector<512x256xf32>
    %47 = arith.addf %44, %46 : vector<512x256xf32>
    %cst_32 = arith.constant 0.000000e+00 : f32
    %48 = vector.broadcast %cst_32 : f32 to vector<512x256xf32>
    %49 = arith.maximumf %47, %48 : vector<512x256xf32>
    %50 = arith.truncf %49 : vector<512x256xf32> to vector<512x256xbf16>
    %c0_33 = arith.constant 0 : index
    %c0_34 = arith.constant 0 : index
    %51 = vector.load %arg14[%c0_33, %c0_34] : memref<256x256xbf16, #tpu.memory_space<vmem>>, vector<256x256xbf16>
    %cst_35 = arith.constant dense<0.000000e+00> : vector<512x256xf32>
    %52 = tpu.matmul %50, %51, %cst_35 {dimension_numbers = #tpu.dot_dimension_numbers<[1], [0], [0], [1], [0, 0, 1, 1], [], []>} : vector<512x256xbf16>, vector<256x256xbf16>, vector<512x256xf32> -> vector<512x256xf32>
    %c0_36 = arith.constant 0 : index
    %c0_37 = arith.constant 0 : index
    %53 = vector.load %arg15[%c0_36, %c0_37] : memref<1x256xf32, #tpu.memory_space<vmem>>, vector<1x256xf32>
    %54 = vector.broadcast %53 : vector<1x256xf32> to vector<512x256xf32>
    %55 = arith.addf %52, %54 : vector<512x256xf32>
    %c2_i32 = arith.constant 2 : i32
    %56 = arith.muli %arg0, %c2_i32 : i32
    %57 = arith.addi %56, %arg1 : i32
    %c512_i32 = arith.constant 512 : i32
    %58 = arith.muli %57, %c512_i32 : i32
    %59 = tpu.iota {dimensions = array<i32: 0>} : vector<512x1xi32>
    %60 = vector.broadcast %58 : i32 to vector<512x1xi32>
    %61 = arith.addi %59, %60 : vector<512x1xi32>
    %c1100_i32 = arith.constant 1100 : i32
    %62 = vector.broadcast %c1100_i32 : i32 to vector<512x1xi32>
    %63 = arith.cmpi slt, %61, %62 : vector<512x1xi32>
    %cst_38 = arith.constant 0.000000e+00 : f32
    %64 = vector.broadcast %cst_38 : f32 to vector<512x256xf32>
    %65 = arith.maximumf %55, %64 : vector<512x256xf32>
    %66 = arith.mulf %55, %3 : vector<512x256xf32>
    %67 = arith.subf %65, %66 : vector<512x256xf32>
    %68 = math.absf %55 : vector<512x256xf32>
    %cst_39 = arith.constant 0.000000e+00 : f32
    %69 = vector.broadcast %cst_39 : f32 to vector<512x256xf32>
    %70 = arith.subf %69, %68 : vector<512x256xf32>
    %71 = math.exp %70 : vector<512x256xf32>
    %72 = math.log1p %71 : vector<512x256xf32>
    %73 = arith.addf %67, %72 : vector<512x256xf32>
    %cst_40 = arith.constant 0.000000e+00 : f32
    %74 = vector.shape_cast %63 : vector<512x1xi1> to vector<512x1xi1>
    %75 = vector.broadcast %74 : vector<512x1xi1> to vector<512x256xi1>
    %76 = vector.broadcast %cst_40 : f32 to vector<512x256xf32>
    %77 = arith.select %75, %73, %76 : vector<512x256xi1>, vector<512x256xf32>
    %c0_41 = arith.constant 0 : index
    %c0_42 = arith.constant 0 : index
    %78 = vector.load %arg18[%c0_41, %c0_42] : memref<1x256xf32, #tpu.memory_space<vmem>>, vector<1x256xf32>
    %cst_43 = arith.constant dense<0.000000e+00> : vector<256xf32>
    %79 = vector.multi_reduction <add>, %77, %cst_43 [0] : vector<512x256xf32> to vector<256xf32>
    %80 = vector.shape_cast %79 : vector<256xf32> to vector<1x256xf32>
    %81 = arith.addf %78, %80 : vector<1x256xf32>
    %c0_44 = arith.constant 0 : index
    %c0_45 = arith.constant 0 : index
    %82 = vector.load %arg18[%c0_44, %c0_45] : memref<1x256xf32, #tpu.memory_space<vmem>>, vector<1x256xf32>
    tpu.vector_store %arg18[%c0_44, %c0_45], %81 {strides = array<i32>} : memref<1x256xf32, #tpu.memory_space<vmem>>, vector<1x256xf32>,
    %cst_46 = arith.constant 1.000000e+00 : f32
    %83 = vector.broadcast %cst_46 : f32 to vector<512x128xf32>
    %84 = arith.addf %83, %27 : vector<512x128xf32>
    %85 = arith.mulf %26, %26 : vector<512x128xf32>
    %86 = arith.subf %84, %85 : vector<512x128xf32>
    %87 = arith.mulf %30, %30 : vector<512x128xf32>
    %88 = arith.subf %86, %87 : vector<512x128xf32>
    %cst_47 = arith.constant -5.000000e-01 : f32
    %89 = vector.broadcast %cst_47 : f32 to vector<512x128xf32>
    %90 = arith.mulf %89, %88 : vector<512x128xf32>
    %cst_48 = arith.constant 0.000000e+00 : f32
    %91 = vector.shape_cast %63 : vector<512x1xi1> to vector<512x1xi1>
    %92 = vector.broadcast %91 : vector<512x1xi1> to vector<512x128xi1>
    %93 = vector.broadcast %cst_48 : f32 to vector<512x128xf32>
    %94 = arith.select %92, %90, %93 : vector<512x128xi1>, vector<512x128xf32>
    %c0_49 = arith.constant 0 : index
    %c0_50 = arith.constant 0 : index
    %95 = vector.load %arg19[%c0_49, %c0_50] : memref<1x128xf32, #tpu.memory_space<vmem>>, vector<1x128xf32>
    %cst_51 = arith.constant dense<0.000000e+00> : vector<128xf32>
    %96 = vector.multi_reduction <add>, %94, %cst_51 [0] : vector<512x128xf32> to vector<128xf32>
    %97 = vector.shape_cast %96 : vector<128xf32> to vector<1x128xf32>
    %98 = arith.addf %95, %97 : vector<1x128xf32>
    %c0_52 = arith.constant 0 : index
    %c0_53 = arith.constant 0 : index
    %99 = vector.load %arg19[%c0_52, %c0_53] : memref<1x128xf32, #tpu.memory_space<vmem>>, vector<1x128xf32>
    tpu.vector_store %arg19[%c0_52, %c0_53], %98 {strides = array<i32>} : memref<1x128xf32, #tpu.memory_space<vmem>>, vector<1x128xf32>,
    %c1_i32 = arith.constant 1 : i32
    %100 = arith.cmpi eq, %arg1, %c1_i32 : i32
    %101 = arith.extui %100 : i1 to i32
    %c0_i32_54 = arith.constant 0 : i32
    %102 = arith.cmpi ne, %101, %c0_i32_54 : i32
    scf.if %102 {
      %c0_55 = arith.constant 0 : index
      %c0_56 = arith.constant 0 : index
      %103 = vector.load %arg18[%c0_55, %c0_56] : memref<1x256xf32, #tpu.memory_space<vmem>>, vector<1x256xf32>
      %104 = vector.shape_cast %103 : vector<1x256xf32> to vector<1x1x256xf32>
      %cst_57 = arith.constant dense<0.000000e+00> : vector<1xf32>
      %105 = vector.multi_reduction <add>, %104, %cst_57 [1, 2] : vector<1x1x256xf32> to vector<1xf32>
      %106 = vector.shape_cast %105 : vector<1xf32> to vector<1x1x1xf32>
      %107 = vector.extract %106[0, 0, 0] : f32 from vector<1x1x1xf32>
      %108 = vector.broadcast %107 : f32 to vector<1x1x1xf32>
      %c0_58 = arith.constant 0 : index
      %c0_59 = arith.constant 0 : index
      %c0_60 = arith.constant 0 : index
      %109 = vector.load %arg16[%c0_58, %c0_59, %c0_60] : memref<1x1x1xf32, #tpu.memory_space<vmem>>, vector<1x1x1xf32>
      tpu.vector_store %arg16[%c0_58, %c0_59, %c0_60], %108 {strides = array<i32>} : memref<1x1x1xf32, #tpu.memory_space<vmem>>, vector<1x1x1xf32>,
      %c0_61 = arith.constant 0 : index
      %c0_62 = arith.constant 0 : index
      %110 = vector.load %arg19[%c0_61, %c0_62] : memref<1x128xf32, #tpu.memory_space<vmem>>, vector<1x128xf32>
      %111 = vector.shape_cast %110 : vector<1x128xf32> to vector<1x1x128xf32>
      %cst_63 = arith.constant dense<0.000000e+00> : vector<1xf32>
      %112 = vector.multi_reduction <add>, %111, %cst_63 [1, 2] : vector<1x1x128xf32> to vector<1xf32>
      %113 = vector.shape_cast %112 : vector<1xf32> to vector<1x1x1xf32>
      %114 = vector.extract %113[0, 0, 0] : f32 from vector<1x1x1xf32>
      %115 = vector.broadcast %114 : f32 to vector<1x1x1xf32>
      %c0_64 = arith.constant 0 : index
      %c0_65 = arith.constant 0 : index
      %c0_66 = arith.constant 0 : index
      %116 = vector.load %arg17[%c0_64, %c0_65, %c0_66] : memref<1x1x1xf32, #tpu.memory_space<vmem>>, vector<1x1x1xf32>
      tpu.vector_store %arg17[%c0_64, %c0_65, %c0_66], %115 {strides = array<i32>} : memref<1x1x1xf32, #tpu.memory_space<vmem>>, vector<1x1x1xf32>,
    } else {
    }
    return
  }
  func.func @transform_0(%arg0: i32, %arg1: i32) -> (i32, i32) {
    %c2_i32 = arith.constant 2 : i32
    %0 = arith.muli %arg0, %c2_i32 : i32
    %1 = arith.addi %0, %arg1 : i32
    %c0_i32 = arith.constant 0 : i32
    %c0_i32_0 = arith.constant 0 : i32
    return %1, %c0_i32 : i32, i32
  }
  func.func @transform_1(%arg0: i32, %arg1: i32) -> (i32, i32) {
    %c2_i32 = arith.constant 2 : i32
    %0 = arith.muli %arg0, %c2_i32 : i32
    %1 = arith.addi %0, %arg1 : i32
    %c0_i32 = arith.constant 0 : i32
    %c0_i32_0 = arith.constant 0 : i32
    return %1, %c0_i32 : i32, i32
  }
  func.func @transform_2(%arg0: i32, %arg1: i32) -> (i32, i32) {
    %c0_i32 = arith.constant 0 : i32
    %c0_i32_0 = arith.constant 0 : i32
    %c0_i32_1 = arith.constant 0 : i32
    return %c0_i32, %c0_i32_0 : i32, i32
  }
  func.func @transform_3(%arg0: i32, %arg1: i32) -> (i32, i32) {
    %c0_i32 = arith.constant 0 : i32
    %c0_i32_0 = arith.constant 0 : i32
    %c0_i32_1 = arith.constant 0 : i32
    return %c0_i32, %c0_i32_0 : i32, i32
  }
  func.func @transform_4(%arg0: i32, %arg1: i32) -> (i32, i32) {
    %c0_i32 = arith.constant 0 : i32
    %c0_i32_0 = arith.constant 0 : i32
    %c0_i32_1 = arith.constant 0 : i32
    return %c0_i32, %c0_i32_0 : i32, i32
  }
  func.func @transform_5(%arg0: i32, %arg1: i32) -> (i32, i32) {
    %c0_i32 = arith.constant 0 : i32
    %c0_i32_0 = arith.constant 0 : i32
    %c0_i32_1 = arith.constant 0 : i32
    return %c0_i32, %c0_i32_0 : i32, i32
  }
  func.func @transform_6(%arg0: i32, %arg1: i32) -> (i32, i32) {
    %c0_i32 = arith.constant 0 : i32
    %c0_i32_0 = arith.constant 0 : i32
    %c0_i32_1 = arith.constant 0 : i32
    return %c0_i32, %c0_i32_0 : i32, i32
  }
  func.func @transform_7(%arg0: i32, %arg1: i32) -> (i32, i32) {
    %c0_i32 = arith.constant 0 : i32
    %c0_i32_0 = arith.constant 0 : i32
    %c0_i32_1 = arith.constant 0 : i32
    return %c0_i32, %c0_i32_0 : i32, i32
  }
  func.func @transform_8(%arg0: i32, %arg1: i32) -> (i32, i32) {
    %c0_i32 = arith.constant 0 : i32
    %c0_i32_0 = arith.constant 0 : i32
    %c0_i32_1 = arith.constant 0 : i32
    return %c0_i32, %c0_i32_0 : i32, i32
  }
  func.func @transform_9(%arg0: i32, %arg1: i32) -> (i32, i32) {
    %c0_i32 = arith.constant 0 : i32
    %c0_i32_0 = arith.constant 0 : i32
    %c0_i32_1 = arith.constant 0 : i32
    return %c0_i32, %c0_i32_0 : i32, i32
  }
  func.func @transform_10(%arg0: i32, %arg1: i32) -> (i32, i32) {
    %c0_i32 = arith.constant 0 : i32
    %c0_i32_0 = arith.constant 0 : i32
    %c0_i32_1 = arith.constant 0 : i32
    return %c0_i32, %c0_i32_0 : i32, i32
  }
  func.func @transform_11(%arg0: i32, %arg1: i32) -> (i32, i32) {
    %c0_i32 = arith.constant 0 : i32
    %c0_i32_0 = arith.constant 0 : i32
    %c0_i32_1 = arith.constant 0 : i32
    return %c0_i32, %c0_i32_0 : i32, i32
  }
  func.func @transform_12(%arg0: i32, %arg1: i32) -> (i32, i32) {
    %c0_i32 = arith.constant 0 : i32
    %c0_i32_0 = arith.constant 0 : i32
    %c0_i32_1 = arith.constant 0 : i32
    return %c0_i32, %c0_i32_0 : i32, i32
  }
  func.func @transform_13(%arg0: i32, %arg1: i32) -> (i32, i32) {
    %c0_i32 = arith.constant 0 : i32
    %c0_i32_0 = arith.constant 0 : i32
    %c0_i32_1 = arith.constant 0 : i32
    return %c0_i32, %c0_i32_0 : i32, i32
  }
  func.func @transform_14(%arg0: i32, %arg1: i32) -> (i32, i32, i32) {
    %c0_i32 = arith.constant 0 : i32
    %c0_i32_0 = arith.constant 0 : i32
    %c0_i32_1 = arith.constant 0 : i32
    return %arg0, %c0_i32, %c0_i32_0 : i32, i32, i32
  }
  func.func @transform_15(%arg0: i32, %arg1: i32) -> (i32, i32, i32) {
    %c0_i32 = arith.constant 0 : i32
    %c0_i32_0 = arith.constant 0 : i32
    %c0_i32_1 = arith.constant 0 : i32
    return %arg0, %c0_i32, %c0_i32_0 : i32, i32, i32
  }
}

</mosaic_0001>

<bundles_post_ra>
// kernel: vae_neural_forward.1
= control target key start
LH: loop header
LB: loop body
LE: loop exit
PB: predicated region body
PF: predicated region fallthrough
CT: control target
= control target key end

     0   :  { %s9438_s18 = smov 0   ;;  %s9440_s19 = smov 0   ;;  %s15380_s0 = inlined_call_operand.vmem [shape: f32[2048,256], index: 0, kind: input, shape index: {}]   ;;  %s15381_s1 = inlined_call_operand.vmem [shape: f32[2048,128], index: 1, kind: input, shape index: {}]   ;;  %s15382_s2 = inlined_call_operand.vmem [shape: bf16[256,256], index: 2, kind: input, shape index: {}]   ;;  %s15383_s3 = inlined_call_operand.vmem [shape: f32[1,256], index: 3, kind: input, shape index: {}]   ;;  %s15384_s4 = inlined_call_operand.vmem [shape: bf16[256,128], index: 4, kind: input, shape index: {}]   ;;  %s15385_s5 = inlined_call_operand.vmem [shape: f32[1,128], index: 5, kind: input, shape index: {}]   ;;  %s15386_s6 = inlined_call_operand.vmem [shape: bf16[128,256], index: 6, kind: input, shape index: {}]   ;;  %s15387_s7 = inlined_call_operand.vmem [shape: f32[1,256], index: 7, kind: input, shape index: {}]   ;;  %s15388_s8 = inlined_call_operand.vmem [shape: bf16[128,128], index: 8, kind: input, shape index: {}]   ;;  %s15389_s9 = inlined_call_operand.vmem [shape: f32[1,128], index: 9, kind: input, shape index: {}]   ;;  %s15390_s10 = inlined_call_operand.vmem [shape: bf16[128,256], index: 10, kind: input, shape index: {}]   ;;  %s15391_s11 = inlined_call_operand.vmem [shape: f32[1,256], index: 11, kind: input, shape index: {}]   ;;  %s15392_s12 = inlined_call_operand.vmem [shape: bf16[256,256], index: 12, kind: input, shape index: {}]   ;;  %s15393_s13 = inlined_call_operand.vmem [shape: f32[1,256], index: 13, kind: input, shape index: {}]   ;;  %s15394_s14 = inlined_call_operand.vmem [shape: f32[2,1,1], index: 14, kind: output, shape index: {0}]   ;;  %s15395_s15 = inlined_call_operand.vmem [shape: f32[2,1,1], index: 15, kind: output, shape index: {1}]  }
   0x1   :  { %15559 = sst [smem:[#allocation60_spill]] %s15389_s9  ;;  %s9442_s20 = smov 0  }
   0x2   :  { %15560 = sst [smem:[#allocation61_spill]] %s15391_s11  ;;  %s9444_s21 = smov 0  }
   0x3   :  { %15561 = sst [smem:[#allocation62_spill]] %s15393_s13  ;;  %s9446_s22 = smov 0  }
   0x4 LB: > { %15562 = sst [smem:[#allocation4_spill]] %s9345_s20  ;;  %s35_s23 = sadd.s32 1, %s9345_s20  ;;  %s9353_s22 = sphi %s9446_s22, %s26_s22   ;;  %s9349_s21 = sphi %s9444_s21, %s16054_s21   ;;  %s9345_s20 = sphi %s9442_s20, %s16053_s20   ;;  %s9341_s19 = sphi %s9440_s19, %s16052_s19   ;;  %s9337_s18 = sphi %s9438_s18, %s16051_s18  }
   0x5   : > { %15563 = sst [smem:[#allocation5_spill]] %s9349_s21  ;;  %s38_s24 = sadd.s32 1, %s9349_s21 }
   0x6   : > { %15564 = sst [smem:[#allocation6_spill]] %s9353_s22  ;;  %p36_p0 = scmp.ge.s32.totalorder %s35_s23, 2 }
   0x7   : > { %p8042_p1 = scmp.ge.s32.totalorder %s9353_s22, 1  ;;  %p481_p2 = scmp.lt.s32.totalorder %s9353_s22, 5 }
   0x8   : > { %s16056_s23 = smov (%p36_p0, %s35_s23), 0  ;;  %s16058_s24 = smov (!%p36_p0, %s38_s24), %s9349_s21 }
   0x9   : > { %15565 = sst [smem:[#allocation7_spill]] %s16056_s23  ;;  %p482_p3 = pnand %p8042_p1, %p481_p2 }
   0xa   : > { %p40_p4 = scmp.ge.s32.totalorder %s16058_s24, 2 }
   0xb   : > { %485 = sbr.rel (%p482_p3) target bundleno = 2323 (0x913), region = 76 }
   0xc   : > { %s16060_s24 = smov (%p40_p4, %s16058_s24), 0 }
   0xd   : > { %15566 = sst [smem:[#allocation8_spill]] %s16060_s24 }
  0x10   : > { %s8043_s25 = sshll.u32 %s9341_s19, 1  ;;  %p561_p5 = scmp.lt.s32.totalorder %s9341_s19, 1 }
  0x11   : > { %s9471_s26 = sadd.s32 %s9337_s18, %s8043_s25  ;;  %p8050_p7 = scmp.ne.s32.totalorder %s9337_s18, 0 }
  0x12   : > { %s8044_s27 = sshll.u32 %s9471_s26, 6  ;;  %s16062_s19 = smov (!%p561_p5, %s9341_s19), 1 }
  0x13   : > { %p543_p6 = scmp.lt.s32.totalorder %s8044_s27, 255  ;;  %s563_s30 = scalar_lea.vmem %s15394_s14, %s16062_s19 }
  0x14   : > { %s566_s24 = scalar_lea.vmem %s15395_s15, %s16062_s19  ;;  %571 = sbr.rel (%p8050_p7) target bundleno = 29 (0x1d), region = 80 }
  0x15   : > { %s16064_s27 = smov (!%p543_p6, %s8044_s27), 255 }
  0x16   : > { %s8178_s23 = sshll.u32 %s16064_s27, 4  ;;  %s8049_s21 = sshll.u32 %s16064_s27, 3 }
  0x17   : > { %s9487_s22 = scalar_lea.vmem %s15380_s0, %s8178_s23  ;;  %s9492_s9 = scalar_lea.vmem %s15381_s1, %s8049_s21 }
  0x19   : > { %v572_v0 = vlaneseq  ;;  %v9355_v1 = vmov 0.0  }
  0x1a   : > { %577 = vst [vmem:[#allocation3] sm:$0x1] %v9355_v1 }
  0x1b   : > { %vm574_vm0 = vcmp.lt.s32.totalorder %v572_v0, 256 }
  0x1c   : > { %576 = vst.msk [vmem:[#allocation2] sm:$0x3] %vm574_vm0, %v9355_v1 }
  0x1d PF: > { %v8378_v2 = vld [vmem:[%s15382_s2 + $0x74] ss:$8 sps:$4 sm:$0xff]   ;;  %v8380_v3 = vld [vmem:[%s15382_s2 + $0x70] ss:$8 sps:$4 sm:$0xff]   ;;  %v8381_v4 = vld [vmem:[%s15382_s2 + $0x64] ss:$8 sps:$4 sm:$0xff]  }
  0x1e   : > { %974 = vmatprep.subr.bf16.mxu0 %v8378_v2  ;;  %8299 = vmatprep.subr.bf16.mxu1 %v8378_v2  ;;  %v8383_v5 = vld [vmem:[%s15382_s2 + $0x60] ss:$8 sps:$4 sm:$0xff]   ;;  %v8384_v6 = vld [vmem:[%s15382_s2 + $0x54] ss:$8 sps:$4 sm:$0xff]   ;;  %v8386_v7 = vld [vmem:[%s15382_s2 + $0x50] ss:$8 sps:$4 sm:$0xff]  }
  0x1f   : > { %975 = vmatpush1.bf16.msra.mxu0 %v8380_v3  ;;  %8315 = vmatpush1.bf16.msra.mxu1 %v8380_v3  ;;  %v8387_v8 = vld [vmem:[%s15382_s2 + $0x44] ss:$8 sps:$4 sm:$0xff]   ;;  %v8389_v9 = vld [vmem:[%s15382_s2 + $0x40] ss:$8 sps:$4 sm:$0xff]   ;;  %v8390_v10 = vld [vmem:[%s15382_s2 + $0x34] ss:$8 sps:$4 sm:$0xff]  }
  0x20   : > { %976 = vmatprep.subr.bf16.mxu0 %v8381_v4  ;;  %8300 = vmatprep.subr.bf16.mxu1 %v8381_v4  ;;  %v8392_v11 = vld [vmem:[%s15382_s2 + $0x30] ss:$8 sps:$4 sm:$0xff]   ;;  %v8393_v12 = vld [vmem:[%s15382_s2 + $0x24] ss:$8 sps:$4 sm:$0xff]   ;;  %v8395_v13 = vld [vmem:[%s15382_s2 + $0x20] ss:$8 sps:$4 sm:$0xff]  }
  0x21   : > { %v8396_v14 = vld [vmem:[%s15382_s2 + $0x14] ss:$8 sps:$4 sm:$0xff]   ;;  %v579_v15 = vld [vmem:[%s9487_s22 + $0x8] sm:$0xff]  ;;  %v8398_v18 = vld [vmem:[%s15382_s2 + $0x10] ss:$8 sps:$4 sm:$0xff]   ;;  %v15400_v59 = vmov 0  }
  0x22   : > { %v581_v16 = vld [vmem:[%s9487_s22 + $0x18] sm:$0xff]  ;;  %v8399_v19 = vld [vmem:[%s15382_s2 + $0x4] ss:$8 sps:$4 sm:$0xff]   ;;  %v8401_v20 = vld [vmem:[%s15382_s2] ss:$8 sps:$4 sm:$0xff]   ;;  %s8174_s13 = sshll.u32 %s9471_s26, 9 }
  0x23   : > { %977 = vmatpush1.bf16.msra.mxu0 %v8383_v5  ;;  %8316 = vmatpush1.bf16.msra.mxu1 %v8383_v5  ;;  %v707_v17 = vpack.c.bf16 %v581_v16, %v579_v15  ;;  %v8402_v21 = vld [vmem:[%s15382_s2 + $0xf4] ss:$8 sps:$4 sm:$0xff]   ;;  %v8404_v22 = vld [vmem:[%s15382_s2 + $0xf0] ss:$8 sps:$4 sm:$0xff]   ;;  %v8405_v23 = vld [vmem:[%s15382_s2 + $0xe4] ss:$8 sps:$4 sm:$0xff]  }
  0x24   : > { %978 = vmatprep.subr.bf16.mxu0 %v8384_v6  ;;  %8301 = vmatprep.subr.bf16.mxu1 %v8384_v6  ;;  %v8407_v24 = vld [vmem:[%s15382_s2 + $0xe0] ss:$8 sps:$4 sm:$0xff]   ;;  %v8408_v25 = vld [vmem:[%s15382_s2 + $0xd4] ss:$8 sps:$4 sm:$0xff]   ;;  %v8410_v26 = vld [vmem:[%s15382_s2 + $0xd0] ss:$8 sps:$4 sm:$0xff]  }
  0x25   : > { %1006 = vmatprep.mubr.bf16.mxu0 %v707_v17  ;;  %v8411_v27 = vld [vmem:[%s15382_s2 + $0xc4] ss:$8 sps:$4 sm:$0xff]   ;;  %v8413_v28 = vld [vmem:[%s15382_s2 + $0xc0] ss:$8 sps:$4 sm:$0xff]   ;;  %v8414_v29 = vld [vmem:[%s15382_s2 + $0xb4] ss:$8 sps:$4 sm:$0xff]  }
  0x26   : > { %v8416_v30 = vld [vmem:[%s15382_s2 + $0xb0] ss:$8 sps:$4 sm:$0xff]   ;;  %v8417_v31 = vld [vmem:[%s15382_s2 + $0xa4] ss:$8 sps:$4 sm:$0xff]   ;;  %v8419_v32 = vld [vmem:[%s15382_s2 + $0xa0] ss:$8 sps:$4 sm:$0xff]  }
  0x27   : > { %979 = vmatpush1.bf16.msra.mxu0 %v8386_v7  ;;  %8317 = vmatpush1.bf16.msra.mxu1 %v8386_v7  ;;  %v8420_v33 = vld [vmem:[%s15382_s2 + $0x94] ss:$8 sps:$4 sm:$0xff]   ;;  %v8422_v34 = vld [vmem:[%s15382_s2 + $0x90] ss:$8 sps:$4 sm:$0xff]   ;;  %v8423_v35 = vld [vmem:[%s15382_s2 + $0x84] ss:$8 sps:$4 sm:$0xff]  }
  0x28   : > { %980 = vmatprep.subr.bf16.mxu0 %v8387_v8  ;;  %8302 = vmatprep.subr.bf16.mxu1 %v8387_v8  ;;  %v8425_v36 = vld [vmem:[%s15382_s2 + $0x80] ss:$8 sps:$4 sm:$0xff]   ;;  %v580_v38 = vld [vmem:[%s9487_s22 + $0x10] sm:$0xff]  ;;  %v585_v40 = vld [vmem:[%s9487_s22 + $0x38] sm:$0xff]  ;;  %s15658_s23 = sld [smem:[#allocation60_spill]]  ;;  %p8175_p8 = scmp.ne.s32.totalorder %s9337_s18, 1 }
  0x29   : > { %v578_v37 = vld [vmem:[%s9487_s22] sm:$0xff]  ;;  %v583_v39 = vld [vmem:[%s9487_s22 + $0x28] sm:$0xff]  ;;  %v584_v44 = vld [vmem:[%s9487_s22 + $0x30] sm:$0xff]  ;;  %s15660_s28 = sld [smem:[#allocation61_spill]] }
  0x2a   : > { %v706_v41 = vpack.c.bf16 %v580_v38, %v578_v37  ;;  %v709_v42 = vpack.c.bf16 %v585_v40, %v583_v39  ;;  %v582_v43 = vld [vmem:[%s9487_s22 + $0x20] sm:$0xff]  ;;  %v587_v45 = vld [vmem:[%s9487_s22 + $0x48] sm:$0xff]  ;;  %v677_v47 = vld [vmem:[%s9487_s22 + $0x318] sm:$0xff] }
  0x2b   : > { %981 = vmatpush1.bf16.msra.mxu0 %v8389_v9  ;;  %8318 = vmatpush1.bf16.msra.mxu1 %v8389_v9  ;;  %v675_v46 = vld [vmem:[%s9487_s22 + $0x308] sm:$0xff]  ;;  %v589_v48 = vld [vmem:[%s9487_s22 + $0x58] sm:$0xff]  ;;  %v708_v50 = vpack.c.bf16 %v584_v44, %v582_v43  ;;  %v674_v52 = vld [vmem:[%s9487_s22 + $0x300] sm:$0xff] }
  0x2c   : > { %982 = vmatprep.subr.bf16.mxu0 %v8390_v10  ;;  %8303 = vmatprep.subr.bf16.mxu1 %v8390_v10  ;;  %v755_v49 = vpack.c.bf16 %v677_v47, %v675_v46  ;;  %v711_v51 = vpack.c.bf16 %v589_v48, %v587_v45  ;;  %v676_v53 = vld [vmem:[%s9487_s22 + $0x310] sm:$0xff]  ;;  %v586_v55 = vld [vmem:[%s9487_s22 + $0x40] sm:$0xff]  ;;  %v8426_v57 = vld [vmem:[%s15384_s4 + $0x38] sm:$0xff]  }
  0x2d   : > { %v754_v54 = vpack.c.bf16 %v676_v53, %v674_v52  ;;  %v588_v56 = vld [vmem:[%s9487_s22 + $0x50] sm:$0xff]  ;;  %v591_v58 = vld [vmem:[%s9487_s22 + $0x68] sm:$0xff]  ;;  %v681_v61 = vld [vmem:[%s9487_s22 + $0x338] sm:$0xff] }
  0x2e   : > { %1246 = vmatprep.mubr.bf16.mxu1 %v755_v49  ;;  %v679_v60 = vld [vmem:[%s9487_s22 + $0x328] sm:$0xff]  ;;  %v593_v62 = vld [vmem:[%s9487_s22 + $0x78] sm:$0xff]  ;;  %v710_v0 = vpack.c.bf16 %v588_v56, %v586_v55  ;;  %v678_v2 = vld [vmem:[%s9487_s22 + $0x320] sm:$0xff] }
  0x2f   : > { %983 = vmatpush1.bf16.msra.mxu0 %v8392_v11  ;;  %8319 = vmatpush1.bf16.msra.mxu1 %v8392_v11  ;;  %v757_v63 = vpack.c.bf16 %v681_v61, %v679_v60  ;;  %v713_v1 = vpack.c.bf16 %v593_v62, %v591_v58  ;;  %v680_v3 = vld [vmem:[%s9487_s22 + $0x330] sm:$0xff]  ;;  %v590_v5 = vld [vmem:[%s9487_s22 + $0x60] sm:$0xff]  ;;  %v595_v8 = vld [vmem:[%s9487_s22 + $0x88] sm:$0xff] }
  0x30   : > { %984 = vmatprep.subr.bf16.mxu0 %v8393_v12  ;;  %8304 = vmatprep.subr.bf16.mxu1 %v8393_v12  ;;  %v756_v4 = vpack.c.bf16 %v680_v3, %v678_v2  ;;  %v592_v6 = vld [vmem:[%s9487_s22 + $0x70] sm:$0xff]  ;;  %v683_v9 = vld [vmem:[%s9487_s22 + $0x348] sm:$0xff]  ;;  %v685_v10 = vld [vmem:[%s9487_s22 + $0x358] sm:$0xff] }
  0x31   : > { %v8427_v7 = vld [vmem:[%s15384_s4 + $0x30] sm:$0xff]   ;;  %v597_v11 = vld [vmem:[%s9487_s22 + $0x98] sm:$0xff]  ;;  %v8428_v12 = vld [vmem:[%s15384_s4 + $0x28] sm:$0xff]  }
  0x32   : > { %v715_v15 = vpack.c.bf16 %v597_v11, %v595_v8  ;;  %v682_v16 = vld [vmem:[%s9487_s22 + $0x340] sm:$0xff]  ;;  %v684_v17 = vld [vmem:[%s9487_s22 + $0x350] sm:$0xff]  ;;  %v693_v37 = vld [vmem:[%s9487_s22 + $0x398] sm:$0xff] }
  0x33   : > { %985 = vmatpush1.bf16.msra.mxu0 %v8395_v13  ;;  %8320 = vmatpush1.bf16.msra.mxu1 %v8395_v13  ;;  %v759_v13 = vpack.c.bf16 %v685_v10, %v683_v9  ;;  %v603_v38 = vld [vmem:[%s9487_s22 + $0xc8] sm:$0xff]  ;;  %v605_v39 = vld [vmem:[%s9487_s22 + $0xd8] sm:$0xff]  ;;  %v690_v44 = vld [vmem:[%s9487_s22 + $0x380] sm:$0xff] }
  0x34   : > { %986 = vmatprep.subr.bf16.mxu0 %v8396_v14  ;;  %8305 = vmatprep.subr.bf16.mxu1 %v8396_v14  ;;  %v712_v14 = vpack.c.bf16 %v592_v6, %v590_v5  ;;  %v8432_v40 = vld [vmem:[%s15384_s4 + $0x8] sm:$0xff]   ;;  %v719_v43 = vpack.c.bf16 %v605_v39, %v603_v38  ;;  %v692_v45 = vld [vmem:[%s9487_s22 + $0x390] sm:$0xff]  ;;  %v602_v47 = vld [vmem:[%s9487_s22 + $0xc0] sm:$0xff] }
  0x35   : > { %v762_v46 = vpack.c.bf16 %v692_v45, %v690_v44  ;;  %v8433_v48 = vld [vmem:[%s15384_s4] sm:$0xff]   ;;  %v604_v49 = vld [vmem:[%s9487_s22 + $0xd0] sm:$0xff]  ;;  %v607_v52 = vld [vmem:[%s9487_s22 + $0xe8] sm:$0xff] }
  0x36   : > { %v609_v53 = vld [vmem:[%s9487_s22 + $0xf8] sm:$0xff]  ;;  %v718_v56 = vpack.c.bf16 %v604_v49, %v602_v47  ;;  %v694_v58 = vld [vmem:[%s9487_s22 + $0x3a0] sm:$0xff]  ;;  %v696_v60 = vld [vmem:[%s9487_s22 + $0x3b0] sm:$0xff] }
  0x37   : > { %987 = vmatpush1.bf16.msra.mxu0 %v8398_v18  ;;  %8321 = vmatpush1.bf16.msra.mxu1 %v8398_v18  ;;  %v758_v18 = vpack.c.bf16 %v684_v17, %v682_v16  ;;  %v764_v61 = vpack.c.bf16 %v696_v60, %v694_v58  ;;  %v606_v62 = vld [vmem:[%s9487_s22 + $0xe0] sm:$0xff]  ;;  %v701_v2 = vld [vmem:[%s9487_s22 + $0x3d8] sm:$0xff]  ;;  %v611_v3 = vld [vmem:[%s9487_s22 + $0x108] sm:$0xff] }
  0x38   : > { %988 = vmatprep.subr.bf16.mxu0 %v8399_v19  ;;  %8306 = vmatprep.subr.bf16.mxu1 %v8399_v19  ;;  %v594_v19 = vld [vmem:[%s9487_s22 + $0x80] sm:$0xff]  ;;  %v8436_v5 = vld [vmem:[%s15384_s4 + $0x68] sm:$0xff]   ;;  %v700_v10 = vld [vmem:[%s9487_s22 + $0x3d0] sm:$0xff] }
  0x39   : > { %v698_v9 = vld [vmem:[%s9487_s22 + $0x3c0] sm:$0xff]  ;;  %v705_v16 = vld [vmem:[%s9487_s22 + $0x3f8] sm:$0xff]  ;;  %v615_v17 = vld [vmem:[%s9487_s22 + $0x128] sm:$0xff] }
  0x3a   : > { %v766_v11 = vpack.c.bf16 %v700_v10, %v698_v9  ;;  %v625_v38 = vld [vmem:[%s9487_s22 + $0x178] sm:$0xff]  ;;  %v626_v47 = vld [vmem:[%s9487_s22 + $0x180] sm:$0xff]  ;;  %v631_v49 = vld [vmem:[%s9487_s22 + $0x1a8] sm:$0xff] }
  0x3b   : > { %989 = vmatpush1.bf16.msra.mxu0 %v8401_v20  ;;  %8322 = vmatpush1.bf16.msra.mxu1 %v8401_v20  ;;  %v596_v20 = vld [vmem:[%s9487_s22 + $0x90] sm:$0xff]  ;;  %v629_v44 = vld [vmem:[%s9487_s22 + $0x198] sm:$0xff]  ;;  %v8447_v9 = vld [vmem:[%s15386_s6 + $0x64] ss:$8 sps:$4 sm:$0xff]  }
  0x3c   : > { %990 = vmatprep.subr.bf16.mxu0 %v8402_v21  ;;  %8307 = vmatprep.subr.bf16.mxu1 %v8402_v21  ;;  %v8429_v21 = vld [vmem:[%s15384_s4 + $0x20] sm:$0xff]   ;;  %v637_v58 = vld [vmem:[%s9487_s22 + $0x1d8] sm:$0xff] }
  0x3f   : > { %991 = vmatpush2.bf16.msra.mxu0 %v8404_v22  ;;  %8323 = vmatpush2.bf16.msra.mxu1 %v8404_v22  ;;  %v599_v22 = vld [vmem:[%s9487_s22 + $0xa8] sm:$0xff] }
  0x40   : > { %992 = vmatprep.subr.bf16.mxu0 %v8405_v23  ;;  %8308 = vmatprep.subr.bf16.mxu1 %v8405_v23  ;;  %v687_v23 = vld [vmem:[%s9487_s22 + $0x368] sm:$0xff] }
  0x43   : > { %993 = vmatpush2.bf16.msra.mxu0 %v8407_v24  ;;  %8324 = vmatpush2.bf16.msra.mxu1 %v8407_v24  ;;  %v689_v24 = vld [vmem:[%s9487_s22 + $0x378] sm:$0xff] }
  0x44   : > { %994 = vmatprep.subr.bf16.mxu0 %v8408_v25  ;;  %8309 = vmatprep.subr.bf16.mxu1 %v8408_v25  ;;  %v601_v25 = vld [vmem:[%s9487_s22 + $0xb8] sm:$0xff] }
  0x47   : > { %995 = vmatpush2.bf16.msra.mxu0 %v8410_v26  ;;  %8325 = vmatpush2.bf16.msra.mxu1 %v8410_v26  ;;  %v8430_v26 = vld [vmem:[%s15384_s4 + $0x18] sm:$0xff]  }
  0x48   : > { %996 = vmatprep.subr.bf16.mxu0 %v8411_v27  ;;  %8310 = vmatprep.subr.bf16.mxu1 %v8411_v27  ;;  %v761_v27 = vpack.c.bf16 %v689_v24, %v687_v23  ;;  %v702_v23 = vld [vmem:[%s9487_s22 + $0x3e0] sm:$0xff]  ;;  %v704_v24 = vld [vmem:[%s9487_s22 + $0x3f0] sm:$0xff] }
  0x4b   : > { %997 = vmatpush2.bf16.msra.mxu0 %v8413_v28  ;;  %8326 = vmatpush2.bf16.msra.mxu1 %v8413_v28  ;;  %v714_v28 = vpack.c.bf16 %v596_v20, %v594_v19  ;;  %v8438_v19 = vld [vmem:[%s15384_s4 + $0x58] sm:$0xff]  }
  0x4c   : > { %998 = vmatprep.subr.bf16.mxu0 %v8414_v29  ;;  %8311 = vmatprep.subr.bf16.mxu1 %v8414_v29  ;;  %v717_v29 = vpack.c.bf16 %v601_v25, %v599_v22  ;;  %v768_v25 = vpack.c.bf16 %v704_v24, %v702_v23  ;;  %v650_v24 = vld [vmem:[%s9487_s22 + $0x240] sm:$0xff] }
  0x4f   : > { %999 = vmatpush2.bf16.msra.mxu0 %v8416_v30  ;;  %8327 = vmatpush2.bf16.msra.mxu1 %v8416_v30  ;;  %v686_v30 = vld [vmem:[%s9487_s22 + $0x360] sm:$0xff] }
  0x50   : > { %1000 = vmatprep.subr.bf16.mxu0 %v8417_v31  ;;  %8312 = vmatprep.subr.bf16.mxu1 %v8417_v31  ;;  %v688_v31 = vld [vmem:[%s9487_s22 + $0x370] sm:$0xff] }
  0x53   : > { %1001 = vmatpush2.bf16.msra.mxu0 %v8419_v32  ;;  %8328 = vmatpush2.bf16.msra.mxu1 %v8419_v32  ;;  %v760_v32 = vpack.c.bf16 %v688_v31, %v686_v30  ;;  %v621_v30 = vld [vmem:[%s9487_s22 + $0x158] sm:$0xff] }
  0x54   : > { %1002 = vmatprep.subr.bf16.mxu0 %v8420_v33  ;;  %8313 = vmatprep.subr.bf16.mxu1 %v8420_v33  ;;  %v598_v33 = vld [vmem:[%s9487_s22 + $0xa0] sm:$0xff] }
  0x57   : > { %1003 = vmatpush2.bf16.msra.mxu0 %v8422_v34  ;;  %8329 = vmatpush2.bf16.msra.mxu1 %v8422_v34  ;;  %v8431_v34 = vld [vmem:[%s15384_s4 + $0x10] sm:$0xff]  }
  0x58   : > { %1004 = vmatprep.subr.bf16.mxu0 %v8423_v35  ;;  %8314 = vmatprep.subr.bf16.mxu1 %v8423_v35  ;;  %v600_v35 = vld [vmem:[%s9487_s22 + $0xb0] sm:$0xff] }
  0x5b   : > { %1005 = vmatpush2.bf16.msra.mxu0 %v8425_v36  ;;  %8330 = vmatpush2.bf16.msra.mxu1 %v8425_v36  ;;  %v691_v36 = vld [vmem:[%s9487_s22 + $0x388] sm:$0xff] }
  0x5c   : > { %1654 = vmatprep.subr.bf16.mxu1 %v15400_v59 }
  0x5e   : > { %1007 = vmatmul.mubr.bf16.vlgmr.msra.gmra.mxu0 %v706_v41  ;;  %1247 = vmatmul.mubr.bf16.vlgmr.msra.gmra.mxu1 %v754_v54  ;;  %v763_v41 = vpack.c.bf16 %v693_v37, %v691_v36  ;;  %v8434_v54 = vld [vmem:[%s15384_s4 + $0x78] sm:$0xff]   ;;  %v8441_v36 = vld [vmem:[%s15384_s4 + $0x40] sm:$0xff]   ;;  %v623_v37 = vld [vmem:[%s9487_s22 + $0x168] sm:$0xff] }
  0x5f   : > { %1016 = vmatprep.mubr.bf16.mxu0 %v709_v42  ;;  %1655 = vmatpush1.bf16.msra.mxu1 %v8426_v57  ;;  %v716_v42 = vpack.c.bf16 %v600_v35, %v598_v33  ;;  %v721_v57 = vpack.c.bf16 %v609_v53, %v607_v52  ;;  %v8440_v33 = vld [vmem:[%s15384_s4 + $0x48] sm:$0xff]   ;;  %v620_v35 = vld [vmem:[%s9487_s22 + $0x150] sm:$0xff] }
  0x60   : > { %1656 = vmatprep.subr.bf16.mxu1 %v15400_v59  ;;  %1256 = vmatprep.mubr.bf16.mxu1 %v757_v63  ;;  %v8435_v63 = vld [vmem:[%s15384_s4 + $0x70] sm:$0xff]  }
  0x61   : > { %v8444_v52 = vld [vmem:[%s15386_s6 + $0x74] ss:$8 sps:$4 sm:$0xff]  }
  0x62   : > { %2147 = vmatprep.subr.bf16.mxu0 %v8444_v52  ;;  %v666_v52 = vld [vmem:[%s9487_s22 + $0x2c0] sm:$0xff] }
  0x63   : > { %1657 = vmatpush1.bf16.msra.mxu1 %v8427_v7 }
  0x64   : > { %1658 = vmatprep.subr.bf16.mxu1 %v15400_v59 }
  0x66   : > { %1017 = vmatmul.mubr.bf16.gmra.mxu0 %v708_v50  ;;  %1257 = vmatmul.mubr.bf16.gmra.mxu1 %v756_v4  ;;  %v695_v50 = vld [vmem:[%s9487_s22 + $0x3a8] sm:$0xff]  ;;  %v613_v4 = vld [vmem:[%s9487_s22 + $0x118] sm:$0xff] }
  0x67   : > { %1026 = vmatprep.mubr.bf16.mxu0 %v711_v51  ;;  %1266 = vmatprep.mubr.bf16.mxu1 %v759_v13  ;;  %v697_v51 = vld [vmem:[%s9487_s22 + $0x3b8] sm:$0xff]  ;;  %v723_v8 = vpack.c.bf16 %v613_v4, %v611_v3  ;;  %v703_v13 = vld [vmem:[%s9487_s22 + $0x3e8] sm:$0xff]  ;;  %v638_v4 = vld [vmem:[%s9487_s22 + $0x1e0] sm:$0xff] }
  0x68   : > { %1659 = vmatpush1.bf16.msra.mxu1 %v8428_v12  ;;  %v765_v55 = vpack.c.bf16 %v697_v51, %v695_v50  ;;  %v8437_v12 = vld [vmem:[%s15384_s4 + $0x60] sm:$0xff]   ;;  %v769_v20 = vpack.c.bf16 %v705_v16, %v703_v13  ;;  %v633_v50 = vld [vmem:[%s9487_s22 + $0x1b8] sm:$0xff]  ;;  %v644_v13 = vld [vmem:[%s9487_s22 + $0x210] sm:$0xff] }
  0x69   : > { %1660 = vmatprep.subr.bf16.mxu1 %v15400_v59  ;;  %v8442_v51 = vld [vmem:[%s15386_s6 + $0x70] ss:$8 sps:$4 sm:$0xff]  }
  0x6a   : > { %2148 = vmatpush1.bf16.msra.mxu0 %v8442_v51 }
  0x6b   : > { %2149 = vmatprep.subr.bf16.mxu0 %v8447_v9 }
  0x6c   : > { %1661 = vmatpush1.bf16.msra.mxu1 %v8429_v21 }
  0x6d   : > { %1662 = vmatprep.subr.bf16.mxu1 %v15400_v59 }
  0x6e   : > { %1027 = vmatmul.mubr.bf16.gmra.mxu0 %v710_v0  ;;  %1267 = vmatmul.mubr.bf16.gmra.mxu1 %v758_v18  ;;  %v608_v0 = vld [vmem:[%s9487_s22 + $0xf0] sm:$0xff]  ;;  %v617_v18 = vld [vmem:[%s9487_s22 + $0x138] sm:$0xff] }
  0x6f   : > { %1036 = vmatprep.mubr.bf16.mxu0 %v713_v1  ;;  %1276 = vmatprep.mubr.bf16.mxu1 %v761_v27  ;;  %v699_v1 = vld [vmem:[%s9487_s22 + $0x3c8] sm:$0xff]  ;;  %v720_v7 = vpack.c.bf16 %v608_v0, %v606_v62  ;;  %v725_v22 = vpack.c.bf16 %v617_v18, %v615_v17  ;;  %v616_v27 = vld [vmem:[%s9487_s22 + $0x130] sm:$0xff]  ;;  %v634_v62 = vld [vmem:[%s9487_s22 + $0x1c0] sm:$0xff] }
  0x70   : > { %1663 = vmatpush1.bf16.msra.mxu1 %v8430_v26  ;;  %v767_v6 = vpack.c.bf16 %v701_v2, %v699_v1  ;;  %v614_v26 = vld [vmem:[%s9487_s22 + $0x120] sm:$0xff]  ;;  %v639_v0 = vld [vmem:[%s9487_s22 + $0x1e8] sm:$0xff]  ;;  %v641_v1 = vld [vmem:[%s9487_s22 + $0x1f8] sm:$0xff] }
  0x71   : > { %1664 = vmatprep.subr.bf16.mxu1 %v15400_v59  ;;  %v724_v31 = vpack.c.bf16 %v616_v27, %v614_v26  ;;  %v737_v3 = vpack.c.bf16 %v641_v1, %v639_v0  ;;  %v646_v18 = vld [vmem:[%s9487_s22 + $0x220] sm:$0xff]  ;;  %v655_v26 = vld [vmem:[%s9487_s22 + $0x268] sm:$0xff]  ;;  %v657_v27 = vld [vmem:[%s9487_s22 + $0x278] sm:$0xff] }
  0x72   : > { %v8454_v0 = vld [vmem:[%s15386_s6 + $0x30] ss:$8 sps:$4 sm:$0xff]   ;;  %v8456_v1 = vld [vmem:[%s15386_s6 + $0x34] ss:$8 sps:$4 sm:$0xff]  }
  0x74   : > { %1665 = vmatpush1.bf16.msra.mxu1 %v8431_v34  ;;  %v618_v34 = vld [vmem:[%s9487_s22 + $0x140] sm:$0xff] }
  0x75   : > { %1666 = vmatprep.subr.bf16.mxu1 %v15400_v59  ;;  %v726_v39 = vpack.c.bf16 %v620_v35, %v618_v34  ;;  %v659_v34 = vld [vmem:[%s9487_s22 + $0x288] sm:$0xff]  ;;  %v661_v35 = vld [vmem:[%s9487_s22 + $0x298] sm:$0xff] }
  0x76   : > { %1037 = vmatmul.mubr.bf16.gmra.mxu0 %v712_v14  ;;  %1277 = vmatmul.mubr.bf16.gmra.mxu1 %v760_v32  ;;  %v610_v14 = vld [vmem:[%s9487_s22 + $0x100] sm:$0xff] }
  0x77   : > { %1046 = vmatprep.mubr.bf16.mxu0 %v715_v15  ;;  %1286 = vmatprep.mubr.bf16.mxu1 %v763_v41  ;;  %v612_v15 = vld [vmem:[%s9487_s22 + $0x110] sm:$0xff]  ;;  %v622_v41 = vld [vmem:[%s9487_s22 + $0x160] sm:$0xff] }
  0x78   : > { %1667 = vmatpush1.bf16.msra.mxu1 %v8432_v40  ;;  %v722_v21 = vpack.c.bf16 %v612_v15, %v610_v14  ;;  %v729_v40 = vpack.c.bf16 %v625_v38, %v623_v37  ;;  %v647_v14 = vld [vmem:[%s9487_s22 + $0x228] sm:$0xff]  ;;  %v649_v15 = vld [vmem:[%s9487_s22 + $0x238] sm:$0xff]  ;;  %v747_v37 = vpack.c.bf16 %v661_v35, %v659_v34  ;;  %v658_v38 = vld [vmem:[%s9487_s22 + $0x280] sm:$0xff] }
  0x79   : > { %1668 = vmatprep.subr.bf16.mxu1 %v15400_v59  ;;  %v741_v17 = vpack.c.bf16 %v649_v15, %v647_v14 }
  0x7c   : > { %1669 = vmatpush1.bf16.msra.mxu1 %v8433_v48  ;;  %v628_v48 = vld [vmem:[%s9487_s22 + $0x190] sm:$0xff] }
  0x7d   : > { %1670 = vmatprep.subr.bf16.mxu1 %v15400_v59  ;;  %v730_v53 = vpack.c.bf16 %v628_v48, %v626_v47  ;;  %v669_v47 = vld [vmem:[%s9487_s22 + $0x2d8] sm:$0xff]  ;;  %v8451_v48 = vld [vmem:[%s15386_s6 + $0x40] ss:$8 sps:$4 sm:$0xff]  }
  0x7e   : > { %1047 = vmatmul.mubr.bf16.gmra.mxu0 %v714_v28  ;;  %1287 = vmatmul.mubr.bf16.gmra.mxu1 %v762_v46  ;;  %v8439_v28 = vld [vmem:[%s15384_s4 + $0x50] sm:$0xff]  }
  0x7f   : > { %1056 = vmatprep.mubr.bf16.mxu0 %v717_v29  ;;  %1296 = vmatprep.mubr.bf16.mxu1 %v765_v55  ;;  %v619_v29 = vld [vmem:[%s9487_s22 + $0x148] sm:$0xff]  ;;  %v630_v55 = vld [vmem:[%s9487_s22 + $0x1a0] sm:$0xff] }
  0x80   : > { %1671 = vmatpush2.bf16.msra.mxu1 %v8434_v54  ;;  %v727_v32 = vpack.c.bf16 %v621_v30, %v619_v29  ;;  %v733_v54 = vpack.c.bf16 %v633_v50, %v631_v49  ;;  %v8450_v29 = vld [vmem:[%s15386_s6 + $0x54] ss:$8 sps:$4 sm:$0xff]   ;;  %v8453_v49 = vld [vmem:[%s15386_s6 + $0x44] ss:$8 sps:$4 sm:$0xff]  }
  0x81   : > { %1672 = vmatprep.subr.bf16.mxu1 %v15400_v59 }
  0x84   : > { %1673 = vmatpush2.bf16.msra.mxu1 %v8435_v63  ;;  %v636_v63 = vld [vmem:[%s9487_s22 + $0x1d0] sm:$0xff] }
  0x85   : > { %1674 = vmatprep.subr.bf16.mxu1 %v15400_v59  ;;  %v734_v2 = vpack.c.bf16 %v636_v63, %v634_v62  ;;  %v15399_v62 = vlaneseq }
  0x86   : > { %1057 = vmatmul.mubr.bf16.gmra.mxu0 %v716_v42  ;;  %1297 = vmatmul.mubr.bf16.gmra.mxu1 %v764_v61  ;;  %v624_v42 = vld [vmem:[%s9487_s22 + $0x170] sm:$0xff] }
  0x87   : > { %1066 = vmatprep.mubr.bf16.mxu0 %v719_v43  ;;  %1306 = vmatprep.mubr.bf16.mxu1 %v767_v6  ;;  %v627_v43 = vld [vmem:[%s9487_s22 + $0x188] sm:$0xff]  ;;  %v728_v45 = vpack.c.bf16 %v624_v42, %v622_v41  ;;  %v665_v41 = vld [vmem:[%s9487_s22 + $0x2b8] sm:$0xff]  ;;  %v9809_v63 = vshrl.u32 %v15399_v62, 7 }
  0x88   : > { %1675 = vmatpush2.bf16.msra.mxu1 %v8436_v5  ;;  %v731_v46 = vpack.c.bf16 %v629_v44, %v627_v43  ;;  %v640_v5 = vld [vmem:[%s9487_s22 + $0x1f0] sm:$0xff]  ;;  %v643_v6 = vld [vmem:[%s9487_s22 + $0x208] sm:$0xff]  ;;  %v662_v44 = vld [vmem:[%s9487_s22 + $0x2a0] sm:$0xff] }
  0x89   : > { %1676 = vmatprep.subr.bf16.mxu1 %v15400_v59  ;;  %v736_v10 = vpack.c.bf16 %v640_v5, %v638_v4  ;;  %15567 = vst [vmem:[#allocation9_spill] sm:$0xff] %v9809_v63  ;;  %v802_v4 = vld [vmem:[%s15383_s3] sm:$0x3] }
  0x8c   : > { %1677 = vmatpush2.bf16.msra.mxu1 %v8437_v12  ;;  %v642_v12 = vld [vmem:[%s9487_s22 + $0x200] sm:$0xff] }
  0x8d   : > { %1678 = vmatprep.subr.bf16.mxu1 %v15400_v59  ;;  %v738_v16 = vpack.c.bf16 %v644_v13, %v642_v12 }
  0x8e   : > { %1067 = vmatmul.mubr.bf16.gmra.mxu0 %v718_v56  ;;  %1307 = vmatmul.mubr.bf16.gmra.mxu1 %v766_v11  ;;  %v632_v56 = vld [vmem:[%s9487_s22 + $0x1b0] sm:$0xff] }
  0x8f   : > { %1076 = vmatprep.mubr.bf16.mxu0 %v721_v57  ;;  %1316 = vmatprep.mubr.bf16.mxu1 %v769_v20  ;;  %v635_v57 = vld [vmem:[%s9487_s22 + $0x1c8] sm:$0xff]  ;;  %v732_v60 = vpack.c.bf16 %v632_v56, %v630_v55  ;;  %v673_v55 = vld [vmem:[%s9487_s22 + $0x2f8] sm:$0xff] }
  0x90   : > { %1679 = vmatpush2.bf16.msra.mxu1 %v8438_v19  ;;  %v735_v61 = vpack.c.bf16 %v637_v58, %v635_v57  ;;  %v648_v19 = vld [vmem:[%s9487_s22 + $0x230] sm:$0xff]  ;;  %v651_v20 = vld [vmem:[%s9487_s22 + $0x248] sm:$0xff]  ;;  %v670_v58 = vld [vmem:[%s9487_s22 + $0x2e0] sm:$0xff] }
  0x91   : > { %1680 = vmatprep.subr.bf16.mxu1 %v15400_v59 }
  0x94   : > { %1681 = vmatpush2.bf16.msra.mxu1 %v8439_v28  ;;  %v8448_v28 = vld [vmem:[%s15386_s6 + $0x50] ss:$8 sps:$4 sm:$0xff]  }
  0x95   : > { %1682 = vmatprep.subr.bf16.mxu1 %v15400_v59 }
  0x96   : > { %1077 = vmatmul.mubr.bf16.gmra.mxu0 %v720_v7  ;;  %1317 = vmatmul.mubr.bf16.gmra.mxu1 %v768_v25  ;;  %v645_v7 = vld [vmem:[%s9487_s22 + $0x218] sm:$0xff]  ;;  %v652_v25 = vld [vmem:[%s9487_s22 + $0x250] sm:$0xff] }
  0x97   : > { %1086 = vmatprep.mubr.bf16.mxu0 %v723_v8  ;;  %v8445_v8 = vld [vmem:[%s15386_s6 + $0x60] ss:$8 sps:$4 sm:$0xff]   ;;  %v739_v11 = vpack.c.bf16 %v645_v7, %v643_v6  ;;  %v742_v30 = vpack.c.bf16 %v652_v25, %v650_v24 }
  0x98   : > { %1683 = vmatpush2.bf16.msra.mxu1 %v8440_v33  ;;  %2150 = vmatpush1.bf16.msra.mxu0 %v8445_v8  ;;  %v656_v33 = vld [vmem:[%s9487_s22 + $0x270] sm:$0xff] }
  0x99   : > { %1684 = vmatprep.subr.bf16.mxu1 %v15400_v59  ;;  %2151 = vmatprep.subr.bf16.mxu0 %v8450_v29 }
  0x9c   : > { %1685 = vmatpush2.bf16.msra.mxu1 %v8441_v36  ;;  %2152 = vmatpush1.bf16.msra.mxu0 %v8448_v28 }
  0x9d   : > { %2153 = vmatprep.subr.bf16.mxu0 %v8453_v49 }
  0x9e   : > { %1087 = vmatmul.mubr.bf16.gmra.mxu0 %v722_v21  ;;  %v653_v21 = vld [vmem:[%s9487_s22 + $0x258] sm:$0xff] }
  0x9f   : > { %1096 = vmatprep.mubr.bf16.mxu0 %v725_v22  ;;  %v740_v22 = vpack.c.bf16 %v648_v19, %v646_v18  ;;  %v743_v23 = vpack.c.bf16 %v653_v21, %v651_v20 }
  0xa0   : > { %2154 = vmatpush1.bf16.msra.mxu0 %v8451_v48 }
  0xa1   : > { %2155 = vmatprep.subr.bf16.mxu0 %v8456_v1 }
  0xa4   : > { %2156 = vmatpush1.bf16.msra.mxu0 %v8454_v0 }
  0xa6   : > { %1097 = vmatmul.mubr.bf16.gmra.mxu0 %v724_v31  ;;  %v745_v31 = vpack.c.bf16 %v657_v27, %v655_v26 }
  0xa7   : > { %1106 = vmatprep.mubr.bf16.mxu0 %v727_v32  ;;  %v654_v32 = vld [vmem:[%s9487_s22 + $0x260] sm:$0xff] }
  0xa8   : > { %v744_v36 = vpack.c.bf16 %v656_v33, %v654_v32 }
  0xae   : > { %1107 = vmatmul.mubr.bf16.gmra.mxu0 %v726_v39  ;;  %v660_v39 = vld [vmem:[%s9487_s22 + $0x290] sm:$0xff] }
  0xaf   : > { %1116 = vmatprep.mubr.bf16.mxu0 %v729_v40  ;;  %v663_v40 = vld [vmem:[%s9487_s22 + $0x2a8] sm:$0xff]  ;;  %v746_v42 = vpack.c.bf16 %v660_v39, %v658_v38 }
  0xb0   : > { %v749_v43 = vpack.c.bf16 %v665_v41, %v663_v40 }
  0xb6   : > { %1117 = vmatmul.mubr.bf16.gmra.mxu0 %v728_v45  ;;  %v664_v45 = vld [vmem:[%s9487_s22 + $0x2b0] sm:$0xff] }
  0xb7   : > { %1126 = vmatprep.mubr.bf16.mxu0 %v731_v46  ;;  %v667_v46 = vld [vmem:[%s9487_s22 + $0x2c8] sm:$0xff]  ;;  %v748_v50 = vpack.c.bf16 %v664_v45, %v662_v44 }
  0xb8   : > { %v751_v51 = vpack.c.bf16 %v669_v47, %v667_v46 }
  0xbe   : > { %1127 = vmatmul.mubr.bf16.gmra.mxu0 %v730_v53  ;;  %v668_v53 = vld [vmem:[%s9487_s22 + $0x2d0] sm:$0xff] }
  0xbf   : > { %1136 = vmatprep.mubr.bf16.mxu0 %v733_v54  ;;  %v671_v54 = vld [vmem:[%s9487_s22 + $0x2e8] sm:$0xff]  ;;  %v750_v56 = vpack.c.bf16 %v668_v53, %v666_v52 }
  0xc0   : > { %v753_v57 = vpack.c.bf16 %v673_v55, %v671_v54 }
  0xc6   : > { %1137 = vmatmul.mubr.bf16.gmra.mxu0 %v732_v60  ;;  %v672_v60 = vld [vmem:[%s9487_s22 + $0x2f0] sm:$0xff] }
  0xc7   : > { %1146 = vmatprep.mubr.bf16.mxu0 %v735_v61  ;;  %v752_v61 = vpack.c.bf16 %v672_v60, %v670_v58 }
  0xce   : > { %1147 = vmatmul.mubr.bf16.gmra.mxu0 %v734_v2  ;;  %v9818_v2 = vsub.s32 1, %v9809_v63 }
  0xcf   : > { %1156 = vmatprep.mubr.bf16.mxu0 %v737_v3  ;;  %v9821_v3 = vsub.s32 0, %v9809_v63 }
  0xd0   : > { %15568 = vst [vmem:[#allocation10_spill] sm:$0xff] %v9818_v2  ;;  %v9827_v6 = vrot.slane %v802_v4, %v9818_v2 }
  0xd1   : > { %15569 = vst [vmem:[#allocation11_spill] sm:$0xff] %v9821_v3  ;;  %v9830_v7 = vrot.slane %v802_v4, %v9821_v3 }
  0xd6   : > { %1157 = vmatmul.mubr.bf16.gmra.mxu0 %v736_v10 }
  0xd7   : > { %1166 = vmatprep.mubr.bf16.mxu0 %v739_v11 }
  0xde   : > { %1167 = vmatmul.mubr.bf16.gmra.mxu0 %v738_v16 }
  0xdf   : > { %1176 = vmatprep.mubr.bf16.mxu0 %v741_v17 }
  0xe6   : > { %1177 = vmatmul.mubr.bf16.gmra.mxu0 %v740_v22 }
  0xe7   : > { %1186 = vmatprep.mubr.bf16.mxu0 %v743_v23 }
  0xee   : > { %1187 = vmatmul.mubr.bf16.gmra.mxu0 %v742_v30 }
  0xef   : > { %1196 = vmatprep.mubr.bf16.mxu0 %v745_v31 }
  0xf6   : > { %1197 = vmatmul.mubr.bf16.gmra.mxu0 %v744_v36  ;;  %v8457_v36 = vld [vmem:[%s15386_s6 + $0x20] ss:$8 sps:$4 sm:$0xff]  }
  0xf7   : > { %1206 = vmatprep.mubr.bf16.mxu0 %v747_v37  ;;  %v8459_v37 = vld [vmem:[%s15386_s6 + $0x24] ss:$8 sps:$4 sm:$0xff]  }
  0xf8   : > { %2157 = vmatprep.subr.bf16.mxu0 %v8459_v37 }
  0xf9   : > { %2158 = vmatpush1.bf16.msra.mxu0 %v8457_v36 }
  0xfe   : > { %1207 = vmatmul.mubr.bf16.gmra.mxu0 %v746_v42 }
  0xff   : > { %1216 = vmatprep.mubr.bf16.mxu0 %v749_v43 }
 0x106   : > { %1217 = vmatmul.mubr.bf16.gmra.mxu0 %v748_v50 }
 0x107   : > { %1226 = vmatprep.mubr.bf16.mxu0 %v751_v51 }
 0x10e   : > { %1227 = vmatmul.mubr.bf16.gmra.mxu0 %v750_v56 }
 0x10f   : > { %1236 = vmatprep.mubr.bf16.mxu0 %v753_v57 }
 0x116   : > { %1237 = vmatmul.mubr.bf16.gmra.mxu0 %v752_v61 }
 0x117   : > { %2179 = vmatprep.mubr.bf16.mxu0 %v15400_v59 }
 0x11e   : > { %v1008_v5 = vpop.f32.mrf.mxu0 }
 0x11f   : > { %v1009_v12 = vadd.f32 %v1008_v5, %v9830_v7 }
 0x120   : > { %v1010_v8 = vpop.f32.mrf.mxu0 }
 0x121   : > { %v1011_v10 = vadd.f32 %v1010_v8, %v9827_v6  ;;  %v1327_v19 = vmax.f32 %v1009_v12, 0.0 }
 0x122   : > { %v1012_v9 = vpop.f32.mrf.mxu0 }
 0x123   : > { %v1013_v11 = vadd.f32 %v1012_v9, %v9830_v7  ;;  %v1328_v17 = vmax.f32 %v1011_v10, 0.0 }
 0x124   : > { %v1014_v13 = vpop.f32.mrf.mxu0 }
 0x125   : > { %v1015_v14 = vadd.f32 %v1014_v13, %v9827_v6  ;;  %v1329_v15 = vmax.f32 %v1013_v11, 0.0 }
 0x126   : > { %v1018_v16 = vpop.f32.mrf.mxu0 }
 0x127   : > { %v1330_v18 = vmax.f32 %v1015_v14, 0.0  ;;  %v1455_v22 = vpack.c.bf16 %v1329_v15, %v1327_v19  ;;  %v1019_v26 = vadd.f32 %v1018_v16, %v9830_v7 }
 0x128   : > { %v1020_v20 = vpop.f32.mrf.mxu0 }
 0x129   : > { %v1456_v21 = vpack.c.bf16 %v1330_v18, %v1328_v17  ;;  %v1021_v24 = vadd.f32 %v1020_v20, %v9827_v6  ;;  %v1331_v33 = vmax.f32 %v1019_v26, 0.0 }
 0x12a   : > { %v1022_v23 = vpop.f32.mrf.mxu0 }
 0x12b   : > { %v1023_v25 = vadd.f32 %v1022_v23, %v9830_v7  ;;  %1686 = vmatprep.mubr.bf16.mxu1 %v1456_v21  ;;  %v1332_v31 = vmax.f32 %v1021_v24, 0.0  ;;  %v8460_v23 = vld [vmem:[%s15386_s6 + $0x10] ss:$8 sps:$4 sm:$0xff]   ;;  %v8462_v24 = vld [vmem:[%s15386_s6 + $0x14] ss:$8 sps:$4 sm:$0xff]  }
 0x12c   : > { %v1024_v27 = vpop.f32.mrf.mxu0  ;;  %1687 = vmatmul.mubr.bf16.vlgmr.msra.gmra.mxu1 %v1455_v22  ;;  %2159 = vmatprep.subr.bf16.mxu0 %v8462_v24 }
 0x12d   : > { %v1025_v28 = vadd.f32 %v1024_v27, %v9827_v6  ;;  %v1333_v29 = vmax.f32 %v1023_v25, 0.0  ;;  %2160 = vmatpush1.bf16.msra.mxu0 %v8460_v23 }
 0x12e   : > { %v1028_v30 = vpop.f32.mrf.mxu0 }
 0x12f   : > { %v1334_v32 = vmax.f32 %v1025_v28, 0.0  ;;  %v1457_v38 = vpack.c.bf16 %v1333_v29, %v1331_v33  ;;  %v1029_v42 = vadd.f32 %v1028_v30, %v9830_v7 }
 0x130   : > { %v1030_v34 = vpop.f32.mrf.mxu0 }
 0x131   : > { %v1458_v35 = vpack.c.bf16 %v1334_v32, %v1332_v31  ;;  %v1031_v40 = vadd.f32 %v1030_v34, %v9827_v6  ;;  %v1335_v49 = vmax.f32 %v1029_v42, 0.0 }
 0x132   : > { %v1032_v39 = vpop.f32.mrf.mxu0 }
 0x133   : > { %v1033_v41 = vadd.f32 %v1032_v39, %v9830_v7  ;;  %1694 = vmatprep.mubr.bf16.mxu1 %v1458_v35  ;;  %v1336_v47 = vmax.f32 %v1031_v40, 0.0 }
 0x134   : > { %v1034_v43 = vpop.f32.mrf.mxu0  ;;  %1695 = vmatmul.mubr.bf16.gmra.mxu1 %v1457_v38 }
 0x135   : > { %v1035_v44 = vadd.f32 %v1034_v43, %v9827_v6  ;;  %v1337_v45 = vmax.f32 %v1033_v41, 0.0 }
 0x136   : > { %v1038_v46 = vpop.f32.mrf.mxu0 }
 0x137   : > { %v1338_v48 = vmax.f32 %v1035_v44, 0.0  ;;  %v1459_v52 = vpack.c.bf16 %v1337_v45, %v1335_v49  ;;  %v1039_v56 = vadd.f32 %v1038_v46, %v9830_v7 }
 0x138   : > { %v1040_v50 = vpop.f32.mrf.mxu0 }
 0x139   : > { %v1460_v51 = vpack.c.bf16 %v1338_v48, %v1336_v47  ;;  %v1041_v54 = vadd.f32 %v1040_v50, %v9827_v6  ;;  %v1339_v4 = vmax.f32 %v1039_v56, 0.0 }
 0x13a   : > { %v1042_v53 = vpop.f32.mrf.mxu0 }
 0x13b   : > { %v1043_v55 = vadd.f32 %v1042_v53, %v9830_v7  ;;  %1702 = vmatprep.mubr.bf16.mxu1 %v1460_v51  ;;  %v1340_v0 = vmax.f32 %v1041_v54, 0.0 }
 0x13c   : > { %v1044_v57 = vpop.f32.mrf.mxu0  ;;  %1703 = vmatmul.mubr.bf16.gmra.mxu1 %v1459_v52 }
 0x13d   : > { %v1045_v58 = vadd.f32 %v1044_v57, %v9827_v6  ;;  %v1341_v60 = vmax.f32 %v1043_v55, 0.0 }
 0x13e   : > { %v1048_v61 = vpop.f32.mrf.mxu0 }
 0x13f   : > { %v1342_v1 = vmax.f32 %v1045_v58, 0.0  ;;  %v1461_v9 = vpack.c.bf16 %v1341_v60, %v1339_v4  ;;  %v1049_v13 = vadd.f32 %v1048_v61, %v9830_v7 }
 0x140   : > { %v1050_v5 = vpop.f32.mrf.mxu0 }
 0x141   : > { %v1462_v8 = vpack.c.bf16 %v1342_v1, %v1340_v0  ;;  %v1051_v11 = vadd.f32 %v1050_v5, %v9827_v6  ;;  %v1343_v20 = vmax.f32 %v1049_v13, 0.0  ;;  %v8463_v5 = vld [vmem:[%s15386_s6] ss:$8 sps:$4 sm:$0xff]  }
 0x142   : > { %v1052_v10 = vpop.f32.mrf.mxu0 }
 0x143   : > { %v1053_v12 = vadd.f32 %v1052_v10, %v9830_v7  ;;  %1710 = vmatprep.mubr.bf16.mxu1 %v1462_v8  ;;  %v1344_v18 = vmax.f32 %v1051_v11, 0.0  ;;  %v8465_v8 = vld [vmem:[%s15386_s6 + $0x4] ss:$8 sps:$4 sm:$0xff]  }
 0x144   : > { %v1054_v14 = vpop.f32.mrf.mxu0  ;;  %1711 = vmatmul.mubr.bf16.gmra.mxu1 %v1461_v9  ;;  %2161 = vmatprep.subr.bf16.mxu0 %v8465_v8 }
 0x145   : > { %v1055_v15 = vadd.f32 %v1054_v14, %v9827_v6  ;;  %v1345_v16 = vmax.f32 %v1053_v12, 0.0  ;;  %2162 = vmatpush1.bf16.msra.mxu0 %v8463_v5 }
 0x146   : > { %v1058_v17 = vpop.f32.mrf.mxu0 }
 0x147   : > { %v1346_v19 = vmax.f32 %v1055_v15, 0.0  ;;  %v1463_v25 = vpack.c.bf16 %v1345_v16, %v1343_v20  ;;  %v1059_v29 = vadd.f32 %v1058_v17, %v9830_v7 }
 0x148   : > { %v1060_v21 = vpop.f32.mrf.mxu0 }
 0x149   : > { %v1464_v22 = vpack.c.bf16 %v1346_v19, %v1344_v18  ;;  %v1061_v27 = vadd.f32 %v1060_v21, %v9827_v6  ;;  %v1347_v36 = vmax.f32 %v1059_v29, 0.0 }
 0x14a   : > { %v1062_v26 = vpop.f32.mrf.mxu0 }
 0x14b   : > { %v1063_v28 = vadd.f32 %v1062_v26, %v9830_v7  ;;  %1718 = vmatprep.mubr.bf16.mxu1 %v1464_v22  ;;  %v1348_v34 = vmax.f32 %v1061_v27, 0.0 }
 0x14c   : > { %v1064_v30 = vpop.f32.mrf.mxu0  ;;  %1719 = vmatmul.mubr.bf16.gmra.mxu1 %v1463_v25 }
 0x14d   : > { %v1065_v31 = vadd.f32 %v1064_v30, %v9827_v6  ;;  %v1349_v32 = vmax.f32 %v1063_v28, 0.0 }
 0x14e   : > { %v1068_v33 = vpop.f32.mrf.mxu0 }
 0x14f   : > { %v1350_v35 = vmax.f32 %v1065_v31, 0.0  ;;  %v1465_v39 = vpack.c.bf16 %v1349_v32, %v1347_v36  ;;  %v1069_v43 = vadd.f32 %v1068_v33, %v9830_v7 }
 0x150   : > { %v1070_v37 = vpop.f32.mrf.mxu0 }
 0x151   : > { %v1466_v38 = vpack.c.bf16 %v1350_v35, %v1348_v34  ;;  %v1071_v41 = vadd.f32 %v1070_v37, %v9827_v6  ;;  %v1351_v50 = vmax.f32 %v1069_v43, 0.0  ;;  %v9890_v35 = vpop.f32.mrf.mxu1 }
 0x152   : > { %v1072_v40 = vpop.f32.mrf.mxu0 }
 0x153   : > { %v1073_v42 = vadd.f32 %v1072_v40, %v9830_v7  ;;  %1726 = vmatprep.mubr.bf16.mxu1 %v1466_v38  ;;  %v1352_v48 = vmax.f32 %v1071_v41, 0.0  ;;  %v9892_v43 = vpop.f32.mrf.mxu1 }
 0x154   : > { %v1074_v44 = vpop.f32.mrf.mxu0  ;;  %1727 = vmatmul.mubr.bf16.gmra.mxu1 %v1465_v39 }
 0x155   : > { %v1075_v45 = vadd.f32 %v1074_v44, %v9827_v6  ;;  %v1353_v46 = vmax.f32 %v1073_v42, 0.0 }
 0x156   : > { %v1078_v47 = vpop.f32.mrf.mxu0 }
 0x157   : > { %v1354_v49 = vmax.f32 %v1075_v45, 0.0  ;;  %v1467_v53 = vpack.c.bf16 %v1353_v46, %v1351_v50  ;;  %v1079_v57 = vadd.f32 %v1078_v47, %v9830_v7 }
 0x158   : > { %v1080_v51 = vpop.f32.mrf.mxu0 }
 0x159   : > { %v1468_v52 = vpack.c.bf16 %v1354_v49, %v1352_v48  ;;  %v1081_v55 = vadd.f32 %v1080_v51, %v9827_v6  ;;  %v1355_v9 = vmax.f32 %v1079_v57, 0.0  ;;  %v9898_v51 = vpop.f32.mrf.mxu1 }
 0x15a   : > { %v1082_v54 = vpop.f32.mrf.mxu0 }
 0x15b   : > { %v1083_v56 = vadd.f32 %v1082_v54, %v9830_v7  ;;  %1734 = vmatprep.mubr.bf16.mxu1 %v1468_v52  ;;  %v1356_v1 = vmax.f32 %v1081_v55, 0.0 }
 0x15c   : > { %v1084_v58 = vpop.f32.mrf.mxu0  ;;  %1735 = vmatmul.mubr.bf16.gmra.mxu1 %v1467_v53 }
 0x15d   : > { %v1085_v60 = vadd.f32 %v1084_v58, %v9827_v6  ;;  %v1357_v61 = vmax.f32 %v1083_v56, 0.0 }
 0x15e   : > { %v1088_v0 = vpop.f32.mrf.mxu0 }
 0x15f   : > { %v1358_v4 = vmax.f32 %v1085_v60, 0.0  ;;  %v1469_v12 = vpack.c.bf16 %v1357_v61, %v1355_v9  ;;  %v1089_v16 = vadd.f32 %v1088_v0, %v9830_v7  ;;  %v9900_v60 = vpop.f32.mrf.mxu1 }
 0x160   : > { %v1090_v10 = vpop.f32.mrf.mxu0 }
 0x161   : > { %v1470_v11 = vpack.c.bf16 %v1358_v4, %v1356_v1  ;;  %v1091_v14 = vadd.f32 %v1090_v10, %v9827_v6  ;;  %v1359_v23 = vmax.f32 %v1089_v16, 0.0  ;;  %v9906_v10 = vpop.f32.mrf.mxu1 }
 0x162   : > { %v1092_v13 = vpop.f32.mrf.mxu0 }
 0x163   : > { %v1093_v15 = vadd.f32 %v1092_v13, %v9830_v7  ;;  %1742 = vmatprep.mubr.bf16.mxu1 %v1470_v11  ;;  %v1360_v21 = vmax.f32 %v1091_v14, 0.0 }
 0x164   : > { %v1094_v17 = vpop.f32.mrf.mxu0  ;;  %1743 = vmatmul.mubr.bf16.gmra.mxu1 %v1469_v12 }
 0x165   : > { %v1095_v18 = vadd.f32 %v1094_v17, %v9827_v6  ;;  %v1361_v19 = vmax.f32 %v1093_v15, 0.0 }
 0x166   : > { %v1098_v20 = vpop.f32.mrf.mxu0 }
 0x167   : > { %v1362_v22 = vmax.f32 %v1095_v18, 0.0  ;;  %v1471_v26 = vpack.c.bf16 %v1361_v19, %v1359_v23  ;;  %v1099_v30 = vadd.f32 %v1098_v20, %v9830_v7  ;;  %v9908_v18 = vpop.f32.mrf.mxu1 }
 0x168   : > { %v1100_v24 = vpop.f32.mrf.mxu0 }
 0x169   : > { %v1472_v25 = vpack.c.bf16 %v1362_v22, %v1360_v21  ;;  %v1101_v28 = vadd.f32 %v1100_v24, %v9827_v6  ;;  %v1363_v38 = vmax.f32 %v1099_v30, 0.0 }
 0x16a   : > { %v1102_v27 = vpop.f32.mrf.mxu0 }
 0x16b   : > { %v1103_v29 = vadd.f32 %v1102_v27, %v9830_v7  ;;  %1750 = vmatprep.mubr.bf16.mxu1 %v1472_v25  ;;  %v1364_v36 = vmax.f32 %v1101_v28, 0.0 }
 0x16c   : > { %v1104_v31 = vpop.f32.mrf.mxu0  ;;  %1751 = vmatmul.mubr.bf16.gmra.mxu1 %v1471_v26  ;;  %v9914_v26 = vpop.f32.mrf.mxu1 }
 0x16d   : > { %v1105_v32 = vadd.f32 %v1104_v31, %v9827_v6  ;;  %v1365_v33 = vmax.f32 %v1103_v29, 0.0 }
 0x16e   : > { %v1108_v34 = vpop.f32.mrf.mxu0 }
 0x16f   : > { %v1366_v37 = vmax.f32 %v1105_v32, 0.0  ;;  %v1473_v41 = vpack.c.bf16 %v1365_v33, %v1363_v38  ;;  %v1109_v46 = vadd.f32 %v1108_v34, %v9830_v7  ;;  %v9916_v34 = vpop.f32.mrf.mxu1 }
 0x170   : > { %v1110_v39 = vpop.f32.mrf.mxu0 }
 0x171   : > { %v1474_v40 = vpack.c.bf16 %v1366_v37, %v1364_v36  ;;  %v1111_v44 = vadd.f32 %v1110_v39, %v9827_v6  ;;  %v1367_v54 = vmax.f32 %v1109_v46, 0.0 }
 0x172   : > { %v1112_v42 = vpop.f32.mrf.mxu0 }
 0x173   : > { %v1113_v45 = vadd.f32 %v1112_v42, %v9830_v7  ;;  %1758 = vmatprep.mubr.bf16.mxu1 %v1474_v40  ;;  %v1368_v52 = vmax.f32 %v1111_v44, 0.0 }
 0x174   : > { %v1114_v47 = vpop.f32.mrf.mxu0  ;;  %1759 = vmatmul.mubr.bf16.gmra.mxu1 %v1473_v41  ;;  %v8466_v41 = vld [vmem:[%s15388_s8 + $0x38] sm:$0xff]  }
 0x175   : > { %v1115_v48 = vadd.f32 %v1114_v47, %v9827_v6  ;;  %v1369_v49 = vmax.f32 %v1113_v45, 0.0  ;;  %v9925_v45 = vpop.f32.mrf.mxu1  ;;  %8219 = vmatprep.subr.bf16.mxu1 %v8466_v41 }
 0x176   : > { %v1118_v50 = vpop.f32.mrf.mxu0  ;;  %8220 = vmatpush3.bf16.msra.mxu1 %v8466_v41 }
 0x177   : > { %v1370_v53 = vmax.f32 %v1115_v48, 0.0  ;;  %v1475_v57 = vpack.c.bf16 %v1369_v49, %v1367_v54  ;;  %v1119_v1 = vadd.f32 %v1118_v50, %v9830_v7  ;;  %v9927_v54 = vpop.f32.mrf.mxu1 }
 0x178   : > { %v1120_v55 = vpop.f32.mrf.mxu0 }
 0x179   : > { %v1476_v56 = vpack.c.bf16 %v1370_v53, %v1368_v52  ;;  %v1121_v61 = vadd.f32 %v1120_v55, %v9827_v6  ;;  %v1371_v13 = vmax.f32 %v1119_v1, 0.0 }
 0x17a   : > { %v1122_v58 = vpop.f32.mrf.mxu0 }
 0x17b   : > { %v1123_v0 = vadd.f32 %v1122_v58, %v9830_v7  ;;  %1766 = vmatprep.mubr.bf16.mxu1 %v1476_v56  ;;  %v1372_v11 = vmax.f32 %v1121_v61, 0.0 }
 0x17c   : > { %v1124_v4 = vpop.f32.mrf.mxu0  ;;  %1767 = vmatmul.mubr.bf16.gmra.mxu1 %v1475_v57 }
 0x17d   : > { %v1125_v5 = vadd.f32 %v1124_v4, %v9827_v6  ;;  %v1373_v8 = vmax.f32 %v1123_v0, 0.0  ;;  %v9933_v4 = vpop.f32.mrf.mxu1 }
 0x17e   : > { %v1128_v9 = vpop.f32.mrf.mxu0 }
 0x17f   : > { %v1374_v12 = vmax.f32 %v1125_v5, 0.0  ;;  %v1477_v16 = vpack.c.bf16 %v1373_v8, %v1371_v13  ;;  %v1129_v21 = vadd.f32 %v1128_v9, %v9830_v7 }
 0x180   : > { %v1130_v14 = vpop.f32.mrf.mxu0 }
 0x181   : > { %v1478_v15 = vpack.c.bf16 %v1374_v12, %v1372_v11  ;;  %v1131_v19 = vadd.f32 %v1130_v14, %v9827_v6  ;;  %v1375_v29 = vmax.f32 %v1129_v21, 0.0 }
 0x182   : > { %v1132_v17 = vpop.f32.mrf.mxu0 }
 0x183   : > { %v1133_v20 = vadd.f32 %v1132_v17, %v9830_v7  ;;  %1774 = vmatprep.mubr.bf16.mxu1 %v1478_v15  ;;  %v1376_v27 = vmax.f32 %v1131_v19, 0.0  ;;  %v9935_v15 = vpop.f32.mrf.mxu1 }
 0x184   : > { %v1134_v22 = vpop.f32.mrf.mxu0  ;;  %1775 = vmatmul.mubr.bf16.gmra.mxu1 %v1477_v16 }
 0x185   : > { %v1135_v23 = vadd.f32 %v1134_v22, %v9827_v6  ;;  %v1377_v24 = vmax.f32 %v1133_v20, 0.0 }
 0x186   : > { %v1138_v25 = vpop.f32.mrf.mxu0 }
 0x187   : > { %v1378_v28 = vmax.f32 %v1135_v23, 0.0  ;;  %v1479_v32 = vpack.c.bf16 %v1377_v24, %v1375_v29  ;;  %v1139_v38 = vadd.f32 %v1138_v25, %v9830_v7  ;;  %v9941_v24 = vpop.f32.mrf.mxu1 }
 0x188   : > { %v1140_v30 = vpop.f32.mrf.mxu0 }
 0x189   : > { %v1480_v31 = vpack.c.bf16 %v1378_v28, %v1376_v27  ;;  %v1141_v36 = vadd.f32 %v1140_v30, %v9827_v6  ;;  %v1379_v48 = vmax.f32 %v1139_v38, 0.0 }
 0x18a   : > { %v1142_v33 = vpop.f32.mrf.mxu0 }
 0x18b   : > { %v1143_v37 = vadd.f32 %v1142_v33, %v9830_v7  ;;  %1782 = vmatprep.mubr.bf16.mxu1 %v1480_v31  ;;  %v1380_v46 = vmax.f32 %v1141_v36, 0.0  ;;  %v9943_v33 = vpop.f32.mrf.mxu1 }
 0x18c   : > { %v1144_v39 = vpop.f32.mrf.mxu0  ;;  %1783 = vmatmul.mubr.bf16.gmra.mxu1 %v1479_v32 }
 0x18d   : > { %v1145_v40 = vadd.f32 %v1144_v39, %v9827_v6  ;;  %v1381_v42 = vmax.f32 %v1143_v37, 0.0 }
 0x18e   : > { %v1148_v44 = vpop.f32.mrf.mxu0 }
 0x18f   : > { %v1382_v47 = vmax.f32 %v1145_v40, 0.0  ;;  %v1481_v52 = vpack.c.bf16 %v1381_v42, %v1379_v48  ;;  %v1149_v57 = vadd.f32 %v1148_v44, %v9830_v7  ;;  %v9949_v44 = vpop.f32.mrf.mxu1 }
 0x190   : > { %v1150_v49 = vpop.f32.mrf.mxu0 }
 0x191   : > { %v1482_v50 = vpack.c.bf16 %v1382_v47, %v1380_v46  ;;  %v1151_v55 = vadd.f32 %v1150_v49, %v9827_v6  ;;  %v1383_v9 = vmax.f32 %v1149_v57, 0.0 }
 0x192   : > { %v1152_v53 = vpop.f32.mrf.mxu0 }
 0x193   : > { %v1153_v56 = vadd.f32 %v1152_v53, %v9830_v7  ;;  %1790 = vmatprep.mubr.bf16.mxu1 %v1482_v50  ;;  %v1384_v5 = vmax.f32 %v1151_v55, 0.0  ;;  %v9951_v55 = vpop.f32.mrf.mxu1 }
 0x194   : > { %v1154_v58 = vpop.f32.mrf.mxu0  ;;  %1791 = vmatmul.mubr.bf16.gmra.mxu1 %v1481_v52 }
 0x195   : > { %v1155_v61 = vadd.f32 %v1154_v58, %v9827_v6  ;;  %v1385_v0 = vmax.f32 %v1153_v56, 0.0 }
 0x196   : > { %v1158_v1 = vpop.f32.mrf.mxu0 }
 0x197   : > { %v1386_v8 = vmax.f32 %v1155_v61, 0.0  ;;  %v1483_v13 = vpack.c.bf16 %v1385_v0, %v1383_v9  ;;  %v1159_v19 = vadd.f32 %v1158_v1, %v9830_v7  ;;  %v8467_v1 = vld [vmem:[%s15388_s8 + $0x30] sm:$0xff]   ;;  %v9960_v9 = vpop.f32.mrf.mxu1 }
 0x198   : > { %v1160_v11 = vpop.f32.mrf.mxu0  ;;  %8221 = vmatprep.subr.bf16.mxu1 %v8467_v1 }
 0x199   : > { %v1484_v12 = vpack.c.bf16 %v1386_v8, %v1384_v5  ;;  %v1161_v16 = vadd.f32 %v1160_v11, %v9827_v6  ;;  %v1387_v28 = vmax.f32 %v1159_v19, 0.0  ;;  %8222 = vmatpush3.bf16.msra.mxu1 %v8467_v1 }
 0x19a   : > { %v1162_v14 = vpop.f32.mrf.mxu0 }
 0x19b   : > { %v1163_v17 = vadd.f32 %v1162_v14, %v9830_v7  ;;  %1798 = vmatprep.mubr.bf16.mxu1 %v1484_v12  ;;  %v1388_v25 = vmax.f32 %v1161_v16, 0.0 }
 0x19c   : > { %v1164_v20 = vpop.f32.mrf.mxu0  ;;  %1799 = vmatmul.mubr.bf16.gmra.mxu1 %v1483_v13 }
 0x19d   : > { %v1165_v21 = vadd.f32 %v1164_v20, %v9827_v6  ;;  %v1389_v22 = vmax.f32 %v1163_v17, 0.0  ;;  %v9962_v20 = vpop.f32.mrf.mxu1 }
 0x19e   : > { %v1168_v23 = vpop.f32.mrf.mxu0 }
 0x19f   : > { %v1390_v27 = vmax.f32 %v1165_v21, 0.0  ;;  %v1485_v31 = vpack.c.bf16 %v1389_v22, %v1387_v28  ;;  %v1169_v38 = vadd.f32 %v1168_v23, %v9830_v7 }
 0x1a0   : > { %v1170_v29 = vpop.f32.mrf.mxu0 }
 0x1a1   : > { %v1486_v30 = vpack.c.bf16 %v1390_v27, %v1388_v25  ;;  %v1171_v36 = vadd.f32 %v1170_v29, %v9827_v6  ;;  %v1391_v48 = vmax.f32 %v1169_v38, 0.0 }
 0x1a2   : > { %v1172_v32 = vpop.f32.mrf.mxu0 }
 0x1a3   : > { %v1173_v37 = vadd.f32 %v1172_v32, %v9830_v7  ;;  %1806 = vmatprep.mubr.bf16.mxu1 %v1486_v30  ;;  %v1392_v46 = vmax.f32 %v1171_v36, 0.0  ;;  %v9968_v30 = vpop.f32.mrf.mxu1 }
 0x1a4   : > { %v1174_v39 = vpop.f32.mrf.mxu0  ;;  %1807 = vmatmul.mubr.bf16.gmra.mxu1 %v1485_v31 }
 0x1a5   : > { %v1175_v40 = vadd.f32 %v1174_v39, %v9827_v6  ;;  %v1393_v41 = vmax.f32 %v1173_v37, 0.0 }
 0x1a6   : > { %v1178_v42 = vpop.f32.mrf.mxu0 }
 0x1a7   : > { %v1394_v47 = vmax.f32 %v1175_v40, 0.0  ;;  %v1487_v52 = vpack.c.bf16 %v1393_v41, %v1391_v48  ;;  %v1179_v58 = vadd.f32 %v1178_v42, %v9830_v7  ;;  %v9970_v41 = vpop.f32.mrf.mxu1 }
 0x1a8   : > { %v1180_v49 = vpop.f32.mrf.mxu0 }
 0x1a9   : > { %v1488_v50 = vpack.c.bf16 %v1394_v47, %v1392_v46  ;;  %v1181_v56 = vadd.f32 %v1180_v49, %v9827_v6  ;;  %v1395_v13 = vmax.f32 %v1179_v58, 0.0 }
 0x1aa   : > { %v1182_v53 = vpop.f32.mrf.mxu0 }
 0x1ab   : > { %v1183_v57 = vadd.f32 %v1182_v53, %v9830_v7  ;;  %1814 = vmatprep.mubr.bf16.mxu1 %v1488_v50  ;;  %v1396_v11 = vmax.f32 %v1181_v56, 0.0  ;;  %v9976_v53 = vpop.f32.mrf.mxu1 }
 0x1ac   : > { %v1184_v61 = vpop.f32.mrf.mxu0  ;;  %1815 = vmatmul.mubr.bf16.gmra.mxu1 %v1487_v52 }
 0x1ad   : > { %v1185_v0 = vadd.f32 %v1184_v61, %v9827_v6  ;;  %v1397_v5 = vmax.f32 %v1183_v57, 0.0 }
 0x1ae   : > { %v1188_v8 = vpop.f32.mrf.mxu0 }
 0x1af   : > { %v1398_v12 = vmax.f32 %v1185_v0, 0.0  ;;  %v1489_v17 = vpack.c.bf16 %v1397_v5, %v1395_v13  ;;  %v1189_v23 = vadd.f32 %v1188_v8, %v9830_v7  ;;  %v9978_v8 = vpop.f32.mrf.mxu1 }
 0x1b0   : > { %v1190_v14 = vpop.f32.mrf.mxu0 }
 0x1b1   : > { %v1490_v16 = vpack.c.bf16 %v1398_v12, %v1396_v11  ;;  %v1191_v21 = vadd.f32 %v1190_v14, %v9827_v6  ;;  %v1399_v36 = vmax.f32 %v1189_v23, 0.0 }
 0x1b2   : > { %v1192_v19 = vpop.f32.mrf.mxu0 }
 0x1b3   : > { %v1193_v22 = vadd.f32 %v1192_v19, %v9830_v7  ;;  %1822 = vmatprep.mubr.bf16.mxu1 %v1490_v16  ;;  %v1400_v31 = vmax.f32 %v1191_v21, 0.0  ;;  %v9984_v21 = vpop.f32.mrf.mxu1 }
 0x1b4   : > { %v1194_v25 = vpop.f32.mrf.mxu0  ;;  %1823 = vmatmul.mubr.bf16.gmra.mxu1 %v1489_v17 }
 0x1b5   : > { %v1195_v27 = vadd.f32 %v1194_v25, %v9827_v6  ;;  %v1401_v28 = vmax.f32 %v1193_v22, 0.0 }
 0x1b6   : > { %v1198_v29 = vpop.f32.mrf.mxu0 }
 0x1b7   : > { %v1402_v32 = vmax.f32 %v1195_v27, 0.0  ;;  %v1491_v39 = vpack.c.bf16 %v1401_v28, %v1399_v36  ;;  %v1199_v47 = vadd.f32 %v1198_v29, %v9830_v7 }
 0x1b8   : > { %v1200_v37 = vpop.f32.mrf.mxu0 }
 0x1b9   : > { %v1492_v38 = vpack.c.bf16 %v1402_v32, %v1400_v31  ;;  %v1201_v42 = vadd.f32 %v1200_v37, %v9827_v6  ;;  %v1403_v58 = vmax.f32 %v1199_v47, 0.0  ;;  %v9986_v32 = vpop.f32.mrf.mxu1 }
 0x1ba   : > { %v1202_v40 = vpop.f32.mrf.mxu0 }
 0x1bb   : > { %v1203_v46 = vadd.f32 %v1202_v40, %v9830_v7  ;;  %1830 = vmatprep.mubr.bf16.mxu1 %v1492_v38  ;;  %v1404_v56 = vmax.f32 %v1201_v42, 0.0  ;;  %v8468_v42 = vld [vmem:[%s15388_s8 + $0x28] sm:$0xff]  }
 0x1bc   : > { %v1204_v48 = vpop.f32.mrf.mxu0  ;;  %1831 = vmatmul.mubr.bf16.gmra.mxu1 %v1491_v39  ;;  %8223 = vmatprep.subr.bf16.mxu1 %v8468_v42 }
 0x1bd   : > { %v1205_v49 = vadd.f32 %v1204_v48, %v9827_v6  ;;  %v1405_v50 = vmax.f32 %v1203_v46, 0.0  ;;  %v9995_v48 = vpop.f32.mrf.mxu1  ;;  %8224 = vmatpush3.bf16.msra.mxu1 %v8468_v42 }
 0x1be   : > { %v1208_v52 = vpop.f32.mrf.mxu0 }
 0x1bf   : > { %v1406_v57 = vmax.f32 %v1205_v49, 0.0  ;;  %v1493_v1 = vpack.c.bf16 %v1405_v50, %v1403_v58  ;;  %v1209_v13 = vadd.f32 %v1208_v52, %v9830_v7 }
 0x1c0   : > { %v1210_v61 = vpop.f32.mrf.mxu0 }
 0x1c1   : > { %v1494_v0 = vpack.c.bf16 %v1406_v57, %v1404_v56  ;;  %v1211_v11 = vadd.f32 %v1210_v61, %v9827_v6  ;;  %v1407_v25 = vmax.f32 %v1209_v13, 0.0 }
 0x1c2   : > { %v1212_v5 = vpop.f32.mrf.mxu0 }
 0x1c3   : > { %v1213_v12 = vadd.f32 %v1212_v5, %v9830_v7  ;;  %1838 = vmatprep.mubr.bf16.mxu1 %v1494_v0  ;;  %v1408_v22 = vmax.f32 %v1211_v11, 0.0  ;;  %v9997_v0 = vpop.f32.mrf.mxu1 }
 0x1c4   : > { %v1214_v14 = vpop.f32.mrf.mxu0  ;;  %1839 = vmatmul.mubr.bf16.gmra.mxu1 %v1493_v1 }
 0x1c5   : > { %v1215_v16 = vadd.f32 %v1214_v14, %v9827_v6  ;;  %v1409_v17 = vmax.f32 %v1213_v12, 0.0 }
 0x1c6   : > { %v1218_v19 = vpop.f32.mrf.mxu0 }
 0x1c7   : > { %v1410_v23 = vmax.f32 %v1215_v16, 0.0  ;;  %v1495_v29 = vpack.c.bf16 %v1409_v17, %v1407_v25  ;;  %v1219_v38 = vadd.f32 %v1218_v19, %v9830_v7  ;;  %v10003_v17 = vpop.f32.mrf.mxu1 }
 0x1c8   : > { %v1220_v27 = vpop.f32.mrf.mxu0 }
 0x1c9   : > { %v1496_v28 = vpack.c.bf16 %v1410_v23, %v1408_v22  ;;  %v1221_v36 = vadd.f32 %v1220_v27, %v9827_v6  ;;  %v1411_v52 = vmax.f32 %v1219_v38, 0.0 }
 0x1ca   : > { %v1222_v31 = vpop.f32.mrf.mxu0 }
 0x1cb   : > { %v1223_v37 = vadd.f32 %v1222_v31, %v9830_v7  ;;  %1846 = vmatprep.mubr.bf16.mxu1 %v1496_v28  ;;  %v1412_v49 = vmax.f32 %v1221_v36, 0.0  ;;  %v10005_v31 = vpop.f32.mrf.mxu1  ;;  %v1251_v36 = vadd.f32 %v9892_v43, %v9827_v6 }
 0x1cc   : > { %v1224_v39 = vpop.f32.mrf.mxu0  ;;  %1847 = vmatmul.mubr.bf16.gmra.mxu1 %v1495_v29 }
 0x1cd   : > { %v1225_v40 = vadd.f32 %v1224_v39, %v9827_v6  ;;  %v1413_v46 = vmax.f32 %v1223_v37, 0.0  ;;  %v1255_v37 = vadd.f32 %v9900_v60, %v9827_v6 }
 0x1ce   : > { %v1228_v47 = vpop.f32.mrf.mxu0 }
 0x1cf   : > { %v1414_v50 = vmax.f32 %v1225_v40, 0.0  ;;  %v1497_v58 = vpack.c.bf16 %v1413_v46, %v1411_v52  ;;  %v1229_v11 = vadd.f32 %v1228_v47, %v9830_v7  ;;  %v1426_v52 = vmax.f32 %v1255_v37, 0.0 }
 0x1d0   : > { %v1230_v56 = vpop.f32.mrf.mxu0 }
 0x1d1   : > { %v1498_v57 = vpack.c.bf16 %v1414_v50, %v1412_v49  ;;  %v1231_v1 = vadd.f32 %v1230_v56, %v9827_v6  ;;  %v1415_v23 = vmax.f32 %v1229_v11, 0.0  ;;  %v10015_v49 = vpop.f32.mrf.mxu1  ;;  %v1424_v50 = vmax.f32 %v1251_v36, 0.0 }
 0x1d2   : > { %v1232_v61 = vpop.f32.mrf.mxu0  ;;  %v1261_v11 = vadd.f32 %v9908_v18, %v9827_v6 }
 0x1d3   : > { %v1233_v5 = vadd.f32 %v1232_v61, %v9830_v7  ;;  %1854 = vmatprep.mubr.bf16.mxu1 %v1498_v57  ;;  %v1416_v19 = vmax.f32 %v1231_v1, 0.0  ;;  %v1253_v61 = vadd.f32 %v9898_v51, %v9830_v7  ;;  %v1259_v51 = vadd.f32 %v9906_v10, %v9830_v7 }
 0x1d4   : > { %v1234_v12 = vpop.f32.mrf.mxu0  ;;  %1855 = vmatmul.mubr.bf16.gmra.mxu1 %v1497_v58  ;;  %v1249_v58 = vadd.f32 %v9890_v35, %v9830_v7  ;;  %v1428_v35 = vmax.f32 %v1261_v11, 0.0 }
 0x1d5   : > { %v1235_v13 = vadd.f32 %v1234_v12, %v9827_v6  ;;  %v1417_v14 = vmax.f32 %v1233_v5, 0.0  ;;  %v10021_v5 = vpop.f32.mrf.mxu1  ;;  %v1265_v12 = vadd.f32 %v9916_v34, %v9827_v6  ;;  %v1271_v34 = vadd.f32 %v9927_v54, %v9827_v6 }
 0x1d6   : > { %v1238_v16 = vpop.f32.mrf.mxu0  ;;  %v1427_v10 = vmax.f32 %v1259_v51, 0.0 }
 0x1d7   : > { %v1418_v22 = vmax.f32 %v1235_v13, 0.0  ;;  %v1499_v28 = vpack.c.bf16 %v1417_v14, %v1415_v23  ;;  %v1239_v40 = vadd.f32 %v1238_v16, %v9830_v7  ;;  %v1504_v13 = vpack.c.bf16 %v1426_v52, %v1424_v50 }
 0x1d8   : > { %v1240_v25 = vpop.f32.mrf.mxu0  ;;  %v1423_v14 = vmax.f32 %v1249_v58, 0.0  ;;  %v1425_v16 = vmax.f32 %v1253_v61, 0.0  ;;  %v1263_v23 = vadd.f32 %v9914_v26, %v9830_v7  ;;  %v8469_v26 = vld [vmem:[%s15388_s8 + $0x20] sm:$0xff]   ;;  %v1432_v54 = vmax.f32 %v1271_v34, 0.0 }
 0x1d9   : > { %v1500_v27 = vpack.c.bf16 %v1418_v22, %v1416_v19  ;;  %v1241_v38 = vadd.f32 %v1240_v25, %v9827_v6  ;;  %v1419_v57 = vmax.f32 %v1239_v40, 0.0  ;;  %v10027_v19 = vpop.f32.mrf.mxu1  ;;  %v1430_v22 = vmax.f32 %v1265_v12, 0.0  ;;  %8225 = vmatprep.subr.bf16.mxu1 %v8469_v26 }
 0x1da   : > { %v1242_v29 = vpop.f32.mrf.mxu0  ;;  %v1503_v18 = vpack.c.bf16 %v1425_v16, %v1423_v14  ;;  %v1429_v37 = vmax.f32 %v1263_v23, 0.0  ;;  %8226 = vmatpush3.bf16.msra.mxu1 %v8469_v26  ;;  %v1273_v50 = vadd.f32 %v9933_v4, %v9830_v7  ;;  %v1281_v52 = vadd.f32 %v9943_v33, %v9827_v6 }
 0x1db   : > { %v1243_v39 = vadd.f32 %v1242_v29, %v9830_v7  ;;  %1862 = vmatprep.mubr.bf16.mxu1 %v1500_v27  ;;  %v1420_v43 = vmax.f32 %v1241_v38, 0.0  ;;  %v10033_v25 = vpop.f32.mrf.mxu1  ;;  %v1275_v27 = vadd.f32 %v9935_v15, %v9827_v6  ;;  %v10042_v29 = vld [vmem:[%s15385_s5] ss:$0 sm:$0xff]  ;;  %v1283_v16 = vadd.f32 %v9949_v44, %v9830_v7 }
 0x1dc   : > { %v1244_v42 = vpop.f32.mrf.mxu0  ;;  %1863 = vmatmul.mubr.bf16.gmra.mxu1 %v1499_v28  ;;  %v1506_v28 = vpack.c.bf16 %v1430_v22, %v1428_v35  ;;  %v1433_v12 = vmax.f32 %v1273_v50, 0.0  ;;  %v1295_v34 = vadd.f32 %v9970_v41, %v9827_v6 }
 0x1dd   : > { %v1245_v46 = vadd.f32 %v1244_v42, %v9827_v6  ;;  %v1421_v47 = vmax.f32 %v1243_v39, 0.0  ;;  %v1434_v39 = vmax.f32 %v1275_v27, 0.0  ;;  %v1505_v42 = vpack.c.bf16 %v1429_v37, %v1427_v10 }
 0x1df   : > { %v1422_v56 = vmax.f32 %v1245_v46, 0.0  ;;  %v1501_v1 = vpack.c.bf16 %v1421_v47, %v1419_v57  ;;  %v1269_v47 = vadd.f32 %v9925_v45, %v9830_v7  ;;  %v1508_v58 = vpack.c.bf16 %v1434_v39, %v1432_v54 }
 0x1e0   : > { %v1436_v45 = vmax.f32 %v1281_v52, 0.0 }
 0x1e1   : > { %v1502_v60 = vpack.c.bf16 %v1422_v56, %v1420_v43  ;;  %v1285_v43 = vadd.f32 %v9951_v55, %v9827_v6  ;;  %v1431_v11 = vmax.f32 %v1269_v47, 0.0  ;;  %v1279_v55 = vadd.f32 %v9941_v24, %v9830_v7 }
 0x1e2   : > { %v1437_v24 = vmax.f32 %v1283_v16, 0.0 }
 0x1e3   : > { %1870 = vmatprep.mubr.bf16.mxu1 %v1502_v60  ;;  %v1507_v22 = vpack.c.bf16 %v1433_v12, %v1431_v11  ;;  %v1435_v10 = vmax.f32 %v1279_v55, 0.0  ;;  %v1299_v12 = vadd.f32 %v9976_v53, %v9830_v7  ;;  %v8470_v53 = vld [vmem:[%s15388_s8 + $0x18] sm:$0xff]  }
 0x1e4   : > { %1871 = vmatmul.mubr.bf16.gmra.mxu1 %v1501_v1  ;;  %8227 = vmatprep.subr.bf16.mxu1 %v8470_v53 }
 0x1e5   : > { %1878 = vmatprep.mubr.bf16.mxu1 %v1504_v13  ;;  %v1438_v13 = vmax.f32 %v1285_v43, 0.0  ;;  %8228 = vmatpush3.bf16.msra.mxu1 %v8470_v53  ;;  %v8471_v53 = vld [vmem:[%s15388_s8 + $0x10] sm:$0xff]  }
 0x1e6   : > { %8229 = vmatprep.subr.bf16.mxu1 %v8471_v53 }
 0x1e7   : > { %v1510_v23 = vpack.c.bf16 %v1438_v13, %v1436_v45  ;;  %v1303_v45 = vadd.f32 %v9984_v21, %v9830_v7 }
 0x1e9   : > { %v1445_v21 = vmax.f32 %v1303_v45, 0.0  ;;  %8230 = vmatpush3.bf16.msra.mxu1 %v8471_v53 }
 0x1ec   : > { %v1688_v36 = vpop.f32.mrf.mxu1  ;;  %1879 = vmatmul.mubr.bf16.gmra.mxu1 %v1503_v18  ;;  %v1291_v18 = vadd.f32 %v9962_v20, %v9827_v6  ;;  %v1509_v20 = vpack.c.bf16 %v1437_v24, %v1435_v10  ;;  %v1313_v10 = vadd.f32 %v10003_v17, %v9830_v7  ;;  %v1321_v24 = vadd.f32 %v10021_v5, %v9827_v6 }
 0x1ed   : > { %1886 = vmatprep.mubr.bf16.mxu1 %v1506_v28  ;;  %v1689_v15 = vadd.f32 %v10042_v29, %v1688_v36 }
 0x1ee   : > { %v1690_v38 = vpop.f32.mrf.mxu1  ;;  %v1440_v26 = vmax.f32 %v1291_v18, 0.0 }
 0x1ef   : > { %v1943_v57 = vmax.f32 %v1689_v15, 0.0  ;;  %v1442_v38 = vmax.f32 %v1295_v34, 0.0  ;;  %v1289_v15 = vadd.f32 %v9960_v9, %v9830_v7 }
 0x1f0   : > { %v1691_v40 = vpop.f32.mrf.mxu1 }
 0x1f1   : > { %v1692_v46 = vadd.f32 %v10042_v29, %v1691_v40  ;;  %v1293_v40 = vadd.f32 %v9968_v30, %v9830_v7  ;;  %v1512_v43 = vpack.c.bf16 %v1442_v38, %v1440_v26 }
 0x1f2   : > { %v1693_v56 = vpop.f32.mrf.mxu1 }
 0x1f3   : > { %v1944_v60 = vmax.f32 %v1692_v46, 0.0  ;;  %v1305_v46 = vadd.f32 %v9986_v32, %v9827_v6 }
 0x1f4   : > { %v1696_v61 = vpop.f32.mrf.mxu1  ;;  %1887 = vmatmul.mubr.bf16.gmra.mxu1 %v1505_v42  ;;  %v1301_v42 = vadd.f32 %v9978_v8, %v9827_v6 }
 0x1f5   : > { %v2007_v1 = vpack.c.bf16 %v1944_v60, %v1943_v57  ;;  %1894 = vmatprep.mubr.bf16.mxu1 %v1508_v58  ;;  %v1697_v4 = vadd.f32 %v10042_v29, %v1696_v61  ;;  %v1439_v60 = vmax.f32 %v1289_v15, 0.0  ;;  %v1441_v58 = vmax.f32 %v1293_v40, 0.0 }
 0x1f6   : > { %v1698_v14 = vpop.f32.mrf.mxu1  ;;  %v1444_v9 = vmax.f32 %v1301_v42, 0.0  ;;  %v1446_v61 = vmax.f32 %v1305_v46, 0.0  ;;  %v1449_v15 = vmax.f32 %v1313_v10, 0.0  ;;  %v1452_v40 = vmax.f32 %v1321_v24, 0.0 }
 0x1f7   : > { %2180 = vmatmul.mubr.bf16.vlgmr.msra.gmra.mxu0 %v2007_v1  ;;  %v1945_v27 = vmax.f32 %v1697_v4, 0.0  ;;  %v1511_v11 = vpack.c.bf16 %v1441_v58, %v1439_v60  ;;  %v1311_v4 = vadd.f32 %v9997_v0, %v9827_v6  ;;  %v1319_v46 = vadd.f32 %v10015_v49, %v9830_v7 }
 0x1f8   : > { %v1699_v33 = vpop.f32.mrf.mxu1  ;;  %2189 = vmatprep.mubr.bf16.mxu0 %v15400_v59  ;;  %v1514_v14 = vpack.c.bf16 %v1446_v61, %v1444_v9 }
 0x1f9   : > { %v1700_v35 = vadd.f32 %v10042_v29, %v1699_v33  ;;  %v1315_v33 = vadd.f32 %v10005_v31, %v9827_v6  ;;  %v1448_v18 = vmax.f32 %v1311_v4, 0.0  ;;  %v1451_v58 = vmax.f32 %v1319_v46, 0.0 }
 0x1fa   : > { %v1701_v51 = vpop.f32.mrf.mxu1 }
 0x1fb   : > { %v1946_v28 = vmax.f32 %v1700_v35, 0.0  ;;  %v1443_v51 = vmax.f32 %v1299_v12, 0.0  ;;  %v1450_v34 = vmax.f32 %v1315_v33, 0.0 }
 0x1fc   : > { %v1704_v36 = vpop.f32.mrf.mxu1  ;;  %1895 = vmatmul.mubr.bf16.gmra.mxu1 %v1507_v22 }
 0x1fd   : > { %v2008_v37 = vpack.c.bf16 %v1946_v28, %v1945_v27  ;;  %1902 = vmatprep.mubr.bf16.mxu1 %v1510_v23  ;;  %v1705_v54 = vadd.f32 %v10042_v29, %v1704_v36  ;;  %v1513_v28 = vpack.c.bf16 %v1445_v21, %v1443_v51  ;;  %v1309_v36 = vadd.f32 %v9995_v48, %v9830_v7 }
 0x1fe   : > { %v1706_v44 = vpop.f32.mrf.mxu1 }
 0x1ff   : > { %2190 = vmatmul.mubr.bf16.gmra.mxu0 %v2008_v37  ;;  %v1947_v50 = vmax.f32 %v1705_v54, 0.0  ;;  %v1325_v44 = vadd.f32 %v10033_v25, %v9827_v6  ;;  %v1516_v54 = vpack.c.bf16 %v1450_v34, %v1448_v18 }
 0x200   : > { %v1707_v39 = vpop.f32.mrf.mxu1  ;;  %2199 = vmatprep.mubr.bf16.mxu0 %v15400_v59 }
 0x201   : > { %v1708_v41 = vadd.f32 %v10042_v29, %v1707_v39  ;;  %v1454_v42 = vmax.f32 %v1325_v44, 0.0 }
 0x202   : > { %v1709_v47 = vpop.f32.mrf.mxu1 }
 0x203   : > { %v1948_v52 = vmax.f32 %v1708_v41, 0.0  ;;  %v1447_v41 = vmax.f32 %v1309_v36, 0.0  ;;  %v1323_v47 = vadd.f32 %v10027_v19, %v9830_v7 }
 0x204   : > { %v1712_v56 = vpop.f32.mrf.mxu1  ;;  %1903 = vmatmul.mubr.bf16.gmra.mxu1 %v1509_v20 }
 0x205   : > { %v2009_v57 = vpack.c.bf16 %v1948_v52, %v1947_v50  ;;  %1910 = vmatprep.mubr.bf16.mxu1 %v1512_v43  ;;  %v1713_v30 = vadd.f32 %v10042_v29, %v1712_v56  ;;  %v1515_v25 = vpack.c.bf16 %v1449_v15, %v1447_v41  ;;  %v1518_v56 = vpack.c.bf16 %v1454_v42, %v1452_v40 }
 0x206   : > { %v1714_v1 = vpop.f32.mrf.mxu1  ;;  %v1453_v9 = vmax.f32 %v1323_v47, 0.0 }
 0x207   : > { %2200 = vmatmul.mubr.bf16.gmra.mxu0 %v2009_v57  ;;  %v1949_v55 = vmax.f32 %v1713_v30, 0.0 }
 0x208   : > { %v1715_v8 = vpop.f32.mrf.mxu1  ;;  %2209 = vmatprep.mubr.bf16.mxu0 %v15400_v59  ;;  %v1517_v7 = vpack.c.bf16 %v1453_v9, %v1451_v58 }
 0x209   : > { %v1716_v32 = vadd.f32 %v10042_v29, %v1715_v8 }
 0x20a   : > { %v1717_v13 = vpop.f32.mrf.mxu1 }
 0x20b   : > { %v1950_v16 = vmax.f32 %v1716_v32, 0.0 }
 0x20c   : > { %v1720_v35 = vpop.f32.mrf.mxu1  ;;  %1911 = vmatmul.mubr.bf16.gmra.mxu1 %v1511_v11 }
 0x20d   : > { %v2010_v22 = vpack.c.bf16 %v1950_v16, %v1949_v55  ;;  %1918 = vmatprep.mubr.bf16.mxu1 %v1514_v14  ;;  %v1721_v0 = vadd.f32 %v10042_v29, %v1720_v35 }
 0x20e   : > { %v1722_v23 = vpop.f32.mrf.mxu1 }
 0x20f   : > { %2210 = vmatmul.mubr.bf16.gmra.mxu0 %v2010_v22  ;;  %v1951_v26 = vmax.f32 %v1721_v0, 0.0 }
 0x210   : > { %v1723_v31 = vpop.f32.mrf.mxu1  ;;  %2219 = vmatprep.mubr.bf16.mxu0 %v15400_v59 }
 0x211   : > { %v1724_v27 = vadd.f32 %v10042_v29, %v1723_v31 }
 0x212   : > { %v1725_v37 = vpop.f32.mrf.mxu1 }
 0x213   : > { %v1952_v38 = vmax.f32 %v1724_v27, 0.0 }
 0x214   : > { %v1728_v39 = vpop.f32.mrf.mxu1  ;;  %1919 = vmatmul.mubr.bf16.gmra.mxu1 %v1513_v28 }
 0x215   : > { %v2011_v20 = vpack.c.bf16 %v1952_v38, %v1951_v26  ;;  %1926 = vmatprep.mubr.bf16.mxu1 %v1516_v54  ;;  %v1729_v17 = vadd.f32 %v10042_v29, %v1728_v39 }
 0x216   : > { %v1730_v48 = vpop.f32.mrf.mxu1 }
 0x217   : > { %2220 = vmatmul.mubr.bf16.gmra.mxu0 %v2011_v20  ;;  %v1953_v52 = vmax.f32 %v1729_v17, 0.0 }
 0x218   : > { %v1731_v5 = vpop.f32.mrf.mxu1  ;;  %2229 = vmatprep.mubr.bf16.mxu0 %v15400_v59 }
 0x219   : > { %v1732_v6 = vadd.f32 %v10042_v29, %v1731_v5 }
 0x21a   : > { %v1733_v50 = vpop.f32.mrf.mxu1 }
 0x21b   : > { %v1954_v43 = vmax.f32 %v1732_v6, 0.0 }
 0x21c   : > { %v1736_v57 = vpop.f32.mrf.mxu1  ;;  %1927 = vmatmul.mubr.bf16.gmra.mxu1 %v1515_v25 }
 0x21d   : > { %v2012_v60 = vpack.c.bf16 %v1954_v43, %v1953_v52  ;;  %1934 = vmatprep.mubr.bf16.mxu1 %v1518_v56  ;;  %v1737_v1 = vadd.f32 %v10042_v29, %v1736_v57 }
 0x21e   : > { %v1738_v61 = vpop.f32.mrf.mxu1 }
 0x21f   : > { %2230 = vmatmul.mubr.bf16.gmra.mxu0 %v2012_v60  ;;  %v1955_v8 = vmax.f32 %v1737_v1, 0.0 }
 0x220   : > { %v1739_v30 = vpop.f32.mrf.mxu1  ;;  %2239 = vmatprep.mubr.bf16.mxu0 %v15400_v59 }
 0x221   : > { %v1740_v49 = vadd.f32 %v10042_v29, %v1739_v30 }
 0x222   : > { %v1741_v19 = vpop.f32.mrf.mxu1 }
 0x223   : > { %v1956_v32 = vmax.f32 %v1740_v49, 0.0 }
 0x224   : > { %v1744_v11 = vpop.f32.mrf.mxu1  ;;  %1935 = vmatmul.mubr.bf16.gmra.mxu1 %v1517_v7 }
 0x225   : > { %v2013_v12 = vpack.c.bf16 %v1956_v32, %v1955_v8  ;;  %v1745_v13 = vadd.f32 %v10042_v29, %v1744_v11  ;;  %v8472_v11 = vld [vmem:[%s15388_s8 + $0x8] sm:$0xff]  }
 0x226   : > { %v1746_v45 = vpop.f32.mrf.mxu1  ;;  %8231 = vmatprep.subr.bf16.mxu1 %v8472_v11 }
 0x227   : > { %2240 = vmatmul.mubr.bf16.gmra.mxu0 %v2013_v12  ;;  %v1957_v55 = vmax.f32 %v1745_v13, 0.0  ;;  %8232 = vmatpush3.bf16.msra.mxu1 %v8472_v11 }
 0x228   : > { %v1747_v14 = vpop.f32.mrf.mxu1  ;;  %2249 = vmatprep.mubr.bf16.mxu0 %v15400_v59 }
 0x229   : > { %v1748_v4 = vadd.f32 %v10042_v29, %v1747_v14 }
 0x22a   : > { %v1749_v33 = vpop.f32.mrf.mxu1 }
 0x22b   : > { %v1958_v16 = vmax.f32 %v1748_v4, 0.0 }
 0x22c   : > { %v1752_v35 = vpop.f32.mrf.mxu1 }
 0x22d   : > { %v2014_v22 = vpack.c.bf16 %v1958_v16, %v1957_v55  ;;  %v1753_v21 = vadd.f32 %v10042_v29, %v1752_v35 }
 0x22e   : > { %v1754_v51 = vpop.f32.mrf.mxu1 }
 0x22f   : > { %2250 = vmatmul.mubr.bf16.gmra.mxu0 %v2014_v22  ;;  %v1959_v0 = vmax.f32 %v1753_v21, 0.0  ;;  %v8473_v21 = vld [vmem:[%s15388_s8] sm:$0xff]  }
 0x230   : > { %v1755_v23 = vpop.f32.mrf.mxu1  ;;  %2259 = vmatprep.mubr.bf16.mxu0 %v15400_v59  ;;  %8233 = vmatprep.subr.bf16.mxu1 %v8473_v21 }
 0x231   : > { %v1756_v18 = vadd.f32 %v10042_v29, %v1755_v23  ;;  %8234 = vmatpush3.bf16.msra.mxu1 %v8473_v21 }
 0x232   : > { %v1757_v34 = vpop.f32.mrf.mxu1 }
 0x233   : > { %v1960_v31 = vmax.f32 %v1756_v18, 0.0 }
 0x234   : > { %v1760_v27 = vpop.f32.mrf.mxu1 }
 0x235   : > { %v2015_v28 = vpack.c.bf16 %v1960_v31, %v1959_v0  ;;  %v1761_v10 = vadd.f32 %v10042_v29, %v1760_v27 }
 0x236   : > { %v1762_v36 = vpop.f32.mrf.mxu1 }
 0x237   : > { %2260 = vmatmul.mubr.bf16.gmra.mxu0 %v2015_v28  ;;  %v1961_v26 = vmax.f32 %v1761_v10, 0.0 }
 0x238   : > { %v1763_v24 = vpop.f32.mrf.mxu1  ;;  %2269 = vmatprep.mubr.bf16.mxu0 %v15400_v59 }
 0x239   : > { %v1764_v37 = vadd.f32 %v10042_v29, %v1763_v24 }
 0x23a   : > { %v1765_v44 = vpop.f32.mrf.mxu1 }
 0x23b   : > { %v1962_v38 = vmax.f32 %v1764_v37, 0.0 }
 0x23c   : > { %v1768_v54 = vpop.f32.mrf.mxu1 }
 0x23d   : > { %v2016_v39 = vpack.c.bf16 %v1962_v38, %v1961_v26  ;;  %v1769_v41 = vadd.f32 %v10042_v29, %v1768_v54 }
 0x23e   : > { %v1770_v20 = vpop.f32.mrf.mxu1 }
 0x23f   : > { %2270 = vmatmul.mubr.bf16.gmra.mxu0 %v2016_v39  ;;  %v1963_v42 = vmax.f32 %v1769_v41, 0.0 }
 0x240   : > { %v1771_v15 = vpop.f32.mrf.mxu1  ;;  %2279 = vmatprep.mubr.bf16.mxu0 %v15400_v59 }
 0x241   : > { %v1772_v48 = vadd.f32 %v10042_v29, %v1771_v15 }
 0x242   : > { %v1773_v40 = vpop.f32.mrf.mxu1 }
 0x243   : > { %v1964_v17 = vmax.f32 %v1772_v48, 0.0 }
 0x244   : > { %v1776_v5 = vpop.f32.mrf.mxu1 }
 0x245   : > { %v2017_v6 = vpack.c.bf16 %v1964_v17, %v1963_v42  ;;  %v1777_v46 = vadd.f32 %v10042_v29, %v1776_v5 }
 0x246   : > { %v1778_v25 = vpop.f32.mrf.mxu1 }
 0x247   : > { %2280 = vmatmul.mubr.bf16.gmra.mxu0 %v2017_v6  ;;  %v1965_v43 = vmax.f32 %v1777_v46, 0.0 }
 0x248   : > { %v1779_v47 = vpop.f32.mrf.mxu1  ;;  %2289 = vmatprep.mubr.bf16.mxu0 %v15400_v59 }
 0x249   : > { %v1780_v50 = vadd.f32 %v10042_v29, %v1779_v47 }
 0x24a   : > { %v1781_v52 = vpop.f32.mrf.mxu1 }
 0x24b   : > { %v1966_v56 = vmax.f32 %v1780_v50, 0.0 }
 0x24c   : > { %v1784_v57 = vpop.f32.mrf.mxu1 }
 0x24d   : > { %v2018_v60 = vpack.c.bf16 %v1966_v56, %v1965_v43  ;;  %v1785_v9 = vadd.f32 %v10042_v29, %v1784_v57 }
 0x24e   : > { %v1786_v58 = vpop.f32.mrf.mxu1 }
 0x24f   : > { %2290 = vmatmul.mubr.bf16.gmra.mxu0 %v2018_v60  ;;  %v1967_v49 = vmax.f32 %v1785_v9, 0.0 }
 0x250   : > { %v1787_v61 = vpop.f32.mrf.mxu1  ;;  %2299 = vmatprep.mubr.bf16.mxu0 %v15400_v59 }
 0x251   : > { %v1788_v1 = vadd.f32 %v10042_v29, %v1787_v61 }
 0x252   : > { %v1789_v30 = vpop.f32.mrf.mxu1 }
 0x253   : > { %v1968_v7 = vmax.f32 %v1788_v1, 0.0 }
 0x254   : > { %v1792_v19 = vpop.f32.mrf.mxu1 }
 0x255   : > { %v2019_v8 = vpack.c.bf16 %v1968_v7, %v1967_v49  ;;  %v1793_v12 = vadd.f32 %v10042_v29, %v1792_v19 }
 0x256   : > { %v1794_v32 = vpop.f32.mrf.mxu1 }
 0x257   : > { %2300 = vmatmul.mubr.bf16.gmra.mxu0 %v2019_v8  ;;  %v1969_v4 = vmax.f32 %v1793_v12, 0.0 }
 0x258   : > { %v1795_v45 = vpop.f32.mrf.mxu1  ;;  %2309 = vmatprep.mubr.bf16.mxu0 %v15400_v59 }
 0x259   : > { %v1796_v13 = vadd.f32 %v10042_v29, %v1795_v45 }
 0x25a   : > { %v1797_v14 = vpop.f32.mrf.mxu1 }
 0x25b   : > { %v1970_v33 = vmax.f32 %v1796_v13, 0.0 }
 0x25c   : > { %v1800_v55 = vpop.f32.mrf.mxu1 }
 0x25d   : > { %v2020_v16 = vpack.c.bf16 %v1970_v33, %v1969_v4  ;;  %v1801_v22 = vadd.f32 %v10042_v29, %v1800_v55 }
 0x25e   : > { %v1802_v35 = vpop.f32.mrf.mxu1 }
 0x25f   : > { %2310 = vmatmul.mubr.bf16.gmra.mxu0 %v2020_v16  ;;  %v1971_v18 = vmax.f32 %v1801_v22, 0.0 }
 0x260   : > { %v1803_v53 = vpop.f32.mrf.mxu1  ;;  %2319 = vmatprep.mubr.bf16.mxu0 %v15400_v59 }
 0x261   : > { %v1804_v51 = vadd.f32 %v10042_v29, %v1803_v53 }
 0x262   : > { %v1805_v23 = vpop.f32.mrf.mxu1 }
 0x263   : > { %v1972_v34 = vmax.f32 %v1804_v51, 0.0 }
 0x264   : > { %v1808_v0 = vpop.f32.mrf.mxu1 }
 0x265   : > { %v2021_v31 = vpack.c.bf16 %v1972_v34, %v1971_v18  ;;  %v1809_v28 = vadd.f32 %v10042_v29, %v1808_v0 }
 0x266   : > { %v1810_v27 = vpop.f32.mrf.mxu1 }
 0x267   : > { %2320 = vmatmul.mubr.bf16.gmra.mxu0 %v2021_v31  ;;  %v1973_v37 = vmax.f32 %v1809_v28, 0.0 }
 0x268   : > { %v1811_v36 = vpop.f32.mrf.mxu1  ;;  %2329 = vmatprep.mubr.bf16.mxu0 %v15400_v59 }
 0x269   : > { %v1812_v10 = vadd.f32 %v10042_v29, %v1811_v36 }
 0x26a   : > { %v1813_v24 = vpop.f32.mrf.mxu1 }
 0x26b   : > { %v1974_v44 = vmax.f32 %v1812_v10, 0.0 }
 0x26c   : > { %v1816_v26 = vpop.f32.mrf.mxu1 }
 0x26d   : > { %v2022_v38 = vpack.c.bf16 %v1974_v44, %v1973_v37  ;;  %v1817_v39 = vadd.f32 %v10042_v29, %v1816_v26 }
 0x26e   : > { %v1818_v54 = vpop.f32.mrf.mxu1 }
 0x26f   : > { %2330 = vmatmul.mubr.bf16.gmra.mxu0 %v2022_v38  ;;  %v1975_v48 = vmax.f32 %v1817_v39, 0.0 }
 0x270   : > { %v1819_v20 = vpop.f32.mrf.mxu1  ;;  %2339 = vmatprep.mubr.bf16.mxu0 %v15400_v59 }
 0x271   : > { %v1820_v41 = vadd.f32 %v10042_v29, %v1819_v20 }
 0x272   : > { %v1821_v15 = vpop.f32.mrf.mxu1 }
 0x273   : > { %v1976_v40 = vmax.f32 %v1820_v41, 0.0 }
 0x274   : > { %v1824_v42 = vpop.f32.mrf.mxu1 }
 0x275   : > { %v2023_v17 = vpack.c.bf16 %v1976_v40, %v1975_v48  ;;  %v1825_v6 = vadd.f32 %v10042_v29, %v1824_v42 }
 0x276   : > { %v1826_v5 = vpop.f32.mrf.mxu1 }
 0x277   : > { %2340 = vmatmul.mubr.bf16.gmra.mxu0 %v2023_v17  ;;  %v1977_v50 = vmax.f32 %v1825_v6, 0.0 }
 0x278   : > { %v1827_v25 = vpop.f32.mrf.mxu1  ;;  %2349 = vmatprep.mubr.bf16.mxu0 %v15400_v59 }
 0x279   : > { %v1828_v46 = vadd.f32 %v10042_v29, %v1827_v25 }
 0x27a   : > { %v1829_v47 = vpop.f32.mrf.mxu1 }
 0x27b   : > { %v1978_v52 = vmax.f32 %v1828_v46, 0.0 }
 0x27c   : > { %v1832_v43 = vpop.f32.mrf.mxu1 }
 0x27d   : > { %v2024_v56 = vpack.c.bf16 %v1978_v52, %v1977_v50  ;;  %v1833_v60 = vadd.f32 %v10042_v29, %v1832_v43 }
 0x27e   : > { %v1834_v57 = vpop.f32.mrf.mxu1 }
 0x27f   : > { %2350 = vmatmul.mubr.bf16.gmra.mxu0 %v2024_v56  ;;  %v1979_v1 = vmax.f32 %v1833_v60, 0.0  ;;  %v2055_v57 = vld [vmem:[%s15387_s7] sm:$0x3] }
 0x280   : > { %v1835_v58 = vpop.f32.mrf.mxu1  ;;  %2359 = vmatprep.mubr.bf16.mxu0 %v15400_v59 }
 0x281   : > { %v1836_v9 = vadd.f32 %v10042_v29, %v1835_v58  ;;  %v10181_v58 = vstv %s8174_s13 }
 0x282   : > { %v1837_v61 = vpop.f32.mrf.mxu1  ;;  %15570 = vst [vmem:[#allocation12_spill] sm:$0xff] %v10181_v58 }
 0x283   : > { %v1980_v30 = vmax.f32 %v1836_v9, 0.0  ;;  %v4587_v9 = vadd.s32 8, %v9809_v63  ;;  %v4588_v61 = vadd.s32 16, %v9809_v63 }
 0x284   : > { %v1840_v49 = vpop.f32.mrf.mxu1 }
 0x285   : > { %v2025_v7 = vpack.c.bf16 %v1980_v30, %v1979_v1  ;;  %v1841_v8 = vadd.f32 %v10042_v29, %v1840_v49  ;;  %v4589_v1 = vadd.s32 24, %v9809_v63 }
 0x286   : > { %v1842_v19 = vpop.f32.mrf.mxu1 }
 0x287   : > { %2360 = vmatmul.mubr.bf16.gmra.mxu0 %v2025_v7  ;;  %v1981_v45 = vmax.f32 %v1841_v8, 0.0  ;;  %v4590_v7 = vadd.s32 32, %v9809_v63  ;;  %v4591_v19 = vadd.s32 40, %v9809_v63 }
 0x288   : > { %v1843_v32 = vpop.f32.mrf.mxu1  ;;  %2369 = vmatprep.mubr.bf16.mxu0 %v15400_v59 }
 0x289   : > { %v1844_v11 = vadd.f32 %v10042_v29, %v1843_v32  ;;  %v10189_v32 = vrot.slane %v2055_v57, %v9821_v3 }
 0x28a   : > { %v1845_v12 = vpop.f32.mrf.mxu1 }
 0x28b   : > { %v1982_v13 = vmax.f32 %v1844_v11, 0.0  ;;  %v4592_v11 = vadd.s32 48, %v9809_v63  ;;  %v4593_v12 = vadd.s32 56, %v9809_v63 }
 0x28c   : > { %v1848_v14 = vpop.f32.mrf.mxu1 }
 0x28d   : > { %v2026_v4 = vpack.c.bf16 %v1982_v13, %v1981_v45  ;;  %v1849_v55 = vadd.f32 %v10042_v29, %v1848_v14  ;;  %v4594_v45 = vadd.s32 64, %v9809_v63  ;;  %v10195_v14 = vrot.slane %v2055_v57, %v9818_v2 }
 0x28e   : > { %v1850_v33 = vpop.f32.mrf.mxu1 }
 0x28f   : > { %2370 = vmatmul.mubr.bf16.gmra.mxu0 %v2026_v4  ;;  %v1983_v53 = vmax.f32 %v1849_v55, 0.0  ;;  %v10199_v4 = vadd.s32 %v10181_v58, %v9809_v63  ;;  %v10202_v55 = vadd.s32 %v10181_v58, %v4587_v9 }
 0x290   : > { %v1851_v16 = vpop.f32.mrf.mxu1  ;;  %2379 = vmatprep.mubr.bf16.mxu0 %v15400_v59 }
 0x291   : > { %v1852_v35 = vadd.f32 %v10042_v29, %v1851_v16  ;;  %15571 = vst [vmem:[#allocation13_spill] sm:$0xff] %v10199_v4  ;;  %15572 = vst [vmem:[#allocation14_spill] sm:$0xff] %v10202_v55  ;;  %v10205_v16 = vadd.s32 %v10181_v58, %v4588_v61  ;;  %vm4715_vm1 = vcmp.lt.s32.totalorder %v10199_v4, 1100  ;;  %vm4716_vm2 = vcmp.lt.s32.totalorder %v10202_v55, 1100 }
 0x292   : > { %v1853_v22 = vpop.f32.mrf.mxu1 }
 0x293   : > { %v1984_v51 = vmax.f32 %v1852_v35, 0.0  ;;  %15573 = vst [vmem:[#allocation15_spill] sm:$0xff] %v10205_v16  ;;  %v4595_v35 = vadd.s32 72, %v9809_v63  ;;  %v4596_v22 = vadd.s32 80, %v9809_v63  ;;  %vm4717_vm3 = vcmp.lt.s32.totalorder %v10205_v16, 1100 }
 0x294   : > { %v1856_v21 = vpop.f32.mrf.mxu1 }
 0x295   : > { %v2027_v23 = vpack.c.bf16 %v1984_v51, %v1983_v53  ;;  %v1857_v34 = vadd.f32 %v10042_v29, %v1856_v21  ;;  %v10211_v21 = vadd.s32 %v10181_v58, %v4589_v1 }
 0x296   : > { %v1858_v18 = vpop.f32.mrf.mxu1 }
 0x297   : > { %2380 = vmatmul.mubr.bf16.gmra.mxu0 %v2027_v23  ;;  %v1985_v28 = vmax.f32 %v1857_v34, 0.0  ;;  %15574 = vst [vmem:[#allocation16_spill] sm:$0xff] %v10211_v21  ;;  %v10214_v23 = vadd.s32 %v10181_v58, %v4590_v7  ;;  %v10217_v18 = vadd.s32 %v10181_v58, %v4591_v19  ;;  %vm4718_vm4 = vcmp.lt.s32.totalorder %v10211_v21, 1100 }
 0x298   : > { %v1859_v0 = vpop.f32.mrf.mxu1  ;;  %2389 = vmatprep.mubr.bf16.mxu0 %v15400_v59 }
 0x299   : > { %v1860_v31 = vadd.f32 %v10042_v29, %v1859_v0  ;;  %15575 = vst [vmem:[#allocation17_spill] sm:$0xff] %v10214_v23  ;;  %15576 = vst [vmem:[#allocation18_spill] sm:$0xff] %v10217_v18  ;;  %vm4719_vm5 = vcmp.lt.s32.totalorder %v10214_v23, 1100  ;;  %vm4720_vm6 = vcmp.lt.s32.totalorder %v10217_v18, 1100 }
 0x29a   : > { %v1861_v27 = vpop.f32.mrf.mxu1 }
 0x29b   : > { %v1986_v36 = vmax.f32 %v1860_v31, 0.0  ;;  %v10224_v31 = vadd.s32 %v10181_v58, %v4592_v11  ;;  %v10227_v27 = vadd.s32 %v10181_v58, %v4593_v12 }
 0x29c   : > { %v1864_v10 = vpop.f32.mrf.mxu1 }
 0x29d   : > { %v2028_v24 = vpack.c.bf16 %v1986_v36, %v1985_v28  ;;  %v1865_v44 = vadd.f32 %v10042_v29, %v1864_v10  ;;  %v10230_v28 = vadd.s32 %v10181_v58, %v4594_v45  ;;  %vm4721_vm7 = vcmp.lt.s32.totalorder %v10224_v31, 1100 }
 0x29e   : > { %v1866_v37 = vpop.f32.mrf.mxu1  ;;  %vm4722_vm8 = vcmp.lt.s32.totalorder %v10227_v27, 1100 }
 0x29f   : > { %2390 = vmatmul.mubr.bf16.gmra.mxu0 %v2028_v24  ;;  %v1987_v39 = vmax.f32 %v1865_v44, 0.0  ;;  %v4597_v24 = vadd.s32 88, %v9809_v63  ;;  %v4598_v37 = vadd.s32 96, %v9809_v63  ;;  %v4599_v44 = vadd.s32 104, %v9809_v63 }
 0x2a0   : > { %v1867_v26 = vpop.f32.mrf.mxu1  ;;  %2399 = vmatprep.mubr.bf16.mxu0 %v15400_v59  ;;  %vm4723_vm9 = vcmp.lt.s32.totalorder %v10230_v28, 1100 }
 0x2a1   : > { %v1868_v38 = vadd.f32 %v10042_v29, %v1867_v26 }
 0x2a2   : > { %v1869_v54 = vpop.f32.mrf.mxu1 }
 0x2a3   : > { %v1988_v20 = vmax.f32 %v1868_v38, 0.0  ;;  %v10238_v54 = vadd.s32 %v10181_v58, %v4595_v35 }
 0x2a4   : > { %v1872_v41 = vpop.f32.mrf.mxu1 }
 0x2a5   : > { %v2029_v15 = vpack.c.bf16 %v1988_v20, %v1987_v39  ;;  %v1873_v40 = vadd.f32 %v10042_v29, %v1872_v41  ;;  %v10241_v39 = vadd.s32 %v10181_v58, %v4596_v22  ;;  %v4600_v20 = vadd.s32 112, %v9809_v63 }
 0x2a6   : > { %v1874_v48 = vpop.f32.mrf.mxu1  ;;  %v4603_v22 = vadd.s32 136, %v9809_v63  ;;  %vm4724_vm10 = vcmp.lt.s32.totalorder %v10238_v54, 1100 }
 0x2a7   : > { %2400 = vmatmul.mubr.bf16.gmra.mxu0 %v2029_v15  ;;  %v1989_v6 = vmax.f32 %v1873_v40, 0.0  ;;  %v4601_v40 = vadd.s32 120, %v9809_v63  ;;  %v10268_v1 = vadd.s32 %v10181_v58, %v4600_v20  ;;  %vm4725_vm11 = vcmp.lt.s32.totalorder %v10241_v39, 1100 }
 0x2a8   : > { %v1875_v42 = vpop.f32.mrf.mxu1  ;;  %2409 = vmatprep.mubr.bf16.mxu0 %v15400_v59 }
 0x2a9   : > { %v1876_v17 = vadd.f32 %v10042_v29, %v1875_v42  ;;  %v4602_v42 = vadd.s32 128, %v9809_v63  ;;  %15577 = vst [vmem:[#allocation19_spill] sm:$0xff] %v10268_v1  ;;  %v10276_v19 = vadd.s32 %v10181_v58, %v4601_v40  ;;  %vm15430_vm15 = vcmp.lt.s32.totalorder %v10268_v1, 1100 }
 0x2aa   : > { %v1877_v5 = vpop.f32.mrf.mxu1 }
 0x2ab   : > { %v1990_v25 = vmax.f32 %v1876_v17, 0.0  ;;  %15578 = vst [vmem:[#allocation20_spill] sm:$0xff] %v10276_v19  ;;  %vm15431_vm0 = vcmp.lt.s32.totalorder %v10276_v19, 1100 }
 0x2ac   : > { %v1880_v46 = vpop.f32.mrf.mxu1 }
 0x2ad   : > { %v2030_v47 = vpack.c.bf16 %v1990_v25, %v1989_v6  ;;  %v1881_v52 = vadd.f32 %v10042_v29, %v1880_v46 }
 0x2ae   : > { %v1882_v50 = vpop.f32.mrf.mxu1 }
 0x2af   : > { %2410 = vmatmul.mubr.bf16.gmra.mxu0 %v2030_v47  ;;  %v1991_v30 = vmax.f32 %v1881_v52, 0.0  ;;  %v10256_v52 = vadd.s32 %v10181_v58, %v4597_v24 }
 0x2b0   : > { %v1883_v43 = vpop.f32.mrf.mxu1  ;;  %2419 = vmatprep.mubr.bf16.mxu0 %v15400_v59 }
 0x2b1   : > { %v1884_v56 = vadd.f32 %v10042_v29, %v1883_v43  ;;  %v10259_v43 = vadd.s32 %v10181_v58, %v4598_v37  ;;  %v4606_v37 = vadd.s32 160, %v9809_v63  ;;  %vm15556_vm12 = vcmp.lt.s32.totalorder %v10256_v52, 1100 }
 0x2b2   : > { %v1885_v60 = vpop.f32.mrf.mxu1 }
 0x2b3   : > { %v1992_v49 = vmax.f32 %v1884_v56, 0.0  ;;  %v10262_v56 = vadd.s32 %v10181_v58, %v4599_v44  ;;  %vm15429_vm13 = vcmp.lt.s32.totalorder %v10259_v43, 1100 }
 0x2b4   : > { %v1888_v8 = vpop.f32.mrf.mxu1 }
 0x2b5   : > { %v2031_v13 = vpack.c.bf16 %v1992_v49, %v1991_v30  ;;  %v1889_v53 = vadd.f32 %v10042_v29, %v1888_v8  ;;  %v10279_v8 = vadd.s32 %v10181_v58, %v4602_v42  ;;  %vm15428_vm14 = vcmp.lt.s32.totalorder %v10262_v56, 1100 }
 0x2b6   : > { %v1890_v33 = vpop.f32.mrf.mxu1 }
 0x2b7   : > { %v2181_v51 = vpop.f32.mrf.mxu0  ;;  %2420 = vmatmul.mubr.bf16.gmra.mxu0 %v2031_v13  ;;  %v1993_v41 = vmax.f32 %v1889_v53, 0.0  ;;  %15579 = vst [vmem:[#allocation21_spill] sm:$0xff] %v10279_v8  ;;  %v4604_v53 = vadd.s32 144, %v9809_v63 }
 0x2b8   : > { %v10220_v34 = vadd.f32 %v2181_v51, %v10189_v32  ;;  %v1891_v0 = vpop.f32.mrf.mxu1  ;;  %2429 = vmatprep.mubr.bf16.mxu0 %v15400_v59  ;;  %v4605_v51 = vadd.s32 152, %v9809_v63 }
 0x2b9   : > { %v1892_v36 = vadd.f32 %v10042_v29, %v1891_v0  ;;  %v2183_v10 = vpop.f32.mrf.mxu0 }
 0x2ba   : > { %v2184_v26 = vadd.f32 %v2183_v10, %v10195_v14  ;;  %v1893_v38 = vpop.f32.mrf.mxu1  ;;  %v10248_v17 = vmul.f32 %v10220_v34, %v10220_v34 }
 0x2bb   : > { %v1994_v15 = vmax.f32 %v1892_v36, 0.0  ;;  %v2185_v48 = vpop.f32.mrf.mxu0 }
 0x2bc   : > { %v2500_v5 = vmul.f32 0.5, %v2184_v26  ;;  %v10250_v6 = vadd.f32 1.0, %v2184_v26  ;;  %v10253_v25 = vadd.f32 %v2185_v48, %v10189_v32  ;;  %v1896_v46 = vpop.f32.mrf.mxu1 }
 0x2bd   : > { %v2032_v47 = vpack.c.bf16 %v1994_v15, %v1993_v41  ;;  %v2187_v50 = vpop.f32.mrf.mxu0  ;;  %v1897_v49 = vadd.f32 %v10042_v29, %v1896_v46  ;;  %v4607_v41 = vadd.s32 168, %v9809_v63 }
 0x2be   : > { %v2564_v57 = vmul.f32 1.442695, %v2500_v5  ;;  %v2188_v9 = vadd.f32 %v2187_v50, %v10195_v14  ;;  %v1898_v61 = vpop.f32.mrf.mxu1  ;;  %v10272_v30 = vmul.f32 %v10253_v25, %v10253_v25  ;;  %v10309_v50 = vadd.s32 %v10181_v58, %v4604_v53 }
 0x2bf   : > { %v2191_v7 = vpop.f32.mrf.mxu0  ;;  %2430 = vmatmul.mubr.bf16.gmra.mxu0 %v2032_v47  ;;  %v1995_v44 = vmax.f32 %v1897_v49, 0.0  ;;  %v10306_v47 = vadd.s32 %v10181_v58, %v4603_v22  ;;  %v10324_v22 = vadd.s32 %v10181_v58, %v4606_v37  ;;  %v10327_v53 = vadd.s32 %v10181_v58, %v4607_v41 }
 0x2c0   : > { %8546 = vpow2.f32 %v2564_v57  ;;  %v2501_v11 = vmul.f32 0.5, %v2188_v9  ;;  %v10281_v12 = vadd.f32 1.0, %v2188_v9  ;;  %v10284_v45 = vadd.f32 %v2191_v7, %v10189_v32  ;;  %v1899_v13 = vpop.f32.mrf.mxu1  ;;  %2439 = vmatprep.mubr.bf16.mxu0 %v15400_v59  ;;  %15581 = vst [vmem:[#allocation23_spill] sm:$0xff] %v10309_v50 }
 0x2c1   : > { %v1900_v33 = vadd.f32 %v10042_v29, %v1899_v13  ;;  %v2193_v35 = vpop.f32.mrf.mxu0  ;;  %15580 = vst [vmem:[#allocation22_spill] sm:$0xff] %v10306_v47  ;;  %v4608_v57 = vadd.s32 176, %v9809_v63  ;;  %15583 = vst [vmem:[#allocation25_spill] sm:$0xff] %v10324_v22  ;;  %v4610_v41 = vadd.s32 192, %v9809_v63 }
 0x2c2   : > { %v2566_v0 = vmul.f32 1.442695, %v2501_v11  ;;  %v2194_v10 = vadd.f32 %v2193_v35, %v10195_v14  ;;  %v1901_v24 = vpop.f32.mrf.mxu1  ;;  %v10297_v26 = vmul.f32 %v10284_v45, %v10284_v45  ;;  %v10316_v11 = vadd.s32 %v10181_v58, %v4605_v51  ;;  %15584 = vst [vmem:[#allocation26_spill] sm:$0xff] %v10327_v53 }
 0x2c3   : > { %v1996_v38 = vmax.f32 %v1900_v33, 0.0  ;;  %v2195_v20 = vpop.f32.mrf.mxu0  ;;  %v10338_v37 = vadd.s32 %v10181_v58, %v4608_v57 }
 0x2c4   : > { %8548 = vpow2.f32 %v2566_v0  ;;  %v2502_v15 = vmul.f32 0.5, %v2194_v10  ;;  %v10300_v48 = vadd.f32 1.0, %v2194_v10  ;;  %v10303_v40 = vadd.f32 %v2195_v20, %v10189_v32  ;;  %v1904_v42 = vpop.f32.mrf.mxu1  ;;  %15582 = vst [vmem:[#allocation24_spill] sm:$0xff] %v10316_v11 }
 0x2c5   : > { %v2033_v5 = vpack.c.bf16 %v1996_v38, %v1995_v44  ;;  %v2197_v46 = vpop.f32.mrf.mxu0  ;;  %v1905_v33 = vadd.f32 %v10042_v29, %v1904_v42  ;;  %15585 = vst [vmem:[#allocation27_spill] sm:$0xff] %v10338_v37  ;;  %v4609_v20 = vadd.s32 184, %v9809_v63 }
 0x2c6   : > { %v2568_v9 = vmul.f32 1.442695, %v2502_v15  ;;  %v2198_v49 = vadd.f32 %v2197_v46, %v10195_v14  ;;  %v1906_v7 = vpop.f32.mrf.mxu1  ;;  %v10320_v13 = vmul.f32 %v10303_v40, %v10303_v40 }
 0x2c7   : > { %v2201_v35 = vpop.f32.mrf.mxu0  ;;  %2440 = vmatmul.mubr.bf16.gmra.mxu0 %v2033_v5 }
 0x2c8   : > { %8550 = vpow2.f32 %v2568_v9  ;;  %v2503_v0 = vmul.f32 0.5, %v2198_v49  ;;  %v10329_v10 = vadd.f32 1.0, %v2198_v49  ;;  %v10332_v51 = vadd.f32 %v2201_v35, %v10189_v32  ;;  %v1907_v24 = vpop.f32.mrf.mxu1  ;;  %2449 = vmatprep.mubr.bf16.mxu0 %v15400_v59 }
 0x2c9   : > { %v1908_v44 = vadd.f32 %v10042_v29, %v1907_v24  ;;  %v2203_v38 = vpop.f32.mrf.mxu0  ;;  %v4611_v9 = vadd.s32 200, %v9809_v63  ;;  %v1997_v49 = vmax.f32 %v1905_v33, 0.0  ;;  %v4612_v24 = vadd.s32 208, %v9809_v63 }
 0x2ca   : > { %v2570_v15 = vmul.f32 1.442695, %v2503_v0  ;;  %v2204_v5 = vadd.f32 %v2203_v38, %v10195_v14  ;;  %v1909_v46 = vpop.f32.mrf.mxu1  ;;  %v10348_v7 = vmul.f32 %v10332_v51, %v10332_v51 }
 0x2cb   : > { %v1998_v57 = vmax.f32 %v1908_v44, 0.0  ;;  %v2205_v35 = vpop.f32.mrf.mxu0  ;;  %v2692_v46 = vld [vmem:[%s9492_s9] sm:$0xff]  ;;  %v10360_v44 = vadd.s32 %v10181_v58, %v4609_v20  ;;  %v10368_v2 = vadd.s32 %v10181_v58, %v4611_v9 }
 0x2cc   : > { %8552 = vpow2.f32 %v2570_v15  ;;  %v2504_v62 = vmul.f32 0.5, %v2204_v5  ;;  %v10351_v0 = vadd.f32 1.0, %v2204_v5  ;;  %v10354_v42 = vadd.f32 %v2205_v35, %v10189_v32  ;;  %v1912_v38 = vpop.f32.mrf.mxu1 }
 0x2cd   : > { %v8547_v61 = vpop.eup %8546  ;;  %v2034_v33 = vpack.c.bf16 %v1998_v57, %v1997_v49  ;;  %v1913_v36 = vadd.f32 %v10042_v29, %v1912_v38  ;;  %v2207_v59 = vpop.f32.mrf.mxu0  ;;  %15586 = vst [vmem:[#allocation28_spill] sm:$0xff] %v10360_v44  ;;  %v10363_v15 = vadd.s32 %v10181_v58, %v4610_v41  ;;  %15588 = vst [vmem:[#allocation30_spill] sm:$0xff] %v10368_v2  ;;  %v15591_v2 = vmov 0  }
 0x2ce   : > { %v7566_v5 = vmul.f32 %v8547_v61, %v8547_v61  ;;  %v2572_v60 = vmul.f32 1.442695, %v2504_v62  ;;  %v1914_v3 = vpop.f32.mrf.mxu1  ;;  %v10372_v29 = vmul.f32 %v10354_v42, %v10354_v42  ;;  %v2208_v20 = vadd.f32 %v2207_v59, %v10195_v14  ;;  %v2693_v59 = vld [vmem:[%s9492_s9 + $0x8] sm:$0xff] }
 0x2cf   : > { %15587 = vst [vmem:[#allocation29_spill] sm:$0xff] %v10363_v15  ;;  %v2211_v49 = vpop.f32.mrf.mxu0  ;;  %2450 = vmatmul.mubr.bf16.gmra.mxu0 %v2034_v33  ;;  %v2756_v41 = vmul.f32 %v8547_v61, %v2692_v46  ;;  %v10376_v57 = vadd.s32 %v10181_v58, %v4612_v24  ;;  %v15590_v62 = vsub.f32 %v10250_v6, %v10248_v17  ;;  %v1999_v3 = vmax.f32 %v1913_v36, 0.0  ;;  %v10392_v17 = vld [vmem:[%s15385_s5] ss:$0 sm:$0xff] }
 0x2d0   : > { %8554 = vpow2.f32 %v2572_v60  ;;  %v10382_v9 = vadd.f32 %v2211_v49, %v10189_v32  ;;  %v1915_v35 = vpop.f32.mrf.mxu1  ;;  %2459 = vmatprep.mubr.bf16.mxu0 %v15591_v2  ;;  %v2505_v61 = vmul.f32 0.5, %v2208_v20  ;;  %v10387_v24 = vadd.f32 1.0, %v2208_v20 }
 0x2d1   : > { %15589 = vst [vmem:[#allocation31_spill] sm:$0xff] %v10376_v57  ;;  %v7630_v38 = vsub.f32 %v15590_v62, %v7566_v5  ;;  %v8549_v15 = vpop.eup %8548  ;;  %v1916_v6 = vadd.f32 %v10392_v17, %v1915_v35  ;;  %v2213_v60 = vpop.f32.mrf.mxu0  ;;  %v10396_v36 = vadd.f32 %v2756_v41, %v10220_v34  ;;  %v2694_v62 = vld [vmem:[%s9492_s9 + $0x10] sm:$0xff]  ;;  %v15592_v41 = vsub.f32 %v10281_v12, %v10272_v30 }
 0x2d2   : > { %v7567_v33 = vmul.f32 %v8549_v15, %v8549_v15  ;;  %v10400_v5 = vmul.f32 %v10382_v9, %v10382_v9  ;;  %v2214_v20 = vadd.f32 %v2213_v60, %v10195_v14  ;;  %v1917_v49 = vpop.f32.mrf.mxu1  ;;  %v2574_v57 = vmul.f32 1.442695, %v2505_v61 }
 0x2d3   : > { %v7694_v46 = vmul.f32 -0.5, %v7630_v38  ;;  %v2000_v58 = vmax.f32 %v1916_v6, 0.0  ;;  %v2215_v35 = vpop.f32.mrf.mxu0  ;;  %v2757_v37 = vmul.f32 %v8549_v15, %v2693_v59 }
 0x2d4   : > { %v7631_v38 = vsub.f32 %v15592_v41, %v7567_v33  ;;  %v2506_v53 = vmul.f32 0.5, %v2214_v20  ;;  %v10411_v22 = vadd.f32 1.0, %v2214_v20  ;;  %v1920_v60 = vpop.f32.mrf.mxu1  ;;  %8556 = vpow2.f32 %v2574_v57  ;;  %v2695_v20 = vld [vmem:[%s9492_s9 + $0x18] sm:$0xff] }
 0x2d5   : > { %v7758_v34 = vsel %vm4715_vm1, %v7694_v46, 0.0  ;;  %v8551_v49 = vpop.eup %8550  ;;  %v2035_v61 = vpack.c.bf16 %v2000_v58, %v1999_v3  ;;  %v10415_v6 = vadd.f32 %v2215_v35, %v10189_v32  ;;  %v1921_v15 = vadd.f32 %v10392_v17, %v1920_v60  ;;  %v2217_v59 = vpop.f32.mrf.mxu0 }
 0x2d6   : > { %v7695_v46 = vmul.f32 -0.5, %v7631_v38  ;;  %v10418_v44 = vmul.f32 %v8551_v49, %v2694_v62  ;;  %v7568_v30 = vmul.f32 %v8551_v49, %v8551_v49  ;;  %v2576_v12 = vmul.f32 1.442695, %v2506_v53  ;;  %v1922_v33 = vpop.f32.mrf.mxu1 }
 0x2d7   : > { %v10425_v57 = vmul.f32 %v10415_v6, %v10415_v6  ;;  %v2001_v58 = vmax.f32 %v1921_v15, 0.0  ;;  %v2218_v3 = vadd.f32 %v2217_v59, %v10195_v14  ;;  %v2221_v35 = vpop.f32.mrf.mxu0  ;;  %2460 = vmatmul.mubr.bf16.gmra.mxu0 %v2035_v61  ;;  %v15593_v53 = vsub.f32 %v10300_v48, %v10297_v26 }
 0x2d8   : > { %v7759_v62 = vsel %vm4716_vm2, %v7695_v46, 0.0  ;;  %8558 = vpow2.f32 %v2576_v12  ;;  %v10434_v60 = vadd.f32 %v2221_v35, %v10189_v32  ;;  %v1923_v49 = vpop.f32.mrf.mxu1  ;;  %2469 = vmatprep.mubr.bf16.mxu0 %v15591_v2 }
 0x2d9   : > { %v7632_v38 = vsub.f32 %v15593_v53, %v7568_v30  ;;  %v8553_v33 = vpop.eup %8552  ;;  %v7823_v15 = vadd.f32 %v7759_v62, %v7758_v34  ;;  %v2507_v59 = vmul.f32 0.5, %v2218_v3  ;;  %v10438_v61 = vadd.f32 1.0, %v2218_v3  ;;  %v2223_v41 = vpop.f32.mrf.mxu0 }
 0x2da   : > { %v1924_v46 = vadd.f32 %v10392_v17, %v1923_v49  ;;  %v2759_v26 = vmul.f32 %v8553_v33, %v2695_v20  ;;  %v7569_v48 = vmul.f32 %v8553_v33, %v8553_v33  ;;  %v10443_v30 = vmul.f32 %v10434_v60, %v10434_v60  ;;  %v1925_v12 = vpop.f32.mrf.mxu1 }
 0x2db   : > { %v7696_v55 = vmul.f32 -0.5, %v7632_v38  ;;  %v2578_v35 = vmul.f32 1.442695, %v2507_v59  ;;  %v2821_v53 = vadd.f32 %v2757_v37, %v10253_v25  ;;  %v2225_v3 = vpop.f32.mrf.mxu0  ;;  %v15594_v20 = vsub.f32 %v10329_v10, %v10320_v13 }
 0x2dc   : > { %v2002_v62 = vmax.f32 %v1924_v46, 0.0  ;;  %v2224_v33 = vadd.f32 %v2223_v41, %v10195_v14  ;;  %v10455_v4 = vadd.f32 %v2225_v3, %v10189_v32  ;;  %v1928_v59 = vpop.f32.mrf.mxu1 }
 0x2dd   : > { %v7760_v49 = vsel %vm4717_vm3, %v7696_v55, 0.0  ;;  %v7633_v38 = vsub.f32 %v15594_v20, %v7569_v48  ;;  %v10457_v12 = vpop.eup %8554  ;;  %8560 = vpow2.f32 %v2578_v35  ;;  %v2884_v25 = vpack.c.bf16 %v2821_v53, %v10396_v36  ;;  %v2227_v37 = vpop.f32.mrf.mxu0 }
 0x2de   : > { %v7824_v34 = vadd.f32 %v7823_v15, %v7760_v49  ;;  %v2036_v46 = vpack.c.bf16 %v2002_v62, %v2001_v58  ;;  %v7570_v55 = vmul.f32 %v10457_v12, %v10457_v12  ;;  %v2508_v13 = vmul.f32 0.5, %v2224_v33  ;;  %v1930_v41 = vpop.f32.mrf.mxu1 }
 0x2df   : > { %v7697_v16 = vmul.f32 -0.5, %v7633_v38  ;;  %v10463_v10 = vadd.f32 1.0, %v2224_v33  ;;  %8235 = vmatprep.mubr.bf16.mxu1 %v2884_v25  ;;  %v10467_v48 = vmul.f32 %v10455_v4, %v10455_v4  ;;  %v1929_v58 = vadd.f32 %v10392_v17, %v1928_v59  ;;  %v2231_v15 = vpop.f32.mrf.mxu0 }
 0x2e0   : > { %v2228_v36 = vadd.f32 %v2227_v37, %v10195_v14  ;;  %2470 = vmatmul.mubr.bf16.gmra.mxu0 %v2036_v46  ;;  %v10472_v35 = vadd.s32 216, %v9809_v63  ;;  %v15595_v53 = vsub.f32 %v10351_v0, %v10348_v7  ;;  %v2580_v49 = vmul.f32 1.442695, %v2508_v13  ;;  %v1931_v38 = vpop.f32.mrf.mxu1 }
 0x2e1   : > { %v7761_v62 = vsel %vm4718_vm4, %v7697_v16, 0.0  ;;  %2479 = vmatprep.mubr.bf16.mxu0 %v15591_v2  ;;  %v2003_v59 = vmax.f32 %v1929_v58, 0.0  ;;  %v2233_v37 = vpop.f32.mrf.mxu0  ;;  %v10485_v16 = vpop.eup %8556  ;;  %v10488_v7 = vadd.f32 %v2231_v15, %v10189_v32  ;;  %v1932_v0 = vadd.f32 %v10392_v17, %v1931_v38 }
 0x2e2   : > { %v7634_v3 = vsub.f32 %v15595_v53, %v7570_v55  ;;  %v7825_v33 = vadd.f32 %v7824_v34, %v7761_v62  ;;  %v2509_v46 = vmul.f32 0.5, %v2228_v36  ;;  %v10483_v25 = vadd.f32 1.0, %v2228_v36  ;;  %v1933_v55 = vpop.f32.mrf.mxu1 }
 0x2e3   : > { %8562 = vpow2.f32 %v2580_v49  ;;  %v7571_v34 = vmul.f32 %v10485_v16, %v10485_v16  ;;  %v2822_v36 = vadd.f32 %v10418_v44, %v10284_v45  ;;  %v2235_v62 = vpop.f32.mrf.mxu0  ;;  %v10501_v15 = vmul.f32 %v10488_v7, %v10488_v7 }
 0x2e4   : > { %v7698_v41 = vmul.f32 -0.5, %v7634_v3  ;;  %v2582_v13 = vmul.f32 1.442695, %v2509_v46  ;;  %v2004_v3 = vmax.f32 %v1932_v0, 0.0  ;;  %v2823_v49 = vadd.f32 %v2759_v26, %v10303_v40  ;;  %v1936_v38 = vpop.f32.mrf.mxu1 }
 0x2e5   : > { %v10504_v55 = vpop.eup %8558  ;;  %v15596_v58 = vsub.f32 %v10387_v24, %v10372_v29  ;;  %v2234_v45 = vadd.f32 %v2233_v37, %v10195_v14  ;;  %v2237_v44 = vpop.f32.mrf.mxu0  ;;  %v10514_v40 = vadd.f32 %v2235_v62, %v10189_v32  ;;  %v1937_v24 = vadd.f32 %v10392_v17, %v1936_v38 }
 0x2e6   : > { %v7762_v53 = vsel %vm4719_vm5, %v7698_v41, 0.0  ;;  %8564 = vpow2.f32 %v2582_v13  ;;  %v7572_v41 = vmul.f32 %v10504_v55, %v10504_v55  ;;  %v2037_v0 = vpack.c.bf16 %v2004_v3, %v2003_v59  ;;  %v1938_v26 = vpop.f32.mrf.mxu1 }
 0x2e7   : > { %v7826_v46 = vadd.f32 %v7825_v33, %v7762_v53  ;;  %v7635_v20 = vsub.f32 %v15596_v58, %v7571_v34  ;;  %v2885_v23 = vpack.c.bf16 %v2823_v49, %v2822_v36  ;;  %v2510_v53 = vmul.f32 0.5, %v2234_v45  ;;  %v2241_v37 = vpop.f32.mrf.mxu0 }
 0x2e8   : > { %v10516_v29 = vadd.f32 1.0, %v2234_v45  ;;  %v15597_v34 = vsub.f32 %v10411_v22, %v10400_v5  ;;  %v10524_v59 = vmul.f32 %v10514_v40, %v10514_v40  ;;  %v2238_v58 = vadd.f32 %v2237_v44, %v10195_v14  ;;  %v1939_v36 = vpop.f32.mrf.mxu1  ;;  %2480 = vmatmul.mubr.bf16.gmra.mxu0 %v2037_v0 }
 0x2e9   : > { %v7699_v33 = vmul.f32 -0.5, %v7635_v20  ;;  %8236 = vmatmul.mubr.bf16.vlgmr.msra.gmra.mxu1 %v2885_v23  ;;  %v10528_v20 = vadd.f32 %v2241_v37, %v10189_v32  ;;  %v2584_v3 = vmul.f32 1.442695, %v2510_v53  ;;  %v2005_v5 = vmax.f32 %v1937_v24, 0.0  ;;  %v2696_v23 = vld [vmem:[%s9492_s9 + $0x20] sm:$0xff]  ;;  %v2243_v49 = vpop.f32.mrf.mxu0  ;;  %v2697_v37 = vld [vmem:[%s9492_s9 + $0x28] sm:$0xff]  ;;  %2489 = vmatprep.mubr.bf16.mxu0 %v15591_v2 }
 0x2ea   : > { %v7636_v13 = vsub.f32 %v15597_v34, %v7572_v41  ;;  %v8561_v38 = vpop.eup %8560  ;;  %v2511_v26 = vmul.f32 0.5, %v2238_v58  ;;  %v10535_v44 = vadd.f32 1.0, %v2238_v58  ;;  %v1941_v34 = vpop.f32.mrf.mxu1  ;;  %v1940_v0 = vadd.f32 %v10392_v17, %v1939_v36 }
 0x2eb   : > { %v7763_v62 = vsel %vm4720_vm6, %v7699_v33, 0.0  ;;  %v7573_v18 = vmul.f32 %v8561_v38, %v8561_v38  ;;  %8566 = vpow2.f32 %v2584_v3  ;;  %v10542_v33 = vmul.f32 %v10528_v20, %v10528_v20  ;;  %v2245_v53 = vpop.f32.mrf.mxu0 }
 0x2ec   : > { %v7827_v45 = vadd.f32 %v7826_v46, %v7763_v62  ;;  %v7700_v41 = vmul.f32 -0.5, %v7636_v13  ;;  %v2586_v24 = vmul.f32 1.442695, %v2511_v26  ;;  %v7513_v13 = vsub.f32 %v10535_v44, %v10524_v59  ;;  %v2703_v59 = vld [vmem:[%s9492_s9 + $0x58] sm:$0xff] }
 0x2ed   : > { %v2760_v58 = vmul.f32 %v10457_v12, %v2696_v23  ;;  %v15598_v3 = vsub.f32 %v10438_v61, %v10425_v57  ;;  %v2006_v22 = vmax.f32 %v1940_v0, 0.0  ;;  %v2761_v21 = vmul.f32 %v10485_v16, %v2697_v37  ;;  %v2247_v2 = vpop.f32.mrf.mxu0 }
 0x2ee   : > { %v7764_v46 = vsel %vm4721_vm7, %v7700_v41, 0.0  ;;  %8568 = vpow2.f32 %v2586_v24  ;;  %v2244_v36 = vadd.f32 %v2243_v49, %v10195_v14  ;;  %v10558_v41 = vadd.f32 %v2245_v53, %v10189_v32 }
 0x2ef   : > { %v7828_v62 = vadd.f32 %v7827_v45, %v7764_v46  ;;  %v7637_v34 = vsub.f32 %v15598_v3, %v7573_v18  ;;  %v2824_v17 = vadd.f32 %v2760_v58, %v10332_v51  ;;  %v2038_v18 = vpack.c.bf16 %v2006_v22, %v2005_v5  ;;  %v2251_v23 = vpop.f32.mrf.mxu0 }
 0x2f0   : > { %v10560_v12 = vpop.eup %8562  ;;  %v2825_v61 = vadd.f32 %v2761_v21, %v10354_v42  ;;  %v2248_v16 = vadd.f32 %v2247_v2, %v10195_v14  ;;  %v2512_v51 = vmul.f32 0.5, %v2244_v36  ;;  %v10566_v26 = vadd.f32 1.0, %v2244_v36  ;;  %v2698_v2 = vld [vmem:[%s9492_s9 + $0x30] sm:$0xff]  ;;  %v2699_v21 = vld [vmem:[%s9492_s9 + $0x38] sm:$0xff] }
 0x2f1   : > { %v7701_v57 = vmul.f32 -0.5, %v7637_v34  ;;  %v7574_v45 = vmul.f32 %v10560_v12, %v10560_v12  ;;  %v10570_v49 = vmul.f32 %v10558_v41, %v10558_v41  ;;  %2490 = vmatmul.mubr.bf16.gmra.mxu0 %v2038_v18  ;;  %v2253_v42 = vpop.f32.mrf.mxu0  ;;  %v15599_v24 = vsub.f32 %v10463_v10, %v10443_v30 }
 0x2f2   : > { %v2886_v0 = vpack.c.bf16 %v2825_v61, %v2824_v17  ;;  %v2513_v22 = vmul.f32 0.5, %v2248_v16  ;;  %v10574_v5 = vadd.f32 1.0, %v2248_v16  ;;  %v2588_v3 = vmul.f32 1.442695, %v2512_v51 }
 0x2f3   : > { %v7765_v37 = vsel %vm4722_vm8, %v7701_v57, 0.0  ;;  %v8565_v53 = vpop.eup %8564  ;;  %v7638_v58 = vsub.f32 %v15599_v24, %v7574_v45  ;;  %v7514_v34 = vsub.f32 %v10566_v26, %v10542_v33  ;;  %v10586_v18 = vadd.f32 %v2251_v23, %v10189_v32  ;;  %v2255_v61 = vpop.f32.mrf.mxu0 }
 0x2f4   : > { %v7829_v46 = vadd.f32 %v7828_v62, %v7765_v37  ;;  %v7575_v36 = vmul.f32 %v8565_v53, %v8565_v53  ;;  %8239 = vmatprep.mubr.bf16.mxu1 %v2886_v0  ;;  %v2590_v17 = vmul.f32 1.442695, %v2513_v22  ;;  %v7515_v57 = vsub.f32 %v10574_v5, %v10570_v49 }
 0x2f5   : > { %v7702_v16 = vmul.f32 -0.5, %v7638_v58  ;;  %8570 = vpow2.f32 %v2588_v3  ;;  %v2762_v30 = vmul.f32 %v10504_v55, %v2698_v2  ;;  %v2763_v10 = vmul.f32 %v8561_v38, %v2699_v21  ;;  %v2257_v37 = vpop.f32.mrf.mxu0  ;;  %v8476_v38 = vld [vmem:[%s15390_s10 + $0x74] ss:$8 sps:$4 sm:$0xff]  }
 0x2f6   : > { %v15600_v62 = vsub.f32 %v10483_v25, %v10467_v48  ;;  %8572 = vpow2.f32 %v2590_v17  ;;  %v10595_v51 = vmul.f32 %v10586_v18, %v10586_v18  ;;  %v2254_v23 = vadd.f32 %v2253_v42, %v10195_v14  ;;  %v8474_v25 = vld [vmem:[%s15390_s10 + $0x70] ss:$8 sps:$4 sm:$0xff]   ;;  %3480 = vmatprep.subr.bf16.mxu1 %v8476_v38 }
 0x2f7   : > { %v7766_v0 = vsel %vm4723_vm9, %v7702_v16, 0.0  ;;  %v2826_v22 = vadd.f32 %v2762_v30, %v10382_v9  ;;  %v2827_v55 = vadd.f32 %v2763_v10, %v10415_v6  ;;  %v10603_v48 = vadd.f32 %v2255_v61, %v10189_v32  ;;  %v2261_v6 = vpop.f32.mrf.mxu0  ;;  %v2700_v61 = vld [vmem:[%s9492_s9 + $0x40] sm:$0xff]  ;;  %3481 = vmatpush1.bf16.msra.mxu1 %v8474_v25 }
 0x2f8   : > { %v7639_v45 = vsub.f32 %v15600_v62, %v7575_v36  ;;  %v7830_v2 = vadd.f32 %v7829_v46, %v7766_v0  ;;  %v2514_v9 = vmul.f32 0.5, %v2254_v23  ;;  %v10612_v42 = vadd.f32 1.0, %v2254_v23  ;;  %v8567_v24 = vpop.eup %8566  ;;  %v2701_v46 = vld [vmem:[%s9492_s9 + $0x48] sm:$0xff] }
 0x2f9   : > { %v2887_v58 = vpack.c.bf16 %v2827_v55, %v2826_v22  ;;  %v10616_v3 = vmul.f32 %v10603_v48, %v10603_v48  ;;  %v2258_v36 = vadd.f32 %v2257_v37, %v10195_v14  ;;  %v10620_v17 = vadd.f32 %v2261_v6, %v10189_v32 }
 0x2fa   : > { %v7703_v21 = vmul.f32 -0.5, %v7639_v45  ;;  %v7576_v30 = vmul.f32 %v8567_v24, %v8567_v24  ;;  %v2592_v10 = vmul.f32 1.442695, %v2514_v9  ;;  %v2263_v45 = vpop.f32.mrf.mxu0  ;;  %v15601_v38 = vsub.f32 %v10516_v29, %v10501_v15 }
 0x2fb   : > { %8240 = vmatmul.mubr.bf16.gmra.mxu1 %v2887_v58  ;;  %v2515_v0 = vmul.f32 0.5, %v2258_v36  ;;  %v10628_v37 = vadd.f32 1.0, %v2258_v36  ;;  %v10632_v22 = vmul.f32 %v10620_v17, %v10620_v17  ;;  %v8569_v55 = vpop.eup %8568  ;;  %v2764_v9 = vmul.f32 %v10560_v12, %v2700_v61 }
 0x2fc   : > { %v7767_v16 = vsel %vm4724_vm10, %v7703_v21, 0.0  ;;  %v7640_v21 = vsub.f32 %v15601_v38, %v7576_v30  ;;  %8574 = vpow2.f32 %v2592_v10  ;;  %v2765_v6 = vmul.f32 %v8565_v53, %v2701_v46  ;;  %v2265_v62 = vpop.f32.mrf.mxu0  ;;  %v2702_v10 = vld [vmem:[%s9492_s9 + $0x50] sm:$0xff] }
 0x2fd   : > { %v7831_v23 = vadd.f32 %v7830_v2, %v7767_v16  ;;  %v7577_v25 = vmul.f32 %v8569_v55, %v8569_v55  ;;  %v2594_v2 = vmul.f32 1.442695, %v2515_v0  ;;  %v2264_v36 = vadd.f32 %v2263_v45, %v10195_v14 }
 0x2fe   : > { %v7704_v16 = vmul.f32 -0.5, %v7640_v21  ;;  %v2828_v15 = vadd.f32 %v2764_v9, %v10434_v60  ;;  %v2829_v29 = vadd.f32 %v2765_v6, %v10455_v4  ;;  %v10645_v12 = vadd.f32 %v2265_v62, %v10189_v32  ;;  %v2267_v53 = vpop.f32.mrf.mxu0  ;;  %v2704_v21 = vld [vmem:[%s9492_s9 + $0x60] sm:$0xff] }
 0x2ff   : > { %v7641_v61 = vsub.f32 %v7513_v13, %v7577_v25  ;;  %8576 = vpow2.f32 %v2594_v2  ;;  %v2516_v46 = vmul.f32 0.5, %v2264_v36  ;;  %v10651_v30 = vadd.f32 1.0, %v2264_v36 }
 0x300   : > { %v7768_v60 = vsel %vm4725_vm11, %v7704_v16, 0.0  ;;  %v2888_v45 = vpack.c.bf16 %v2829_v29, %v2828_v15  ;;  %v10658_v4 = vmul.f32 %v10645_v12, %v10645_v12  ;;  %v2268_v62 = vadd.f32 %v2267_v53, %v10195_v14  ;;  %v2271_v0 = vpop.f32.mrf.mxu0 }
 0x301   : > { %v7832_v44 = vadd.f32 %v7831_v23, %v7768_v60  ;;  %v7705_v13 = vmul.f32 -0.5, %v7641_v61  ;;  %v2596_v38 = vmul.f32 1.442695, %v2516_v46  ;;  %v10667_v2 = vadd.f32 %v2271_v0, %v10189_v32 }
 0x302   : > { %v8571_v9 = vpop.eup %8570  ;;  %8243 = vmatprep.mubr.bf16.mxu1 %v2888_v45  ;;  %v2517_v6 = vmul.f32 0.5, %v2268_v62  ;;  %v10664_v25 = vadd.f32 1.0, %v2268_v62  ;;  %v2766_v36 = vmul.f32 %v8567_v24, %v2702_v10  ;;  %v2273_v16 = vpop.f32.mrf.mxu0  ;;  %v2767_v53 = vmul.f32 %v8569_v55, %v2703_v59  ;;  %v2707_v45 = vld [vmem:[%s9492_s9 + $0x78] sm:$0xff] }
 0x303   : > { %v8573_v15 = vpop.eup %8572  ;;  %v7769_v23 = vsel %vm15556_vm12, %v7705_v13, 0.0  ;;  %v7578_v29 = vmul.f32 %v8571_v9, %v8571_v9  ;;  %8578 = vpow2.f32 %v2596_v38  ;;  %v10680_v10 = vmul.f32 %v10667_v2, %v10667_v2 }
 0x304   : > { %v7833_v61 = vadd.f32 %v7832_v44, %v7769_v23  ;;  %v7579_v46 = vmul.f32 %v8573_v15, %v8573_v15  ;;  %v2598_v60 = vmul.f32 1.442695, %v2517_v6  ;;  %v2275_v62 = vpop.f32.mrf.mxu0  ;;  %v2830_v55 = vadd.f32 %v2766_v36, %v10488_v7 }
 0x305   : > { %v7642_v24 = vsub.f32 %v7514_v34, %v7578_v29  ;;  %v2831_v0 = vadd.f32 %v2767_v53, %v10514_v40  ;;  %v2274_v44 = vadd.f32 %v2273_v16, %v10195_v14  ;;  %v10689_v33 = vadd.f32 %v2275_v62, %v10189_v32  ;;  %v8477_v53 = vld [vmem:[%s15390_s10 + $0x60] ss:$8 sps:$4 sm:$0xff]  }
 0x306   : > { %v7643_v59 = vsub.f32 %v7515_v57, %v7579_v46  ;;  %8580 = vpow2.f32 %v2598_v60  ;;  %v2277_v26 = vpop.f32.mrf.mxu0  ;;  %v2768_v6 = vmul.f32 %v8571_v9, %v2704_v21  ;;  %v2705_v9 = vld [vmem:[%s9492_s9 + $0x68] sm:$0xff] }
 0x307   : > { %v7706_v34 = vmul.f32 -0.5, %v7642_v24  ;;  %v2889_v13 = vpack.c.bf16 %v2831_v0, %v2830_v55  ;;  %v2278_v38 = vadd.f32 %v2277_v26, %v10195_v14  ;;  %v2518_v40 = vmul.f32 0.5, %v2274_v44  ;;  %v8479_v0 = vld [vmem:[%s15390_s10 + $0x64] ss:$8 sps:$4 sm:$0xff]  }
 0x308   : > { %v7707_v7 = vmul.f32 -0.5, %v7643_v59  ;;  %v10693_v36 = vadd.f32 1.0, %v2274_v44  ;;  %v10697_v49 = vmul.f32 %v10689_v33, %v10689_v33  ;;  %v2281_v5 = vpop.f32.mrf.mxu0  ;;  %3482 = vmatprep.subr.bf16.mxu1 %v8479_v0  ;;  %v2832_v26 = vadd.f32 %v2768_v6, %v10528_v20 }
 0x309   : > { %v8575_v57 = vpop.eup %8574  ;;  %v7770_v16 = vsel %vm15429_vm13, %v7706_v34, 0.0  ;;  %8244 = vmatmul.mubr.bf16.gmra.mxu1 %v2889_v13  ;;  %v2519_v23 = vmul.f32 0.5, %v2278_v38  ;;  %v10701_v29 = vadd.f32 1.0, %v2278_v38  ;;  %v10704_v21 = vadd.f32 %v2281_v5, %v10189_v32  ;;  %v2706_v34 = vld [vmem:[%s9492_s9 + $0x70] sm:$0xff] }
 0x30a   : > { %v7834_v46 = vadd.f32 %v7833_v61, %v7770_v16  ;;  %v7771_v60 = vsel %vm15428_vm14, %v7707_v7, 0.0  ;;  %v7580_v62 = vmul.f32 %v8575_v57, %v8575_v57  ;;  %v2600_v24 = vmul.f32 1.442695, %v2518_v40  ;;  %v2283_v55 = vpop.f32.mrf.mxu0  ;;  %3483 = vmatpush1.bf16.msra.mxu1 %v8477_v53 }
 0x30b   : > { %v2602_v44 = vmul.f32 1.442695, %v2519_v23  ;;  %v10721_v61 = vmul.f32 %v10704_v21, %v10704_v21  ;;  %v15602_v7 = vsub.f32 %v10612_v42, %v10595_v51  ;;  %vm15433_vm14 = vcmp.lt.s32.totalorder %v10279_v8, 1100 }
 0x30c   : > { %v8577_v13 = vpop.eup %8576  ;;  %v7835_v38 = vadd.f32 %v7834_v46, %v7771_v60  ;;  %8582 = vpow2.f32 %v2600_v24  ;;  %v2769_v5 = vmul.f32 %v8573_v15, %v2705_v9  ;;  %v2285_v16 = vpop.f32.mrf.mxu0  ;;  %v2284_v59 = vadd.f32 %v2283_v55, %v10195_v14 }
 0x30d   : > { %v7644_v40 = vsub.f32 %v15602_v7, %v7580_v62  ;;  %v7581_v23 = vmul.f32 %v8577_v13, %v8577_v13  ;;  %8584 = vpow2.f32 %v2602_v44  ;;  %v10733_v51 = vadd.f32 %v2285_v16, %v10189_v32 }
 0x30e   : > { %v2833_v46 = vadd.f32 %v2769_v5, %v10558_v41  ;;  %v2287_v42 = vpop.f32.mrf.mxu0  ;;  %v2770_v60 = vmul.f32 %v8575_v57, %v2706_v34  ;;  %v15603_v15 = vsub.f32 %v10628_v37, %v10616_v3  ;;  %vm15432_vm13 = vcmp.lt.s32.totalorder %v10306_v47, 1100 }
 0x30f   : > { %v7708_v58 = vmul.f32 -0.5, %v7644_v40  ;;  %v2520_v62 = vmul.f32 0.5, %v2284_v59  ;;  %v10739_v20 = vadd.f32 1.0, %v2284_v59  ;;  %v2288_v6 = vadd.f32 %v2287_v42, %v10195_v14 }
 0x310   : > { %v7645_v9 = vsub.f32 %v15603_v15, %v7581_v23  ;;  %v8579_v53 = vpop.eup %8578  ;;  %v2890_v24 = vpack.c.bf16 %v2833_v46, %v2832_v26  ;;  %v10746_v55 = vmul.f32 %v10733_v51, %v10733_v51  ;;  %v2291_v57 = vpop.f32.mrf.mxu0  ;;  %v2771_v0 = vmul.f32 %v8577_v13, %v2707_v45  ;;  %v2708_v23 = vld [vmem:[%s9492_s9 + $0x80] sm:$0xff] }
 0x311   : > { %v7772_v41 = vsel %vm15430_vm15, %v7708_v58, 0.0  ;;  %v7582_v44 = vmul.f32 %v8579_v53, %v8579_v53  ;;  %v2604_v34 = vmul.f32 1.442695, %v2520_v62  ;;  %v2521_v7 = vmul.f32 0.5, %v2288_v6 }
 0x312   : > { %v7836_v3 = vadd.f32 %v7835_v38, %v7772_v41  ;;  %v7709_v37 = vmul.f32 -0.5, %v7645_v9  ;;  %8247 = vmatprep.mubr.bf16.mxu1 %v2890_v24  ;;  %v10750_v40 = vadd.f32 1.0, %v2288_v6  ;;  %v10753_v58 = vadd.f32 %v2291_v57, %v10189_v32  ;;  %v2293_v26 = vpop.f32.mrf.mxu0  ;;  %v15609_v9 = vld [vmem:[#allocation26_spill] sm:$0xff] }
 0x313   : > { %v8581_v5 = vpop.eup %8580  ;;  %v15604_v13 = vsub.f32 %v10651_v30, %v10632_v22  ;;  %8586 = vpow2.f32 %v2604_v34  ;;  %v2834_v16 = vadd.f32 %v2770_v60, %v10586_v18  ;;  %v2606_v15 = vmul.f32 1.442695, %v2521_v7 }
 0x314   : > { %v7773_v45 = vsel %vm15431_vm0, %v7709_v37, 0.0  ;;  %v7583_v42 = vmul.f32 %v8581_v5, %v8581_v5  ;;  %v2295_v62 = vpop.f32.mrf.mxu0  ;;  %vm15437_vm15 = vcmp.lt.s32.totalorder %v10309_v50, 1100  ;;  %v10767_v41 = vmul.f32 %v10753_v58, %v10753_v58 }
 0x315   : > { %v7646_v38 = vsub.f32 %v15604_v13, %v7582_v44  ;;  %v7837_v46 = vadd.f32 %v7836_v3, %v7773_v45  ;;  %v2835_v22 = vadd.f32 %v2771_v0, %v10603_v48  ;;  %v2294_v18 = vadd.f32 %v2293_v26, %v10195_v14  ;;  %v2709_v3 = vld [vmem:[%s9492_s9 + $0x88] sm:$0xff] }
 0x316   : > { %v15605_v30 = vsub.f32 %v10664_v25, %v10658_v4  ;;  %vm15436_vm0 = vcmp.lt.s32.totalorder %v10316_v11, 1100  ;;  %8588 = vpow2.f32 %v2606_v15  ;;  %v10776_v24 = vadd.f32 %v2295_v62, %v10189_v32  ;;  %v2297_v57 = vpop.f32.mrf.mxu0 }
 0x317   : > { %v7710_v6 = vmul.f32 -0.5, %v7646_v38  ;;  %v2772_v37 = vmul.f32 %v8579_v53, %v2708_v23  ;;  %v2891_v34 = vpack.c.bf16 %v2835_v22, %v2834_v16  ;;  %v2522_v48 = vmul.f32 0.5, %v2294_v18 }
 0x318   : > { %v7647_v60 = vsub.f32 %v15605_v30, %v7583_v42  ;;  %v10781_v0 = vadd.f32 1.0, %v2294_v18  ;;  %v10785_v4 = vmul.f32 %v10776_v24, %v10776_v24  ;;  %v2298_v25 = vadd.f32 %v2297_v57, %v10195_v14  ;;  %v2301_v45 = vpop.f32.mrf.mxu0  ;;  %v2710_v57 = vld [vmem:[%s9492_s9 + $0x90] sm:$0xff] }
 0x319   : > { %v7774_v44 = vsel %vm15433_vm14, %v7710_v6, 0.0  ;;  %v8583_v13 = vpop.eup %8582  ;;  %8248 = vmatmul.mubr.bf16.gmra.mxu1 %v2891_v34  ;;  %v2608_v53 = vmul.f32 1.442695, %v2522_v48  ;;  %v10791_v16 = vadd.f32 %v2301_v45, %v10189_v32  ;;  %v2773_v23 = vmul.f32 %v8581_v5, %v2709_v3  ;;  %v15607_v34 = vld [vmem:[#allocation25_spill] sm:$0xff]  ;;  %v8480_v45 = vld [vmem:[%s15390_s10 + $0x50] ss:$8 sps:$4 sm:$0xff]  }
 0x31a   : > { %v7838_v7 = vadd.f32 %v7837_v46, %v7774_v44  ;;  %v7711_v26 = vmul.f32 -0.5, %v7647_v60  ;;  %v8585_v46 = vpop.eup %8584  ;;  %v7584_v15 = vmul.f32 %v8583_v13, %v8583_v13  ;;  %v2523_v62 = vmul.f32 0.5, %v2298_v25  ;;  %v2303_v22 = vpop.f32.mrf.mxu0  ;;  %v2711_v44 = vld [vmem:[%s9492_s9 + $0x98] sm:$0xff] }
 0x31b   : > { %v10795_v6 = vadd.f32 1.0, %v2298_v25  ;;  %v7585_v30 = vmul.f32 %v8585_v46, %v8585_v46  ;;  %8590 = vpow2.f32 %v2608_v53  ;;  %v10799_v60 = vmul.f32 %v10791_v16, %v10791_v16  ;;  %v8482_v53 = vld [vmem:[%s15390_s10 + $0x54] ss:$8 sps:$4 sm:$0xff]  }
 0x31c   : > { %v7775_v42 = vsel %vm15432_vm13, %v7711_v26, 0.0  ;;  %v15606_v5 = vsub.f32 %v10693_v36, %v10680_v10  ;;  %vm15439_vm13 = vcmp.lt.s32.totalorder %v15607_v34, 1100  ;;  %v2610_v48 = vmul.f32 1.442695, %v2523_v62  ;;  %v2305_v25 = vpop.f32.mrf.mxu0  ;;  %3484 = vmatprep.subr.bf16.mxu1 %v8482_v53 }
 0x31d   : > { %v7839_v18 = vadd.f32 %v7838_v7, %v7775_v42  ;;  %v2836_v7 = vadd.f32 %v2772_v37, %v10620_v17  ;;  %v15608_v10 = vsub.f32 %v10701_v29, %v10697_v49  ;;  %v2837_v42 = vadd.f32 %v2773_v23, %v10645_v12  ;;  %3485 = vmatpush1.bf16.msra.mxu1 %v8480_v45 }
 0x31e   : > { %v7648_v3 = vsub.f32 %v15606_v5, %v7584_v15  ;;  %v2304_v15 = vadd.f32 %v2303_v22, %v10195_v14  ;;  %v10822_v62 = vadd.f32 %v2305_v25, %v10189_v32  ;;  %8592 = vpow2.f32 %v2610_v48  ;;  %v2307_v37 = vpop.f32.mrf.mxu0 }
 0x31f   : > { %v7649_v36 = vsub.f32 %v15608_v10, %v7585_v30  ;;  %v2774_v5 = vmul.f32 %v8583_v13, %v2710_v57  ;;  %v2775_v26 = vmul.f32 %v8585_v46, %v2711_v44  ;;  %vm15438_vm14 = vcmp.lt.s32.totalorder %v15609_v9, 1100 }
 0x320   : > { %v7712_v17 = vmul.f32 -0.5, %v7648_v3  ;;  %v2892_v59 = vpack.c.bf16 %v2837_v42, %v2836_v7  ;;  %v2524_v47 = vmul.f32 0.5, %v2304_v15  ;;  %v10825_v49 = vadd.f32 1.0, %v2304_v15  ;;  %v8587_v12 = vpop.eup %8586  ;;  %v2311_v46 = vpop.f32.mrf.mxu0  ;;  %v15611_v15 = vld [vmem:[#allocation27_spill] sm:$0xff] }
 0x321   : > { %v7713_v38 = vmul.f32 -0.5, %v7649_v36  ;;  %v10831_v23 = vmul.f32 %v10822_v62, %v10822_v62  ;;  %v2308_v13 = vadd.f32 %v2307_v37, %v10195_v14  ;;  %v2838_v22 = vadd.f32 %v2774_v5, %v10667_v2 }
 0x322   : > { %v7776_v29 = vsel %vm15437_vm15, %v7712_v17, 0.0  ;;  %v7586_v44 = vmul.f32 %v8587_v12, %v8587_v12  ;;  %8251 = vmatprep.mubr.bf16.mxu1 %v2892_v59  ;;  %v2612_v3 = vmul.f32 1.442695, %v2524_v47  ;;  %v10842_v45 = vadd.f32 %v2311_v46, %v10189_v32  ;;  %v2313_v53 = vpop.f32.mrf.mxu0  ;;  %v2712_v47 = vld [vmem:[%s9492_s9 + $0xa0] sm:$0xff] }
 0x323   : > { %v7840_v30 = vadd.f32 %v7839_v18, %v7776_v29  ;;  %v7777_v57 = vsel %vm15436_vm0, %v7713_v38, 0.0  ;;  %v2525_v7 = vmul.f32 0.5, %v2308_v13  ;;  %v10839_v25 = vadd.f32 1.0, %v2308_v13  ;;  %v8589_v2 = vpop.eup %8588  ;;  %v2713_v38 = vld [vmem:[%s9492_s9 + $0xa8] sm:$0xff]  ;;  %v15612_v29 = vld [vmem:[#allocation12_spill] sm:$0xff] }
 0x324   : > { %v15610_v18 = vsub.f32 %v10739_v20, %v10721_v61  ;;  %8594 = vpow2.f32 %v2612_v3  ;;  %v2839_v59 = vadd.f32 %v2775_v26, %v10689_v33  ;;  %v7587_v42 = vmul.f32 %v8589_v2, %v8589_v2  ;;  %v2315_v5 = vpop.f32.mrf.mxu0 }
 0x325   : > { %v7841_v10 = vadd.f32 %v7840_v30, %v7777_v57  ;;  %vm15502_vm0 = vcmp.lt.s32.totalorder %v15611_v15, 1100  ;;  %v2614_v17 = vmul.f32 1.442695, %v2525_v7  ;;  %v10855_v13 = vadd.s32 %v15612_v29, %v10472_v35  ;;  %v15615_v35 = vld [vmem:[#allocation28_spill] sm:$0xff] }
 0x326   : > { %v7650_v36 = vsub.f32 %v15610_v18, %v7586_v44  ;;  %v2893_v61 = vpack.c.bf16 %v2839_v59, %v2838_v22  ;;  %v2314_v20 = vadd.f32 %v2313_v53, %v10195_v14  ;;  %v10859_v33 = vadd.f32 %v2315_v5, %v10189_v32  ;;  %v2317_v57 = vpop.f32.mrf.mxu0 }
 0x327   : > { %15613 = vst [vmem:[#allocation12_spill] sm:$0xff] %v10855_v13  ;;  %v15614_v26 = vsub.f32 %v10750_v40, %v10746_v55  ;;  %8596 = vpow2.f32 %v2614_v17  ;;  %v2776_v44 = vmul.f32 %v8587_v12, %v2712_v47  ;;  %v2777_v3 = vmul.f32 %v8589_v2, %v2713_v38 }
 0x328   : > { %v7714_v46 = vmul.f32 -0.5, %v7650_v36  ;;  %vm15441_vm15 = vcmp.lt.s32.totalorder %v15615_v35, 1100  ;;  %v10869_v22 = vmul.f32 %v10842_v45, %v10842_v45  ;;  %8252 = vmatmul.mubr.bf16.gmra.mxu1 %v2893_v61  ;;  %v2526_v53 = vmul.f32 0.5, %v2314_v20  ;;  %v8591_v55 = vpop.eup %8590  ;;  %v2321_v59 = vpop.f32.mrf.mxu0 }
 0x329   : > { %v7651_v30 = vsub.f32 %v15614_v26, %v7587_v42  ;;  %v10871_v18 = vadd.f32 1.0, %v2314_v20  ;;  %v10875_v12 = vmul.f32 %v10859_v33, %v10859_v33  ;;  %v2318_v2 = vadd.f32 %v2317_v57, %v10195_v14  ;;  %v2714_v26 = vld [vmem:[%s9492_s9 + $0xb0] sm:$0xff] }
 0x32a   : > { %v7778_v7 = vsel %vm15439_vm13, %v7714_v46, 0.0  ;;  %v7588_v47 = vmul.f32 %v8591_v55, %v8591_v55  ;;  %v2616_v38 = vmul.f32 1.442695, %v2526_v53  ;;  %v2840_v17 = vadd.f32 %v2776_v44, %v10704_v21  ;;  %v2323_v20 = vpop.f32.mrf.mxu0  ;;  %v2715_v21 = vld [vmem:[%s9492_s9 + $0xb8] sm:$0xff] }
 0x32b   : > { %v7842_v40 = vadd.f32 %v7841_v10, %v7778_v7  ;;  %v7715_v36 = vmul.f32 -0.5, %v7651_v30  ;;  %v2527_v10 = vmul.f32 0.5, %v2318_v2  ;;  %v10883_v46 = vadd.f32 1.0, %v2318_v2  ;;  %v8593_v30 = vpop.eup %8592 }
 0x32c   : > { %v2841_v61 = vadd.f32 %v2777_v3, %v10733_v51  ;;  %v15616_v7 = vsub.f32 %v10781_v0, %v10767_v41  ;;  %8598 = vpow2.f32 %v2616_v38  ;;  %v10891_v42 = vadd.f32 %v2321_v59, %v10189_v32  ;;  %v2325_v37 = vpop.f32.mrf.mxu0 }
 0x32d   : > { %v7779_v5 = vsel %vm15438_vm14, %v7715_v36, 0.0  ;;  %v7589_v44 = vmul.f32 %v8593_v30, %v8593_v30  ;;  %v15617_v36 = vld [vmem:[#allocation29_spill] sm:$0xff]  ;;  %v2618_v2 = vmul.f32 1.442695, %v2527_v10  ;;  %v10899_v41 = vadd.f32 %v2325_v37, %v10189_v32 }
 0x32e   : > { %v7843_v57 = vadd.f32 %v7842_v40, %v7779_v5  ;;  %v7652_v53 = vsub.f32 %v15616_v7, %v7588_v47  ;;  %vm15499_vm14 = vcmp.lt.s32.totalorder %v15617_v36, 1100  ;;  %v2894_v3 = vpack.c.bf16 %v2841_v61, %v2840_v17  ;;  %v2327_v5 = vpop.f32.mrf.mxu0  ;;  %v8483_v17 = vld [vmem:[%s15390_s10 + $0x40] ss:$8 sps:$4 sm:$0xff]   ;;  %v8485_v37 = vld [vmem:[%s15390_s10 + $0x44] ss:$8 sps:$4 sm:$0xff]  }
 0x32f   : > { %v2324_v40 = vadd.f32 %v2323_v20, %v10195_v14  ;;  %v2778_v0 = vmul.f32 %v8591_v55, %v2714_v26  ;;  %v15618_v59 = vsub.f32 %v10795_v6, %v10785_v4  ;;  %8600 = vpow2.f32 %v2618_v2  ;;  %v15619_v4 = vld [vmem:[#allocation30_spill] sm:$0xff]  ;;  %3486 = vmatprep.subr.bf16.mxu1 %v8485_v37 }
 0x330   : > { %v7716_v48 = vmul.f32 -0.5, %v7652_v53  ;;  %8255 = vmatprep.mubr.bf16.mxu1 %v2894_v3  ;;  %v10905_v38 = vadd.s32 224, %v9809_v63  ;;  %v2779_v10 = vmul.f32 %v8593_v30, %v2715_v21  ;;  %vm15445_vm13 = vcmp.lt.s32.totalorder %v15619_v4, 1100  ;;  %3487 = vmatpush1.bf16.msra.mxu1 %v8483_v17 }
 0x331   : > { %v7653_v47 = vsub.f32 %v15618_v59, %v7589_v44  ;;  %v10918_v6 = vmul.f32 %v10891_v42, %v10891_v42  ;;  %v2528_v61 = vmul.f32 0.5, %v2324_v40  ;;  %v10920_v20 = vadd.f32 1.0, %v2324_v40  ;;  %v8595_v26 = vpop.eup %8594  ;;  %v2331_v44 = vpop.f32.mrf.mxu0 }
 0x332   : > { %v7780_v55 = vsel %vm15502_vm0, %v7716_v48, 0.0  ;;  %v10924_v53 = vmul.f32 %v10899_v41, %v10899_v41  ;;  %v2328_v21 = vadd.f32 %v2327_v5, %v10195_v14  ;;  %v7590_v48 = vmul.f32 %v8595_v26, %v8595_v26 }
 0x333   : > { %v7844_v30 = vadd.f32 %v7843_v57, %v7780_v55  ;;  %v7717_v7 = vmul.f32 -0.5, %v7653_v47  ;;  %v2620_v2 = vmul.f32 1.442695, %v2528_v61  ;;  %v2842_v40 = vadd.f32 %v2778_v0, %v10753_v58  ;;  %v2333_v55 = vpop.f32.mrf.mxu0  ;;  %v2716_v58 = vld [vmem:[%s9492_s9 + $0xc0] sm:$0xff]  ;;  %v2717_v0 = vld [vmem:[%s9492_s9 + $0xc8] sm:$0xff] }
 0x334   : > { %v2529_v59 = vmul.f32 0.5, %v2328_v21  ;;  %v10932_v47 = vadd.f32 1.0, %v2328_v21  ;;  %v2843_v5 = vadd.f32 %v2779_v10, %v10776_v24  ;;  %v8597_v37 = vpop.eup %8596  ;;  %v15620_v61 = vsub.f32 %v10825_v49, %v10799_v60 }
 0x335   : > { %v7781_v57 = vsel %vm15441_vm15, %v7717_v7, 0.0  ;;  %8602 = vpow2.f32 %v2620_v2  ;;  %v10939_v3 = vadd.f32 %v2331_v44, %v10189_v32  ;;  %v7591_v17 = vmul.f32 %v8597_v37, %v8597_v37  ;;  %v15621_v7 = vld [vmem:[#allocation31_spill] sm:$0xff]  ;;  %v2335_v35 = vpop.f32.mrf.mxu0 }
 0x336   : > { %v7845_v51 = vadd.f32 %v7844_v30, %v7781_v57  ;;  %v7654_v15 = vsub.f32 %v15620_v61, %v7590_v48  ;;  %vm15454_vm15 = vcmp.lt.s32.totalorder %v15621_v7, 1100  ;;  %v2622_v21 = vmul.f32 1.442695, %v2529_v59 }
 0x337   : > { %v2895_v10 = vpack.c.bf16 %v2843_v5, %v2842_v40  ;;  %v4615_v57 = vadd.s32 232, %v9809_v63  ;;  %v2334_v60 = vadd.f32 %v2333_v55, %v10195_v14  ;;  %v10949_v49 = vadd.f32 %v2335_v35, %v10189_v32  ;;  %v2337_v2 = vpop.f32.mrf.mxu0 }
 0x338   : > { %v7718_v30 = vmul.f32 -0.5, %v7654_v15  ;;  %v15622_v44 = vsub.f32 %v10839_v25, %v10831_v23  ;;  %8604 = vpow2.f32 %v2622_v21  ;;  %v2780_v59 = vmul.f32 %v8595_v26, %v2716_v58 }
 0x339   : > { %8256 = vmatmul.mubr.bf16.gmra.mxu1 %v2895_v10  ;;  %v2781_v61 = vmul.f32 %v8597_v37, %v2717_v0  ;;  %v10958_v15 = vmul.f32 %v10939_v3, %v10939_v3  ;;  %v2530_v5 = vmul.f32 0.5, %v2334_v60  ;;  %v10960_v55 = vadd.f32 1.0, %v2334_v60  ;;  %v8599_v35 = vpop.eup %8598  ;;  %v2341_v26 = vpop.f32.mrf.mxu0 }
 0x33a   : > { %v7655_v48 = vsub.f32 %v15622_v44, %v7591_v17  ;;  %v7782_v40 = vsel %vm15499_vm14, %v7718_v30, 0.0  ;;  %v10964_v23 = vmul.f32 %v10949_v49, %v10949_v49  ;;  %v2338_v25 = vadd.f32 %v2337_v2, %v10195_v14 }
 0x33b   : > { %v7846_v24 = vadd.f32 %v7845_v51, %v7782_v40  ;;  %v7592_v37 = vmul.f32 %v8599_v35, %v8599_v35  ;;  %v2624_v58 = vmul.f32 1.442695, %v2530_v5  ;;  %v2844_v17 = vadd.f32 %v2780_v59, %v10791_v16  ;;  %v2343_v60 = vpop.f32.mrf.mxu0 }
 0x33c   : > { %v7719_v9 = vmul.f32 -0.5, %v7655_v48  ;;  %v2531_v10 = vmul.f32 0.5, %v2338_v25  ;;  %v10972_v51 = vadd.f32 1.0, %v2338_v25  ;;  %v2845_v30 = vadd.f32 %v2781_v61, %v10822_v62  ;;  %v8601_v44 = vpop.eup %8600 }
 0x33d   : > { %v15623_v2 = vsub.f32 %v10871_v18, %v10869_v22  ;;  %8606 = vpow2.f32 %v2624_v58  ;;  %v10979_v5 = vadd.f32 %v2341_v26, %v10189_v32  ;;  %v7593_v16 = vmul.f32 %v8601_v44, %v8601_v44  ;;  %v2345_v0 = vpop.f32.mrf.mxu0 }
 0x33e   : > { %v7783_v21 = vsel %vm15445_vm13, %v7719_v9, 0.0  ;;  %v2626_v59 = vmul.f32 1.442695, %v2531_v10  ;;  %v2896_v25 = vpack.c.bf16 %v2845_v30, %v2844_v17  ;;  %vm15447_vm13 = vcmp.lt.s32.totalorder %v10855_v13, 1100 }
 0x33f   : > { %v7847_v48 = vadd.f32 %v7846_v24, %v7783_v21  ;;  %v7656_v40 = vsub.f32 %v15623_v2, %v7592_v37  ;;  %v2344_v62 = vadd.f32 %v2343_v60, %v10195_v14  ;;  %v15624_v22 = vsub.f32 %v10883_v46, %v10875_v12  ;;  %v2347_v26 = vpop.f32.mrf.mxu0  ;;  %v8486_v60 = vld [vmem:[%s15390_s10 + $0x30] ss:$8 sps:$4 sm:$0xff]   ;;  %v8488_v2 = vld [vmem:[%s15390_s10 + $0x34] ss:$8 sps:$4 sm:$0xff]  }
 0x340   : > { %v10990_v24 = vadd.s32 %v15612_v29, %v10905_v38  ;;  %8608 = vpow2.f32 %v2626_v59  ;;  %8259 = vmatprep.mubr.bf16.mxu1 %v2896_v25  ;;  %v10993_v61 = vadd.f32 %v2345_v0, %v10189_v32  ;;  %v10999_v58 = vmul.f32 %v10979_v5, %v10979_v5  ;;  %3488 = vmatprep.subr.bf16.mxu1 %v8488_v2 }
 0x341   : > { %v7720_v4 = vmul.f32 -0.5, %v7656_v40  ;;  %v7657_v18 = vsub.f32 %v15624_v22, %v7593_v16  ;;  %v2532_v12 = vmul.f32 0.5, %v2344_v62  ;;  %v11001_v46 = vadd.f32 1.0, %v2344_v62  ;;  %v11009_v30 = vpop.f32.mrf.mxu0  ;;  %3489 = vmatpush1.bf16.msra.mxu1 %v8486_v60 }
 0x342   : > { %15625 = vst [vmem:[#allocation32_spill] sm:$0xff] %v10990_v24  ;;  %v11003_v17 = vpop.eup %8602  ;;  %v11006_v10 = vadd.s32 %v15612_v29, %v4615_v57  ;;  %v2348_v0 = vadd.f32 %v2347_v26, %v10195_v14  ;;  %v4616_v40 = vadd.s32 240, %v9809_v63  ;;  %v11027_v25 = vmul.f32 %v10993_v61, %v10993_v61 }
 0x343   : > { %v7784_v37 = vsel %vm15454_vm15, %v7720_v4, 0.0  ;;  %v7721_v21 = vmul.f32 -0.5, %v7657_v18  ;;  %v2718_v4 = vld [vmem:[%s9492_s9 + $0xd0] sm:$0xff]  ;;  %v2628_v57 = vmul.f32 1.442695, %v2532_v12  ;;  %v2719_v18 = vld [vmem:[%s9492_s9 + $0xd8] sm:$0xff]  ;;  %v2353_v26 = vpop.f32.mrf.mxu0  ;;  %v15627_v12 = vsub.f32 %v10920_v20, %v10918_v6 }
 0x344   : > { %v7848_v38 = vadd.f32 %v7847_v48, %v7784_v37  ;;  %15626 = vst [vmem:[#allocation33_spill] sm:$0xff] %v11006_v10  ;;  %v7594_v48 = vmul.f32 %v11003_v17, %v11003_v17  ;;  %v2533_v62 = vmul.f32 0.5, %v2348_v0  ;;  %v11029_v22 = vadd.f32 1.0, %v2348_v0 }
 0x345   : > { %v7785_v59 = vsel %vm15447_vm13, %v7721_v21, 0.0  ;;  %v8605_v37 = vpop.eup %8604  ;;  %8610 = vpow2.f32 %v2628_v57  ;;  %v2782_v16 = vmul.f32 %v8599_v35, %v2718_v4  ;;  %vm15455_vm13 = vcmp.lt.s32.totalorder %v10990_v24, 1100  ;;  %v2355_v36 = vpop.f32.mrf.mxu0 }
 0x346   : > { %v7849_v9 = vadd.f32 %v7848_v38, %v7785_v59  ;;  %v7658_v7 = vsub.f32 %v15627_v12, %v7594_v48  ;;  %v7595_v21 = vmul.f32 %v8605_v37, %v8605_v37  ;;  %v2630_v13 = vmul.f32 1.442695, %v2533_v62 }
 0x347   : > { %v7535_v0 = vsub.f32 %v11029_v22, %v11027_v25  ;;  %v4617_v2 = vadd.s32 248, %v9809_v63  ;;  %v2783_v11 = vmul.f32 %v8601_v44, %v2719_v18  ;;  %v11040_v38 = vadd.f32 %v2353_v26, %v10195_v14  ;;  %v2357_v4 = vpop.f32.mrf.mxu0  ;;  %v8489_v25 = vld [vmem:[%s15392_s12 + $0x70] ss:$8 sps:$4 sm:$0xff]   ;;  %v8491_v22 = vld [vmem:[%s15392_s12 + $0x74] ss:$8 sps:$4 sm:$0xff]  }
 0x348   : > { %v7722_v34 = vmul.f32 -0.5, %v7658_v7  ;;  %vm15456_vm15 = vcmp.lt.s32.totalorder %v11006_v10, 1100  ;;  %v15628_v6 = vsub.f32 %v10932_v47, %v10924_v53  ;;  %v11047_v35 = vadd.s32 %v15612_v29, %v4616_v40  ;;  %4229 = vmatprep.subr.bf16.mxu0 %v8491_v22 }
 0x349   : > { %8612 = vpow2.f32 %v2630_v13  ;;  %v2846_v44 = vadd.f32 %v2782_v16, %v10842_v45  ;;  %v2847_v60 = vadd.f32 %v2783_v11, %v10859_v33  ;;  %v2534_v48 = vmul.f32 0.5, %v11040_v38  ;;  %v11059_v13 = vpop.f32.mrf.mxu0  ;;  %4230 = vmatpush1.bf16.msra.mxu0 %v8489_v25 }
 0x34a   : > { %v7659_v20 = vsub.f32 %v15628_v6, %v7595_v21  ;;  %15629 = vst [vmem:[#allocation34_spill] sm:$0xff] %v11047_v35  ;;  %v7786_v7 = vsel %vm15455_vm13, %v7722_v34, 0.0  ;;  %v11054_v57 = vpop.eup %8606  ;;  %v11057_v40 = vadd.f32 %v2355_v36, %v10189_v32  ;;  %v11064_v59 = vadd.s32 %v15612_v29, %v4617_v2  ;;  %v2721_v36 = vld [vmem:[%s9492_s9 + $0xe8] sm:$0xff] }
 0x34b   : > { %v7850_v53 = vadd.f32 %v7849_v9, %v7786_v7  ;;  %v7596_v34 = vmul.f32 %v11054_v57, %v11054_v57  ;;  %v2897_v45 = vpack.c.bf16 %v2847_v60, %v2846_v44  ;;  %v2632_v16 = vmul.f32 1.442695, %v2534_v48  ;;  %v2720_v9 = vld [vmem:[%s9492_s9 + $0xe0] sm:$0xff]  ;;  %v2363_v62 = vpop.f32.mrf.mxu0 }
 0x34c   : > { %v7723_v47 = vmul.f32 -0.5, %v7659_v20  ;;  %15630 = vst [vmem:[#allocation35_spill] sm:$0xff] %v11064_v59  ;;  %vm15458_vm13 = vcmp.lt.s32.totalorder %v11047_v35, 1100  ;;  %v2358_v33 = vadd.f32 %v2357_v4, %v10195_v14  ;;  %v15631_v12 = vsub.f32 %v10960_v55, %v10958_v15 }
 0x34d   : > { %v8609_v18 = vpop.eup %8608  ;;  %v4618_v2 = vadd.s32 256, %v9809_v63  ;;  %8260 = vmatmul.mubr.bf16.gmra.mxu1 %v2897_v45  ;;  %8614 = vpow2.f32 %v2632_v16  ;;  %v11078_v20 = vmul.f32 %v11057_v40, %v11057_v40  ;;  %v11082_v44 = vpop.f32.mrf.mxu0  ;;  %v2784_v15 = vmul.f32 %v11003_v17, %v2720_v9 }
 0x34e   : > { %v7787_v11 = vsel %vm15456_vm15, %v7723_v47, 0.0  ;;  %v7660_v21 = vsub.f32 %v15631_v12, %v7596_v34  ;;  %v7597_v6 = vmul.f32 %v8609_v18, %v8609_v18  ;;  %v2535_v7 = vmul.f32 0.5, %v2358_v33 }
 0x34f   : > { %v7851_v26 = vadd.f32 %v7850_v53, %v7787_v11  ;;  %v11080_v4 = vadd.f32 1.0, %v2358_v33  ;;  %vm15457_vm15 = vcmp.lt.s32.totalorder %v11064_v59, 1100  ;;  %v2785_v55 = vmul.f32 %v8605_v37, %v2721_v36  ;;  %v2367_v16 = vpop.f32.mrf.mxu0 }
 0x350   : > { %v7724_v60 = vmul.f32 -0.5, %v7660_v21  ;;  %v15632_v48 = vsub.f32 %v10972_v51, %v10964_v23  ;;  %v4619_v47 = vadd.s32 264, %v9809_v63  ;;  %v2634_v34 = vmul.f32 1.442695, %v2535_v7 }
 0x351   : > { %v7537_v45 = vsub.f32 %v11080_v4, %v11078_v20  ;;  %v2848_v33 = vadd.f32 %v2784_v15, %v10891_v42  ;;  %v2849_v12 = vadd.f32 %v2785_v55, %v10899_v41  ;;  %v11097_v17 = vadd.f32 %v2363_v62, %v10195_v14  ;;  %v11104_v36 = vpop.f32.mrf.mxu0 }
 0x352   : > { %v7661_v53 = vsub.f32 %v15632_v48, %v7597_v6  ;;  %v7788_v11 = vsel %vm15458_vm13, %v7724_v60, 0.0  ;;  %v11099_v37 = vpop.eup %8610  ;;  %v11102_v9 = vadd.s32 %v15612_v29, %v4618_v2  ;;  %8616 = vpow2.f32 %v2634_v34  ;;  %v2722_v34 = vld [vmem:[%s9492_s9 + $0xf0] sm:$0xff] }
 0x353   : > { %v7852_v23 = vadd.f32 %v7851_v26, %v7788_v11  ;;  %v7598_v21 = vmul.f32 %v11099_v37, %v11099_v37  ;;  %v2898_v42 = vpack.c.bf16 %v2849_v12, %v2848_v33  ;;  %v2536_v41 = vmul.f32 0.5, %v11097_v17  ;;  %v2373_v6 = vpop.f32.mrf.mxu0  ;;  %v2723_v33 = vld [vmem:[%s9492_s9 + $0xf8] sm:$0xff] }
 0x354   : > { %v7725_v51 = vmul.f32 -0.5, %v7661_v53  ;;  %15633 = vst [vmem:[#allocation36_spill] sm:$0xff] %v11102_v9  ;;  %v11112_v26 = vadd.s32 %v15612_v29, %v4619_v47  ;;  %v11115_v2 = vadd.f32 %v2367_v16, %v10195_v14  ;;  %v15635_v15 = vsub.f32 %v11001_v46, %v10999_v58 }
 0x355   : > { %v11124_v48 = vadd.f32 %v11009_v30, %v10189_v32  ;;  %8263 = vmatprep.mubr.bf16.mxu1 %v2898_v42  ;;  %v2636_v53 = vmul.f32 1.442695, %v2536_v41  ;;  %v4620_v16 = vadd.s32 272, %v9809_v63  ;;  %v11133_v12 = vpop.f32.mrf.mxu0  ;;  %v7408_v46 = vadd.f32 1.0, %v11040_v38 }
 0x356   : > { %v7789_v62 = vsel %vm15457_vm15, %v7725_v51, 0.0  ;;  %15634 = vst [vmem:[#allocation37_spill] sm:$0xff] %v11112_v26  ;;  %v11117_v7 = vpop.eup %8612  ;;  %v7662_v55 = vsub.f32 %v15635_v15, %v7598_v21  ;;  %vm15460_vm15 = vcmp.lt.s32.totalorder %v11102_v9, 1100  ;;  %v2537_v11 = vmul.f32 0.5, %v11115_v2 }
 0x357   : > { %v7853_v60 = vadd.f32 %v7852_v23, %v7789_v62  ;;  %v7599_v47 = vmul.f32 %v11117_v7, %v11117_v7  ;;  %8618 = vpow2.f32 %v2636_v53  ;;  %v4621_v23 = vadd.s32 280, %v9809_v63  ;;  %v2377_v42 = vpop.f32.mrf.mxu0 }
 0x358   : > { %v7726_v58 = vmul.f32 -0.5, %v7662_v55  ;;  %v2638_v51 = vmul.f32 1.442695, %v2537_v11  ;;  %v2786_v21 = vmul.f32 %v11054_v57, %v2722_v34  ;;  %vm15459_vm13 = vcmp.lt.s32.totalorder %v11112_v26, 1100  ;;  %v8494_v34 = vld [vmem:[%s15390_s10 + $0x24] ss:$8 sps:$4 sm:$0xff]  }
 0x359   : > { %v7663_v30 = vsub.f32 %v7535_v0, %v7599_v47  ;;  %v7472_v62 = vmul.f32 %v11124_v48, %v11124_v48  ;;  %v2787_v38 = vmul.f32 %v8609_v18, %v2723_v33  ;;  %v11155_v55 = vadd.s32 %v15612_v29, %v4620_v16  ;;  %v11157_v53 = vpop.f32.mrf.mxu0  ;;  %v8492_v18 = vld [vmem:[%s15390_s10 + $0x20] ss:$8 sps:$4 sm:$0xff]   ;;  %3490 = vmatprep.subr.bf16.mxu1 %v8494_v34 }
 0x35a   : > { %v7790_v41 = vsel %vm15460_vm15, %v7726_v58, 0.0  ;;  %v11152_v0 = vpop.eup %8614  ;;  %8620 = vpow2.f32 %v2638_v51  ;;  %v11172_v58 = vadd.s32 %v15612_v29, %v4621_v23  ;;  %3491 = vmatpush1.bf16.msra.mxu1 %v8492_v18  ;;  %v2725_v18 = vld [vmem:[%s9492_s9 + $0x108] sm:$0xff]  ;;  %v7411_v4 = vadd.f32 1.0, %v11115_v2 }
 0x35b   : > { %v7854_v57 = vadd.f32 %v7853_v60, %v7790_v41  ;;  %v7727_v15 = vmul.f32 -0.5, %v7663_v30  ;;  %15636 = vst [vmem:[#allocation38_spill] sm:$0xff] %v11155_v55  ;;  %v7536_v47 = vsub.f32 %v7408_v46, %v7472_v62  ;;  %v7600_v11 = vmul.f32 %v11152_v0, %v11152_v0  ;;  %v2383_v51 = vpop.f32.mrf.mxu0 }
 0x35c   : > { %v2850_v60 = vadd.f32 %v2786_v21, %v10939_v3  ;;  %v2851_v16 = vadd.f32 %v2787_v38, %v10949_v49  ;;  %15637 = vst [vmem:[#allocation39_spill] sm:$0xff] %v11172_v58  ;;  %v11176_v30 = vadd.f32 %v11059_v13, %v10189_v32  ;;  %v11179_v46 = vadd.f32 %v2373_v6, %v10195_v14 }
 0x35d   : > { %v7791_v33 = vsel %vm15459_vm13, %v7727_v15, 0.0  ;;  %v7664_v49 = vsub.f32 %v7536_v47, %v7600_v11  ;;  %v11182_v41 = vadd.f32 %v2377_v42, %v10195_v14  ;;  %vm15461_vm13 = vcmp.lt.s32.totalorder %v11155_v55, 1100  ;;  %v11186_v23 = vpop.f32.mrf.mxu0  ;;  %v2724_v15 = vld [vmem:[%s9492_s9 + $0x100] sm:$0xff] }
 0x35e   : > { %v7855_v3 = vadd.f32 %v7854_v57, %v7791_v33  ;;  %v2899_v21 = vpack.c.bf16 %v2851_v16, %v2850_v60  ;;  %v2538_v13 = vmul.f32 0.5, %v11179_v46  ;;  %v7474_v22 = vmul.f32 %v11176_v30, %v11176_v30 }
 0x35f   : > { %v8617_v6 = vpop.eup %8616  ;;  %v7728_v62 = vmul.f32 -0.5, %v7664_v49  ;;  %v2539_v38 = vmul.f32 0.5, %v11182_v41  ;;  %v4622_v57 = vadd.s32 288, %v9809_v63  ;;  %v2387_v34 = vpop.f32.mrf.mxu0  ;;  %vm15466_vm15 = vcmp.lt.s32.totalorder %v11172_v58, 1100 }
 0x360   : > { %8264 = vmatmul.mubr.bf16.gmra.mxu1 %v2899_v21  ;;  %v7601_v25 = vmul.f32 %v8617_v6, %v8617_v6  ;;  %v2640_v42 = vmul.f32 1.442695, %v2538_v13  ;;  %v7410_v11 = vadd.f32 1.0, %v11097_v17  ;;  %v11203_v49 = vadd.f32 %v11082_v44, %v10189_v32 }
 0x361   : > { %v7792_v47 = vsel %vm15461_vm13, %v7728_v62, 0.0  ;;  %v2642_v60 = vmul.f32 1.442695, %v2539_v38  ;;  %v11205_v21 = vpop.f32.mrf.mxu0  ;;  %v4623_v13 = vadd.s32 296, %v9809_v63  ;;  %v2788_v62 = vmul.f32 %v11099_v37, %v2724_v15 }
 0x362   : > { %v7856_v16 = vadd.f32 %v7855_v3, %v7792_v47  ;;  %v7665_v33 = vsub.f32 %v7537_v45, %v7601_v25  ;;  %8622 = vpow2.f32 %v2640_v42  ;;  %v2789_v17 = vmul.f32 %v11117_v7, %v2725_v18 }
 0x363   : > { %8624 = vpow2.f32 %v2642_v60  ;;  %v11213_v20 = vadd.s32 %v15612_v29, %v4622_v57  ;;  %v11217_v44 = vadd.f32 %v2383_v51, %v10195_v14  ;;  %v11219_v45 = vpop.f32.mrf.mxu0  ;;  %v7538_v25 = vsub.f32 %v7410_v11, %v7474_v22  ;;  %v2726_v60 = vld [vmem:[%s9492_s9 + $0x110] sm:$0xff] }
 0x364   : > { %v11210_v38 = vpop.eup %8618  ;;  %v7729_v3 = vmul.f32 -0.5, %v7665_v33  ;;  %v2852_v7 = vadd.f32 %v2788_v62, %v10979_v5  ;;  %v2853_v42 = vadd.f32 %v2789_v17, %v10993_v61  ;;  %v7475_v2 = vmul.f32 %v11203_v49, %v11203_v49  ;;  %v2727_v61 = vld [vmem:[%s9492_s9 + $0x118] sm:$0xff] }
 0x365   : > { %15638 = vst [vmem:[#allocation40_spill] sm:$0xff] %v11213_v20  ;;  %v7602_v37 = vmul.f32 %v11210_v38, %v11210_v38  ;;  %v2540_v51 = vmul.f32 0.5, %v11217_v44  ;;  %v11230_v15 = vpop.f32.mrf.mxu0  ;;  %v11235_v11 = vadd.s32 %v15612_v29, %v4623_v13  ;;  %vm15468_vm13 = vcmp.lt.s32.totalorder %v11213_v20, 1100 }
 0x366   : > { %v7793_v57 = vsel %vm15466_vm15, %v7729_v3, 0.0  ;;  %v2900_v5 = vpack.c.bf16 %v2853_v42, %v2852_v7  ;;  %v7539_v33 = vsub.f32 %v7411_v4, %v7475_v2  ;;  %v11244_v55 = vadd.f32 %v11104_v36, %v10189_v32 }
 0x367   : > { %v11232_v18 = vpop.eup %8620  ;;  %v7857_v22 = vadd.f32 %v7856_v16, %v7793_v57  ;;  %v7666_v47 = vsub.f32 %v7538_v25, %v7602_v37  ;;  %15639 = vst [vmem:[#allocation41_spill] sm:$0xff] %v11235_v11  ;;  %v2644_v17 = vmul.f32 1.442695, %v2540_v51  ;;  %v2397_v3 = vpop.f32.mrf.mxu0  ;;  %v4624_v16 = vadd.s32 304, %v9809_v63 }
 0x368   : > { %v7603_v62 = vmul.f32 %v11232_v18, %v11232_v18  ;;  %8267 = vmatprep.mubr.bf16.mxu1 %v2900_v5  ;;  %v11248_v13 = vadd.f32 %v2387_v34, %v10195_v14  ;;  %v2790_v4 = vmul.f32 %v11152_v0, %v2726_v60  ;;  %v2791_v37 = vmul.f32 %v8617_v6, %v2727_v61 }
 0x369   : > { %v7730_v58 = vmul.f32 -0.5, %v7666_v47  ;;  %8626 = vpow2.f32 %v2644_v17  ;;  %v11251_v7 = vpop.f32.mrf.mxu0  ;;  %vm15467_vm15 = vcmp.lt.s32.totalorder %v11235_v11, 1100  ;;  %v11258_v36 = vadd.f32 %v11133_v12, %v10189_v32 }
 0x36a   : > { %v7667_v25 = vsub.f32 %v7539_v33, %v7603_v62  ;;  %v2541_v57 = vmul.f32 0.5, %v11248_v13  ;;  %v7412_v51 = vadd.f32 1.0, %v11179_v46  ;;  %v4625_v0 = vadd.s32 312, %v9809_v63 }
 0x36b   : > { %v7794_v42 = vsel %vm15468_vm13, %v7730_v58, 0.0  ;;  %v11263_v6 = vpop.f32.mrf.mxu0  ;;  %v7413_v47 = vadd.f32 1.0, %v11182_v41  ;;  %v2854_v58 = vadd.f32 %v2790_v4, %v11124_v48  ;;  %v2855_v60 = vadd.f32 %v2791_v37, %v11057_v40 }
 0x36c   : > { %v7858_v34 = vadd.f32 %v7857_v22, %v7794_v42  ;;  %v7731_v2 = vmul.f32 -0.5, %v7667_v25  ;;  %v2646_v5 = vmul.f32 1.442695, %v2541_v57  ;;  %v7476_v22 = vmul.f32 %v11244_v55, %v11244_v55 }
 0x36d   : > { %v11273_v61 = vadd.s32 %v15612_v29, %v4624_v16  ;;  %v11275_v46 = vpop.f32.mrf.mxu0  ;;  %v7477_v48 = vmul.f32 %v11258_v36, %v11258_v36  ;;  %v2901_v40 = vpack.c.bf16 %v2855_v60, %v2854_v58  ;;  %v11286_v16 = vadd.s32 %v15612_v29, %v4625_v0 }
 0x36e   : > { %v7795_v12 = vsel %vm15467_vm15, %v7731_v2, 0.0  ;;  %8628 = vpow2.f32 %v2646_v5  ;;  %v7540_v17 = vsub.f32 %v7412_v51, %v7476_v22  ;;  %v11294_v57 = vadd.f32 %v11157_v53, %v10189_v32 }
 0x36f   : > { %15640 = vst [vmem:[#allocation42_spill] sm:$0xff] %v11273_v61  ;;  %v11277_v33 = vpop.eup %8622  ;;  %v7859_v41 = vadd.f32 %v7858_v34, %v7795_v12  ;;  %15641 = vst [vmem:[#allocation43_spill] sm:$0xff] %v11286_v16  ;;  %v11288_v4 = vpop.f32.mrf.mxu0  ;;  %v7541_v37 = vsub.f32 %v7413_v47, %v7477_v48  ;;  %8268 = vmatmul.mubr.bf16.gmra.mxu1 %v2901_v40  ;;  %v2728_v34 = vld [vmem:[%s9492_s9 + $0x120] sm:$0xff]  ;;  %v4626_v51 = vadd.s32 320, %v9809_v63  ;;  %vm15492_vm15 = vcmp.lt.s32.totalorder %v11273_v61, 1100  ;;  %v2729_v47 = vld [vmem:[%s9492_s9 + $0x128] sm:$0xff] }
 0x370   : > { %v11281_v62 = vpop.eup %8624  ;;  %v7604_v25 = vmul.f32 %v11277_v33, %v11277_v33  ;;  %v7414_v58 = vadd.f32 1.0, %v11217_v44  ;;  %vm15475_vm13 = vcmp.lt.s32.totalorder %v11286_v16, 1100  ;;  %v11306_v53 = vadd.f32 %v11219_v45, %v10195_v14  ;;  %v8500_v48 = vld [vmem:[%s15390_s10 + $0x14] ss:$8 sps:$4 sm:$0xff]   ;;  %v8498_v45 = vld [vmem:[%s15390_s10 + $0x10] ss:$8 sps:$4 sm:$0xff]  }
 0x371   : > { %v7605_v42 = vmul.f32 %v11281_v62, %v11281_v62  ;;  %v11298_v5 = vpop.f32.mrf.mxu0  ;;  %v2792_v12 = vmul.f32 %v11210_v38, %v2728_v34  ;;  %v7478_v44 = vmul.f32 %v11294_v57, %v11294_v57  ;;  %3492 = vmatprep.subr.bf16.mxu1 %v8500_v48  ;;  %v2730_v16 = vld [vmem:[%s9492_s9 + $0x130] sm:$0xff] }
 0x372   : > { %v7668_v2 = vsub.f32 %v7540_v17, %v7604_v25  ;;  %v11317_v17 = vadd.f32 %v2397_v3, %v10195_v14  ;;  %v11325_v25 = vadd.s32 %v15612_v29, %v4626_v51  ;;  %v4627_v51 = vadd.s32 328, %v9809_v63  ;;  %3493 = vmatpush1.bf16.msra.mxu1 %v8498_v45 }
 0x373   : > { %v7669_v0 = vsub.f32 %v7541_v37, %v7605_v42  ;;  %v11309_v22 = vpop.f32.mrf.mxu0  ;;  %v11329_v37 = vadd.f32 %v11186_v23, %v10189_v32  ;;  %v2793_v42 = vmul.f32 %v11232_v18, %v2729_v47  ;;  %v2542_v61 = vmul.f32 0.5, %v11306_v53 }
 0x374   : > { %v7732_v60 = vmul.f32 -0.5, %v7668_v2  ;;  %15642 = vst [vmem:[#allocation44_spill] sm:$0xff] %v11325_v25  ;;  %v2856_v18 = vadd.f32 %v2792_v12, %v11176_v30  ;;  %v8504_v30 = vld [vmem:[%s15390_s10] ss:$8 sps:$4 sm:$0xff]  }
 0x375   : > { %v7733_v40 = vmul.f32 -0.5, %v7669_v0  ;;  %v11332_v34 = vpop.f32.mrf.mxu0  ;;  %v2857_v47 = vadd.f32 %v2793_v42, %v11203_v49  ;;  %v7479_v49 = vmul.f32 %v11329_v37, %v11329_v37  ;;  %v11361_v42 = vadd.s32 %v15612_v29, %v4627_v51 }
 0x376   : > { %v7796_v38 = vsel %vm15492_vm15, %v7732_v60, 0.0  ;;  %v11334_v3 = vpop.eup %8626  ;;  %v7542_v60 = vsub.f32 %v7414_v58, %v7478_v44  ;;  %v8506_v58 = vld [vmem:[%s15390_s10 + $0x4] ss:$8 sps:$4 sm:$0xff]  }
 0x377   : > { %v7860_v2 = vadd.f32 %v7859_v41, %v7796_v38  ;;  %v7797_v0 = vsel %vm15475_vm13, %v7733_v40, 0.0  ;;  %v7606_v23 = vmul.f32 %v11334_v3, %v11334_v3  ;;  %v11344_v48 = vpop.f32.mrf.mxu0  ;;  %v7415_v38 = vadd.f32 1.0, %v11248_v13  ;;  %3494 = vmatprep.subr.bf16.mxu1 %v8506_v58  ;;  %15643 = vst [vmem:[#allocation45_spill] sm:$0xff] %v11361_v42 }
 0x378   : > { %v2543_v40 = vmul.f32 0.5, %v11317_v17  ;;  %v2902_v45 = vpack.c.bf16 %v2857_v47, %v2856_v18  ;;  %vm15478_vm13 = vcmp.lt.s32.totalorder %v11325_v25, 1100  ;;  %3495 = vmatpush1.bf16.msra.mxu1 %v8504_v30  ;;  %v2794_v58 = vmul.f32 %v11277_v33, %v2730_v16  ;;  %v8503_v16 = vld [vmem:[%s15392_s12 + $0x54] ss:$8 sps:$4 sm:$0xff]  }
 0x379   : > { %v7861_v41 = vadd.f32 %v7860_v2, %v7797_v0  ;;  %v7670_v44 = vsub.f32 %v7542_v60, %v7606_v23  ;;  %v11352_v11 = vpop.f32.mrf.mxu0  ;;  %v2648_v2 = vmul.f32 1.442695, %v2542_v61  ;;  %v11365_v0 = vadd.f32 %v11263_v6, %v10195_v14  ;;  %v2731_v60 = vld [vmem:[%s9492_s9 + $0x138] sm:$0xff]  ;;  %v8495_v61 = vld [vmem:[%s15392_s12 + $0x60] ss:$8 sps:$4 sm:$0xff]  }
 0x37a   : > { %8271 = vmatprep.mubr.bf16.mxu1 %v2902_v45  ;;  %v7543_v18 = vsub.f32 %v7415_v38, %v7479_v49  ;;  %v2650_v20 = vmul.f32 1.442695, %v2543_v40  ;;  %v8497_v6 = vld [vmem:[%s15392_s12 + $0x64] ss:$8 sps:$4 sm:$0xff]   ;;  %v11383_v38 = vadd.f32 %v11288_v4, %v10195_v14  ;;  %v2795_v33 = vmul.f32 %v11281_v62, %v2731_v60  ;;  %v8501_v62 = vld [vmem:[%s15392_s12 + $0x50] ss:$8 sps:$4 sm:$0xff]  }
 0x37b   : > { %v8629_v13 = vpop.eup %8628  ;;  %v7734_v12 = vmul.f32 -0.5, %v7670_v44  ;;  %v11368_v23 = vpop.f32.mrf.mxu0  ;;  %8630 = vpow2.f32 %v2648_v2  ;;  %v2544_v40 = vmul.f32 0.5, %v11365_v0  ;;  %4231 = vmatprep.subr.bf16.mxu0 %v8497_v6  ;;  %v8509_v2 = vld [vmem:[%s15392_s12 + $0x44] ss:$8 sps:$4 sm:$0xff]   ;;  %v8507_v6 = vld [vmem:[%s15392_s12 + $0x40] ss:$8 sps:$4 sm:$0xff]  }
 0x37c   : > { %v7607_v47 = vmul.f32 %v8629_v13, %v8629_v13  ;;  %v2859_v4 = vadd.f32 %v2795_v33, %v11258_v36  ;;  %4232 = vmatpush1.bf16.msra.mxu0 %v8495_v61  ;;  %8632 = vpow2.f32 %v2650_v20  ;;  %v2733_v20 = vld [vmem:[%s9492_s9 + $0x148] sm:$0xff]  ;;  %v8512_v33 = vld [vmem:[%s15392_s12 + $0x34] ss:$8 sps:$4 sm:$0xff]  }
 0x37d   : > { %v7798_v44 = vsel %vm15478_vm13, %v7734_v12, 0.0  ;;  %v11373_v51 = vpop.f32.mrf.mxu0  ;;  %vm15485_vm13 = vcmp.lt.s32.totalorder %v11361_v42, 1100  ;;  %v2858_v12 = vadd.f32 %v2794_v58, %v11244_v55  ;;  %4233 = vmatprep.subr.bf16.mxu0 %v8503_v16  ;;  %v2545_v55 = vmul.f32 0.5, %v11383_v38 }
 0x37e   : > { %v7862_v45 = vadd.f32 %v7861_v41, %v7798_v44  ;;  %v7671_v30 = vsub.f32 %v7543_v18, %v7607_v47  ;;  %v2652_v58 = vmul.f32 1.442695, %v2544_v40  ;;  %v2732_v44 = vld [vmem:[%s9492_s9 + $0x140] sm:$0xff]  ;;  %v11422_v16 = vadd.f32 %v11309_v22, %v10195_v14  ;;  %v8510_v22 = vld [vmem:[%s15392_s12 + $0x30] ss:$8 sps:$4 sm:$0xff]  }
 0x37f   : > { %v11391_v49 = vpop.f32.mrf.mxu0  ;;  %v2903_v47 = vpack.c.bf16 %v2859_v4, %v2858_v12  ;;  %v2796_v40 = vmul.f32 %v11334_v3, %v2732_v44  ;;  %v2797_v12 = vmul.f32 %v8629_v13, %v2733_v20  ;;  %v2396_v13 = vadd.f32 %v11230_v15, %v10189_v32  ;;  %v8513_v15 = vld [vmem:[%s15392_s12 + $0x20] ss:$8 sps:$4 sm:$0xff]  }
 0x380   : > { %v7735_v41 = vmul.f32 -0.5, %v7671_v30  ;;  %4234 = vmatpush1.bf16.msra.mxu0 %v8501_v62  ;;  %8634 = vpow2.f32 %v2652_v58  ;;  %v2392_v62 = vadd.f32 %v11205_v21, %v10189_v32  ;;  %v2546_v21 = vmul.f32 0.5, %v11422_v16 }
 0x381   : > { %v11398_v60 = vpop.f32.mrf.mxu0  ;;  %8272 = vmatmul.mubr.bf16.gmra.mxu1 %v2903_v47  ;;  %4235 = vmatprep.subr.bf16.mxu0 %v8509_v2  ;;  %v4628_v2 = vadd.s32 336, %v9809_v63  ;;  %v2860_v3 = vadd.f32 %v2796_v40, %v11294_v57  ;;  %v4629_v47 = vadd.s32 344, %v9809_v63  ;;  %v2734_v40 = vld [vmem:[%s9492_s9 + $0x150] sm:$0xff] }
 0x382   : > { %v7799_v18 = vsel %vm15485_vm13, %v7735_v41, 0.0  ;;  %v11427_v41 = vadd.f32 %v11344_v48, %v10195_v14  ;;  %v7416_v48 = vadd.f32 1.0, %v11306_v53  ;;  %v7480_v20 = vmul.f32 %v2392_v62, %v2392_v62 }
 0x383   : > { %v11406_v36 = vadd.f32 %v7862_v45, %v7799_v18  ;;  %v11409_v61 = vpop.f32.mrf.mxu0  ;;  %v2654_v45 = vmul.f32 1.442695, %v2545_v55  ;;  %v2861_v18 = vadd.f32 %v2797_v12, %v11329_v37  ;;  %v7417_v53 = vadd.f32 1.0, %v11317_v17 }
 0x384   : > { %4236 = vmatpush1.bf16.msra.mxu0 %v8507_v6  ;;  %v2547_v58 = vmul.f32 0.5, %v11427_v41  ;;  %v11450_v6 = vadd.s32 %v15612_v29, %v4628_v2  ;;  %v7481_v17 = vmul.f32 %v2396_v13, %v2396_v13  ;;  %v11468_v25 = vadd.s32 %v15612_v29, %v4629_v47 }
 0x385   : > { %v11415_v30 = vpop.f32.mrf.mxu0  ;;  %4237 = vmatprep.subr.bf16.mxu0 %v8512_v33  ;;  %8636 = vpow2.f32 %v2654_v45  ;;  %v2904_v44 = vpack.c.bf16 %v2861_v18, %v2860_v3  ;;  %v8515_v33 = vld [vmem:[%s15392_s12 + $0x24] ss:$8 sps:$4 sm:$0xff]   ;;  %v11461_v45 = vadd.f32 %v11368_v23, %v10195_v14  ;;  %v7544_v3 = vsub.f32 %v7416_v48, %v7480_v20  ;;  %v2735_v18 = vld [vmem:[%s9492_s9 + $0x158] sm:$0xff] }
 0x386   : > { %15644 = vst [vmem:[#allocation46_spill] sm:$0xff] %v11450_v6  ;;  %15645 = vst [vmem:[#allocation47_spill] sm:$0xff] %v11468_v25  ;;  %v2658_v26 = vmul.f32 1.442695, %v2547_v58  ;;  %vm15512_vm13 = vcmp.lt.s32.totalorder %v11450_v6, 1100  ;;  %v7545_v9 = vsub.f32 %v7417_v53, %v7481_v17  ;;  %v4630_v48 = vadd.s32 352, %v9809_v63 }
 0x387   : > { %v11429_v4 = vpop.f32.mrf.mxu0  ;;  %8275 = vmatprep.mubr.bf16.mxu1 %v2904_v44  ;;  %v11472_v44 = vadd.f32 %v11251_v7, %v10189_v32  ;;  %v7418_v47 = vadd.f32 1.0, %v11365_v0  ;;  %v2406_v7 = vadd.f32 %v11275_v46, %v10189_v32  ;;  %v2548_v58 = vmul.f32 0.5, %v11461_v45 }
 0x388   : > { %v8631_v37 = vpop.eup %8630  ;;  %4238 = vmatpush1.bf16.msra.mxu0 %v8510_v22  ;;  %v2656_v22 = vmul.f32 1.442695, %v2546_v21  ;;  %v11480_v21 = vadd.f32 %v11391_v49, %v10195_v14  ;;  %v4631_v53 = vadd.s32 360, %v9809_v63  ;;  %v11490_v17 = vadd.f32 1.0, %v11383_v38 }
 0x389   : > { %v11439_v55 = vpop.f32.mrf.mxu0  ;;  %v8633_v2 = vpop.eup %8632  ;;  %4239 = vmatprep.subr.bf16.mxu0 %v8515_v33  ;;  %v7608_v42 = vmul.f32 %v8631_v37, %v8631_v37  ;;  %v2798_v20 = vmul.f32 %v8631_v37, %v2734_v40  ;;  %v7482_v40 = vmul.f32 %v11472_v44, %v11472_v44  ;;  %vm15511_vm15 = vcmp.lt.s32.totalorder %v11468_v25, 1100 }
 0x38a   : > { %v2799_v33 = vmul.f32 %v8633_v2, %v2735_v18  ;;  %v7609_v35 = vmul.f32 %v8633_v2, %v8633_v2  ;;  %8638 = vpow2.f32 %v2656_v22  ;;  %v11497_v18 = vadd.s32 %v15612_v29, %v4630_v48 }
 0x38b   : > { %v11447_v57 = vpop.f32.mrf.mxu0  ;;  %v7672_v49 = vsub.f32 %v7544_v3, %v7608_v42  ;;  %8640 = vpow2.f32 %v2658_v26  ;;  %v2862_v37 = vadd.f32 %v2798_v20, %v2392_v62  ;;  %v11501_v2 = vadd.f32 %v11298_v5, %v10189_v32 }
 0x38c   : > { %4240 = vmatpush1.bf16.msra.mxu0 %v8513_v15  ;;  %v2863_v0 = vadd.f32 %v2799_v33, %v2396_v13  ;;  %v2549_v38 = vmul.f32 0.5, %v11480_v21  ;;  %v7483_v26 = vmul.f32 %v2406_v7, %v2406_v7  ;;  %v2660_v42 = vmul.f32 1.442695, %v2548_v58  ;;  %v2736_v13 = vld [vmem:[%s9492_s9 + $0x160] sm:$0xff] }
 0x38d   : > { %v11464_v12 = vpop.f32.mrf.mxu0  ;;  %v8635_v46 = vpop.eup %8634  ;;  %v7673_v22 = vsub.f32 %v7545_v9, %v7609_v35  ;;  %v7546_v20 = vsub.f32 %v7418_v47, %v7482_v40  ;;  %v4632_v48 = vadd.s32 368, %v9809_v63  ;;  %v11511_v33 = vadd.f32 %v11409_v61, %v10195_v14 }
 0x38e   : > { %v2905_v62 = vpack.c.bf16 %v2863_v0, %v2862_v37  ;;  %v7736_v10 = vmul.f32 -0.5, %v7672_v49  ;;  %v7610_v24 = vmul.f32 %v8635_v46, %v8635_v46  ;;  %v11514_v50 = vadd.s32 %v15612_v29, %v4631_v53  ;;  %v2737_v37 = vld [vmem:[%s9492_s9 + $0x168] sm:$0xff] }
 0x38f   : > { %v11474_v23 = vpop.f32.mrf.mxu0  ;;  %v7547_v58 = vsub.f32 %v11490_v17, %v7483_v26  ;;  %vm15516_vm14 = vcmp.lt.s32.totalorder %v11497_v18, 1100  ;;  %v11523_v35 = vmul.f32 %v11501_v2, %v11501_v2  ;;  %v2662_v9 = vmul.f32 1.442695, %v2549_v38 }
 0x390   : > { %15646 = vst [vmem:[#allocation48_spill] sm:$0xff] %v11514_v50  ;;  %8276 = vmatmul.mubr.bf16.gmra.mxu1 %v2905_v62  ;;  %v11527_v61 = vadd.f32 %v11429_v4, %v10195_v14  ;;  %v2800_v47 = vmul.f32 %v8635_v46, %v2736_v13  ;;  %v11530_v53 = vadd.f32 1.0, %v11422_v16  ;;  %v11534_v17 = vadd.f32 %v11332_v34, %v10189_v32 }
 0x391   : > { %v11486_v59 = vpop.f32.mrf.mxu0  ;;  %v4633_v49 = vadd.s32 376, %v9809_v63  ;;  %8642 = vpow2.f32 %v2660_v42  ;;  %v7737_v26 = vmul.f32 -0.5, %v7673_v22  ;;  %v11540_v38 = vadd.s32 %v15612_v29, %v4632_v48 }
 0x392   : > { %v8637_v5 = vpop.eup %8636  ;;  %v2550_v4 = vmul.f32 0.5, %v11511_v33  ;;  %v7800_v16 = vsel %vm15512_vm13, %v7736_v10, 0.0  ;;  %v7674_v46 = vsub.f32 %v7546_v20, %v7610_v24  ;;  %v11546_v34 = vadd.f32 1.0, %v11427_v41  ;;  %v8518_v24 = vld [vmem:[%s15392_s12 + $0x14] ss:$8 sps:$4 sm:$0xff]  }
 0x393   : > { %v11492_v15 = vpop.f32.mrf.mxu0  ;;  %v2801_v62 = vmul.f32 %v8637_v5, %v2737_v37  ;;  %v7611_v13 = vmul.f32 %v8637_v5, %v8637_v5  ;;  %vm15513_vm0 = vcmp.lt.s32.totalorder %v11514_v50, 1100  ;;  %8644 = vpow2.f32 %v2662_v9  ;;  %v8516_v37 = vld [vmem:[%s15392_s12 + $0x10] ss:$8 sps:$4 sm:$0xff]   ;;  %4241 = vmatprep.subr.bf16.mxu0 %v8518_v24 }
 0x394   : > { %v2551_v42 = vmul.f32 0.5, %v11527_v61  ;;  %v2864_v22 = vadd.f32 %v2800_v47, %v11472_v44  ;;  %v7548_v10 = vsub.f32 %v11530_v53, %v11523_v35  ;;  %v7485_v41 = vmul.f32 %v11534_v17, %v11534_v17  ;;  %4242 = vmatpush1.bf16.msra.mxu0 %v8516_v37 }
 0x395   : > { %v11506_v3 = vpop.f32.mrf.mxu0  ;;  %v2865_v48 = vadd.f32 %v2801_v62, %v2406_v7  ;;  %v11565_v20 = vadd.f32 %v11352_v11, %v10189_v32  ;;  %v11569_v44 = vadd.f32 %v11447_v57, %v10195_v14  ;;  %v7801_v5 = vsel %vm15511_vm15, %v7737_v26, 0.0  ;;  %v2738_v57 = vld [vmem:[%s9492_s9 + $0x170] sm:$0xff] }
 0x396   : > { %v4634_v9 = vadd.s32 384, %v9809_v63  ;;  %v2664_v47 = vmul.f32 1.442695, %v2550_v4  ;;  %v7864_v62 = vadd.f32 %v11406_v36, %v7800_v16  ;;  %v7738_v11 = vmul.f32 -0.5, %v7674_v46 }
 0x397   : > { %v11518_v0 = vpop.f32.mrf.mxu0  ;;  %v2906_v35 = vpack.c.bf16 %v2865_v48, %v2864_v22  ;;  %v8639_v53 = vpop.eup %8638  ;;  %v7675_v6 = vsub.f32 %v7547_v58, %v7611_v13  ;;  %v11578_v19 = vadd.s32 %v15612_v29, %v4633_v49  ;;  %v7549_v26 = vsub.f32 %v11546_v34, %v7485_v41  ;;  %v2739_v58 = vld [vmem:[%s9492_s9 + $0x178] sm:$0xff] }
 0x398   : > { %v8641_v25 = vpop.eup %8640  ;;  %v11586_v4 = vadd.f32 %v11373_v51, %v10189_v32  ;;  %v2666_v22 = vmul.f32 1.442695, %v2551_v42  ;;  %v11590_v36 = vadd.f32 %v11474_v23, %v10195_v14  ;;  %v7865_v49 = vadd.f32 %v7864_v62, %v7801_v5 }
 0x399   : > { %v11537_v40 = vpop.f32.mrf.mxu0  ;;  %15647 = vst [vmem:[#allocation49_spill] sm:$0xff] %v11578_v19  ;;  %8279 = vmatprep.mubr.bf16.mxu1 %v2906_v35  ;;  %v7486_v16 = vmul.f32 %v11565_v20, %v11565_v20  ;;  %v4635_v46 = vadd.s32 392, %v9809_v63  ;;  %v2552_v13 = vmul.f32 0.5, %v11569_v44  ;;  %v11598_v34 = vadd.s32 %v15612_v29, %v4634_v9 }
 0x39a   : > { %v7422_v51 = vadd.f32 1.0, %v11461_v45  ;;  %8646 = vpow2.f32 %v2664_v47  ;;  %v2802_v42 = vmul.f32 %v8639_v53, %v2738_v57  ;;  %v7802_v23 = vsel %vm15516_vm14, %v7738_v11, 0.0 }
 0x39b   : > { %v11548_v8 = vpop.f32.mrf.mxu0  ;;  %15648 = vst [vmem:[#allocation50_spill] sm:$0xff] %v11598_v34  ;;  %v7739_v48 = vmul.f32 -0.5, %v7675_v6  ;;  %v7612_v37 = vmul.f32 %v8639_v53, %v8639_v53  ;;  %v2803_v24 = vmul.f32 %v8641_v25, %v2739_v58  ;;  %vm15518_vm15 = vcmp.lt.s32.totalorder %v11540_v38, 1100 }
 0x39c   : > { %v7613_v5 = vmul.f32 %v8641_v25, %v8641_v25  ;;  %v11608_v35 = vmul.f32 %v11586_v4, %v11586_v4  ;;  %8648 = vpow2.f32 %v2666_v22  ;;  %v2553_v45 = vmul.f32 0.5, %v11590_v36 }
 0x39d   : > { %v11571_v7 = vpop.f32.mrf.mxu0  ;;  %vm15517_vm13 = vcmp.lt.s32.totalorder %v11578_v19, 1100  ;;  %v2668_v9 = vmul.f32 1.442695, %v2552_v13  ;;  %v2866_v47 = vadd.f32 %v2802_v42, %v11501_v2  ;;  %v2867_v6 = vadd.f32 %v2803_v24, %v11534_v17  ;;  %v2740_v42 = vld [vmem:[%s9492_s9 + $0x180] sm:$0xff] }
 0x39e   : > { %v11616_v53 = vadd.f32 %v11492_v15, %v10195_v14  ;;  %v8643_v25 = vpop.eup %8642  ;;  %v7866_v62 = vadd.f32 %v7865_v49, %v7802_v23  ;;  %v11619_v11 = vadd.s32 %v15612_v29, %v4635_v46  ;;  %v11622_v57 = vadd.f32 1.0, %v11480_v21 }
 0x39f   : > { %v11581_v1 = vpop.f32.mrf.mxu0  ;;  %v11626_v22 = vadd.f32 %v11398_v60, %v10189_v32  ;;  %v7803_v2 = vsel %vm15513_vm0, %v7739_v48, 0.0  ;;  %v7676_v17 = vsub.f32 %v7548_v10, %v7612_v37  ;;  %v4636_v15 = vadd.s32 400, %v9809_v63  ;;  %v2741_v37 = vld [vmem:[%s9492_s9 + $0x188] sm:$0xff] }
 0x3a0   : > { %v2907_v58 = vpack.c.bf16 %v2867_v6, %v2866_v47  ;;  %v7677_v49 = vsub.f32 %v7549_v26, %v7613_v5  ;;  %v11634_v46 = vadd.f32 1.0, %v11511_v33  ;;  %v11638_v21 = vadd.f32 %v11415_v30, %v10189_v32  ;;  %v8645_v23 = vpop.eup %8644 }
 0x3a1   : > { %v11603_v41 = vpop.f32.mrf.mxu0  ;;  %v2670_v60 = vmul.f32 1.442695, %v2553_v45  ;;  %v7614_v24 = vmul.f32 %v8643_v25, %v8643_v25  ;;  %v4637_v48 = vadd.s32 408, %v9809_v63  ;;  %8650 = vpow2.f32 %v2668_v9 }
 0x3a2   : > { %8280 = vmatmul.mubr.bf16.gmra.mxu1 %v2907_v58  ;;  %v2554_v10 = vmul.f32 0.5, %v11616_v53  ;;  %vm15523_vm0 = vcmp.lt.s32.totalorder %v11598_v34, 1100  ;;  %v7550_v26 = vsub.f32 %v7422_v51, %v7486_v16  ;;  %v7551_v33 = vsub.f32 %v11622_v57, %v11608_v35 }
 0x3a3   : > { %v11631_v13 = vpop.f32.mrf.mxu0  ;;  %v11649_v30 = vmul.f32 %v11626_v22, %v11626_v22  ;;  %v11653_v5 = vadd.f32 %v11518_v0, %v10195_v14  ;;  %v7867_v45 = vadd.f32 %v7866_v62, %v7803_v2  ;;  %v7740_v9 = vmul.f32 -0.5, %v7676_v17  ;;  %v8519_v0 = vld [vmem:[%s15392_s12] ss:$8 sps:$4 sm:$0xff]   ;;  %v8521_v62 = vld [vmem:[%s15392_s12 + $0x4] ss:$8 sps:$4 sm:$0xff]  }
 0x3a4   : > { %v11656_v47 = vadd.s32 %v15612_v29, %v4636_v15  ;;  %v2804_v6 = vmul.f32 %v8643_v25, %v2740_v42  ;;  %v7741_v16 = vmul.f32 -0.5, %v7677_v49  ;;  %v11662_v51 = vmul.f32 %v11638_v21, %v11638_v21  ;;  %4243 = vmatprep.subr.bf16.mxu0 %v8521_v62 }
 0x3a5   : > { %v11658_v58 = vpop.f32.mrf.mxu0  ;;  %8652 = vpow2.f32 %v2670_v60  ;;  %v2805_v35 = vmul.f32 %v8645_v23, %v2741_v37  ;;  %v7678_v57 = vsub.f32 %v7550_v26, %v7614_v24  ;;  %v7552_v25 = vsub.f32 %v11634_v46, %v11649_v30  ;;  %4244 = vmatpush1.bf16.msra.mxu0 %v8519_v0 }
 0x3a6   : > { %v11673_v2 = vadd.s32 %v15612_v29, %v4637_v48  ;;  %v2672_v17 = vmul.f32 1.442695, %v2554_v10  ;;  %v7615_v15 = vmul.f32 %v8645_v23, %v8645_v23  ;;  %v2555_v49 = vmul.f32 0.5, %v11653_v5 }
 0x3a7   : > { %v2868_v60 = vadd.f32 %v2804_v6, %v11565_v20  ;;  %v2869_v42 = vadd.f32 %v2805_v35, %v11586_v4  ;;  %v8647_v37 = vpop.eup %8646  ;;  %v7804_v50 = vsel %vm15518_vm15, %v7740_v9, 0.0  ;;  %vm15524_vm14 = vcmp.lt.s32.totalorder %v11619_v11, 1100  ;;  %v11687_v48 = vpop.f32.mrf.mxu0 }
 0x3a8   : > { %v7425_v46 = vadd.f32 1.0, %v11527_v61  ;;  %v11684_v24 = vadd.f32 %v11439_v55, %v10189_v32  ;;  %v4638_v23 = vadd.s32 416, %v9809_v63  ;;  %v7805_v20 = vsel %vm15517_vm13, %v7741_v16, 0.0 }
 0x3a9   : > { %v11693_v4 = vadd.f32 %v11464_v12, %v10189_v32  ;;  %v2908_v10 = vpack.c.bf16 %v2869_v42, %v2868_v60  ;;  %v11697_v61 = vadd.f32 %v11548_v8, %v10195_v14  ;;  %v8649_v55 = vpop.eup %8648  ;;  %v7742_v26 = vmul.f32 -0.5, %v7678_v57 }
 0x3aa   : > { %v7426_v30 = vadd.f32 1.0, %v11569_v44  ;;  %8654 = vpow2.f32 %v2672_v17  ;;  %v11702_v9 = vadd.f32 %v11581_v1, %v10195_v14  ;;  %v7868_v6 = vadd.f32 %v7867_v45, %v7804_v50  ;;  %v2742_v1 = vld [vmem:[%s9492_s9 + $0x190] sm:$0xff]  ;;  %v11714_v50 = vpop.f32.mrf.mxu0 }
 0x3ab   : > { %v7679_v16 = vsub.f32 %v7551_v33, %v7615_v15  ;;  %v7616_v12 = vmul.f32 %v8647_v37, %v8647_v37  ;;  %v2674_v35 = vmul.f32 1.442695, %v2555_v49  ;;  %8283 = vmatprep.mubr.bf16.mxu1 %v2908_v10  ;;  %vm15525_vm13 = vcmp.lt.s32.totalorder %v11656_v47, 1100 }
 0x3ac   : > { %v7553_v8 = vsub.f32 %v7425_v46, %v11662_v51  ;;  %v7490_v0 = vmul.f32 %v11684_v24, %v11684_v24  ;;  %v4639_v44 = vadd.s32 424, %v9809_v63  ;;  %v11711_v62 = vadd.f32 %v11486_v59, %v10189_v32  ;;  %v2743_v51 = vld [vmem:[%s9492_s9 + $0x198] sm:$0xff] }
 0x3ad   : > { %v7869_v33 = vadd.f32 %v7868_v6, %v7805_v20  ;;  %v7617_v45 = vmul.f32 %v8649_v55, %v8649_v55  ;;  %v11717_v57 = vadd.s32 %v15612_v29, %v4638_v23  ;;  %v2556_v17 = vmul.f32 0.5, %v11697_v61 }
 0x3ae   : > { %v7806_v15 = vsel %vm15523_vm0, %v7742_v26, 0.0  ;;  %v7554_v49 = vsub.f32 %v7426_v30, %v7490_v0  ;;  %v7491_v60 = vmul.f32 %v11693_v4, %v11693_v4  ;;  %v2557_v59 = vmul.f32 0.5, %v11702_v9  ;;  %v11726_v42 = vpop.eup %8650  ;;  %v11737_v0 = vpop.f32.mrf.mxu0 }
 0x3af   : > { %v7743_v46 = vmul.f32 -0.5, %v7679_v16  ;;  %v7680_v20 = vsub.f32 %v7552_v25, %v7616_v12  ;;  %vm15526_vm15 = vcmp.lt.s32.totalorder %v11673_v2, 1100  ;;  %8656 = vpow2.f32 %v2674_v35 }
 0x3b0   : > { %v2806_v23 = vmul.f32 %v8647_v37, %v2742_v1  ;;  %v11730_v10 = vadd.s32 %v15612_v29, %v4639_v44  ;;  %v7427_v6 = vadd.f32 1.0, %v11590_v36  ;;  %v11735_v26 = vmul.f32 %v11711_v62, %v11711_v62 }
 0x3b1   : > { %v2807_v30 = vmul.f32 %v8649_v55, %v2743_v51  ;;  %v7870_v34 = vadd.f32 %v7869_v33, %v7806_v15  ;;  %v7681_v19 = vsub.f32 %v7553_v8, %v7617_v45  ;;  %v2676_v16 = vmul.f32 1.442695, %v2556_v17  ;;  %v11760_v17 = vpop.f32.mrf.mxu0 }
 0x3b2   : > { %v11741_v25 = vadd.f32 %v11631_v13, %v10195_v14  ;;  %v8653_v37 = vpop.eup %8652  ;;  %v7618_v12 = vmul.f32 %v11726_v42, %v11726_v42  ;;  %v2678_v35 = vmul.f32 1.442695, %v2557_v59  ;;  %v2870_v36 = vadd.f32 %v2806_v23, %v11626_v22 }
 0x3b3   : > { %v2871_v44 = vadd.f32 %v2807_v30, %v11638_v21  ;;  %v7807_v55 = vsel %vm15524_vm14, %v7743_v46, 0.0  ;;  %v7744_v1 = vmul.f32 -0.5, %v7680_v20  ;;  %vm15555_vm0 = vcmp.lt.s32.totalorder %v11717_v57, 1100 }
 0x3b4   : > { %v4640_v8 = vadd.s32 432, %v9809_v63  ;;  %v11753_v13 = vadd.f32 %v11506_v3, %v10189_v32  ;;  %v7428_v33 = vadd.f32 1.0, %v11616_v53  ;;  %v4641_v45 = vadd.s32 440, %v9809_v63  ;;  %v8522_v3 = vld [vmem:[%s15392_s12 + $0xf0] ss:$8 sps:$4 sm:$0xff]  }
 0x3b5   : > { %v11758_v22 = vadd.f32 1.0, %v11653_v5  ;;  %v2909_v21 = vpack.c.bf16 %v2871_v44, %v2870_v36  ;;  %v7619_v51 = vmul.f32 %v8653_v37, %v8653_v37  ;;  %v11764_v15 = vadd.f32 %v11537_v40, %v10189_v32  ;;  %v8524_v53 = vld [vmem:[%s15392_s12 + $0xf4] ss:$8 sps:$4 sm:$0xff]   ;;  %v2744_v36 = vld [vmem:[%s9492_s9 + $0x1a0] sm:$0xff]  ;;  %v2745_v44 = vld [vmem:[%s9492_s9 + $0x1a8] sm:$0xff] }
 0x3b6   : > { %8658 = vpow2.f32 %v2676_v16  ;;  %v2558_v59 = vmul.f32 0.5, %v11741_v25  ;;  %v7745_v5 = vmul.f32 -0.5, %v7681_v19  ;;  %v7682_v46 = vsub.f32 %v7554_v49, %v7618_v12  ;;  %4245 = vmatprep.subr.bf16.mxu0 %v8524_v53 }
 0x3b7   : > { %vm15527_vm14 = vcmp.lt.s32.totalorder %v11730_v10, 1100  ;;  %8660 = vpow2.f32 %v2678_v35  ;;  %8284 = vmatmul.mubr.bf16.gmra.mxu1 %v2909_v21  ;;  %v11776_v40 = vadd.f32 %v11687_v48, %v10195_v14  ;;  %v11778_v20 = vpop.eup %8654  ;;  %v7808_v23 = vsel %vm15525_vm13, %v7744_v1, 0.0  ;;  %v2487_v21 = vpop.f32.mrf.mxu0  ;;  %4246 = vmatpush2.bf16.msra.mxu0 %v8522_v3 }
 0x3b8   : > { %v7555_v30 = vsub.f32 %v7427_v6, %v7491_v60  ;;  %v11783_v16 = vadd.s32 %v15612_v29, %v4640_v8  ;;  %v7493_v19 = vmul.f32 %v11753_v13, %v11753_v13  ;;  %v7871_v49 = vadd.f32 %v7870_v34, %v7807_v55 }
 0x3b9   : > { %v7556_v12 = vsub.f32 %v7428_v33, %v11735_v26  ;;  %v11789_v35 = vadd.s32 %v15612_v29, %v4641_v45  ;;  %v2559_v48 = vmul.f32 0.5, %v11776_v40  ;;  %v11797_v1 = vmul.f32 %v11764_v15, %v11764_v15 }
 0x3ba   : > { %15649 = vst [vmem:[#allocation51_spill] sm:$0xff] %v11783_v16  ;;  %v7683_v60 = vsub.f32 %v7555_v30, %v7619_v51  ;;  %v7557_v6 = vsub.f32 %v11758_v22, %v7493_v19  ;;  %v2680_v8 = vmul.f32 1.442695, %v2558_v59  ;;  %v7872_v34 = vadd.f32 %v7871_v49, %v7808_v23  ;;  %v11818_v23 = vpop.f32.mrf.mxu0 }
 0x3bb   : > { %15650 = vst [vmem:[#allocation52_spill] sm:$0xff] %v11789_v35  ;;  %v7809_v26 = vsel %vm15526_vm15, %v7745_v5, 0.0  ;;  %v7746_v55 = vmul.f32 -0.5, %v7682_v46  ;;  %v7620_v33 = vmul.f32 %v11778_v20, %v11778_v20  ;;  %vm15528_vm13 = vcmp.lt.s32.totalorder %v11783_v16, 1100  ;;  %v2749_v16 = vld [vmem:[%s9492_s9 + $0x1c8] sm:$0xff] }
 0x3bc   : > { %v4642_v45 = vadd.s32 448, %v9809_v63  ;;  %v2682_v51 = vmul.f32 1.442695, %v2559_v48  ;;  %v2808_v22 = vmul.f32 %v11726_v42, %v2744_v36  ;;  %v2809_v3 = vmul.f32 %v8653_v37, %v2745_v44  ;;  %v8657_v53 = vpop.eup %8656 }
 0x3bd   : > { %v11807_v30 = vadd.f32 1.0, %v11697_v61  ;;  %v11811_v59 = vadd.f32 %v11571_v7, %v10189_v32  ;;  %v4643_v5 = vadd.s32 456, %v9809_v63  ;;  %v11816_v46 = vadd.f32 %v11737_v0, %v10195_v14 }
 0x3be   : > { %v7747_v19 = vmul.f32 -0.5, %v7683_v60  ;;  %8662 = vpow2.f32 %v2680_v8  ;;  %v2872_v42 = vadd.f32 %v2808_v22, %v11684_v24  ;;  %v2873_v37 = vadd.f32 %v2809_v3, %v11693_v4  ;;  %v2493_v60 = vpop.f32.mrf.mxu0  ;;  %v2747_v22 = vld [vmem:[%s9492_s9 + $0x1b8] sm:$0xff] }
 0x3bf   : > { %v7810_v61 = vsel %vm15555_vm0, %v7746_v55, 0.0  ;;  %v7684_v49 = vsub.f32 %v7556_v12, %v7620_v33  ;;  %v11826_v7 = vadd.f32 %v11603_v41, %v10189_v32  ;;  %v2560_v0 = vmul.f32 0.5, %v11816_v46 }
 0x3c0   : > { %v7621_v48 = vmul.f32 %v8657_v53, %v8657_v53  ;;  %8664 = vpow2.f32 %v2682_v51  ;;  %v2910_v36 = vpack.c.bf16 %v2873_v37, %v2872_v42  ;;  %v11830_v44 = vadd.f32 %v2487_v21, %v10195_v14 }
 0x3c1   : > { %v7873_v24 = vadd.f32 %v7872_v34, %v7809_v26  ;;  %vm15531_vm15 = vcmp.lt.s32.totalorder %v11789_v35, 1100  ;;  %v11834_v4 = vadd.s32 %v15612_v29, %v4642_v45  ;;  %v2684_v12 = vmul.f32 1.442695, %v2560_v0  ;;  %v2746_v34 = vld [vmem:[%s9492_s9 + $0x1b0] sm:$0xff]  ;;  %v2751_v35 = vld [vmem:[%s9492_s9 + $0x1d8] sm:$0xff] }
 0x3c2   : > { %v7811_v41 = vsel %vm15527_vm14, %v7747_v19, 0.0  ;;  %v7558_v8 = vsub.f32 %v11807_v30, %v11797_v1  ;;  %v7495_v55 = vmul.f32 %v11811_v59, %v11811_v59  ;;  %8287 = vmatprep.mubr.bf16.mxu1 %v2910_v36  ;;  %v2561_v21 = vmul.f32 0.5, %v11830_v44 }
 0x3c3   : > { %v8659_v26 = vpop.eup %8658  ;;  %v7874_v33 = vadd.f32 %v7873_v24, %v7810_v61  ;;  %v7748_v51 = vmul.f32 -0.5, %v7684_v49  ;;  %v11845_v45 = vadd.s32 %v15612_v29, %v4643_v5  ;;  %8666 = vpow2.f32 %v2684_v12  ;;  %v11858_v49 = vpop.f32.mrf.mxu0 }
 0x3c4   : > { %v8661_v3 = vpop.eup %8660  ;;  %v7685_v19 = vsub.f32 %v7557_v6, %v7621_v48  ;;  %v7431_v42 = vadd.f32 1.0, %v11702_v9  ;;  %v11851_v1 = vmul.f32 %v11826_v7, %v11826_v7  ;;  %v2686_v30 = vmul.f32 1.442695, %v2561_v21 }
 0x3c5   : > { %15651 = vst [vmem:[#allocation53_spill] sm:$0xff] %v11845_v45  ;;  %v7875_v37 = vadd.f32 %v7874_v33, %v7811_v41  ;;  %v4644_v0 = vadd.s32 464, %v9809_v63  ;;  %v11855_v61 = vadd.f32 1.0, %v11741_v25  ;;  %v2810_v5 = vmul.f32 %v11778_v20, %v2746_v34  ;;  %v8525_v20 = vld [vmem:[%s15392_s12 + $0xe0] ss:$8 sps:$4 sm:$0xff]  }
 0x3c6   : > { %v11862_v6 = vadd.f32 %v11658_v58, %v10189_v32  ;;  %v4645_v9 = vadd.s32 472, %v9809_v63  ;;  %8668 = vpow2.f32 %v2686_v30  ;;  %v2811_v48 = vmul.f32 %v8657_v53, %v2747_v22  ;;  %v8527_v58 = vld [vmem:[%s15392_s12 + $0xe4] ss:$8 sps:$4 sm:$0xff]   ;;  %v2497_v22 = vpop.f32.mrf.mxu0 }
 0x3c7   : > { %v7812_v36 = vsel %vm15528_vm13, %v7748_v51, 0.0  ;;  %v7622_v24 = vmul.f32 %v8659_v26, %v8659_v26  ;;  %v7623_v12 = vmul.f32 %v8661_v3, %v8661_v3  ;;  %v11868_v25 = vadd.f32 %v2493_v60, %v10195_v14  ;;  %4247 = vmatprep.subr.bf16.mxu0 %v8527_v58 }
 0x3c8   : > { %v7749_v41 = vmul.f32 -0.5, %v7685_v19  ;;  %vm15535_vm14 = vcmp.lt.s32.totalorder %v11834_v4, 1100  ;;  %v11879_v53 = vadd.f32 %v11714_v50, %v10189_v32  ;;  %v2874_v21 = vadd.f32 %v2810_v5, %v11711_v62  ;;  %4248 = vmatpush2.bf16.msra.mxu0 %v8525_v20 }
 0x3c9   : > { %v2875_v60 = vadd.f32 %v2811_v48, %v11753_v13  ;;  %vm15534_vm13 = vcmp.lt.s32.totalorder %v11845_v45, 1100  ;;  %v7559_v34 = vsub.f32 %v7431_v42, %v7495_v55  ;;  %v11885_v33 = vadd.s32 %v15612_v29, %v4644_v0  ;;  %v2748_v48 = vld [vmem:[%s9492_s9 + $0x1c0] sm:$0xff] }
 0x3ca   : > { %v2562_v51 = vmul.f32 0.5, %v11868_v25  ;;  %v7876_v19 = vadd.f32 %v7875_v37, %v7812_v36  ;;  %v7560_v50 = vsub.f32 %v11855_v61, %v11851_v1  ;;  %v7497_v62 = vmul.f32 %v11862_v6, %v11862_v6 }
 0x3cb   : > { %15652 = vst [vmem:[#allocation54_spill] sm:$0xff] %v11885_v33  ;;  %v2911_v13 = vpack.c.bf16 %v2875_v60, %v2874_v21  ;;  %v8663_v30 = vpop.eup %8662  ;;  %v7686_v5 = vsub.f32 %v7558_v8, %v7622_v24  ;;  %v7687_v55 = vsub.f32 %v7559_v34, %v7623_v12  ;;  %v7433_v42 = vadd.f32 1.0, %v11776_v40 }
 0x3cc   : > { %v2688_v0 = vmul.f32 1.442695, %v2562_v51  ;;  %v7813_v58 = vsel %vm15531_vm15, %v7749_v41, 0.0  ;;  %v11898_v37 = vadd.s32 %v15612_v29, %v4645_v9  ;;  %v7498_v1 = vmul.f32 %v11879_v53, %v11879_v53 }
 0x3cd   : > { %8288 = vmatmul.mubr.bf16.gmra.mxu1 %v2911_v13  ;;  %v11903_v61 = vadd.f32 %v2497_v22, %v10195_v14  ;;  %v8665_v8 = vpop.eup %8664  ;;  %v4646_v36 = vadd.s32 480, %v9809_v63  ;;  %v7434_v40 = vadd.f32 1.0, %v11816_v46  ;;  %v2486_v24 = vadd.f32 %v11760_v17, %v10189_v32 }
 0x3ce   : > { %15653 = vst [vmem:[#allocation55_spill] sm:$0xff] %v11898_v37  ;;  %8670 = vpow2.f32 %v2688_v0  ;;  %v7624_v9 = vmul.f32 %v8663_v30, %v8663_v30  ;;  %v2812_v20 = vmul.f32 %v8659_v26, %v2748_v48  ;;  %v2813_v41 = vmul.f32 %v8661_v3, %v2749_v16  ;;  %v2750_v0 = vld [vmem:[%s9492_s9 + $0x1d0] sm:$0xff] }
 0x3cf   : > { %v2563_v12 = vmul.f32 0.5, %v11903_v61  ;;  %v7877_v21 = vadd.f32 %v7876_v19, %v7813_v58  ;;  %v7750_v60 = vmul.f32 -0.5, %v7686_v5  ;;  %v7751_v14 = vmul.f32 -0.5, %v7687_v55 }
 0x3d0   : > { %vm15536_vm15 = vcmp.lt.s32.totalorder %v11885_v33, 1100  ;;  %v7561_v34 = vsub.f32 %v7433_v42, %v7497_v62  ;;  %v8667_v51 = vpop.eup %8666  ;;  %v7625_v46 = vmul.f32 %v8665_v8, %v8665_v8  ;;  %v2876_v17 = vadd.f32 %v2812_v20, %v11764_v15  ;;  %v2752_v42 = vld [vmem:[%s9492_s9 + $0x1e0] sm:$0xff]  ;;  %v2753_v20 = vld [vmem:[%s9492_s9 + $0x1e8] sm:$0xff] }
 0x3d1   : > { %v2690_v22 = vmul.f32 1.442695, %v2563_v12  ;;  %v2877_v13 = vadd.f32 %v2813_v41, %v11811_v59  ;;  %v11916_v26 = vadd.s32 %v15612_v29, %v4646_v36  ;;  %v7562_v16 = vsub.f32 %v7434_v40, %v7498_v1 }
 0x3d2   : > { %v7499_v3 = vmul.f32 %v2486_v24, %v2486_v24  ;;  %v7435_v19 = vadd.f32 1.0, %v11830_v44  ;;  %v7688_v5 = vsub.f32 %v7560_v50, %v7624_v9  ;;  %v7626_v62 = vmul.f32 %v8667_v51, %v8667_v51  ;;  %v11930_v50 = vpop.f32.mrf.mxu1 }
 0x3d3   : > { %15654 = vst [vmem:[#allocation56_spill] sm:$0xff] %v11916_v26  ;;  %8672 = vpow2.f32 %v2690_v22  ;;  %v2912_v55 = vpack.c.bf16 %v2877_v13, %v2876_v17  ;;  %v8669_v48 = vpop.eup %8668  ;;  %v7814_v15 = vsel %vm15535_vm14, %v7750_v60, 0.0  ;;  %v4647_v59 = vadd.s32 488, %v9809_v63 }
 0x3d4   : > { %v2814_v58 = vmul.f32 %v8663_v30, %v2750_v0  ;;  %v2815_v12 = vmul.f32 %v8665_v8, %v2751_v35  ;;  %v7815_v1 = vsel %vm15534_vm13, %v7751_v14, 0.0  ;;  %v7689_v36 = vsub.f32 %v7561_v34, %v7625_v46 }
 0x3d5   : > { %v7627_v40 = vmul.f32 %v8669_v48, %v8669_v48  ;;  %v11928_v44 = vadd.f32 %v11818_v23, %v10189_v32  ;;  %8291 = vmatprep.mubr.bf16.mxu1 %v2912_v55  ;;  %v7563_v9 = vsub.f32 %v7435_v19, %v7499_v3  ;;  %v2816_v30 = vmul.f32 %v8667_v51, %v2752_v42  ;;  %v3021_v51 = vpop.f32.mrf.mxu1  ;;  %v8528_v55 = vld [vmem:[%s15392_s12 + $0xd0] ss:$8 sps:$4 sm:$0xff]  }
 0x3d6   : > { %v2878_v41 = vadd.f32 %v2814_v58, %v11826_v7  ;;  %v2879_v60 = vadd.f32 %v2815_v12, %v11862_v6  ;;  %v7752_v35 = vmul.f32 -0.5, %v7688_v5  ;;  %v7690_v8 = vsub.f32 %v7562_v16, %v7626_v62 }
 0x3d7   : > { %v4648_v22 = vadd.s32 496, %v9809_v63  ;;  %v2817_v14 = vmul.f32 %v8669_v48, %v2753_v20  ;;  %v7878_v34 = vadd.f32 %v7877_v21, %v7814_v15  ;;  %vm15537_vm13 = vcmp.lt.s32.totalorder %v11898_v37, 1100  ;;  %v8238_v20 = vpop.f32.mrf.mxu1 }
 0x3d8   : > { %v7436_v23 = vadd.f32 1.0, %v11868_v25  ;;  %v2913_v46 = vpack.c.bf16 %v2879_v60, %v2878_v41  ;;  %v7753_v17 = vmul.f32 -0.5, %v7689_v36  ;;  %vm15542_vm14 = vcmp.lt.s32.totalorder %v11916_v26, 1100  ;;  %v2755_v36 = vld [vmem:[%s9492_s9 + $0x1f8] sm:$0xff] }
 0x3d9   : > { %v11939_v13 = vadd.s32 %v15612_v29, %v4647_v59  ;;  %v7691_v7 = vsub.f32 %v7563_v9, %v7627_v40  ;;  %v7879_v6 = vadd.f32 %v7878_v34, %v7815_v1  ;;  %v7500_v0 = vmul.f32 %v11928_v44, %v11928_v44  ;;  %v2754_v59 = vld [vmem:[%s9492_s9 + $0x1f0] sm:$0xff] }
 0x3da   : > { %8292 = vmatmul.mubr.bf16.gmra.mxu1 %v2913_v46  ;;  %v2880_v21 = vadd.f32 %v2816_v30, %v11879_v53  ;;  %v2881_v16 = vadd.f32 %v2817_v14, %v2486_v24  ;;  %v7816_v25 = vsel %vm15536_vm15, %v7752_v35, 0.0  ;;  %v7754_v19 = vmul.f32 -0.5, %v7690_v8  ;;  %v8530_v53 = vld [vmem:[%s15392_s12 + $0xd4] ss:$8 sps:$4 sm:$0xff]  }
 0x3db   : > { %15655 = vst [vmem:[#allocation57_spill] sm:$0xff] %v11939_v13  ;;  %v8671_v3 = vpop.eup %8670  ;;  %v11947_v5 = vadd.s32 %v15612_v29, %v4648_v22  ;;  %v2496_v62 = vadd.f32 %v11858_v49, %v10189_v32  ;;  %v7564_v24 = vsub.f32 %v7436_v23, %v7500_v0  ;;  %v4649_v48 = vadd.s32 504, %v9809_v63  ;;  %4249 = vmatprep.subr.bf16.mxu0 %v8530_v53  ;;  %v3024_v23 = vpop.f32.mrf.mxu1 }
 0x3dc   : > { %v7628_v42 = vmul.f32 %v8671_v3, %v8671_v3  ;;  %v2914_v15 = vpack.c.bf16 %v2881_v16, %v2880_v21  ;;  %v7817_v58 = vsel %vm15537_vm13, %v7753_v17, 0.0  ;;  %v7755_v12 = vmul.f32 -0.5, %v7691_v7  ;;  %4250 = vmatpush2.bf16.msra.mxu0 %v8528_v55 }
 0x3dd   : > { %15656 = vst [vmem:[#allocation58_spill] sm:$0xff] %v11947_v5  ;;  %v7437_v32 = vadd.f32 1.0, %v11903_v61  ;;  %v7880_v49 = vadd.f32 %v7879_v6, %v7816_v25  ;;  %vm15538_vm15 = vcmp.lt.s32.totalorder %v11939_v13, 1100  ;;  %v7818_v40 = vsel %vm15542_vm14, %v7754_v19, 0.0 }
 0x3de   : > { %v7692_v1 = vsub.f32 %v7564_v24, %v7628_v42  ;;  %8295 = vmatprep.mubr.bf16.mxu1 %v2914_v15  ;;  %v7501_v9 = vmul.f32 %v2496_v62, %v2496_v62  ;;  %v2818_v41 = vmul.f32 %v8671_v3, %v2754_v59  ;;  %vm15540_vm13 = vcmp.lt.s32.totalorder %v11947_v5, 1100  ;;  %v8241_v3 = vpop.f32.mrf.mxu1 }
 0x3df   : > { %v7881_v30 = vadd.f32 %v7880_v49, %v7817_v58  ;;  %v11968_v61 = vadd.s32 %v15612_v29, %v4649_v48  ;;  %v7819_v8 = vsel %vm15538_vm15, %v7755_v12, 0.0  ;;  %v11978_v29 = vld [vmem:[%s15658_s23] ss:$0 sm:$0xff]  ;;  %v15659_v24 = vmov 0   ;;  %s15663_s23 = sld [smem:[#allocation62_spill]] }
 0x3e0   : > { %v8673_v60 = vpop.eup %8672  ;;  %v7756_v35 = vmul.f32 -0.5, %v7692_v1  ;;  %v7565_v22 = vsub.f32 %v7437_v32, %v7501_v9  ;;  %v2882_v6 = vadd.f32 %v2818_v41, %v11928_v44  ;;  %v3025_v16 = vadd.f32 %v11978_v29, %v3024_v23  ;;  %v3037_v48 = vpop.f32.mrf.mxu1  ;;  %v8533_v1 = vld [vmem:[%s15392_s12 + $0xc4] ss:$8 sps:$4 sm:$0xff]  }
 0x3e1   : > { %15657 = vst [vmem:[#allocation59_spill] sm:$0xff] %v11968_v61  ;;  %v7629_v14 = vmul.f32 %v8673_v60, %v8673_v60  ;;  %v2819_v34 = vmul.f32 %v8673_v60, %v2755_v36  ;;  %v7882_v46 = vadd.f32 %v7881_v30, %v7818_v40  ;;  %vm15539_vm15 = vcmp.lt.s32.totalorder %v11968_v61, 1100  ;;  %4251 = vmatprep.subr.bf16.mxu0 %v8533_v1 }
 0x3e2   : > { %v7820_v17 = vsel %vm15540_vm13, %v7756_v35, 0.0  ;;  %v3022_v53 = vadd.f32 %v11978_v29, %v3021_v51  ;;  %v3277_v42 = vmax.f32 %v3025_v16, 0.0  ;;  %v3033_v12 = vadd.f32 %v8238_v20, %v11978_v29  ;;  %v8242_v49 = vpop.f32.mrf.mxu1  ;;  %v8531_v51 = vld [vmem:[%s15392_s12 + $0xc0] ss:$8 sps:$4 sm:$0xff]  }
 0x3e3   : > { %v7693_v7 = vsub.f32 %v7565_v22, %v7629_v14  ;;  %v2883_v0 = vadd.f32 %v2819_v34, %v2496_v62  ;;  %v7883_v21 = vadd.f32 %v7882_v46, %v7819_v8  ;;  %v3030_v40 = vadd.f32 %v11930_v50, %v11978_v29  ;;  %4252 = vmatpush2.bf16.msra.mxu0 %v8531_v51  ;;  %v7822_v35 = vld [vmem:[#allocation3] sm:$0x1] }
 0x3e4   : > { %v3276_v59 = vmax.f32 %v3022_v53, 0.0  ;;  %v3279_v20 = vmax.f32 %v3033_v12, 0.0  ;;  %v3040_v41 = vpop.f32.mrf.mxu1  ;;  %v3038_v46 = vadd.f32 %v11978_v29, %v3037_v48  ;;  %v3046_v16 = vadd.f32 %v8241_v3, %v11978_v29  ;;  %v8534_v53 = vld [vmem:[%s15392_s12 + $0xb0] ss:$8 sps:$4 sm:$0xff]  }
 0x3e5   : > { %v7757_v25 = vmul.f32 -0.5, %v7693_v7  ;;  %v2915_v19 = vpack.c.bf16 %v2883_v0, %v2882_v6  ;;  %v7884_v55 = vadd.f32 %v7883_v21, %v7820_v17  ;;  %v3278_v30 = vmax.f32 %v3030_v40, 0.0 }
 0x3e6   : > { %v3340_v32 = vpack.c.bf16 %v3277_v42, %v3276_v59  ;;  %v8245_v8 = vpop.f32.mrf.mxu1  ;;  %v3041_v34 = vadd.f32 %v11978_v29, %v3040_v41  ;;  %v3280_v7 = vmax.f32 %v3038_v46, 0.0  ;;  %v3049_v0 = vadd.f32 %v8242_v49, %v11978_v29 }
 0x3e7   : > { %v7821_v44 = vsel %vm15539_vm15, %v7757_v25, 0.0  ;;  %8296 = vmatmul.mubr.bf16.gmra.mxu1 %v2915_v19  ;;  %v3341_v14 = vpack.c.bf16 %v3279_v20, %v3278_v30  ;;  %v3062_v1 = vadd.f32 %v8245_v8, %v11978_v29  ;;  %v8537_v30 = vld [vmem:[%s15392_s12 + $0xa0] ss:$8 sps:$4 sm:$0xff]  }
 0x3e8   : > { %v7885_v62 = vadd.f32 %v7884_v55, %v7821_v44  ;;  %3512 = vmatprep.mubr.bf16.mxu1 %v15659_v24  ;;  %v3053_v50 = vpop.f32.mrf.mxu1  ;;  %v3281_v17 = vmax.f32 %v3041_v34, 0.0  ;;  %v3283_v19 = vmax.f32 %v3049_v0, 0.0  ;;  %v8536_v44 = vld [vmem:[%s15392_s12 + $0xb4] ss:$8 sps:$4 sm:$0xff]  }
 0x3e9   : > { %4253 = vmatprep.subr.bf16.mxu0 %v8536_v44 }
 0x3ea   : > { %v7886_v15 = vrot.slane %v7885_v62, 4  ;;  %v8246_v6 = vpop.f32.mrf.mxu1  ;;  %v3342_v21 = vpack.c.bf16 %v3281_v17, %v3280_v7  ;;  %4254 = vmatpush2.bf16.msra.mxu0 %v8534_v53 }
 0x3ec   : > { %v7887_v58 = vadd.f32 %v7886_v15, %v7885_v62  ;;  %v3056_v25 = vpop.f32.mrf.mxu1  ;;  %v3282_v62 = vmax.f32 %v3046_v16, 0.0  ;;  %v3054_v15 = vadd.f32 %v11978_v29, %v3053_v50  ;;  %v8540_v16 = vld [vmem:[%s15392_s12 + $0x90] ss:$8 sps:$4 sm:$0xff]  }
 0x3ed   : > { %v3057_v3 = vadd.f32 %v11978_v29, %v3056_v25  ;;  %v8542_v25 = vld [vmem:[%s15392_s12 + $0x94] ss:$8 sps:$4 sm:$0xff]  }
 0x3ee   : > { %v7888_v36 = vrot.slane %v7887_v58, 2  ;;  %v8249_v55 = vpop.f32.mrf.mxu1  ;;  %v3343_v42 = vpack.c.bf16 %v3283_v19, %v3282_v62  ;;  %v3284_v12 = vmax.f32 %v3054_v15, 0.0 }
 0x3ef   : > { %3513 = vmatmul.mubr.bf16.vlgmr.msra.gmra.mxu1 %v3340_v32  ;;  %v3285_v59 = vmax.f32 %v3057_v3, 0.0  ;;  %v3065_v32 = vadd.f32 %v8246_v6, %v11978_v29  ;;  %v3078_v7 = vadd.f32 %v8249_v55, %v11978_v29 }
 0x3f0   : > { %v7889_v9 = vadd.f32 %v7888_v36, %v7887_v58  ;;  %3522 = vmatprep.mubr.bf16.mxu1 %v15659_v24  ;;  %v3069_v48 = vpop.f32.mrf.mxu1 }
 0x3f1   : > { %v3344_v49 = vpack.c.bf16 %v3285_v59, %v3284_v12  ;;  %v3287_v40 = vmax.f32 %v3065_v32, 0.0  ;;  %v3070_v8 = vadd.f32 %v11978_v29, %v3069_v48  ;;  %v8543_v32 = vld [vmem:[%s15392_s12 + $0x80] ss:$8 sps:$4 sm:$0xff]  }
 0x3f2   : > { %v7890_v60 = vrot.slane %v7889_v9, 1  ;;  %v8250_v58 = vpop.f32.mrf.mxu1 }
 0x3f3   : > { %v3288_v34 = vmax.f32 %v3070_v8, 0.0  ;;  %v3081_v46 = vadd.f32 %v8250_v58, %v11978_v29 }
 0x3f4   : > { %v7891_v22 = vadd.f32 %v7890_v60, %v7889_v9  ;;  %v3072_v51 = vpop.f32.mrf.mxu1  ;;  %v3286_v9 = vmax.f32 %v3062_v1, 0.0 }
 0x3f5   : > { %v3073_v60 = vadd.f32 %v11978_v29, %v3072_v51  ;;  %v3291_v6 = vmax.f32 %v3081_v46, 0.0 }
 0x3f6   : > { %v7892_v23 = vadd.f32 %v7891_v22, %v7822_v35  ;;  %v8253_v36 = vpop.f32.mrf.mxu1  ;;  %v3345_v41 = vpack.c.bf16 %v3287_v40, %v3286_v9  ;;  %v8539_v35 = vld [vmem:[%s15392_s12 + $0xa4] ss:$8 sps:$4 sm:$0xff]  }
 0x3f7   : > { %3523 = vmatmul.mubr.bf16.gmra.mxu1 %v3341_v14  ;;  %4255 = vmatprep.subr.bf16.mxu0 %v8539_v35  ;;  %v3289_v14 = vmax.f32 %v3073_v60, 0.0  ;;  %v3094_v58 = vadd.f32 %v8253_v36, %v11978_v29 }
 0x3f8   : > { %7893 = vst [vmem:[#allocation3] sm:$0x1] %v7892_v23  ;;  %3532 = vmatprep.mubr.bf16.mxu1 %v15659_v24  ;;  %v3085_v20 = vpop.f32.mrf.mxu1  ;;  %4256 = vmatpush2.bf16.msra.mxu0 %v8537_v30 }
 0x3f9   : > { %v3346_v50 = vpack.c.bf16 %v3289_v14, %v3288_v34  ;;  %4257 = vmatprep.subr.bf16.mxu0 %v8542_v25  ;;  %v3086_v55 = vadd.f32 %v11978_v29, %v3085_v20  ;;  %v3294_v1 = vmax.f32 %v3094_v58, 0.0 }
 0x3fa   : > { %v8254_v22 = vpop.f32.mrf.mxu1 }
 0x3fb   : > { %v3292_v3 = vmax.f32 %v3086_v55, 0.0  ;;  %v3097_v15 = vadd.f32 %v8254_v22, %v11978_v29 }
 0x3fc   : > { %v3088_v23 = vpop.f32.mrf.mxu1  ;;  %4258 = vmatpush2.bf16.msra.mxu0 %v8540_v16 }
 0x3fd   : > { %v3089_v53 = vadd.f32 %v11978_v29, %v3088_v23  ;;  %v3295_v51 = vmax.f32 %v3097_v15, 0.0 }
 0x3fe   : > { %v8257_v17 = vpop.f32.mrf.mxu1 }
 0x3ff   : > { %3533 = vmatmul.mubr.bf16.gmra.mxu1 %v3342_v21  ;;  %v3290_v21 = vmax.f32 %v3078_v7, 0.0  ;;  %v3293_v62 = vmax.f32 %v3089_v53, 0.0  ;;  %v3349_v9 = vpack.c.bf16 %v3295_v51, %v3294_v1  ;;  %v3110_v34 = vadd.f32 %v8257_v17, %v11978_v29 }
 0x400   : > { %3542 = vmatprep.mubr.bf16.mxu1 %v15659_v24  ;;  %v3101_v0 = vpop.f32.mrf.mxu1 }
 0x401   : > { %v3347_v19 = vpack.c.bf16 %v3291_v6, %v3290_v21  ;;  %v3348_v59 = vpack.c.bf16 %v3293_v62, %v3292_v3  ;;  %v3102_v20 = vadd.f32 %v11978_v29, %v3101_v0 }
 0x402   : > { %v8258_v44 = vpop.f32.mrf.mxu1 }
 0x403   : > { %v3296_v35 = vmax.f32 %v3102_v20, 0.0  ;;  %v3113_v8 = vadd.f32 %v8258_v44, %v11978_v29 }
 0x405   : > { %v3299_v23 = vmax.f32 %v3113_v8, 0.0 }
 0x407   : > { %3543 = vmatmul.mubr.bf16.gmra.mxu1 %v3343_v42  ;;  %v3104_v42 = vpop.f32.mrf.mxu1 }
 0x408   : > { %3552 = vmatprep.mubr.bf16.mxu1 %v15659_v24  ;;  %v3105_v36 = vadd.f32 %v11978_v29, %v3104_v42 }
 0x40a   : > { %v3297_v60 = vmax.f32 %v3105_v36, 0.0 }
 0x40c   : > { %v3350_v22 = vpack.c.bf16 %v3297_v60, %v3296_v35 }
 0x40d   : > { %v8261_v48 = vpop.f32.mrf.mxu1 }
 0x40e   : > { %v3126_v55 = vadd.f32 %v8261_v48, %v11978_v29 }
 0x40f   : > { %3553 = vmatmul.mubr.bf16.gmra.mxu1 %v3344_v49  ;;  %v3117_v12 = vpop.f32.mrf.mxu1  ;;  %v8545_v49 = vld [vmem:[%s15392_s12 + $0x84] ss:$8 sps:$4 sm:$0xff]  }
 0x410   : > { %3562 = vmatprep.mubr.bf16.mxu1 %v15659_v24  ;;  %4259 = vmatprep.subr.bf16.mxu0 %v8545_v49  ;;  %v3118_v21 = vadd.f32 %v11978_v29, %v3117_v12  ;;  %v3302_v3 = vmax.f32 %v3126_v55, 0.0 }
 0x411   : > { %v8262_v40 = vpop.f32.mrf.mxu1  ;;  %4260 = vmatpush2.bf16.msra.mxu0 %v8543_v32 }
 0x412   : > { %v3129_v17 = vadd.f32 %v8262_v40, %v11978_v29 }
 0x414   : > { %v3303_v42 = vmax.f32 %v3129_v17, 0.0 }
 0x417   : > { %3563 = vmatmul.mubr.bf16.gmra.mxu1 %v3345_v41  ;;  %v3120_v41 = vpop.f32.mrf.mxu1 }
 0x418   : > { %3572 = vmatprep.mubr.bf16.mxu1 %v15659_v24  ;;  %v3121_v6 = vadd.f32 %v11978_v29, %v3120_v41 }
 0x41a   : > { %v3301_v25 = vmax.f32 %v3121_v6, 0.0 }
 0x41f   : > { %3573 = vmatmul.mubr.bf16.gmra.mxu1 %v3346_v50  ;;  %v3298_v50 = vmax.f32 %v3110_v34, 0.0 }
 0x420   : > { %3582 = vmatprep.mubr.bf16.mxu1 %v15659_v24  ;;  %v8265_v30 = vpop.f32.mrf.mxu1 }
 0x421   : > { %v3351_v7 = vpack.c.bf16 %v3299_v23, %v3298_v50  ;;  %v3142_v36 = vadd.f32 %v8265_v30, %v11978_v29 }
 0x422   : > { %v3133_v14 = vpop.f32.mrf.mxu1 }
 0x423   : > { %v3134_v32 = vadd.f32 %v11978_v29, %v3133_v14  ;;  %v3306_v60 = vmax.f32 %v3142_v36, 0.0 }
 0x424   : > { %v8266_v46 = vpop.f32.mrf.mxu1 }
 0x425   : > { %v3304_v1 = vmax.f32 %v3134_v32, 0.0  ;;  %v3145_v48 = vadd.f32 %v8266_v46, %v11978_v29 }
 0x426   : > { %v3136_v0 = vpop.f32.mrf.mxu1 }
 0x427   : > { %3583 = vmatmul.mubr.bf16.gmra.mxu1 %v3347_v19  ;;  %v3300_v19 = vmax.f32 %v3118_v21, 0.0  ;;  %v3137_v58 = vadd.f32 %v11978_v29, %v3136_v0  ;;  %v3307_v20 = vmax.f32 %v3145_v48, 0.0 }
 0x428   : > { %3592 = vmatprep.mubr.bf16.mxu1 %v15659_v24 }
 0x429   : > { %v3352_v44 = vpack.c.bf16 %v3301_v25, %v3300_v19  ;;  %v3305_v49 = vmax.f32 %v3137_v58, 0.0  ;;  %v3355_v8 = vpack.c.bf16 %v3307_v20, %v3306_v60 }
 0x42b   : > { %v3354_v40 = vpack.c.bf16 %v3305_v49, %v3304_v1 }
 0x42f   : > { %3593 = vmatmul.mubr.bf16.gmra.mxu1 %v3348_v59  ;;  %v8269_v16 = vpop.f32.mrf.mxu1  ;;  %v3353_v59 = vpack.c.bf16 %v3303_v42, %v3302_v3 }
 0x430   : > { %3602 = vmatprep.mubr.bf16.mxu1 %v15659_v24  ;;  %v3158_v6 = vadd.f32 %v8269_v16, %v11978_v29 }
 0x431   : > { %v3149_v53 = vpop.f32.mrf.mxu1 }
 0x432   : > { %v3150_v14 = vadd.f32 %v11978_v29, %v3149_v53  ;;  %v3310_v19 = vmax.f32 %v3158_v6, 0.0 }
 0x433   : > { %v8270_v62 = vpop.f32.mrf.mxu1 }
 0x434   : > { %v3308_v46 = vmax.f32 %v3150_v14, 0.0  ;;  %v3161_v30 = vadd.f32 %v8270_v62, %v11978_v29 }
 0x435   : > { %v3152_v15 = vpop.f32.mrf.mxu1 }
 0x436   : > { %v3311_v21 = vmax.f32 %v3161_v30, 0.0 }
 0x437   : > { %3603 = vmatmul.mubr.bf16.gmra.mxu1 %v3349_v9 }
 0x438   : > { %3612 = vmatprep.mubr.bf16.mxu1 %v15659_v24  ;;  %v3357_v53 = vpack.c.bf16 %v3311_v21, %v3310_v19 }
 0x43f   : > { %3613 = vmatmul.mubr.bf16.gmra.mxu1 %v3350_v22  ;;  %v3153_v22 = vadd.f32 %v11978_v29, %v3152_v15 }
 0x440   : > { %3622 = vmatprep.mubr.bf16.mxu1 %v15659_v24 }
 0x441   : > { %v8273_v12 = vpop.f32.mrf.mxu1  ;;  %v3309_v23 = vmax.f32 %v3153_v22, 0.0 }
 0x442   : > { %v3174_v58 = vadd.f32 %v8273_v12, %v11978_v29 }
 0x443   : > { %v3165_v51 = vpop.f32.mrf.mxu1 }
 0x444   : > { %v3166_v55 = vadd.f32 %v11978_v29, %v3165_v51  ;;  %v3314_v1 = vmax.f32 %v3174_v58, 0.0 }
 0x445   : > { %v8274_v9 = vpop.f32.mrf.mxu1 }
 0x446   : > { %v3312_v3 = vmax.f32 %v3166_v55, 0.0  ;;  %v3177_v16 = vadd.f32 %v8274_v9, %v11978_v29 }
 0x447   : > { %3623 = vmatmul.mubr.bf16.gmra.mxu1 %v3351_v7  ;;  %v3168_v41 = vpop.f32.mrf.mxu1  ;;  %v3356_v7 = vpack.c.bf16 %v3309_v23, %v3308_v46 }
 0x448   : > { %3632 = vmatprep.mubr.bf16.mxu1 %v15659_v24  ;;  %v3169_v17 = vadd.f32 %v11978_v29, %v3168_v41  ;;  %v3315_v49 = vmax.f32 %v3177_v16, 0.0 }
 0x44a   : > { %v3313_v62 = vmax.f32 %v3169_v17, 0.0  ;;  %v3359_v51 = vpack.c.bf16 %v3315_v49, %v3314_v1 }
 0x44c   : > { %v3358_v15 = vpack.c.bf16 %v3313_v62, %v3312_v3 }
 0x44f   : > { %3633 = vmatmul.mubr.bf16.gmra.mxu1 %v3352_v44 }
 0x450   : > { %3642 = vmatprep.mubr.bf16.mxu1 %v15659_v24  ;;  %v8277_v35 = vpop.f32.mrf.mxu1 }
 0x451   : > { %v3190_v14 = vadd.f32 %v8277_v35, %v11978_v29 }
 0x452   : > { %v3181_v34 = vpop.f32.mrf.mxu1 }
 0x453   : > { %v3182_v36 = vadd.f32 %v11978_v29, %v3181_v34  ;;  %v3318_v34 = vmax.f32 %v3190_v14, 0.0 }
 0x454   : > { %v8278_v50 = vpop.f32.mrf.mxu1 }
 0x455   : > { %v3316_v41 = vmax.f32 %v3182_v36, 0.0  ;;  %v3193_v12 = vadd.f32 %v8278_v50, %v11978_v29 }
 0x456   : > { %v3184_v0 = vpop.f32.mrf.mxu1 }
 0x457   : > { %3643 = vmatmul.mubr.bf16.gmra.mxu1 %v3353_v59  ;;  %v3319_v46 = vmax.f32 %v3193_v12, 0.0 }
 0x458   : > { %3652 = vmatprep.mubr.bf16.mxu1 %v15659_v24 }
 0x45f   : > { %3653 = vmatmul.mubr.bf16.gmra.mxu1 %v3354_v40  ;;  %v3185_v40 = vadd.f32 %v11978_v29, %v3184_v0 }
 0x460   : > { %3662 = vmatprep.mubr.bf16.mxu1 %v15659_v24 }
 0x461   : > { %v3317_v9 = vmax.f32 %v3185_v40, 0.0 }
 0x462   : > { %v8281_v25 = vpop.f32.mrf.mxu1 }
 0x463   : > { %v3206_v62 = vadd.f32 %v8281_v25, %v11978_v29 }
 0x464   : > { %v3197_v44 = vpop.f32.mrf.mxu1 }
 0x465   : > { %v3198_v0 = vadd.f32 %v11978_v29, %v3197_v44  ;;  %v3322_v16 = vmax.f32 %v3206_v62, 0.0 }
 0x466   : > { %v8282_v42 = vpop.f32.mrf.mxu1 }
 0x467   : > { %3663 = vmatmul.mubr.bf16.gmra.mxu1 %v3355_v8  ;;  %v3360_v8 = vpack.c.bf16 %v3317_v9, %v3316_v41  ;;  %v3320_v35 = vmax.f32 %v3198_v0, 0.0 }
 0x468   : > { %3672 = vmatprep.mubr.bf16.mxu1 %v15659_v24  ;;  %v3200_v59 = vpop.f32.mrf.mxu1 }
 0x469   : > { %v3201_v6 = vadd.f32 %v11978_v29, %v3200_v59 }
 0x46b   : > { %v3321_v21 = vmax.f32 %v3201_v6, 0.0 }
 0x46d   : > { %v3362_v17 = vpack.c.bf16 %v3321_v21, %v3320_v35 }
 0x46f   : > { %3673 = vmatmul.mubr.bf16.gmra.mxu1 %v3356_v7  ;;  %v3361_v7 = vpack.c.bf16 %v3319_v46, %v3318_v34  ;;  %v15662_v34 = vld [vmem:[#allocation11_spill] sm:$0xff] }
 0x470   : > { %3682 = vmatprep.mubr.bf16.mxu1 %v15659_v24 }
 0x477   : > { %3683 = vmatmul.mubr.bf16.gmra.mxu1 %v3357_v53  ;;  %v8285_v32 = vpop.f32.mrf.mxu1  ;;  %v3209_v53 = vadd.f32 %v8282_v42, %v11978_v29 }
 0x478   : > { %3692 = vmatprep.mubr.bf16.mxu1 %v15659_v24 }
 0x479   : > { %v3213_v48 = vpop.f32.mrf.mxu1  ;;  %v3323_v3 = vmax.f32 %v3209_v53, 0.0 }
 0x47a   : > { %v3214_v49 = vadd.f32 %v11978_v29, %v3213_v48  ;;  %v3388_v48 = vld [vmem:[%s15660_s28] sm:$0x3] }
 0x47b   : > { %v8286_v20 = vpop.f32.mrf.mxu1 }
 0x47c   : > { %v3225_v36 = vadd.f32 %v8286_v20, %v11978_v29 }
 0x47d   : > { %v3216_v60 = vpop.f32.mrf.mxu1 }
 0x47e   : > { %v3217_v59 = vadd.f32 %v11978_v29, %v3216_v60  ;;  %v3222_v60 = vadd.f32 %v8285_v32, %v11978_v29  ;;  %v3327_v46 = vmax.f32 %v3225_v36, 0.0 }
 0x47f   : > { %3693 = vmatmul.mubr.bf16.gmra.mxu1 %v3358_v15  ;;  %v3363_v15 = vpack.c.bf16 %v3323_v3, %v3322_v16 }
 0x480   : > { %3702 = vmatprep.mubr.bf16.mxu1 %v15659_v24  ;;  %v3325_v25 = vmax.f32 %v3217_v59, 0.0  ;;  %v3326_v6 = vmax.f32 %v3222_v60, 0.0 }
 0x482   : > { %v3365_v53 = vpack.c.bf16 %v3327_v46, %v3326_v6 }
 0x487   : > { %3703 = vmatmul.mubr.bf16.gmra.mxu1 %v3359_v51  ;;  %v3324_v51 = vmax.f32 %v3214_v49, 0.0 }
 0x488   : > { %3712 = vmatprep.mubr.bf16.mxu1 %v15659_v24 }
 0x489   : > { %v3364_v9 = vpack.c.bf16 %v3325_v25, %v3324_v51 }
 0x48d   : > { %v12078_v22 = vpop.f32.mrf.mxu1 }
 0x48f   : > { %3713 = vmatmul.mubr.bf16.gmra.mxu1 %v3360_v8  ;;  %v3229_v23 = vpop.f32.mrf.mxu1  ;;  %v15661_v8 = vld [vmem:[#allocation10_spill] sm:$0xff] }
 0x490   : > { %3722 = vmatprep.mubr.bf16.mxu1 %v15659_v24  ;;  %v12115_v14 = vrot.slane %v3388_v48, %v15661_v8  ;;  %v3230_v16 = vadd.f32 %v11978_v29, %v3229_v23 }
 0x491   : > { %v12082_v30 = vpop.f32.mrf.mxu1 }
 0x492   : > { %v3328_v60 = vmax.f32 %v3230_v16, 0.0  ;;  %v3241_v23 = vadd.f32 %v12082_v30, %v11978_v29 }
 0x493   : > { %v3232_v50 = vpop.f32.mrf.mxu1 }
 0x494   : > { %v3233_v32 = vadd.f32 %v11978_v29, %v3232_v50  ;;  %v3331_v16 = vmax.f32 %v3241_v23, 0.0 }
 0x496   : > { %v3329_v51 = vmax.f32 %v3233_v32, 0.0 }
 0x497   : > { %3723 = vmatmul.mubr.bf16.gmra.mxu1 %v3361_v7  ;;  %v12119_v7 = vrot.slane %v3388_v48, %v15662_v34 }
 0x498   : > { %3732 = vmatprep.mubr.bf16.mxu1 %v15659_v24  ;;  %v3366_v6 = vpack.c.bf16 %v3329_v51, %v3328_v60 }
 0x49a   : > { %v12087_v19 = vpop.f32.mrf.mxu1 }
 0x49c   : > { %v12090_v55 = vpop.f32.mrf.mxu1 }
 0x49e   : > { %v12094_v44 = vpop.f32.mrf.mxu1 }
 0x49f   : > { %3733 = vmatmul.mubr.bf16.gmra.mxu1 %v3362_v17 }
 0x4a0   : > { %3742 = vmatprep.mubr.bf16.mxu1 %v15659_v24  ;;  %v12097_v58 = vpop.f32.mrf.mxu1 }
 0x4a7   : > { %v12100_v42 = vpop.f32.mrf.mxu1  ;;  %3743 = vmatmul.mubr.bf16.gmra.mxu1 %v3363_v15 }
 0x4a8   : > { %3752 = vmatprep.mubr.bf16.mxu1 %v15659_v24 }
 0x4a9   : > { %v12103_v1 = vpop.f32.mrf.mxu1 }
 0x4ab   : > { %v12105_v40 = vpop.f32.mrf.mxu1 }
 0x4ad   : > { %v12108_v41 = vpop.f32.mrf.mxu1 }
 0x4af   : > { %v3514_v12 = vpop.f32.mrf.mxu1  ;;  %3753 = vmatmul.mubr.bf16.gmra.mxu1 %v3364_v9 }
 0x4b0   : > { %3762 = vmatprep.mubr.bf16.mxu1 %v15659_v24  ;;  %v3515_v17 = vadd.f32 %v3514_v12, %v12119_v7 }
 0x4b1   : > { %v3516_v20 = vpop.f32.mrf.mxu1 }
 0x4b2   : > { %v3517_v21 = vadd.f32 %v3516_v20, %v12115_v14  ;;  %v3833_v36 = vmax.f32 %v3515_v17, 0.0 }
 0x4b3   : > { %v3518_v0 = vpop.f32.mrf.mxu1 }
 0x4b4   : > { %v3519_v35 = vadd.f32 %v3518_v0, %v12119_v7  ;;  %v3834_v49 = vmax.f32 %v3517_v21, 0.0 }
 0x4b5   : > { %v3520_v62 = vpop.f32.mrf.mxu1 }
 0x4b6   : > { %v3521_v3 = vadd.f32 %v3520_v62, %v12115_v14  ;;  %v3835_v15 = vmax.f32 %v3519_v35, 0.0 }
 0x4b7   : > { %v3524_v59 = vpop.f32.mrf.mxu1  ;;  %3763 = vmatmul.mubr.bf16.gmra.mxu1 %v3365_v53  ;;  %v3238_v53 = vadd.f32 %v12078_v22, %v11978_v29 }
 0x4b8   : > { %v3836_v25 = vmax.f32 %v3521_v3, 0.0  ;;  %3772 = vmatprep.mubr.bf16.mxu1 %v15659_v24  ;;  %v3961_v50 = vpack.c.bf16 %v3835_v15, %v3833_v36  ;;  %v3525_v0 = vadd.f32 %v3524_v59, %v12119_v7 }
 0x4b9   : > { %v3526_v9 = vpop.f32.mrf.mxu1 }
 0x4ba   : > { %v3962_v48 = vpack.c.bf16 %v3836_v25, %v3834_v49  ;;  %v3527_v12 = vadd.f32 %v3526_v9, %v12115_v14  ;;  %v3837_v15 = vmax.f32 %v3525_v0, 0.0  ;;  %v3330_v25 = vmax.f32 %v3238_v53, 0.0 }
 0x4bb   : > { %v3528_v46 = vpop.f32.mrf.mxu1 }
 0x4bc   : > { %v3529_v20 = vadd.f32 %v3528_v46, %v12119_v7  ;;  %4261 = vmatprep.mubr.bf16.mxu0 %v3962_v48  ;;  %v3838_v62 = vmax.f32 %v3527_v12, 0.0  ;;  %v3367_v22 = vpack.c.bf16 %v3331_v16, %v3330_v25  ;;  %v3249_v48 = vadd.f32 %v11978_v29, %v12097_v58 }
 0x4bd   : > { %v3530_v21 = vpop.f32.mrf.mxu1  ;;  %4262 = vmatmul.mubr.bf16.vlgmr.msra.gmra.mxu0 %v3961_v50  ;;  %v3246_v12 = vadd.f32 %v11978_v29, %v12090_v55  ;;  %v3257_v55 = vadd.f32 %v12094_v44, %v11978_v29 }
 0x4be   : > { %v3531_v35 = vadd.f32 %v3530_v21, %v12115_v14  ;;  %v3839_v32 = vmax.f32 %v3529_v20, 0.0  ;;  %v3333_v21 = vmax.f32 %v3249_v48, 0.0 }
 0x4bf   : > { %v3534_v17 = vpop.f32.mrf.mxu1  ;;  %3773 = vmatmul.mubr.bf16.gmra.mxu1 %v3366_v6  ;;  %v3335_v48 = vmax.f32 %v3257_v55, 0.0 }
 0x4c0   : > { %v3840_v3 = vmax.f32 %v3531_v35, 0.0  ;;  %3782 = vmatprep.mubr.bf16.mxu1 %v15659_v24  ;;  %v3963_v59 = vpack.c.bf16 %v3839_v32, %v3837_v15  ;;  %v3535_v60 = vadd.f32 %v3534_v17, %v12119_v7  ;;  %v3332_v32 = vmax.f32 %v3246_v12, 0.0 }
 0x4c1   : > { %v3536_v30 = vpop.f32.mrf.mxu1 }
 0x4c2   : > { %v3964_v49 = vpack.c.bf16 %v3840_v3, %v3838_v62  ;;  %v3537_v36 = vadd.f32 %v3536_v30, %v12115_v14  ;;  %v3841_v35 = vmax.f32 %v3535_v60, 0.0  ;;  %v3368_v15 = vpack.c.bf16 %v3333_v21, %v3332_v32 }
 0x4c3   : > { %v3538_v51 = vpop.f32.mrf.mxu1 }
 0x4c4   : > { %v3539_v9 = vadd.f32 %v3538_v51, %v12119_v7  ;;  %4271 = vmatprep.mubr.bf16.mxu0 %v3964_v49  ;;  %v3842_v6 = vmax.f32 %v3537_v36, 0.0 }
 0x4c5   : > { %v3540_v50 = vpop.f32.mrf.mxu1  ;;  %4272 = vmatmul.mubr.bf16.gmra.mxu0 %v3963_v59  ;;  %v3254_v59 = vadd.f32 %v12087_v19, %v11978_v29 }
 0x4c6   : > { %v3541_v46 = vadd.f32 %v3540_v50, %v12115_v14  ;;  %v3843_v20 = vmax.f32 %v3539_v9, 0.0 }
 0x4c7   : > { %v3544_v23 = vpop.f32.mrf.mxu1  ;;  %3783 = vmatmul.mubr.bf16.gmra.mxu1 %v3367_v22 }
 0x4c8   : > { %v3844_v0 = vmax.f32 %v3541_v46, 0.0  ;;  %3792 = vmatprep.mubr.bf16.mxu1 %v15659_v24  ;;  %v3965_v17 = vpack.c.bf16 %v3843_v20, %v3841_v35  ;;  %v3545_v30 = vadd.f32 %v3544_v23, %v12119_v7  ;;  %v3334_v46 = vmax.f32 %v3254_v59, 0.0 }
 0x4c9   : > { %v3546_v53 = vpop.f32.mrf.mxu1 }
 0x4ca   : > { %v3966_v58 = vpack.c.bf16 %v3844_v0, %v3842_v6  ;;  %v3547_v3 = vadd.f32 %v3546_v53, %v12115_v14  ;;  %v3845_v60 = vmax.f32 %v3545_v30, 0.0  ;;  %v3369_v19 = vpack.c.bf16 %v3335_v48, %v3334_v46 }
 0x4cb   : > { %v3548_v62 = vpop.f32.mrf.mxu1  ;;  %v3265_v0 = vadd.f32 %v11978_v29, %v12108_v41 }
 0x4cc   : > { %v3549_v16 = vadd.f32 %v3548_v62, %v12119_v7  ;;  %4281 = vmatprep.mubr.bf16.mxu0 %v3966_v58  ;;  %v3846_v9 = vmax.f32 %v3547_v3, 0.0  ;;  %v3262_v58 = vadd.f32 %v11978_v29, %v12103_v1  ;;  %v3273_v1 = vadd.f32 %v12105_v40, %v11978_v29 }
 0x4cd   : > { %v3550_v49 = vpop.f32.mrf.mxu1  ;;  %4282 = vmatmul.mubr.bf16.gmra.mxu0 %v3965_v17 }
 0x4ce   : > { %v3551_v25 = vadd.f32 %v3550_v49, %v12115_v14  ;;  %v3847_v51 = vmax.f32 %v3549_v16, 0.0  ;;  %v3337_v16 = vmax.f32 %v3265_v0, 0.0  ;;  %v3336_v30 = vmax.f32 %v3262_v58, 0.0 }
 0x4cf   : > { %v3554_v36 = vpop.f32.mrf.mxu1  ;;  %3793 = vmatmul.mubr.bf16.gmra.mxu1 %v3368_v15 }
 0x4d0   : > { %v3848_v22 = vmax.f32 %v3551_v25, 0.0  ;;  %3802 = vmatprep.mubr.bf16.mxu1 %v15659_v24  ;;  %v3967_v12 = vpack.c.bf16 %v3847_v51, %v3845_v60  ;;  %v3555_v21 = vadd.f32 %v3554_v36, %v12119_v7  ;;  %v3370_v36 = vpack.c.bf16 %v3337_v16, %v3336_v30 }
 0x4d1   : > { %v3556_v44 = vpop.f32.mrf.mxu1  ;;  %v3270_v60 = vadd.f32 %v12100_v42, %v11978_v29 }
 0x4d2   : > { %v3968_v50 = vpack.c.bf16 %v3848_v22, %v3846_v9  ;;  %v3557_v23 = vadd.f32 %v3556_v44, %v12115_v14  ;;  %v3849_v55 = vmax.f32 %v3555_v21, 0.0 }
 0x4d3   : > { %v3558_v20 = vpop.f32.mrf.mxu1 }
 0x4d4   : > { %v3559_v6 = vadd.f32 %v3558_v20, %v12119_v7  ;;  %4291 = vmatprep.mubr.bf16.mxu0 %v3968_v50  ;;  %v3850_v62 = vmax.f32 %v3557_v23, 0.0  ;;  %v3339_v20 = vmax.f32 %v3273_v1, 0.0 }
 0x4d5   : > { %v3560_v35 = vpop.f32.mrf.mxu1  ;;  %4292 = vmatmul.mubr.bf16.gmra.mxu0 %v3967_v12 }
 0x4d6   : > { %v3561_v53 = vadd.f32 %v3560_v35, %v12115_v14  ;;  %v3851_v32 = vmax.f32 %v3559_v6, 0.0 }
 0x4d7   : > { %v3564_v17 = vpop.f32.mrf.mxu1  ;;  %3803 = vmatmul.mubr.bf16.gmra.mxu1 %v3369_v19  ;;  %v3338_v19 = vmax.f32 %v3270_v60, 0.0 }
 0x4d8   : > { %v3852_v3 = vmax.f32 %v3561_v53, 0.0  ;;  %3812 = vmatprep.mubr.bf16.mxu1 %v15659_v24  ;;  %v3969_v49 = vpack.c.bf16 %v3851_v32, %v3849_v55  ;;  %v3565_v9 = vadd.f32 %v3564_v17, %v12119_v7 }
 0x4d9   : > { %v3566_v15 = vpop.f32.mrf.mxu1  ;;  %v3371_v29 = vpack.c.bf16 %v3339_v20, %v3338_v19 }
 0x4da   : > { %v3970_v41 = vpack.c.bf16 %v3852_v3, %v3850_v62  ;;  %v3567_v59 = vadd.f32 %v3566_v15, %v12115_v14  ;;  %v3853_v23 = vmax.f32 %v3565_v9, 0.0 }
 0x4db   : > { %v3568_v25 = vpop.f32.mrf.mxu1 }
 0x4dc   : > { %v3569_v51 = vadd.f32 %v3568_v25, %v12119_v7  ;;  %4301 = vmatprep.mubr.bf16.mxu0 %v3970_v41  ;;  %v3854_v46 = vmax.f32 %v3567_v59, 0.0 }
 0x4dd   : > { %v3570_v22 = vpop.f32.mrf.mxu1  ;;  %4302 = vmatmul.mubr.bf16.gmra.mxu0 %v3969_v49 }
 0x4de   : > { %v3571_v48 = vadd.f32 %v3570_v22, %v12115_v14  ;;  %v3855_v44 = vmax.f32 %v3569_v51, 0.0 }
 0x4df   : > { %v3574_v50 = vpop.f32.mrf.mxu1  ;;  %3813 = vmatmul.mubr.bf16.gmra.mxu1 %v3370_v36 }
 0x4e0   : > { %v3856_v12 = vmax.f32 %v3571_v48, 0.0  ;;  %3822 = vmatprep.mubr.bf16.mxu1 %v15659_v24  ;;  %v3971_v0 = vpack.c.bf16 %v3855_v44, %v3853_v23  ;;  %v3575_v42 = vadd.f32 %v3574_v50, %v12119_v7 }
 0x4e1   : > { %v3576_v40 = vpop.f32.mrf.mxu1 }
 0x4e2   : > { %v3972_v6 = vpack.c.bf16 %v3856_v12, %v3854_v46  ;;  %v3577_v35 = vadd.f32 %v3576_v40, %v12115_v14  ;;  %v3857_v16 = vmax.f32 %v3575_v42, 0.0 }
 0x4e3   : > { %v3578_v21 = vpop.f32.mrf.mxu1 }
 0x4e4   : > { %v3579_v53 = vadd.f32 %v3578_v21, %v12119_v7  ;;  %4311 = vmatprep.mubr.bf16.mxu0 %v3972_v6  ;;  %v3858_v62 = vmax.f32 %v3577_v35, 0.0 }
 0x4e5   : > { %v3580_v58 = vpop.f32.mrf.mxu1  ;;  %4312 = vmatmul.mubr.bf16.gmra.mxu0 %v3971_v0 }
 0x4e6   : > { %v3581_v32 = vadd.f32 %v3580_v58, %v12115_v14  ;;  %v3859_v24 = vmax.f32 %v3579_v53, 0.0 }
 0x4e7   : > { %v3584_v17 = vpop.f32.mrf.mxu1  ;;  %3823 = vmatmul.mubr.bf16.gmra.mxu1 %v3371_v29 }
 0x4e8   : > { %v3860_v3 = vmax.f32 %v3581_v32, 0.0  ;;  %v3973_v41 = vpack.c.bf16 %v3859_v24, %v3857_v16  ;;  %v3585_v59 = vadd.f32 %v3584_v17, %v12119_v7 }
 0x4e9   : > { %v3586_v55 = vpop.f32.mrf.mxu1 }
 0x4ea   : > { %v3974_v15 = vpack.c.bf16 %v3860_v3, %v3858_v62  ;;  %v3587_v49 = vadd.f32 %v3586_v55, %v12115_v14  ;;  %v3861_v60 = vmax.f32 %v3585_v59, 0.0 }
 0x4eb   : > { %v3588_v30 = vpop.f32.mrf.mxu1 }
 0x4ec   : > { %v3589_v25 = vadd.f32 %v3588_v30, %v12119_v7  ;;  %4321 = vmatprep.mubr.bf16.mxu0 %v3974_v15  ;;  %v3862_v22 = vmax.f32 %v3587_v49, 0.0 }
 0x4ed   : > { %v3590_v51 = vpop.f32.mrf.mxu1  ;;  %4322 = vmatmul.mubr.bf16.gmra.mxu0 %v3973_v41 }
 0x4ee   : > { %v3591_v1 = vadd.f32 %v3590_v51, %v12115_v14  ;;  %v3863_v36 = vmax.f32 %v3589_v25, 0.0 }
 0x4ef   : > { %v3594_v9 = vpop.f32.mrf.mxu1 }
 0x4f0   : > { %v3864_v48 = vmax.f32 %v3591_v1, 0.0  ;;  %v3975_v46 = vpack.c.bf16 %v3863_v36, %v3861_v60  ;;  %v3595_v40 = vadd.f32 %v3594_v9, %v12119_v7 }
 0x4f1   : > { %v3596_v44 = vpop.f32.mrf.mxu1 }
 0x4f2   : > { %v3976_v50 = vpack.c.bf16 %v3864_v48, %v3862_v22  ;;  %v3597_v20 = vadd.f32 %v3596_v44, %v12115_v14  ;;  %v3865_v29 = vmax.f32 %v3595_v40, 0.0 }
 0x4f3   : > { %v3598_v12 = vpop.f32.mrf.mxu1 }
 0x4f4   : > { %v3599_v23 = vadd.f32 %v3598_v12, %v12119_v7  ;;  %4331 = vmatprep.mubr.bf16.mxu0 %v3976_v50  ;;  %v3866_v35 = vmax.f32 %v3597_v20, 0.0 }
 0x4f5   : > { %v3600_v6 = vpop.f32.mrf.mxu1  ;;  %4332 = vmatmul.mubr.bf16.gmra.mxu0 %v3975_v46 }
 0x4f6   : > { %v3601_v19 = vadd.f32 %v3600_v6, %v12115_v14  ;;  %v3867_v0 = vmax.f32 %v3599_v23, 0.0 }
 0x4f7   : > { %v3604_v21 = vpop.f32.mrf.mxu1 }
 0x4f8   : > { %v3868_v53 = vmax.f32 %v3601_v19, 0.0  ;;  %v3977_v32 = vpack.c.bf16 %v3867_v0, %v3865_v29  ;;  %v3605_v3 = vadd.f32 %v3604_v21, %v12119_v7 }
 0x4f9   : > { %v3606_v42 = vpop.f32.mrf.mxu1 }
 0x4fa   : > { %v3978_v58 = vpack.c.bf16 %v3868_v53, %v3866_v35  ;;  %v3607_v17 = vadd.f32 %v3606_v42, %v12115_v14  ;;  %v3869_v25 = vmax.f32 %v3605_v3, 0.0 }
 0x4fb   : > { %v3608_v24 = vpop.f32.mrf.mxu1 }
 0x4fc   : > { %v3609_v62 = vadd.f32 %v3608_v24, %v12119_v7  ;;  %4341 = vmatprep.mubr.bf16.mxu0 %v3978_v58  ;;  %v3870_v30 = vmax.f32 %v3607_v17, 0.0 }
 0x4fd   : > { %v3610_v16 = vpop.f32.mrf.mxu1  ;;  %4342 = vmatmul.mubr.bf16.gmra.mxu0 %v3977_v32 }
 0x4fe   : > { %v3611_v55 = vadd.f32 %v3610_v16, %v12115_v14  ;;  %v3871_v15 = vmax.f32 %v3609_v62, 0.0 }
 0x4ff   : > { %v3614_v41 = vpop.f32.mrf.mxu1 }
 0x500   : > { %v3872_v49 = vmax.f32 %v3611_v55, 0.0  ;;  %v3979_v1 = vpack.c.bf16 %v3871_v15, %v3869_v25  ;;  %v3615_v48 = vadd.f32 %v3614_v41, %v12119_v7 }
 0x501   : > { %v3616_v59 = vpop.f32.mrf.mxu1 }
 0x502   : > { %v3980_v51 = vpack.c.bf16 %v3872_v49, %v3870_v30  ;;  %v3617_v9 = vadd.f32 %v3616_v59, %v12115_v14  ;;  %v3873_v23 = vmax.f32 %v3615_v48, 0.0 }
 0x503   : > { %v3618_v36 = vpop.f32.mrf.mxu1 }
 0x504   : > { %v3619_v22 = vadd.f32 %v3618_v36, %v12119_v7  ;;  %4351 = vmatprep.mubr.bf16.mxu0 %v3980_v51  ;;  %v3874_v12 = vmax.f32 %v3617_v9, 0.0 }
 0x505   : > { %v3620_v60 = vpop.f32.mrf.mxu1  ;;  %4352 = vmatmul.mubr.bf16.gmra.mxu0 %v3979_v1 }
 0x506   : > { %v3621_v44 = vadd.f32 %v3620_v60, %v12115_v14  ;;  %v3875_v50 = vmax.f32 %v3619_v22, 0.0 }
 0x507   : > { %v3624_v46 = vpop.f32.mrf.mxu1 }
 0x508   : > { %v3876_v20 = vmax.f32 %v3621_v44, 0.0  ;;  %v3981_v19 = vpack.c.bf16 %v3875_v50, %v3873_v23  ;;  %v3625_v53 = vadd.f32 %v3624_v46, %v12119_v7 }
 0x509   : > { %v3626_v40 = vpop.f32.mrf.mxu1 }
 0x50a   : > { %v3982_v6 = vpack.c.bf16 %v3876_v20, %v3874_v12  ;;  %v3627_v21 = vadd.f32 %v3626_v40, %v12115_v14  ;;  %v3877_v62 = vmax.f32 %v3625_v53, 0.0 }
 0x50b   : > { %v3628_v0 = vpop.f32.mrf.mxu1 }
 0x50c   : > { %v3629_v35 = vadd.f32 %v3628_v0, %v12119_v7  ;;  %4361 = vmatprep.mubr.bf16.mxu0 %v3982_v6  ;;  %v3878_v24 = vmax.f32 %v3627_v21, 0.0 }
 0x50d   : > { %v3630_v29 = vpop.f32.mrf.mxu1  ;;  %4362 = vmatmul.mubr.bf16.gmra.mxu0 %v3981_v19 }
 0x50e   : > { %v3631_v42 = vadd.f32 %v3630_v29, %v12115_v14  ;;  %v3879_v58 = vmax.f32 %v3629_v35, 0.0 }
 0x50f   : > { %v3634_v32 = vpop.f32.mrf.mxu1 }
 0x510   : > { %v3880_v17 = vmax.f32 %v3631_v42, 0.0  ;;  %v3983_v55 = vpack.c.bf16 %v3879_v58, %v3877_v62  ;;  %v3635_v49 = vadd.f32 %v3634_v32, %v12119_v7 }
 0x511   : > { %v3636_v3 = vpop.f32.mrf.mxu1 }
 0x512   : > { %v3984_v16 = vpack.c.bf16 %v3880_v17, %v3878_v24  ;;  %v3637_v41 = vadd.f32 %v3636_v3, %v12115_v14  ;;  %v3881_v22 = vmax.f32 %v3635_v49, 0.0 }
 0x513   : > { %v3638_v15 = vpop.f32.mrf.mxu1 }
 0x514   : > { %v3639_v30 = vadd.f32 %v3638_v15, %v12119_v7  ;;  %4371 = vmatprep.mubr.bf16.mxu0 %v3984_v16  ;;  %v3882_v36 = vmax.f32 %v3637_v41, 0.0 }
 0x515   : > { %v3640_v25 = vpop.f32.mrf.mxu1  ;;  %4372 = vmatmul.mubr.bf16.gmra.mxu0 %v3983_v55 }
 0x516   : > { %v3641_v59 = vadd.f32 %v3640_v25, %v12115_v14  ;;  %v3883_v51 = vmax.f32 %v3639_v30, 0.0 }
 0x517   : > { %v3644_v1 = vpop.f32.mrf.mxu1 }
 0x518   : > { %v3884_v9 = vmax.f32 %v3641_v59, 0.0  ;;  %v3985_v44 = vpack.c.bf16 %v3883_v51, %v3881_v22  ;;  %v3645_v20 = vadd.f32 %v3644_v1, %v12119_v7 }
 0x519   : > { %v3646_v48 = vpop.f32.mrf.mxu1 }
 0x51a   : > { %v3986_v60 = vpack.c.bf16 %v3884_v9, %v3882_v36  ;;  %v3647_v46 = vadd.f32 %v3646_v48, %v12115_v14  ;;  %v3885_v35 = vmax.f32 %v3645_v20, 0.0 }
 0x51b   : > { %v3648_v50 = vpop.f32.mrf.mxu1 }
 0x51c   : > { %v3649_v12 = vadd.f32 %v3648_v50, %v12119_v7  ;;  %4381 = vmatprep.mubr.bf16.mxu0 %v3986_v60  ;;  %v3886_v0 = vmax.f32 %v3647_v46, 0.0 }
 0x51d   : > { %v3650_v23 = vpop.f32.mrf.mxu1  ;;  %4382 = vmatmul.mubr.bf16.gmra.mxu0 %v3985_v44 }
 0x51e   : > { %v3651_v40 = vadd.f32 %v3650_v23, %v12115_v14  ;;  %v3887_v6 = vmax.f32 %v3649_v12, 0.0 }
 0x51f   : > { %v3654_v19 = vpop.f32.mrf.mxu1 }
 0x520   : > { %v3888_v21 = vmax.f32 %v3651_v40, 0.0  ;;  %v3987_v42 = vpack.c.bf16 %v3887_v6, %v3885_v35  ;;  %v3655_v17 = vadd.f32 %v3654_v19, %v12119_v7 }
 0x521   : > { %v3656_v53 = vpop.f32.mrf.mxu1 }
 0x522   : > { %v3988_v29 = vpack.c.bf16 %v3888_v21, %v3886_v0  ;;  %v3657_v32 = vadd.f32 %v3656_v53, %v12115_v14  ;;  %v3889_v30 = vmax.f32 %v3655_v17, 0.0 }
 0x523   : > { %v3658_v58 = vpop.f32.mrf.mxu1 }
 0x524   : > { %v3659_v24 = vadd.f32 %v3658_v58, %v12119_v7  ;;  %4391 = vmatprep.mubr.bf16.mxu0 %v3988_v29  ;;  %v3890_v15 = vmax.f32 %v3657_v32, 0.0 }
 0x525   : > { %v3660_v62 = vpop.f32.mrf.mxu1  ;;  %4392 = vmatmul.mubr.bf16.gmra.mxu0 %v3987_v42 }
 0x526   : > { %v3661_v3 = vadd.f32 %v3660_v62, %v12115_v14  ;;  %v3891_v16 = vmax.f32 %v3659_v24, 0.0 }
 0x527   : > { %v3664_v55 = vpop.f32.mrf.mxu1 }
 0x528   : > { %v3892_v41 = vmax.f32 %v3661_v3, 0.0  ;;  %v3989_v59 = vpack.c.bf16 %v3891_v16, %v3889_v30  ;;  %v3665_v9 = vadd.f32 %v3664_v55, %v12119_v7 }
 0x529   : > { %v3666_v49 = vpop.f32.mrf.mxu1 }
 0x52a   : > { %v3990_v25 = vpack.c.bf16 %v3892_v41, %v3890_v15  ;;  %v3667_v1 = vadd.f32 %v3666_v49, %v12115_v14  ;;  %v3893_v12 = vmax.f32 %v3665_v9, 0.0 }
 0x52b   : > { %v3668_v51 = vpop.f32.mrf.mxu1 }
 0x52c   : > { %v3669_v36 = vadd.f32 %v3668_v51, %v12119_v7  ;;  %4401 = vmatprep.mubr.bf16.mxu0 %v3990_v25  ;;  %v3894_v50 = vmax.f32 %v3667_v1, 0.0 }
 0x52d   : > { %v3670_v22 = vpop.f32.mrf.mxu1  ;;  %4402 = vmatmul.mubr.bf16.gmra.mxu0 %v3989_v59 }
 0x52e   : > { %v3671_v48 = vadd.f32 %v3670_v22, %v12115_v14  ;;  %v3895_v60 = vmax.f32 %v3669_v36, 0.0 }
 0x52f   : > { %v3674_v44 = vpop.f32.mrf.mxu1 }
 0x530   : > { %v3896_v46 = vmax.f32 %v3671_v48, 0.0  ;;  %v3991_v40 = vpack.c.bf16 %v3895_v60, %v3893_v12  ;;  %v3675_v21 = vadd.f32 %v3674_v44, %v12119_v7 }
 0x531   : > { %v3676_v20 = vpop.f32.mrf.mxu1 }
 0x532   : > { %v3992_v23 = vpack.c.bf16 %v3896_v46, %v3894_v50  ;;  %v3677_v19 = vadd.f32 %v3676_v20, %v12115_v14  ;;  %v3897_v24 = vmax.f32 %v3675_v21, 0.0 }
 0x533   : > { %v3678_v6 = vpop.f32.mrf.mxu1 }
 0x534   : > { %v3679_v0 = vadd.f32 %v3678_v6, %v12119_v7  ;;  %4411 = vmatprep.mubr.bf16.mxu0 %v3992_v23  ;;  %v3898_v58 = vmax.f32 %v3677_v19, 0.0 }
 0x535   : > { %v3680_v35 = vpop.f32.mrf.mxu1  ;;  %4412 = vmatmul.mubr.bf16.gmra.mxu0 %v3991_v40 }
 0x536   : > { %v3681_v53 = vadd.f32 %v3680_v35, %v12115_v14  ;;  %v3899_v29 = vmax.f32 %v3679_v0, 0.0 }
 0x537   : > { %v3684_v42 = vpop.f32.mrf.mxu1 }
 0x538   : > { %v3900_v32 = vmax.f32 %v3681_v53, 0.0  ;;  %v3993_v3 = vpack.c.bf16 %v3899_v29, %v3897_v24  ;;  %v3685_v41 = vadd.f32 %v3684_v42, %v12119_v7 }
 0x539   : > { %v3686_v17 = vpop.f32.mrf.mxu1 }
 0x53a   : > { %v3994_v62 = vpack.c.bf16 %v3900_v32, %v3898_v58  ;;  %v3687_v55 = vadd.f32 %v3686_v17, %v12115_v14  ;;  %v3901_v36 = vmax.f32 %v3685_v41, 0.0 }
 0x53b   : > { %v3688_v16 = vpop.f32.mrf.mxu1 }
 0x53c   : > { %v3689_v15 = vadd.f32 %v3688_v16, %v12119_v7  ;;  %4421 = vmatprep.mubr.bf16.mxu0 %v3994_v62  ;;  %v3902_v51 = vmax.f32 %v3687_v55, 0.0 }
 0x53d   : > { %v3690_v30 = vpop.f32.mrf.mxu1  ;;  %4422 = vmatmul.mubr.bf16.gmra.mxu0 %v3993_v3 }
 0x53e   : > { %v3691_v49 = vadd.f32 %v3690_v30, %v12115_v14  ;;  %v3903_v25 = vmax.f32 %v3689_v15, 0.0 }
 0x53f   : > { %v3694_v59 = vpop.f32.mrf.mxu1 }
 0x540   : > { %v3904_v1 = vmax.f32 %v3691_v49, 0.0  ;;  %v3995_v48 = vpack.c.bf16 %v3903_v25, %v3901_v36  ;;  %v3695_v46 = vadd.f32 %v3694_v59, %v12119_v7 }
 0x541   : > { %v3696_v9 = vpop.f32.mrf.mxu1 }
 0x542   : > { %v3996_v22 = vpack.c.bf16 %v3904_v1, %v3902_v51  ;;  %v3697_v44 = vadd.f32 %v3696_v9, %v12115_v14  ;;  %v3905_v0 = vmax.f32 %v3695_v46, 0.0 }
 0x543   : > { %v3698_v60 = vpop.f32.mrf.mxu1 }
 0x544   : > { %v3699_v50 = vadd.f32 %v3698_v60, %v12119_v7  ;;  %4431 = vmatprep.mubr.bf16.mxu0 %v3996_v22  ;;  %v3906_v6 = vmax.f32 %v3697_v44, 0.0 }
 0x545   : > { %v3700_v12 = vpop.f32.mrf.mxu1  ;;  %4432 = vmatmul.mubr.bf16.gmra.mxu0 %v3995_v48 }
 0x546   : > { %v3701_v20 = vadd.f32 %v3700_v12, %v12115_v14  ;;  %v3907_v23 = vmax.f32 %v3699_v50, 0.0 }
 0x547   : > { %v3704_v40 = vpop.f32.mrf.mxu1 }
 0x548   : > { %v3908_v19 = vmax.f32 %v3701_v20, 0.0  ;;  %v3997_v53 = vpack.c.bf16 %v3907_v23, %v3905_v0  ;;  %v3705_v32 = vadd.f32 %v3704_v40, %v12119_v7 }
 0x549   : > { %v3706_v21 = vpop.f32.mrf.mxu1 }
 0x54a   : > { %v3998_v35 = vpack.c.bf16 %v3908_v19, %v3906_v6  ;;  %v3707_v42 = vadd.f32 %v3706_v21, %v12115_v14  ;;  %v3909_v15 = vmax.f32 %v3705_v32, 0.0 }
 0x54b   : > { %v3708_v29 = vpop.f32.mrf.mxu1 }
 0x54c   : > { %v3709_v58 = vadd.f32 %v3708_v29, %v12119_v7  ;;  %4441 = vmatprep.mubr.bf16.mxu0 %v3998_v35  ;;  %v3910_v16 = vmax.f32 %v3707_v42, 0.0 }
 0x54d   : > { %v3710_v24 = vpop.f32.mrf.mxu1  ;;  %4442 = vmatmul.mubr.bf16.gmra.mxu0 %v3997_v53 }
 0x54e   : > { %v3711_v17 = vadd.f32 %v3710_v24, %v12115_v14  ;;  %v3911_v62 = vmax.f32 %v3709_v58, 0.0 }
 0x54f   : > { %v3714_v3 = vpop.f32.mrf.mxu1 }
 0x550   : > { %v3912_v55 = vmax.f32 %v3711_v17, 0.0  ;;  %v3999_v49 = vpack.c.bf16 %v3911_v62, %v3909_v15  ;;  %v3715_v1 = vadd.f32 %v3714_v3, %v12119_v7 }
 0x551   : > { %v3716_v41 = vpop.f32.mrf.mxu1 }
 0x552   : > { %v4000_v30 = vpack.c.bf16 %v3912_v55, %v3910_v16  ;;  %v3717_v59 = vadd.f32 %v3716_v41, %v12115_v14  ;;  %v3913_v50 = vmax.f32 %v3715_v1, 0.0 }
 0x553   : > { %v3718_v25 = vpop.f32.mrf.mxu1 }
 0x554   : > { %v3719_v51 = vadd.f32 %v3718_v25, %v12119_v7  ;;  %4451 = vmatprep.mubr.bf16.mxu0 %v4000_v30  ;;  %v3914_v60 = vmax.f32 %v3717_v59, 0.0 }
 0x555   : > { %v3720_v36 = vpop.f32.mrf.mxu1  ;;  %4452 = vmatmul.mubr.bf16.gmra.mxu0 %v3999_v49 }
 0x556   : > { %v3721_v9 = vadd.f32 %v3720_v36, %v12115_v14  ;;  %v3915_v22 = vmax.f32 %v3719_v51, 0.0 }
 0x557   : > { %v3724_v48 = vpop.f32.mrf.mxu1 }
 0x558   : > { %v3916_v44 = vmax.f32 %v3721_v9, 0.0  ;;  %v4001_v20 = vpack.c.bf16 %v3915_v22, %v3913_v50  ;;  %v3725_v19 = vadd.f32 %v3724_v48, %v12119_v7 }
 0x559   : > { %v3726_v46 = vpop.f32.mrf.mxu1 }
 0x55a   : > { %v4002_v12 = vpack.c.bf16 %v3916_v44, %v3914_v60  ;;  %v3727_v40 = vadd.f32 %v3726_v46, %v12115_v14  ;;  %v3917_v58 = vmax.f32 %v3725_v19, 0.0 }
 0x55b   : > { %v3728_v23 = vpop.f32.mrf.mxu1 }
 0x55c   : > { %v3729_v6 = vadd.f32 %v3728_v23, %v12119_v7  ;;  %4461 = vmatprep.mubr.bf16.mxu0 %v4002_v12  ;;  %v3918_v29 = vmax.f32 %v3727_v40, 0.0 }
 0x55d   : > { %v3730_v0 = vpop.f32.mrf.mxu1  ;;  %4462 = vmatmul.mubr.bf16.gmra.mxu0 %v4001_v20 }
 0x55e   : > { %v3731_v21 = vadd.f32 %v3730_v0, %v12115_v14  ;;  %v3919_v35 = vmax.f32 %v3729_v6, 0.0 }
 0x55f   : > { %v3734_v53 = vpop.f32.mrf.mxu1 }
 0x560   : > { %v3920_v42 = vmax.f32 %v3731_v21, 0.0  ;;  %v4003_v17 = vpack.c.bf16 %v3919_v35, %v3917_v58  ;;  %v3735_v55 = vadd.f32 %v3734_v53, %v12119_v7 }
 0x561   : > { %v3736_v32 = vpop.f32.mrf.mxu1 }
 0x562   : > { %v4004_v24 = vpack.c.bf16 %v3920_v42, %v3918_v29  ;;  %v3737_v3 = vadd.f32 %v3736_v32, %v12115_v14  ;;  %v3921_v51 = vmax.f32 %v3735_v55, 0.0 }
 0x563   : > { %v3738_v62 = vpop.f32.mrf.mxu1 }
 0x564   : > { %v3739_v16 = vadd.f32 %v3738_v62, %v12119_v7  ;;  %4471 = vmatprep.mubr.bf16.mxu0 %v4004_v24  ;;  %v3922_v25 = vmax.f32 %v3737_v3, 0.0  ;;  %v4057_v62 = vld [vmem:[%s15663_s23] sm:$0x3] }
 0x565   : > { %v3740_v15 = vpop.f32.mrf.mxu1  ;;  %4472 = vmatmul.mubr.bf16.gmra.mxu0 %v4003_v17 }
 0x566   : > { %v3741_v41 = vadd.f32 %v3740_v15, %v12115_v14  ;;  %v3923_v30 = vmax.f32 %v3739_v16, 0.0 }
 0x567   : > { %v3744_v49 = vpop.f32.mrf.mxu1 }
 0x568   : > { %v3924_v59 = vmax.f32 %v3741_v41, 0.0  ;;  %v4005_v9 = vpack.c.bf16 %v3923_v30, %v3921_v51  ;;  %v3745_v44 = vadd.f32 %v3744_v49, %v12119_v7  ;;  %v12253_v30 = vrot.slane %v4057_v62, %v15662_v34 }
 0x569   : > { %v3746_v1 = vpop.f32.mrf.mxu1 }
 0x56a   : > { %v4006_v36 = vpack.c.bf16 %v3924_v59, %v3922_v25  ;;  %v3747_v48 = vadd.f32 %v3746_v1, %v12115_v14  ;;  %v3925_v6 = vmax.f32 %v3745_v44, 0.0 }
 0x56b   : > { %v3748_v22 = vpop.f32.mrf.mxu1 }
 0x56c   : > { %v3749_v60 = vadd.f32 %v3748_v22, %v12119_v7  ;;  %4481 = vmatprep.mubr.bf16.mxu0 %v4006_v36  ;;  %v3926_v23 = vmax.f32 %v3747_v48, 0.0  ;;  %v12259_v22 = vrot.slane %v4057_v62, %v15661_v8 }
 0x56d   : > { %v3750_v50 = vpop.f32.mrf.mxu1  ;;  %4482 = vmatmul.mubr.bf16.gmra.mxu0 %v4005_v9 }
 0x56e   : > { %v3751_v46 = vadd.f32 %v3750_v50, %v12115_v14  ;;  %v3927_v12 = vmax.f32 %v3749_v60, 0.0 }
 0x56f   : > { %v3754_v20 = vpop.f32.mrf.mxu1 }
 0x570   : > { %v3928_v40 = vmax.f32 %v3751_v46, 0.0  ;;  %v4007_v21 = vpack.c.bf16 %v3927_v12, %v3925_v6  ;;  %v3755_v42 = vadd.f32 %v3754_v20, %v12119_v7 }
 0x571   : > { %v3756_v19 = vpop.f32.mrf.mxu1 }
 0x572   : > { %v4008_v0 = vpack.c.bf16 %v3928_v40, %v3926_v23  ;;  %v3757_v53 = vadd.f32 %v3756_v19, %v12115_v14  ;;  %v3929_v55 = vmax.f32 %v3755_v42, 0.0 }
 0x573   : > { %v3758_v35 = vpop.f32.mrf.mxu1 }
 0x574   : > { %v3759_v29 = vadd.f32 %v3758_v35, %v12119_v7  ;;  %4491 = vmatprep.mubr.bf16.mxu0 %v4008_v0  ;;  %v3930_v3 = vmax.f32 %v3757_v53, 0.0 }
 0x575   : > { %v3760_v58 = vpop.f32.mrf.mxu1  ;;  %4492 = vmatmul.mubr.bf16.gmra.mxu0 %v4007_v21 }
 0x576   : > { %v3761_v32 = vadd.f32 %v3760_v58, %v12115_v14  ;;  %v3931_v24 = vmax.f32 %v3759_v29, 0.0 }
 0x577   : > { %v3764_v17 = vpop.f32.mrf.mxu1 }
 0x578   : > { %v3932_v16 = vmax.f32 %v3761_v32, 0.0  ;;  %v4009_v49 = vpack.c.bf16 %v3931_v24, %v3929_v55  ;;  %v3765_v1 = vadd.f32 %v3764_v17, %v12119_v7 }
 0x579   : > { %v3766_v15 = vpop.f32.mrf.mxu1 }
 0x57a   : > { %v4010_v41 = vpack.c.bf16 %v3932_v16, %v3930_v3  ;;  %v3767_v59 = vadd.f32 %v3766_v15, %v12115_v14  ;;  %v3933_v20 = vmax.f32 %v3765_v1, 0.0 }
 0x57b   : > { %v3768_v25 = vpop.f32.mrf.mxu1 }
 0x57c   : > { %v3769_v51 = vadd.f32 %v3768_v25, %v12119_v7  ;;  %4501 = vmatprep.mubr.bf16.mxu0 %v4010_v41  ;;  %v3934_v46 = vmax.f32 %v3767_v59, 0.0 }
 0x57d   : > { %v3770_v36 = vpop.f32.mrf.mxu1  ;;  %v4263_v9 = vpop.f32.mrf.mxu0  ;;  %4502 = vmatmul.mubr.bf16.gmra.mxu0 %v4009_v49 }
 0x57e   : > { %v3771_v48 = vadd.f32 %v3770_v36, %v12115_v14  ;;  %v12263_v34 = vadd.f32 %v4263_v9, %v12253_v30  ;;  %v3935_v60 = vmax.f32 %v3769_v51, 0.0 }
 0x57f   : > { %v3774_v44 = vpop.f32.mrf.mxu1  ;;  %v4265_v50 = vpop.f32.mrf.mxu0 }
 0x580   : > { %v3936_v12 = vmax.f32 %v3771_v48, 0.0  ;;  %v5163_v23 = vand.u32 2147483647, %v12263_v34  ;;  %v12267_v40 = vadd.f32 %v4265_v50, %v12259_v22  ;;  %v4011_v21 = vpack.c.bf16 %v3935_v60, %v3933_v20 }
 0x581   : > { %v3776_v6 = vpop.f32.mrf.mxu1  ;;  %v4267_v19 = vpop.f32.mrf.mxu0  ;;  %v3775_v16 = vadd.f32 %v3774_v44, %v12119_v7 }
 0x582   : > { %v4012_v8 = vpack.c.bf16 %v3936_v12, %v3934_v46  ;;  %v12270_v0 = vadd.f32 %v4267_v19, %v12253_v30  ;;  %v5291_v35 = vsub.f32 0.0, %v5163_v23  ;;  %v5164_v42 = vand.u32 2147483647, %v12267_v40 }
 0x583   : > { %v3778_v53 = vpop.f32.mrf.mxu1  ;;  %v4269_v29 = vpop.f32.mrf.mxu0  ;;  %v3777_v32 = vadd.f32 %v3776_v6, %v12115_v14  ;;  %v3937_v12 = vmax.f32 %v3775_v16, 0.0 }
 0x584   : > { %4511 = vmatprep.mubr.bf16.mxu0 %v4012_v8  ;;  %v5419_v58 = vmul.f32 1.442695, %v5291_v35  ;;  %v5165_v24 = vand.u32 2147483647, %v12270_v0  ;;  %v3779_v17 = vadd.f32 %v3778_v53, %v12119_v7  ;;  %v5292_v55 = vsub.f32 0.0, %v5164_v42 }
 0x585   : > { %v3780_v62 = vpop.f32.mrf.mxu1  ;;  %v4273_v3 = vpop.f32.mrf.mxu0  ;;  %4512 = vmatmul.mubr.bf16.gmra.mxu0 %v4011_v21  ;;  %v12278_v15 = vadd.f32 %v4269_v29, %v12259_v22  ;;  %v3938_v48 = vmax.f32 %v3777_v32, 0.0 }
 0x586   : > { %v3781_v41 = vadd.f32 %v3780_v62, %v12115_v14  ;;  %8674 = vpow2.f32 %v5419_v58  ;;  %v5293_v49 = vsub.f32 0.0, %v5165_v24  ;;  %v12282_v25 = vadd.f32 %v4273_v3, %v12253_v30 }
 0x587   : > { %v3784_v59 = vpop.f32.mrf.mxu1  ;;  %v4275_v51 = vpop.f32.mrf.mxu0  ;;  %v5421_v1 = vmul.f32 1.442695, %v5292_v55  ;;  %v3939_v36 = vmax.f32 %v3779_v17, 0.0  ;;  %v5166_v9 = vand.u32 2147483647, %v12278_v15  ;;  %v4779_v62 = vmax.f32 %v12263_v34, 0.0 }
 0x588   : > { %v5423_v60 = vmul.f32 1.442695, %v5293_v49  ;;  %v3940_v44 = vmax.f32 %v3781_v41, 0.0  ;;  %v5167_v6 = vand.u32 2147483647, %v12282_v25  ;;  %v12287_v35 = vadd.f32 %v4275_v51, %v12259_v22 }
 0x589   : > { %v3786_v50 = vpop.f32.mrf.mxu1  ;;  %v4277_v46 = vpop.f32.mrf.mxu0  ;;  %8676 = vpow2.f32 %v5421_v1  ;;  %v5294_v20 = vsub.f32 0.0, %v5166_v9  ;;  %v4013_v8 = vpack.c.bf16 %v3939_v36, %v3937_v12  ;;  %v3785_v49 = vadd.f32 %v3784_v59, %v12119_v7  ;;  %v9187_v36 = vld [vmem:[%s9487_s22] sm:$0xff] }
 0x58a   : > { %8678 = vpow2.f32 %v5423_v60  ;;  %v4014_v23 = vpack.c.bf16 %v3940_v44, %v3938_v48  ;;  %v5295_v29 = vsub.f32 0.0, %v5167_v6  ;;  %v12290_v42 = vadd.f32 %v4277_v46, %v12253_v30 }
 0x58b   : > { %v3788_v19 = vpop.f32.mrf.mxu1  ;;  %v5425_v21 = vmul.f32 1.442695, %v5294_v20  ;;  %v4279_v53 = vpop.f32.mrf.mxu0  ;;  %v5168_v58 = vand.u32 2147483647, %v12287_v35  ;;  %v3787_v16 = vadd.f32 %v3786_v50, %v12115_v14  ;;  %v4907_v9 = vmul.f32 %v9187_v36, %v12263_v34 }
 0x58c   : > { %4521 = vmatprep.mubr.bf16.mxu0 %v4014_v23  ;;  %v5427_v24 = vmul.f32 1.442695, %v5295_v29  ;;  %v3789_v17 = vadd.f32 %v3788_v19, %v12119_v7  ;;  %v5169_v55 = vand.u32 2147483647, %v12290_v42  ;;  %v12299_v51 = vadd.f32 %v4279_v53, %v12259_v22  ;;  %v9188_v23 = vld [vmem:[%s9487_s22 + $0x8] sm:$0xff]  ;;  %v9189_v53 = vld [vmem:[%s9487_s22 + $0x10] sm:$0xff] }
 0x58d   : > { %8680 = vpow2.f32 %v5425_v21  ;;  %v3790_v32 = vpop.f32.mrf.mxu1  ;;  %4522 = vmatmul.mubr.bf16.gmra.mxu0 %v4013_v8  ;;  %v5296_v3 = vsub.f32 0.0, %v5168_v58  ;;  %v4283_v41 = vpop.f32.mrf.mxu0  ;;  %v4780_v48 = vmax.f32 %v12267_v40, 0.0  ;;  %v4908_v6 = vmul.f32 %v9188_v23, %v12267_v40 }
 0x58e   : > { %8682 = vpow2.f32 %v5427_v24  ;;  %v3791_v1 = vadd.f32 %v3790_v32, %v12115_v14  ;;  %v5297_v44 = vsub.f32 0.0, %v5169_v55  ;;  %v3943_v50 = vmax.f32 %v3789_v17, 0.0 }
 0x58f   : > { %v5429_v60 = vmul.f32 1.442695, %v5296_v3  ;;  %v5170_v46 = vand.u32 2147483647, %v12299_v51  ;;  %v12307_v20 = vadd.f32 %v4283_v41, %v12253_v30  ;;  %v3942_v19 = vmax.f32 %v3787_v16, 0.0 }
 0x590   : > { %v3944_v12 = vmax.f32 %v3791_v1, 0.0  ;;  %v5431_v34 = vmul.f32 1.442695, %v5297_v44  ;;  %v4781_v21 = vmax.f32 %v12270_v0, 0.0  ;;  %v4909_v29 = vmul.f32 %v9189_v53, %v12270_v0 }
 0x591   : > { %8684 = vpow2.f32 %v5429_v60  ;;  %v3941_v58 = vmax.f32 %v3785_v49, 0.0  ;;  %v5298_v32 = vsub.f32 0.0, %v5170_v46  ;;  %v5171_v40 = vand.u32 2147483647, %v12307_v20 }
 0x592   : > { %8686 = vpow2.f32 %v5431_v34  ;;  %v4016_v24 = vpack.c.bf16 %v3944_v12, %v3942_v19  ;;  %v12322_v55 = vsub.f32 %v4779_v62, %v4907_v9  ;;  %v12324_v41 = vsub.f32 %v4780_v48, %v4908_v6  ;;  %v9190_v9 = vld [vmem:[%s9487_s22 + $0x18] sm:$0xff]  ;;  %v9191_v12 = vld [vmem:[%s9487_s22 + $0x20] sm:$0xff]  ;;  %v4285_v19 = vpop.f32.mrf.mxu0 }
 0x593   : > { %v12309_v59 = vpop.eup %8674  ;;  %v4015_v3 = vpack.c.bf16 %v3943_v50, %v3941_v58  ;;  %v12328_v1 = vsub.f32 %v4781_v21, %v4909_v29  ;;  %v5433_v60 = vmul.f32 1.442695, %v5298_v32  ;;  %v4782_v62 = vmax.f32 %v12278_v15, 0.0 }
 0x594   : > { %v5675_v8 = vadd.f32 1.0, %v12309_v59  ;;  %4531 = vmatprep.mubr.bf16.mxu0 %v4016_v24  ;;  %v5678_v49 = vmul.f32 -0.5, %v12309_v59  ;;  %v4910_v48 = vmul.f32 %v9190_v9, %v12278_v15  ;;  %v5299_v44 = vsub.f32 0.0, %v5171_v40  ;;  %v9193_v15 = vld [vmem:[%s9487_s22 + $0x30] sm:$0xff] }
 0x595   : > { %4532 = vmatmul.mubr.bf16.gmra.mxu0 %v4015_v3  ;;  %v4783_v46 = vmax.f32 %v12282_v25, 0.0  ;;  %v4911_v23 = vmul.f32 %v9191_v12, %v12282_v25  ;;  %v4784_v6 = vmax.f32 %v12287_v35, 0.0  ;;  %v4785_v53 = vmax.f32 %v12290_v42, 0.0  ;;  %v4287_v12 = vpop.f32.mrf.mxu0 }
 0x596   : > { %v12317_v17 = vpop.eup %8676  ;;  %8688 = vlog2.f32 %v5675_v8  ;;  %v9192_v8 = vld [vmem:[%s9487_s22 + $0x28] sm:$0xff]  ;;  %v4913_v29 = vmul.f32 %v9193_v15, %v12290_v42  ;;  %v5679_v58 = vadd.f32 1.0, %v5678_v49  ;;  %v5681_v32 = vand.u32 2147483647, %v12309_v59 }
 0x597   : > { %v12320_v16 = vpop.eup %8678  ;;  %v5684_v0 = vadd.f32 1.0, %v12317_v17  ;;  %v4912_v21 = vmul.f32 %v9192_v8, %v12287_v35  ;;  %v5435_v24 = vmul.f32 1.442695, %v5299_v44  ;;  %v5687_v25 = vmul.f32 -0.5, %v12317_v17  ;;  %v3794_v8 = vpop.f32.mrf.mxu1 }
 0x598   : > { %v5693_v36 = vadd.f32 1.0, %v12320_v16  ;;  %v5696_v40 = vmul.f32 -0.5, %v12320_v16  ;;  %v5690_v35 = vand.u32 2147483647, %v12317_v17  ;;  %v5699_v49 = vand.u32 2147483647, %v12320_v16 }
 0x599   : > { %8690 = vlog2.f32 %v5684_v0  ;;  %v12352_v0 = vadd.f32 %v4285_v19, %v12259_v22  ;;  %v12361_v9 = vsub.f32 %v4784_v6, %v4912_v21  ;;  %vm12366_vm15 = vcmp.lt.f32.partialorder %v5681_v32, 0.0004427343 }
 0x59a   : > { %v12334_v50 = vpop.eup %8680  ;;  %8692 = vlog2.f32 %v5693_v36  ;;  %v12355_v36 = vsub.f32 %v4782_v62, %v4910_v48  ;;  %v12371_v48 = vsub.f32 %v4785_v53, %v4913_v29  ;;  %v5697_v6 = vadd.f32 1.0, %v5696_v40 }
 0x59b   : > { %v5702_v34 = vadd.f32 1.0, %v12334_v50  ;;  %8694 = vpow2.f32 %v5433_v60  ;;  %v12347_v3 = vpop.eup %8682  ;;  %v12359_v60 = vsub.f32 %v4783_v46, %v4911_v23  ;;  %v5172_v44 = vand.u32 2147483647, %v12352_v0 }
 0x59c   : > { %v5711_v42 = vadd.f32 1.0, %v12347_v3  ;;  %v5705_v62 = vmul.f32 -0.5, %v12334_v50  ;;  %v5680_v46 = vmul.f32 %v12309_v59, %v5679_v58  ;;  %v5688_v23 = vadd.f32 1.0, %v5687_v25 }
 0x59d   : > { %8696 = vlog2.f32 %v5702_v34  ;;  %vm12377_vm13 = vcmp.lt.f32.partialorder %v5690_v35, 0.0004427343  ;;  %v5714_v32 = vmul.f32 -0.5, %v12347_v3  ;;  %v5300_v63 = vsub.f32 0.0, %v5172_v44  ;;  %v3796_v44 = vpop.f32.mrf.mxu1 }
 0x59e   : > { %8698 = vpow2.f32 %v5435_v24  ;;  %v12364_v34 = vpop.eup %8684  ;;  %vm12385_vm14 = vcmp.lt.f32.partialorder %v5699_v49, 0.0004427343  ;;  %v5708_v59 = vand.u32 2147483647, %v12334_v50  ;;  %v5706_v40 = vadd.f32 1.0, %v5705_v62 }
 0x59f   : > { %8700 = vlog2.f32 %v5711_v42  ;;  %v5720_v21 = vadd.f32 1.0, %v12364_v34  ;;  %v12375_v15 = vpop.eup %8686  ;;  %v12383_v42 = vadd.f32 %v4287_v12, %v12253_v30  ;;  %v5717_v35 = vand.u32 2147483647, %v12347_v3 }
 0x5a0   : > { %v5729_v58 = vadd.f32 1.0, %v12375_v15  ;;  %v12393_v61 = vadd.f32 %v3794_v8, %v12119_v7  ;;  %v5689_v12 = vmul.f32 %v12317_v17, %v5688_v23  ;;  %v5698_v49 = vmul.f32 %v12320_v16, %v5697_v6  ;;  %v3798_v23 = vpop.f32.mrf.mxu1 }
 0x5a1   : > { %8702 = vlog2.f32 %v5720_v21  ;;  %v5437_v5 = vmul.f32 1.442695, %v5300_v63  ;;  %v5715_v26 = vadd.f32 1.0, %v5714_v32  ;;  %v5173_v62 = vand.u32 2147483647, %v12383_v42 }
 0x5a2   : > { %8704 = vlog2.f32 %v5729_v58  ;;  %vm12401_vm0 = vcmp.lt.f32.partialorder %v5708_v59, 0.0004427343  ;;  %v5732_v17 = vmul.f32 -0.5, %v12375_v15  ;;  %v5707_v63 = vmul.f32 %v12334_v50, %v5706_v40 }
 0x5a3   : > { %v8689_v53 = vpop.eup %8688  ;;  %8706 = vpow2.f32 %v5437_v5  ;;  %vm12407_vm12 = vcmp.lt.f32.partialorder %v5717_v35, 0.0004427343  ;;  %v5726_v59 = vand.u32 2147483647, %v12364_v34  ;;  %v3797_v5 = vadd.f32 %v3796_v44, %v12115_v14 }
 0x5a4   : > { %v5677_v25 = vmul.f32 0.6931472, %v8689_v53  ;;  %v5723_v53 = vmul.f32 -0.5, %v12364_v34  ;;  %v5716_v58 = vmul.f32 %v12347_v3, %v5715_v26  ;;  %v5733_v24 = vadd.f32 1.0, %v5732_v17 }
 0x5a5   : > { %v3799_v17 = vadd.f32 %v3798_v23, %v12119_v7 }
 0x5a6   : > { %v8691_v13 = vpop.eup %8690  ;;  %v5683_v21 = vsel %vm12366_vm15, %v5680_v46, %v5677_v25  ;;  %v5301_v46 = vsub.f32 0.0, %v5173_v62  ;;  %v5724_v25 = vadd.f32 1.0, %v5723_v53  ;;  %v3800_v62 = vpop.f32.mrf.mxu1 }
 0x5a7   : > { %v8693_v37 = vpop.eup %8692  ;;  %v5686_v33 = vmul.f32 0.6931472, %v8691_v13  ;;  %v6827_v13 = vadd.f32 %v5683_v21, %v12322_v55 }
 0x5a8   : > { %v5695_v16 = vmul.f32 0.6931472, %v8693_v37  ;;  %v12411_v6 = vpop.eup %8694 }
 0x5a9   : > { %v5692_v32 = vsel %vm12377_vm13, %v5689_v12, %v5686_v33  ;;  %v5738_v40 = vadd.f32 1.0, %v12411_v6  ;;  %v5735_v33 = vand.u32 2147483647, %v12375_v15  ;;  %v4289_v12 = vpop.f32.mrf.mxu0  ;;  %v7083_v53 = vsel %vm4715_vm1, %v6827_v13, 0.0 }
 0x5aa   : > { %v8697_v37 = vpop.eup %8696  ;;  %v5701_v50 = vsel %vm12385_vm14, %v5698_v49, %v5695_v16  ;;  %v6828_v44 = vadd.f32 %v5692_v32, %v12324_v41  ;;  %v5439_v49 = vmul.f32 1.442695, %v5301_v46  ;;  %vm12439_vm13 = vcmp.lt.f32.partialorder %v5726_v59, 0.0004427343 }
 0x5ab   : > { %v12422_v35 = vpop.eup %8698  ;;  %v6829_v55 = vadd.f32 %v5701_v50, %v12328_v1  ;;  %v5704_v21 = vmul.f32 0.6931472, %v8697_v37  ;;  %8708 = vlog2.f32 %v5738_v40  ;;  %v12437_v50 = vadd.f32 %v4289_v12, %v12259_v22 }
 0x5ac   : > { %v5747_v29 = vadd.f32 1.0, %v12422_v35  ;;  %v8701_v26 = vpop.eup %8700  ;;  %v3946_v13 = vmax.f32 %v3797_v5, 0.0  ;;  %v3801_v40 = vadd.f32 %v3800_v62, %v12115_v14  ;;  %v7084_v8 = vsel %vm4715_vm1, %v6828_v44, 0.0 }
 0x5ad   : > { %v7085_v45 = vsel %vm4716_vm2, %v6829_v55, 0.0  ;;  %v5710_v1 = vsel %vm12401_vm0, %v5707_v63, %v5704_v21  ;;  %v5713_v32 = vmul.f32 0.6931472, %v8701_v26  ;;  %v5725_v21 = vmul.f32 %v12364_v34, %v5724_v25  ;;  %v4293_v26 = vpop.f32.mrf.mxu0 }
 0x5ae   : > { %v7212_v37 = vadd.f32 %v7085_v45, %v7083_v53  ;;  %v6830_v41 = vadd.f32 %v5710_v1, %v12355_v36  ;;  %8710 = vlog2.f32 %v5747_v29  ;;  %v8703_v55 = vpop.eup %8702  ;;  %v5734_v12 = vmul.f32 %v12375_v15, %v5733_v24  ;;  %v9194_v29 = vld [vmem:[%s9487_s22 + $0x40] sm:$0xff] }
 0x5af   : > { %v5719_v36 = vsel %vm12407_vm12, %v5716_v58, %v5713_v32  ;;  %8712 = vpow2.f32 %v5439_v49  ;;  %v5722_v59 = vmul.f32 0.6931472, %v8703_v55  ;;  %v8705_v5 = vpop.eup %8704  ;;  %vm12453_vm14 = vcmp.lt.f32.partialorder %v5735_v33, 0.0004427343 }
 0x5b0   : > { %v7086_v45 = vsel %vm4716_vm2, %v6830_v41, 0.0  ;;  %v6831_v23 = vadd.f32 %v5719_v36, %v12359_v60  ;;  %v3947_v44 = vmax.f32 %v3799_v17, 0.0  ;;  %v5174_v62 = vand.u32 2147483647, %v12437_v50  ;;  %v12462_v34 = vpop.eup %8706 }
 0x5b1   : > { %v7281_v63 = vadd.f32 %v7086_v45, %v7084_v8  ;;  %v5728_v60 = vsel %vm12439_vm13, %v5725_v21, %v5722_v59  ;;  %v5731_v49 = vmul.f32 0.6931472, %v8705_v5  ;;  %v3948_v3 = vmax.f32 %v3801_v40, 0.0  ;;  %v4295_v40 = vpop.f32.mrf.mxu0 }
 0x5b2   : > { %v7087_v58 = vsel %vm4717_vm3, %v6831_v23, 0.0  ;;  %v6832_v15 = vadd.f32 %v5728_v60, %v12361_v9  ;;  %v5741_v24 = vmul.f32 -0.5, %v12411_v6  ;;  %v5302_v33 = vsub.f32 0.0, %v5174_v62  ;;  %v12474_v9 = vpop.f32.mrf.mxu1 }
 0x5b3   : > { %v7213_v25 = vadd.f32 %v7212_v37, %v7087_v58  ;;  %v5737_v53 = vsel %vm12453_vm14, %v5734_v12, %v5731_v49  ;;  %v5750_v16 = vmul.f32 -0.5, %v12422_v35  ;;  %v3945_v1 = vmax.f32 %v12393_v61, 0.0  ;;  %v9195_v58 = vld [vmem:[%s9487_s22 + $0x38] sm:$0xff] }
 0x5b4   : > { %v5756_v17 = vadd.f32 1.0, %v12462_v34  ;;  %v7088_v41 = vsel %vm4717_vm3, %v6832_v15, 0.0  ;;  %v6833_v32 = vadd.f32 %v5737_v53, %v12371_v48  ;;  %v5441_v37 = vmul.f32 1.442695, %v5302_v33  ;;  %v3806_v19 = vpop.f32.mrf.mxu1  ;;  %v4297_v15 = vpop.f32.mrf.mxu0 }
 0x5b5   : > { %v4018_v46 = vpack.c.bf16 %v3948_v3, %v3946_v13  ;;  %v12476_v55 = vadd.f32 %v7281_v63, %v7088_v41  ;;  %v5744_v8 = vand.u32 2147483647, %v12411_v6  ;;  %v4017_v45 = vpack.c.bf16 %v3947_v44, %v3945_v1 }
 0x5b6   : > { %8714 = vlog2.f32 %v5756_v17  ;;  %v7089_v36 = vsel %vm4718_vm4, %v6833_v32, 0.0  ;;  %v5742_v23 = vadd.f32 1.0, %v5741_v24  ;;  %v12482_v48 = vadd.f32 %v4293_v26, %v12253_v30 }
 0x5b7   : > { %8716 = vpow2.f32 %v5441_v37  ;;  %4541 = vmatprep.mubr.bf16.mxu0 %v4018_v46  ;;  %v7214_v59 = vadd.f32 %v7213_v25, %v7089_v36  ;;  %v4786_v63 = vmax.f32 %v12299_v51, 0.0  ;;  %v5751_v21 = vadd.f32 1.0, %v5750_v16 }
 0x5b8   : > { %v8709_v13 = vpop.eup %8708  ;;  %v12486_v5 = vadd.f32 %v4295_v40, %v12259_v22  ;;  %4542 = vmatmul.mubr.bf16.gmra.mxu0 %v4017_v45  ;;  %v4787_v12 = vmax.f32 %v12307_v20, 0.0  ;;  %v4915_v44 = vmul.f32 %v9194_v29, %v12307_v20  ;;  %v5753_v62 = vand.u32 2147483647, %v12422_v35  ;;  %v9196_v20 = vld [vmem:[%s9487_s22 + $0x48] sm:$0xff] }
 0x5b9   : > { %v5175_v26 = vand.u32 2147483647, %v12482_v48  ;;  %v4914_v60 = vmul.f32 %v9195_v58, %v12299_v51  ;;  %v5740_v49 = vmul.f32 0.6931472, %v8709_v13  ;;  %v4788_v3 = vmax.f32 %v12352_v0, 0.0  ;;  %v4299_v13 = vpop.f32.mrf.mxu0 }
 0x5ba   : > { %v5176_v25 = vand.u32 2147483647, %v12486_v5  ;;  %v5743_v33 = vmul.f32 %v12411_v6, %v5742_v23  ;;  %vm12498_vm1 = vcmp.lt.f32.partialorder %v5744_v8, 0.0004427343  ;;  %v4916_v16 = vmul.f32 %v9196_v20, %v12352_v0  ;;  %v3808_v8 = vpop.f32.mrf.mxu1 }
 0x5bb   : > { %v8711_v24 = vpop.eup %8710  ;;  %v5303_v1 = vsub.f32 0.0, %v5175_v26  ;;  %v5752_v41 = vmul.f32 %v12422_v35, %v5751_v21  ;;  %v5759_v32 = vmul.f32 -0.5, %v12462_v34  ;;  %v5043_v46 = vsub.f32 %v4787_v12, %v4915_v44  ;;  %v4303_v53 = vpop.f32.mrf.mxu0 }
 0x5bc   : > { %v12504_v17 = vpop.eup %8712  ;;  %v5749_v51 = vmul.f32 0.6931472, %v8711_v24  ;;  %v5304_v37 = vsub.f32 0.0, %v5176_v25  ;;  %vm5754_vm2 = vcmp.lt.f32.partialorder %v5753_v62, 0.0004427343  ;;  %v5746_v45 = vsel %vm12498_vm1, %v5743_v33, %v5740_v49 }
 0x5bd   : > { %v5765_v6 = vadd.f32 1.0, %v12504_v17  ;;  %v5443_v40 = vmul.f32 1.442695, %v5303_v1  ;;  %v12512_v23 = vadd.f32 %v4297_v15, %v12253_v30  ;;  %v5042_v35 = vsub.f32 %v4786_v63, %v4914_v60  ;;  %v3810_v15 = vpop.f32.mrf.mxu1  ;;  %v9197_v63 = vld [vmem:[%s9487_s22 + $0x50] sm:$0xff] }
 0x5be   : > { %v5755_v36 = vsel %vm5754_vm2, %v5752_v41, %v5749_v51  ;;  %v5445_v0 = vmul.f32 1.442695, %v5304_v37  ;;  %v5762_v29 = vand.u32 2147483647, %v12462_v34  ;;  %v5044_v12 = vsub.f32 %v4788_v3, %v4916_v16 }
 0x5bf   : > { %v6835_v21 = vadd.f32 %v5755_v36, %v5043_v46  ;;  %8718 = vlog2.f32 %v5765_v6  ;;  %v5760_v44 = vadd.f32 1.0, %v5759_v32  ;;  %v4789_v62 = vmax.f32 %v12383_v42, 0.0 }
 0x5c0   : > { %8720 = vpow2.f32 %v5443_v40  ;;  %v6834_v26 = vadd.f32 %v5746_v45, %v5042_v35  ;;  %v5177_v25 = vand.u32 2147483647, %v12512_v23  ;;  %v4917_v60 = vmul.f32 %v9197_v63, %v12383_v42 }
 0x5c1   : > { %v7091_v49 = vsel %vm4719_vm5, %v6835_v21, 0.0  ;;  %8722 = vpow2.f32 %v5445_v0  ;;  %v3805_v3 = vadd.f32 %v12474_v9, %v12119_v7  ;;  %v12526_v33 = vadd.f32 %v4299_v13, %v12259_v22  ;;  %v4305_v0 = vpop.f32.mrf.mxu0 }
 0x5c2   : > { %v12519_v24 = vadd.f32 %v7214_v59, %v7091_v49  ;;  %vm12528_vm3 = vcmp.lt.f32.partialorder %v5762_v29, 0.0004427343  ;;  %v3807_v1 = vadd.f32 %v3806_v19, %v12115_v14  ;;  %v5305_v51 = vsub.f32 0.0, %v5177_v25 }
 0x5c3   : > { %v8715_v20 = vpop.eup %8714  ;;  %v3809_v59 = vadd.f32 %v3808_v8, %v12119_v7  ;;  %v5761_v32 = vmul.f32 %v12462_v34, %v5760_v44  ;;  %v5768_v9 = vmul.f32 -0.5, %v12504_v17  ;;  %v3811_v37 = vadd.f32 %v3810_v15, %v12115_v14 }
 0x5c4   : > { %v12534_v41 = vpop.eup %8716  ;;  %v5758_v42 = vmul.f32 0.6931472, %v8715_v20  ;;  %v7090_v46 = vsel %vm4718_vm4, %v6834_v26, 0.0  ;;  %v5447_v40 = vmul.f32 1.442695, %v5305_v51  ;;  %v12543_v19 = vadd.f32 %v4303_v53, %v12253_v30  ;;  %v9198_v53 = vld [vmem:[%s9487_s22 + $0x58] sm:$0xff] }
 0x5c5   : > { %v5774_v6 = vadd.f32 1.0, %v12534_v41  ;;  %v5045_v45 = vsub.f32 %v4789_v62, %v4917_v60  ;;  %v3949_v36 = vmax.f32 %v3805_v3, 0.0  ;;  %v5178_v34 = vand.u32 2147483647, %v12526_v33  ;;  %v3814_v3 = vpop.f32.mrf.mxu1 }
 0x5c6   : > { %v5764_v8 = vsel %vm12528_vm3, %v5761_v32, %v5758_v42  ;;  %v3950_v35 = vmax.f32 %v3807_v1, 0.0  ;;  %v3951_v61 = vmax.f32 %v3809_v59, 0.0  ;;  %v7283_v21 = vadd.f32 %v12476_v55, %v7090_v46  ;;  %v4307_v55 = vpop.f32.mrf.mxu0  ;;  %v9199_v42 = vld [vmem:[%s9487_s22 + $0x60] sm:$0xff] }
 0x5c7   : > { %v6836_v13 = vadd.f32 %v5764_v8, %v5044_v12  ;;  %8724 = vlog2.f32 %v5774_v6  ;;  %v5306_v29 = vsub.f32 0.0, %v5178_v34  ;;  %v3952_v44 = vmax.f32 %v3811_v37, 0.0 }
 0x5c8   : > { %8726 = vpow2.f32 %v5447_v40  ;;  %v5769_v49 = vadd.f32 1.0, %v5768_v9  ;;  %v5771_v62 = vand.u32 2147483647, %v12504_v17  ;;  %v5179_v25 = vand.u32 2147483647, %v12543_v19  ;;  %v9200_v40 = vld [vmem:[%s9487_s22 + $0x68] sm:$0xff] }
 0x5c9   : > { %v7092_v26 = vsel %vm4719_vm5, %v6836_v13, 0.0  ;;  %v4790_v12 = vmax.f32 %v12437_v50, 0.0  ;;  %v5449_v63 = vmul.f32 1.442695, %v5306_v29  ;;  %v4020_v60 = vpack.c.bf16 %v3952_v44, %v3950_v35  ;;  %v3816_v35 = vpop.f32.mrf.mxu1 }
 0x5ca   : > { %v12553_v15 = vadd.f32 %v7283_v21, %v7092_v26  ;;  %v4918_v20 = vmul.f32 %v9198_v53, %v12437_v50  ;;  %v4019_v58 = vpack.c.bf16 %v3951_v61, %v3949_v36  ;;  %v5307_v16 = vsub.f32 0.0, %v5179_v25  ;;  %v4309_v61 = vpop.f32.mrf.mxu0 }
 0x5cb   : > { %v12559_v1 = vadd.f32 %v4305_v0, %v12259_v22  ;;  %v4791_v59 = vmax.f32 %v12482_v48, 0.0  ;;  %v4919_v32 = vmul.f32 %v9199_v42, %v12482_v48  ;;  %v4792_v9 = vmax.f32 %v12486_v5, 0.0  ;;  %4551 = vmatprep.mubr.bf16.mxu0 %v4020_v60 }
 0x5cc   : > { %v8719_v51 = vpop.eup %8718  ;;  %8728 = vpow2.f32 %v5449_v63  ;;  %v5770_v50 = vmul.f32 %v12504_v17, %v5769_v49  ;;  %vm12568_vm4 = vcmp.lt.f32.partialorder %v5771_v62, 0.0004427343  ;;  %v4920_v8 = vmul.f32 %v9200_v40, %v12486_v5  ;;  %4552 = vmatmul.mubr.bf16.gmra.mxu0 %v4019_v58  ;;  %v9201_v5 = vld [vmem:[%s9487_s22 + $0x70] sm:$0xff] }
 0x5cd   : > { %v12565_v37 = vpop.eup %8720  ;;  %v5767_v46 = vmul.f32 0.6931472, %v8719_v51  ;;  %v4793_v34 = vmax.f32 %v12512_v23, 0.0  ;;  %v5451_v0 = vmul.f32 1.442695, %v5307_v16  ;;  %v5777_v21 = vmul.f32 -0.5, %v12534_v41 }
 0x5ce   : > { %v12574_v36 = vpop.eup %8722  ;;  %v5783_v48 = vadd.f32 1.0, %v12565_v37  ;;  %v5180_v13 = vand.u32 2147483647, %v12559_v1  ;;  %v4921_v44 = vmul.f32 %v9201_v5, %v12512_v23  ;;  %v5780_v49 = vand.u32 2147483647, %v12534_v41 }
 0x5cf   : > { %v5773_v17 = vsel %vm12568_vm4, %v5770_v50, %v5767_v46  ;;  %v5792_v29 = vadd.f32 1.0, %v12574_v36  ;;  %v12587_v62 = vadd.f32 %v4307_v55, %v12253_v30  ;;  %v5046_v25 = vsub.f32 %v4790_v12, %v4918_v20 }
 0x5d0   : > { %v6837_v26 = vadd.f32 %v5773_v17, %v5045_v45  ;;  %8730 = vlog2.f32 %v5783_v48  ;;  %v12589_v63 = vsub.f32 %v4791_v59, %v4919_v32  ;;  %v12592_v60 = vadd.f32 %v4309_v61, %v12259_v22  ;;  %v3818_v45 = vpop.f32.mrf.mxu1 }
 0x5d1   : > { %8732 = vlog2.f32 %v5792_v29  ;;  %v12596_v16 = vsub.f32 %v4792_v9, %v4920_v8  ;;  %v5308_v23 = vsub.f32 0.0, %v5180_v13  ;;  %v5778_v55 = vadd.f32 1.0, %v5777_v21 }
 0x5d2   : > { %v7093_v58 = vsel %vm4720_vm6, %v6837_v26, 0.0  ;;  %8734 = vpow2.f32 %v5451_v0  ;;  %v12601_v12 = vsub.f32 %v4793_v34, %v4921_v44  ;;  %vm12604_vm5 = vcmp.lt.f32.partialorder %v5780_v49, 0.0004427343  ;;  %v3820_v13 = vpop.f32.mrf.mxu1  ;;  %v9203_v44 = vld [vmem:[%s9487_s22 + $0x80] sm:$0xff] }
 0x5d3   : > { %v12599_v51 = vadd.f32 %v12519_v24, %v7093_v58  ;;  %v3815_v32 = vadd.f32 %v3814_v3, %v12119_v7  ;;  %v5453_v9 = vmul.f32 1.442695, %v5308_v23  ;;  %v5181_v46 = vand.u32 2147483647, %v12587_v62  ;;  %v9202_v24 = vld [vmem:[%s9487_s22 + $0x78] sm:$0xff] }
 0x5d4   : > { %v8725_v59 = vpop.eup %8724  ;;  %v12614_v40 = vmul.f32 %v9202_v24, %v12526_v33  ;;  %v5182_v48 = vand.u32 2147483647, %v12592_v60  ;;  %v5786_v34 = vmul.f32 -0.5, %v12565_v37  ;;  %v5795_v0 = vmul.f32 -0.5, %v12574_v36 }
 0x5d5   : > { %v12610_v50 = vpop.eup %8726  ;;  %v5776_v6 = vmul.f32 0.6931472, %v8725_v59  ;;  %8736 = vpow2.f32 %v5453_v9  ;;  %v5779_v61 = vmul.f32 %v12534_v41, %v5778_v55  ;;  %v3817_v17 = vadd.f32 %v3816_v35, %v12115_v14  ;;  %v4313_v55 = vpop.f32.mrf.mxu0 }
 0x5d6   : > { %v5801_v3 = vadd.f32 1.0, %v12610_v50  ;;  %v5309_v21 = vsub.f32 0.0, %v5181_v46  ;;  %v3819_v29 = vadd.f32 %v3818_v45, %v12119_v7  ;;  %v5789_v5 = vand.u32 2147483647, %v12565_v37 }
 0x5d7   : > { %v12627_v26 = vmul.f32 %v9203_v44, %v12543_v19  ;;  %v3953_v49 = vmax.f32 %v3815_v32, 0.0  ;;  %v5782_v23 = vsel %vm12604_vm5, %v5779_v61, %v5776_v6  ;;  %v5310_v41 = vsub.f32 0.0, %v5182_v48 }
 0x5d8   : > { %8738 = vlog2.f32 %v5801_v3  ;;  %v5455_v59 = vmul.f32 1.442695, %v5309_v21  ;;  %v3821_v35 = vadd.f32 %v3820_v13, %v12115_v14  ;;  %v5787_v45 = vadd.f32 1.0, %v5786_v34 }
 0x5d9   : > { %v12629_v58 = vpop.eup %8728  ;;  %v5796_v9 = vadd.f32 1.0, %v5795_v0  ;;  %v5798_v46 = vand.u32 2147483647, %v12574_v36  ;;  %v3954_v3 = vmax.f32 %v3817_v17, 0.0  ;;  %v3955_v32 = vmax.f32 %v3819_v29, 0.0  ;;  %v9204_v0 = vld [vmem:[%s9487_s22 + $0x88] sm:$0xff] }
 0x5da   : > { %v5810_v24 = vadd.f32 1.0, %v12629_v58  ;;  %8740 = vpow2.f32 %v5455_v59  ;;  %v5457_v44 = vmul.f32 1.442695, %v5310_v41  ;;  %v6838_v8 = vadd.f32 %v5782_v23, %v5046_v25 }
 0x5db   : > { %v3956_v42 = vmax.f32 %v3821_v35, 0.0  ;;  %v12637_v6 = vadd.f32 %v4313_v55, %v12253_v30  ;;  %v5804_v13 = vmul.f32 -0.5, %v12610_v50  ;;  %v4796_v34 = vmax.f32 %v12559_v1, 0.0 }
 0x5dc   : > { %8742 = vlog2.f32 %v5810_v24  ;;  %v4924_v61 = vmul.f32 %v9204_v0, %v12559_v1  ;;  %v5788_v29 = vmul.f32 %v12565_v37, %v5787_v45  ;;  %vm5790_vm12 = vcmp.lt.f32.partialorder %v5789_v5, 0.0004427343  ;;  %v4315_v24 = vpop.f32.mrf.mxu0 }
 0x5dd   : > { %v8731_v48 = vpop.eup %8730  ;;  %8744 = vpow2.f32 %v5457_v44  ;;  %v4022_v25 = vpack.c.bf16 %v3956_v42, %v3954_v3  ;;  %v5797_v41 = vmul.f32 %v12574_v36, %v5796_v9  ;;  %v4021_v35 = vpack.c.bf16 %v3955_v32, %v3953_v49 }
 0x5de   : > { %v8733_v21 = vpop.eup %8732  ;;  %v5785_v17 = vmul.f32 0.6931472, %v8731_v48  ;;  %v5183_v55 = vand.u32 2147483647, %v12637_v6  ;;  %v7094_v20 = vsel %vm4720_vm6, %v6838_v8, 0.0  ;;  %v5805_v45 = vadd.f32 1.0, %v5804_v13 }
 0x5df   : > { %v12644_v23 = vpop.eup %8734  ;;  %v5794_v59 = vmul.f32 0.6931472, %v8733_v21  ;;  %vm5799_vm15 = vcmp.lt.f32.partialorder %v5798_v46, 0.0004427343  ;;  %4561 = vmatprep.mubr.bf16.mxu0 %v4022_v25  ;;  %v5813_v49 = vmul.f32 -0.5, %v12629_v58  ;;  %v12655_v9 = vadd.f32 %v4315_v24, %v12259_v22  ;;  %v3824_v21 = vpop.f32.mrf.mxu1 }
 0x5e0   : > { %v5791_v1 = vsel %vm5790_vm12, %v5788_v29, %v5785_v17  ;;  %v5819_v44 = vadd.f32 1.0, %v12644_v23  ;;  %v5311_v3 = vsub.f32 0.0, %v5183_v55  ;;  %4562 = vmatmul.mubr.bf16.gmra.mxu0 %v4021_v35  ;;  %v7285_v8 = vadd.f32 %v12553_v15, %v7094_v20 }
 0x5e1   : > { %v6839_v37 = vadd.f32 %v5791_v1, %v12589_v63  ;;  %v5800_v5 = vsel %vm5799_vm15, %v5797_v41, %v5794_v59  ;;  %v5807_v63 = vand.u32 2147483647, %v12610_v50  ;;  %v15692_v48 = vmax.f32 %v12526_v33, 0.0  ;;  %v9205_v41 = vld [vmem:[%s9487_s22 + $0x90] sm:$0xff] }
 0x5e2   : > { %v6840_v36 = vadd.f32 %v5800_v5, %v12596_v16  ;;  %8746 = vlog2.f32 %v5819_v44  ;;  %v12657_v53 = vpop.eup %8736  ;;  %v5459_v32 = vmul.f32 1.442695, %v5311_v3  ;;  %v5806_v17 = vmul.f32 %v12610_v50, %v5805_v45  ;;  %v4317_v50 = vpop.f32.mrf.mxu0 }
 0x5e3   : > { %v7095_v46 = vsel %vm4721_vm7, %v6839_v37, 0.0  ;;  %v5050_v13 = vsub.f32 %v15692_v48, %v12614_v40  ;;  %v5828_v0 = vadd.f32 1.0, %v12657_v53  ;;  %v15693_v29 = vmax.f32 %v12543_v19, 0.0  ;;  %v3826_v44 = vpop.f32.mrf.mxu1 }
 0x5e4   : > { %v7217_v42 = vadd.f32 %v12599_v51, %v7095_v46  ;;  %v7096_v16 = vsel %vm4721_vm7, %v6840_v36, 0.0  ;;  %8748 = vpow2.f32 %v5459_v32  ;;  %v5814_v25 = vadd.f32 1.0, %v5813_v49  ;;  %v4319_v32 = vpop.f32.mrf.mxu0 }
 0x5e5   : > { %v8739_v15 = vpop.eup %8738  ;;  %v12670_v20 = vadd.f32 %v7285_v8, %v7096_v16  ;;  %v12676_v51 = vsub.f32 %v15693_v29, %v12627_v26  ;;  %8750 = vlog2.f32 %v5828_v0  ;;  %v5184_v33 = vand.u32 2147483647, %v12655_v9 }
 0x5e6   : > { %v5803_v31 = vmul.f32 0.6931472, %v8739_v15  ;;  %vm5808_vm6 = vcmp.lt.f32.partialorder %v5807_v63, 0.0004427343  ;;  %v12679_v40 = vsub.f32 %v4796_v34, %v4924_v61  ;;  %v4797_v59 = vmax.f32 %v12587_v62, 0.0 }
 0x5e7   : > { %v4925_v35 = vmul.f32 %v9205_v41, %v12587_v62  ;;  %v12684_v55 = vpop.eup %8740  ;;  %v5816_v26 = vand.u32 2147483647, %v12629_v58  ;;  %v5822_v24 = vmul.f32 -0.5, %v12644_v23  ;;  %v5312_v1 = vsub.f32 0.0, %v5184_v33 }
 0x5e8   : > { %v5809_v19 = vsel %vm5808_vm6, %v5806_v17, %v5803_v31  ;;  %v5831_v34 = vmul.f32 -0.5, %v12657_v53  ;;  %v5837_v61 = vadd.f32 1.0, %v12684_v55  ;;  %v12692_v45 = vadd.f32 %v3824_v21, %v12119_v7  ;;  %v3828_v21 = vpop.f32.mrf.mxu1 }
 0x5e9   : > { %v8743_v37 = vpop.eup %8742  ;;  %v6841_v5 = vadd.f32 %v5809_v19, %v12601_v12  ;;  %v5815_v36 = vmul.f32 %v12629_v58, %v5814_v25  ;;  %v5825_v49 = vand.u32 2147483647, %v12644_v23  ;;  %v5461_v8 = vmul.f32 1.442695, %v5312_v1  ;;  %v9206_v25 = vld [vmem:[%s9487_s22 + $0x98] sm:$0xff] }
 0x5ea   : > { %v12694_v62 = vpop.eup %8744  ;;  %v5812_v3 = vmul.f32 0.6931472, %v8743_v37  ;;  %8752 = vlog2.f32 %v5837_v61  ;;  %v12702_v63 = vadd.f32 %v4317_v50, %v12253_v30  ;;  %vm12704_vm7 = vcmp.lt.f32.partialorder %v5816_v26, 0.0004427343  ;;  %v3830_v61 = vpop.f32.mrf.mxu1 }
 0x5eb   : > { %v7097_v46 = vsel %vm4722_vm8, %v6841_v5, 0.0  ;;  %v5846_v12 = vadd.f32 1.0, %v12694_v62  ;;  %v5823_v58 = vadd.f32 1.0, %v5822_v24  ;;  %v5834_v0 = vand.u32 2147483647, %v12657_v53 }
 0x5ec   : > { %v7218_v16 = vadd.f32 %v7217_v42, %v7097_v46  ;;  %v5818_v15 = vsel %vm12704_vm7, %v5815_v36, %v5812_v3  ;;  %v5832_v17 = vadd.f32 1.0, %v5831_v34  ;;  %v4798_v29 = vmax.f32 %v12592_v60, 0.0  ;;  %v4323_v46 = vpop.f32.mrf.mxu0 }
 0x5ed   : > { %8754 = vlog2.f32 %v5846_v12  ;;  %v5840_v31 = vmul.f32 -0.5, %v12684_v55  ;;  %v12715_v42 = vmul.f32 %v9206_v25, %v12592_v60  ;;  %v12718_v33 = vadd.f32 %v4319_v32, %v12259_v22 }
 0x5ee   : > { %8756 = vpow2.f32 %v5461_v8  ;;  %vm12720_vm0 = vcmp.lt.f32.partialorder %v5825_v49, 0.0004427343  ;;  %v5053_v19 = vsub.f32 %v4797_v59, %v4925_v35  ;;  %v3957_v26 = vmax.f32 %v12692_v45, 0.0 }
 0x5ef   : > { %v8747_v41 = vpop.eup %8746  ;;  %v5185_v24 = vand.u32 2147483647, %v12702_v63  ;;  %v6842_v1 = vadd.f32 %v5818_v15, %v5050_v13  ;;  %v5824_v5 = vmul.f32 %v12644_v23, %v5823_v58  ;;  %vm12727_vm13 = vcmp.lt.f32.partialorder %v5834_v0, 0.0004427343 }
 0x5f0   : > { %v5821_v37 = vmul.f32 0.6931472, %v8747_v41  ;;  %v5833_v3 = vmul.f32 %v12657_v53, %v5832_v17  ;;  %v3827_v36 = vadd.f32 %v3826_v44, %v12115_v14  ;;  %v3829_v59 = vadd.f32 %v3828_v21, %v12119_v7 }
 0x5f1   : > { %v5313_v49 = vsub.f32 0.0, %v5185_v24  ;;  %v12734_v35 = vpop.eup %8748  ;;  %v5841_v45 = vadd.f32 1.0, %v5840_v31  ;;  %v5843_v23 = vand.u32 2147483647, %v12684_v55  ;;  %v5186_v8 = vand.u32 2147483647, %v12718_v33 }
 0x5f2   : > { %v5827_v13 = vsel %vm12720_vm0, %v5824_v5, %v5821_v37  ;;  %v8751_v12 = vpop.eup %8750  ;;  %v5849_v53 = vmul.f32 -0.5, %v12694_v62  ;;  %v5855_v44 = vadd.f32 1.0, %v12734_v35  ;;  %v3831_v7 = vadd.f32 %v3830_v61, %v12115_v14 }
 0x5f3   : > { %v6843_v32 = vadd.f32 %v5827_v13, %v12676_v51  ;;  %v7098_v48 = vsel %vm4722_vm8, %v6842_v1, 0.0  ;;  %v5830_v58 = vmul.f32 0.6931472, %v8751_v12  ;;  %v5463_v0 = vmul.f32 1.442695, %v5313_v49  ;;  %v4325_v1 = vpop.f32.mrf.mxu0 }
 0x5f4   : > { %v5314_v21 = vsub.f32 0.0, %v5186_v8  ;;  %8758 = vlog2.f32 %v5855_v44  ;;  %v3959_v17 = vmax.f32 %v3829_v59, 0.0  ;;  %v12749_v31 = vadd.f32 %v4323_v46, %v12253_v30 }
 0x5f5   : > { %v7099_v15 = vsel %vm4723_vm9, %v6843_v32, 0.0  ;;  %v5836_v25 = vsel %vm12727_vm13, %v5833_v3, %v5830_v58  ;;  %8760 = vpow2.f32 %v5463_v0  ;;  %v5850_v41 = vadd.f32 1.0, %v5849_v53  ;;  %v4327_v28 = vpop.f32.mrf.mxu0 }
 0x5f6   : > { %v7219_v51 = vadd.f32 %v7218_v16, %v7099_v15  ;;  %v5465_v14 = vmul.f32 1.442695, %v5314_v21  ;;  %v6844_v27 = vadd.f32 %v5836_v25, %v12679_v40  ;;  %v3958_v50 = vmax.f32 %v3827_v36, 0.0  ;;  %v9207_v21 = vld [vmem:[%s9487_s22 + $0xa0] sm:$0xff] }
 0x5f7   : > { %v3960_v24 = vmax.f32 %v3831_v7, 0.0  ;;  %v8753_v37 = vpop.eup %8752  ;;  %v7287_v5 = vadd.f32 %v12670_v20, %v7098_v48  ;;  %v5842_v61 = vmul.f32 %v12684_v55, %v5841_v45  ;;  %v5852_v49 = vand.u32 2147483647, %v12694_v62  ;;  %v4329_v60 = vpop.f32.mrf.mxu0 }
 0x5f8   : > { %8762 = vpow2.f32 %v5465_v14  ;;  %v7100_v16 = vsel %vm4723_vm9, %v6844_v27, 0.0  ;;  %v5839_v34 = vmul.f32 0.6931472, %v8753_v37  ;;  %v5187_v59 = vand.u32 2147483647, %v12749_v31 }
 0x5f9   : > { %v4024_v3 = vpack.c.bf16 %v3960_v24, %v3958_v50  ;;  %v7288_v13 = vadd.f32 %v7287_v5, %v7100_v16  ;;  %vm5844_vm8 = vcmp.lt.f32.partialorder %v5843_v23, 0.0004427343  ;;  %v5858_v36 = vmul.f32 -0.5, %v12734_v35  ;;  %v4333_v37 = vpop.f32.mrf.mxu0 }
 0x5fa   : > { %v8755_v40 = vpop.eup %8754  ;;  %v4023_v8 = vpack.c.bf16 %v3959_v17, %v3957_v26  ;;  %v5845_v20 = vsel %vm5844_vm8, %v5842_v61, %v5839_v34  ;;  %v5851_v45 = vmul.f32 %v12694_v62, %v5850_v41  ;;  %v12765_v12 = vadd.f32 %v4325_v1, %v12259_v22 }
 0x5fb   : > { %v12761_v46 = vpop.eup %8756  ;;  %v5848_v55 = vmul.f32 0.6931472, %v8755_v40  ;;  %4571 = vmatprep.mubr.bf16.mxu0 %v4024_v3  ;;  %v6845_v32 = vadd.f32 %v5845_v20, %v5053_v19  ;;  %v5054_v53 = vsub.f32 %v4798_v29, %v12715_v42  ;;  %vm5853_vm9 = vcmp.lt.f32.partialorder %v5852_v49, 0.0004427343 }
 0x5fc   : > { %v5864_v26 = vadd.f32 1.0, %v12761_v46  ;;  %4572 = vmatmul.mubr.bf16.gmra.mxu0 %v4023_v8  ;;  %v5315_v44 = vsub.f32 0.0, %v5187_v59  ;;  %v5859_v48 = vadd.f32 1.0, %v5858_v36  ;;  %v5188_v19 = vand.u32 2147483647, %v12765_v12 }
 0x5fd   : > { %v5854_v23 = vsel %vm5853_vm9, %v5851_v45, %v5848_v55  ;;  %v7101_v62 = vsel %vm4724_vm10, %v6845_v32, 0.0  ;;  %v12775_v0 = vadd.f32 %v4327_v28, %v12253_v30  ;;  %v4799_v42 = vmax.f32 %v12637_v6, 0.0  ;;  %v9208_v28 = vld [vmem:[%s9487_s22 + $0xa8] sm:$0xff] }
 0x5fe   : > { %v6846_v7 = vadd.f32 %v5854_v23, %v5054_v53  ;;  %8764 = vlog2.f32 %v5864_v26  ;;  %v7220_v58 = vadd.f32 %v7219_v51, %v7101_v62  ;;  %v4927_v15 = vmul.f32 %v9207_v21, %v12637_v6 }
 0x5ff   : > { %v5861_v17 = vand.u32 2147483647, %v12734_v35  ;;  %v5467_v14 = vmul.f32 1.442695, %v5315_v44  ;;  %v5860_v51 = vmul.f32 %v12734_v35, %v5859_v48  ;;  %v5316_v24 = vsub.f32 0.0, %v5188_v19 }
 0x600   : > { %v7102_v29 = vsel %vm4724_vm10, %v6846_v7, 0.0  ;;  %v5189_v1 = vand.u32 2147483647, %v12775_v0  ;;  %v12788_v54 = vadd.f32 %v4329_v60, %v12259_v22  ;;  %v5055_v5 = vsub.f32 %v4799_v42, %v4927_v15 }
 0x601   : > { %v7289_v25 = vadd.f32 %v7288_v13, %v7102_v29  ;;  %v8759_v27 = vpop.eup %8758  ;;  %vm5862_vm10 = vcmp.lt.f32.partialorder %v5861_v17, 0.0004427343  ;;  %v5867_v6 = vmul.f32 -0.5, %v12761_v46  ;;  %8766 = vpow2.f32 %v5467_v14  ;;  %v4335_v13 = vpop.f32.mrf.mxu0 }
 0x602   : > { %v12784_v41 = vpop.eup %8760  ;;  %v5857_v50 = vmul.f32 0.6931472, %v8759_v27  ;;  %v5469_v3 = vmul.f32 1.442695, %v5316_v24  ;;  %v5317_v59 = vsub.f32 0.0, %v5189_v1  ;;  %v4800_v8 = vmax.f32 %v12655_v9, 0.0 }
 0x603   : > { %v5873_v61 = vadd.f32 1.0, %v12784_v41  ;;  %v5190_v40 = vand.u32 2147483647, %v12788_v54  ;;  %v5868_v20 = vadd.f32 1.0, %v5867_v6  ;;  %v12800_v55 = vadd.f32 %v4333_v37, %v12253_v30  ;;  %v4337_v7 = vpop.f32.mrf.mxu0  ;;  %v9209_v24 = vld [vmem:[%s9487_s22 + $0xb0] sm:$0xff] }
 0x604   : > { %v5863_v35 = vsel %vm5862_vm10, %v5860_v51, %v5857_v50  ;;  %v4928_v32 = vmul.f32 %v9208_v28, %v12655_v9  ;;  %v5870_v53 = vand.u32 2147483647, %v12761_v46  ;;  %v5876_v26 = vmul.f32 -0.5, %v12784_v41 }
 0x605   : > { %v12792_v49 = vpop.eup %8762  ;;  %v6847_v16 = vadd.f32 %v5863_v35, %v5055_v5  ;;  %8768 = vlog2.f32 %v5873_v61  ;;  %v5471_v44 = vmul.f32 1.442695, %v5317_v59  ;;  %v5318_v62 = vsub.f32 0.0, %v5190_v40  ;;  %v4339_v5 = vpop.f32.mrf.mxu0 }
 0x606   : > { %v5882_v34 = vadd.f32 1.0, %v12792_v49  ;;  %v5869_v19 = vmul.f32 %v12761_v46, %v5868_v20  ;;  %v12811_v60 = vadd.f32 %v4335_v13, %v12259_v22  ;;  %v5056_v9 = vsub.f32 %v4800_v8, %v4928_v32 }
 0x607   : > { %v7103_v36 = vsel %vm4725_vm11, %v6847_v16, 0.0  ;;  %vm5871_vm14 = vcmp.lt.f32.partialorder %v5870_v53, 0.0004427343  ;;  %v5877_v42 = vadd.f32 1.0, %v5876_v26  ;;  %v12814_v21 = vadd.f32 %v4337_v7, %v12253_v30  ;;  %v9210_v16 = vld [vmem:[%s9487_s22 + $0xb8] sm:$0xff] }
 0x608   : > { %v12802_v45 = vadd.f32 %v7220_v58, %v7103_v36  ;;  %8770 = vlog2.f32 %v5882_v34  ;;  %v5191_v58 = vand.u32 2147483647, %v12800_v55  ;;  %v5885_v17 = vmul.f32 -0.5, %v12792_v49 }
 0x609   : > { %8772 = vpow2.f32 %v5469_v3  ;;  %v5473_v14 = vmul.f32 1.442695, %v5318_v62  ;;  %v5192_v27 = vand.u32 2147483647, %v12811_v60  ;;  %v4801_v50 = vmax.f32 %v12702_v63, 0.0  ;;  %v4343_v62 = vpop.f32.mrf.mxu0 }
 0x60a   : > { %8774 = vpow2.f32 %v5471_v44  ;;  %v5319_v46 = vsub.f32 0.0, %v5191_v58  ;;  %v4929_v1 = vmul.f32 %v9209_v24, %v12702_v63  ;;  %v5879_v37 = vand.u32 2147483647, %v12784_v41 }
 0x60b   : > { %v8765_v23 = vpop.eup %8764  ;;  %v4802_v35 = vmax.f32 %v12718_v33, 0.0  ;;  %v4930_v34 = vmul.f32 %v9210_v16, %v12718_v33  ;;  %v5193_v3 = vand.u32 2147483647, %v12814_v21  ;;  %v5878_v59 = vmul.f32 %v12784_v41, %v5877_v42  ;;  %v9212_v16 = vld [vmem:[%s9487_s22 + $0xc8] sm:$0xff] }
 0x60c   : > { %v5866_v48 = vmul.f32 0.6931472, %v8765_v23  ;;  %v5886_v40 = vadd.f32 1.0, %v5885_v17  ;;  %v5888_v13 = vand.u32 2147483647, %v12792_v49  ;;  %8776 = vpow2.f32 %v5473_v14 }
 0x60d   : > { %v5475_v36 = vmul.f32 1.442695, %v5319_v46  ;;  %v5320_v8 = vsub.f32 0.0, %v5192_v27  ;;  %v12833_v20 = vadd.f32 %v4339_v5, %v12259_v22  ;;  %v5058_v33 = vsub.f32 %v4802_v35, %v4930_v34 }
 0x60e   : > { %v5872_v29 = vsel %vm5871_vm14, %v5869_v19, %v5866_v48  ;;  %v12824_v6 = vpop.eup %8766  ;;  %v5321_v53 = vsub.f32 0.0, %v5193_v3  ;;  %v5887_v41 = vmul.f32 %v12792_v49, %v5886_v40  ;;  %vm5889_vm1 = vcmp.lt.f32.partialorder %v5888_v13, 0.0004427343 }
 0x60f   : > { %v6848_v15 = vadd.f32 %v5872_v29, %v5056_v9  ;;  %v5891_v44 = vadd.f32 1.0, %v12824_v6  ;;  %8778 = vpow2.f32 %v5475_v36  ;;  %v5477_v48 = vmul.f32 1.442695, %v5320_v8  ;;  %v9215_v8 = vld [vmem:[%s9487_s22 + $0xe0] sm:$0xff] }
 0x610   : > { %v5194_v19 = vand.u32 2147483647, %v12833_v20  ;;  %vm15700_vm2 = vcmp.lt.s32.totalorder %v10256_v52, 1100  ;;  %v12846_v49 = vadd.f32 %v4343_v62, %v12253_v30  ;;  %v4803_v52 = vmax.f32 %v12749_v31, 0.0 }
 0x611   : > { %v7104_v51 = vsel %vm4725_vm11, %v6848_v15, 0.0  ;;  %vm5880_vm11 = vcmp.lt.f32.partialorder %v5879_v37, 0.0004427343  ;;  %v5479_v15 = vmul.f32 1.442695, %v5321_v53  ;;  %8780 = vlog2.f32 %v5891_v44  ;;  %vm15701_vm3 = vmmov %vm15700_vm2  ;;  %v9211_v37 = vld [vmem:[%s9487_s22 + $0xc0] sm:$0xff] }
 0x612   : > { %v7290_v61 = vadd.f32 %v7289_v25, %v7104_v51  ;;  %v8769_v39 = vpop.eup %8768  ;;  %v5057_v25 = vsub.f32 %v4801_v50, %v4929_v1  ;;  %8782 = vpow2.f32 %v5477_v48  ;;  %v5322_v27 = vsub.f32 0.0, %v5194_v19  ;;  %v4345_v51 = vpop.f32.mrf.mxu0 }
 0x613   : > { %v5875_v63 = vmul.f32 0.6931472, %v8769_v39  ;;  %8784 = vpow2.f32 %v5479_v15  ;;  %v5195_v50 = vand.u32 2147483647, %v12846_v49  ;;  %v4931_v5 = vmul.f32 %v9211_v37, %v12749_v31  ;;  %v9213_v39 = vld [vmem:[%s9487_s22 + $0xd0] sm:$0xff] }
 0x614   : > { %v4804_v35 = vmax.f32 %v12765_v12, 0.0  ;;  %v4932_v34 = vmul.f32 %v9212_v16, %v12765_v12  ;;  %v4805_v3 = vmax.f32 %v12775_v0, 0.0  ;;  %v4806_v40 = vmax.f32 %v12788_v54, 0.0  ;;  %v4347_v13 = vpop.f32.mrf.mxu0 }
 0x615   : > { %v8771_v28 = vpop.eup %8770  ;;  %v5881_v32 = vsel %vm5880_vm11, %v5878_v59, %v5875_v63  ;;  %v4933_v59 = vmul.f32 %v9213_v39, %v12775_v0  ;;  %v9214_v63 = vld [vmem:[%s9487_s22 + $0xd8] sm:$0xff]  ;;  %v4807_v31 = vmax.f32 %v12800_v55, 0.0  ;;  %v4808_v12 = vmax.f32 %v12811_v60, 0.0 }
 0x616   : > { %v6849_v26 = vadd.f32 %v5881_v32, %v5057_v25  ;;  %v5884_v23 = vmul.f32 0.6931472, %v8771_v28  ;;  %v12837_v7 = vpop.eup %8772  ;;  %v4934_v36 = vmul.f32 %v9214_v63, %v12788_v54  ;;  %v4935_v25 = vmul.f32 %v9215_v8, %v12800_v55  ;;  %v9216_v32 = vld [vmem:[%s9487_s22 + $0xe8] sm:$0xff] }
 0x617   : > { %v5900_v17 = vadd.f32 1.0, %v12837_v7  ;;  %v12849_v14 = vpop.eup %8774  ;;  %v5323_v28 = vsub.f32 0.0, %v5195_v50  ;;  %v12878_v0 = vadd.f32 %v4345_v51, %v12259_v22  ;;  %v12880_v53 = vsub.f32 %v4803_v52, %v4931_v5 }
 0x618   : > { %v7105_v58 = vsel %vm15700_vm2, %v6849_v26, 0.0  ;;  %v5890_v9 = vsel %vm5889_vm1, %v5887_v41, %v5884_v23  ;;  %v5909_v24 = vadd.f32 1.0, %v12849_v14  ;;  %v12884_v26 = vadd.f32 %v4347_v13, %v12253_v30 }
 0x619   : > { %v12843_v29 = vadd.f32 %v12802_v45, %v7105_v58  ;;  %v6850_v42 = vadd.f32 %v5890_v9, %v5058_v33  ;;  %8786 = vlog2.f32 %v5900_v17  ;;  %v12857_v1 = vpop.eup %8776  ;;  %v4936_v33 = vmul.f32 %v9216_v32, %v12811_v60  ;;  %v4349_v9 = vpop.f32.mrf.mxu0  ;;  %v9217_v17 = vld [vmem:[%s9487_s22 + $0xf0] sm:$0xff] }
 0x61a   : > { %8788 = vlog2.f32 %v5909_v24  ;;  %v5918_v54 = vadd.f32 1.0, %v12857_v1  ;;  %v5894_v23 = vmul.f32 -0.5, %v12824_v6  ;;  %v5897_v41 = vand.u32 2147483647, %v12824_v6 }
 0x61b   : > { %v7106_v46 = vsel %vm15701_vm3, %v6850_v42, 0.0  ;;  %v12890_v44 = vsub.f32 %v4804_v35, %v4932_v34  ;;  %v5903_v60 = vmul.f32 -0.5, %v12837_v7  ;;  %v12893_v62 = vsub.f32 %v4805_v3, %v4933_v59  ;;  %v9218_v34 = vld [vmem:[%s9487_s22 + $0xf8] sm:$0xff]  ;;  %v4353_v59 = vpop.f32.mrf.mxu0 }
 0x61c   : > { %v12853_v45 = vadd.f32 %v7290_v61, %v7106_v46  ;;  %v5481_v61 = vmul.f32 1.442695, %v5322_v27  ;;  %v12886_v55 = vpop.eup %8778  ;;  %v12895_v48 = vsub.f32 %v4806_v40, %v4934_v36  ;;  %v12897_v19 = vsub.f32 %v4807_v31, %v4935_v25 }
 0x61d   : > { %v5483_v58 = vmul.f32 1.442695, %v5323_v28  ;;  %v12899_v42 = vsub.f32 %v4808_v12, %v4936_v33  ;;  %v4809_v15 = vmax.f32 %v12814_v21, 0.0  ;;  %v4937_v46 = vmul.f32 %v9217_v17, %v12814_v21 }
 0x61e   : > { %8790 = vpow2.f32 %v5481_v61  ;;  %v5196_v27 = vand.u32 2147483647, %v12878_v0  ;;  %v8781_v51 = vpop.eup %8780  ;;  %v5912_v50 = vmul.f32 -0.5, %v12849_v14  ;;  %v5927_v24 = vadd.f32 1.0, %v12886_v55 }
 0x61f   : > { %8792 = vlog2.f32 %v5918_v54  ;;  %v5197_v52 = vand.u32 2147483647, %v12884_v26  ;;  %v12908_v37 = vpop.eup %8782  ;;  %v5895_v5 = vadd.f32 1.0, %v5894_v23  ;;  %vm12910_vm4 = vcmp.lt.f32.partialorder %v5897_v41, 0.0004427343 }
 0x620   : > { %v5904_v61 = vadd.f32 1.0, %v5903_v60  ;;  %v5906_v21 = vand.u32 2147483647, %v12837_v7  ;;  %v4810_v16 = vmax.f32 %v12833_v20, 0.0  ;;  %v4938_v3 = vmul.f32 %v9218_v34, %v12833_v20  ;;  %v12921_v40 = vpop.eup %8784  ;;  %v9219_v34 = vld [vmem:[%s9487_s22 + $0x100] sm:$0xff] }
 0x621   : > { %8794 = vpow2.f32 %v5483_v58  ;;  %v12919_v39 = vadd.f32 %v4349_v9, %v12259_v22  ;;  %v5893_v13 = vmul.f32 0.6931472, %v8781_v51  ;;  %v5915_v63 = vand.u32 2147483647, %v12849_v14 }
 0x622   : > { %v12924_v36 = vsub.f32 %v4809_v15, %v4937_v46  ;;  %v5324_v31 = vsub.f32 0.0, %v5196_v27  ;;  %v5913_v25 = vadd.f32 1.0, %v5912_v50  ;;  %8796 = vlog2.f32 %v5927_v24 }
 0x623   : > { %v5936_v28 = vadd.f32 1.0, %v12908_v37  ;;  %v5325_v12 = vsub.f32 0.0, %v5197_v52  ;;  %v5896_v20 = vmul.f32 %v12824_v6, %v5895_v5  ;;  %vm12928_vm5 = vcmp.lt.f32.partialorder %v5906_v21, 0.0004427343  ;;  %v4355_v21 = vpop.f32.mrf.mxu0 }
 0x624   : > { %v5921_v33 = vmul.f32 -0.5, %v12857_v1  ;;  %v12934_v54 = vadd.f32 %v4353_v59, %v12253_v30  ;;  %v5905_v23 = vmul.f32 %v12837_v7, %v5904_v61  ;;  %v5945_v41 = vadd.f32 1.0, %v12921_v40 }
 0x625   : > { %v12938_v60 = vsub.f32 %v4810_v16, %v4938_v3  ;;  %v5198_v58 = vand.u32 2147483647, %v12919_v39  ;;  %v5899_v6 = vsel %vm12910_vm4, %v5896_v20, %v5893_v13  ;;  %vm12943_vm12 = vcmp.lt.f32.partialorder %v5915_v63, 0.0004427343  ;;  %v4357_v32 = vpop.f32.mrf.mxu0 }
 0x626   : > { %v8787_v8 = vpop.eup %8786  ;;  %v5930_v17 = vmul.f32 -0.5, %v12886_v55  ;;  %v5485_v46 = vmul.f32 1.442695, %v5324_v31  ;;  %v5914_v7 = vmul.f32 %v12849_v14, %v5913_v25  ;;  %8798 = vlog2.f32 %v5936_v28 }
 0x627   : > { %v5902_v9 = vmul.f32 0.6931472, %v8787_v8  ;;  %v8789_v27 = vpop.eup %8788  ;;  %v4811_v51 = vmax.f32 %v12846_v49, 0.0  ;;  %v5487_v50 = vmul.f32 1.442695, %v5325_v12  ;;  %v5922_v52 = vadd.f32 1.0, %v5921_v33 }
 0x628   : > { %v5924_v5 = vand.u32 2147483647, %v12857_v1  ;;  %v5326_v35 = vsub.f32 0.0, %v5198_v58  ;;  %v5199_v61 = vand.u32 2147483647, %v12934_v54  ;;  %v6851_v16 = vadd.f32 %v5899_v6, %v12880_v53  ;;  %v9220_v58 = vld [vmem:[%s9487_s22 + $0x108] sm:$0xff] }
 0x629   : > { %8800 = vlog2.f32 %v5945_v41  ;;  %v4939_v3 = vmul.f32 %v9219_v34, %v12846_v49  ;;  %v4812_v14 = vmax.f32 %v12878_v0, 0.0  ;;  %v5908_v59 = vsel %vm12928_vm5, %v5905_v23, %v5902_v9 }
 0x62a   : > { %v5931_v13 = vadd.f32 1.0, %v5930_v17  ;;  %v5933_v63 = vand.u32 2147483647, %v12886_v55  ;;  %8802 = vpow2.f32 %v5485_v46  ;;  %v5911_v31 = vmul.f32 0.6931472, %v8789_v27 }
 0x62b   : > { %v12950_v24 = vpop.eup %8790  ;;  %8804 = vpow2.f32 %v5487_v50  ;;  %v5327_v25 = vsub.f32 0.0, %v5199_v61  ;;  %v5923_v28 = vmul.f32 %v12857_v1, %v5922_v52  ;;  %vm12963_vm15 = vcmp.lt.f32.partialorder %v5924_v5, 0.0004427343 }
 0x62c   : > { %v5954_v8 = vadd.f32 1.0, %v12950_v24  ;;  %v8793_v53 = vpop.eup %8792  ;;  %v5489_v12 = vmul.f32 1.442695, %v5326_v35  ;;  %v12968_v20 = vadd.f32 %v4355_v21, %v12259_v22  ;;  %vm15710_vm6 = vcmp.lt.s32.totalorder %v10259_v43, 1100  ;;  %v4359_v35 = vpop.f32.mrf.mxu0 }
 0x62d   : > { %v7107_v33 = vsel %vm15710_vm6, %v6851_v16, 0.0  ;;  %v5939_v23 = vmul.f32 -0.5, %v12908_v37  ;;  %v12973_v41 = vsub.f32 %v4811_v51, %v4939_v3  ;;  %v4940_v6 = vmul.f32 %v9220_v58, %v12878_v0  ;;  %vm15713_vm0 = vmmov %vm15710_vm6 }
 0x62e   : > { %v12977_v1 = vpop.eup %8794  ;;  %v6852_v9 = vadd.f32 %v5908_v59, %v12890_v44  ;;  %v5932_v17 = vmul.f32 %v12886_v55, %v5931_v13  ;;  %vm12981_vm7 = vcmp.lt.f32.partialorder %v5933_v63, 0.0004427343  ;;  %v5942_v27 = vand.u32 2147483647, %v12908_v37 }
 0x62f   : > { %v5917_v50 = vsel %vm12943_vm12, %v5914_v7, %v5911_v31  ;;  %v5920_v51 = vmul.f32 0.6931472, %v8793_v53  ;;  %8806 = vlog2.f32 %v5954_v8  ;;  %v5491_v52 = vmul.f32 1.442695, %v5327_v25  ;;  %v8797_v5 = vpop.eup %8796 }
 0x630   : > { %v7223_v0 = vadd.f32 %v12843_v29, %v7107_v33  ;;  %8808 = vpow2.f32 %v5489_v12  ;;  %v5200_v44 = vand.u32 2147483647, %v12968_v20  ;;  %v12991_v55 = vadd.f32 %v4357_v32, %v12253_v30 }
 0x631   : > { %v5940_v61 = vadd.f32 1.0, %v5939_v23  ;;  %v5948_v21 = vmul.f32 -0.5, %v12921_v40  ;;  %v5963_v15 = vadd.f32 1.0, %v12977_v1  ;;  %v12995_v7 = vsub.f32 %v4812_v14, %v4940_v6 }
 0x632   : > { %v7108_v16 = vsel %vm15713_vm0, %v6852_v9, 0.0  ;;  %v6853_v29 = vadd.f32 %v5917_v50, %v12893_v62  ;;  %vm13000_vm13 = vcmp.lt.f32.partialorder %v5942_v27, 0.0004427343  ;;  %v5951_v3 = vand.u32 2147483647, %v12921_v40  ;;  %v9221_v62 = vld [vmem:[%s9487_s22 + $0x110] sm:$0xff] }
 0x633   : > { %v5957_v59 = vmul.f32 -0.5, %v12950_v24  ;;  %v5926_v13 = vsel %vm12963_vm15, %v5923_v28, %v5920_v51  ;;  %v5929_v63 = vmul.f32 0.6931472, %v8797_v5  ;;  %8810 = vpow2.f32 %v5491_v52  ;;  %v8799_v43 = vpop.eup %8798  ;;  %v4363_v28 = vpop.f32.mrf.mxu0 }
 0x634   : > { %v13009_v14 = vadd.f32 %v4359_v35, %v12259_v22  ;;  %v4813_v31 = vmax.f32 %v12884_v26, 0.0  ;;  %v4941_v8 = vmul.f32 %v9221_v62, %v12884_v26  ;;  %v5328_v25 = vsub.f32 0.0, %v5200_v44 }
 0x635   : > { %v5201_v53 = vand.u32 2147483647, %v12991_v55  ;;  %v7292_v12 = vadd.f32 %v12853_v45, %v7108_v16  ;;  %v5941_v32 = vmul.f32 %v12908_v37, %v5940_v61  ;;  %v5949_v49 = vadd.f32 1.0, %v5948_v21 }
 0x636   : > { %8812 = vlog2.f32 %v5963_v15  ;;  %v8801_v33 = vpop.eup %8800  ;;  %vm15716_vm8 = vcmp.lt.s32.totalorder %v10262_v56, 1100  ;;  %v6854_v58 = vadd.f32 %v5926_v13, %v12895_v48  ;;  %vm13020_vm9 = vcmp.lt.f32.partialorder %v5951_v3, 0.0004427343  ;;  %v4365_v15 = vpop.f32.mrf.mxu0 }
 0x637   : > { %v7109_v23 = vsel %vm15716_vm8, %v6853_v29, 0.0  ;;  %v5958_v26 = vadd.f32 1.0, %v5957_v59  ;;  %v13024_v9 = vpop.eup %8802  ;;  %v5935_v45 = vsel %vm12981_vm7, %v5932_v17, %v5929_v63  ;;  %v5938_v37 = vmul.f32 0.6931472, %v8799_v43  ;;  %v9222_v17 = vld [vmem:[%s9487_s22 + $0x118] sm:$0xff]  ;;  %vm15719_vm10 = vmmov %vm15716_vm8 }
 0x638   : > { %v5960_v27 = vand.u32 2147483647, %v12950_v24  ;;  %v5202_v50 = vand.u32 2147483647, %v13009_v14  ;;  %v13030_v51 = vpop.eup %8804  ;;  %v13032_v52 = vsub.f32 %v4813_v31, %v4941_v8  ;;  %v5493_v48 = vmul.f32 1.442695, %v5328_v25 }
 0x639   : > { %v5329_v5 = vsub.f32 0.0, %v5201_v53  ;;  %v13035_v44 = vadd.f32 %v4363_v28, %v12253_v30  ;;  %v7224_v35 = vadd.f32 %v7223_v0, %v7109_v23  ;;  %v5950_v61 = vmul.f32 %v12921_v40, %v5949_v49  ;;  %v9223_v25 = vld [vmem:[%s9487_s22 + $0x120] sm:$0xff] }
 0x63a   : > { %v4814_v46 = vmax.f32 %v12919_v39, 0.0  ;;  %v4942_v21 = vmul.f32 %v9222_v17, %v12919_v39  ;;  %v7110_v16 = vsel %vm15719_vm10, %v6854_v58, 0.0  ;;  %v6855_v29 = vadd.f32 %v5935_v45, %v12897_v19 }
 0x63b   : > { %v5959_v3 = vmul.f32 %v12950_v24, %v5958_v26  ;;  %v5972_v59 = vadd.f32 1.0, %v13024_v9  ;;  %v5944_v0 = vsel %vm13000_vm13, %v5941_v32, %v5938_v37  ;;  %v5947_v40 = vmul.f32 0.6931472, %v8801_v33  ;;  %v15722_v32 = vld [vmem:[#allocation19_spill] sm:$0xff]  ;;  %v4367_v26 = vpop.f32.mrf.mxu0 }
 0x63c   : > { %vm13048_vm14 = vcmp.lt.f32.partialorder %v5960_v27, 0.0004427343  ;;  %v5981_v39 = vadd.f32 1.0, %v13030_v51  ;;  %v5330_v63 = vsub.f32 0.0, %v5202_v50  ;;  %v8807_v56 = vpop.eup %8806  ;;  %8814 = vpow2.f32 %v5493_v48 }
 0x63d   : > { %v5495_v43 = vmul.f32 1.442695, %v5329_v5  ;;  %v5203_v19 = vand.u32 2147483647, %v13035_v44  ;;  %v13055_v24 = vadd.f32 %v4365_v15, %v12259_v22  ;;  %v13057_v31 = vpop.eup %8808  ;;  %v7293_v34 = vadd.f32 %v7292_v12, %v7110_v16 }
 0x63e   : > { %v5966_v62 = vmul.f32 -0.5, %v12977_v1  ;;  %v4815_v8 = vmax.f32 %v12934_v54, 0.0  ;;  %v4943_v53 = vmul.f32 %v9223_v25, %v12934_v54  ;;  %vm15723_vm11 = vcmp.lt.s32.totalorder %v15722_v32, 1100 }
 0x63f   : > { %v7111_v49 = vsel %vm15723_vm11, %v6855_v29, 0.0  ;;  %v6856_v28 = vadd.f32 %v5944_v0, %v12899_v42  ;;  %v5969_v33 = vand.u32 2147483647, %v12977_v1  ;;  %8816 = vlog2.f32 %v5972_v59  ;;  %vm15726_vm2 = vmmov %vm15723_vm11  ;;  %v4369_v59 = vpop.f32.mrf.mxu0 }
 0x640   : > { %v5953_v23 = vsel %vm13020_vm9, %v5950_v61, %v5947_v40  ;;  %v5956_v58 = vmul.f32 0.6931472, %v8807_v56  ;;  %8818 = vlog2.f32 %v5981_v39  ;;  %v5497_v12 = vmul.f32 1.442695, %v5330_v63  ;;  %v13069_v45 = vpop.eup %8810  ;;  %v9225_v56 = vld [vmem:[%s9487_s22 + $0x130] sm:$0xff] }
 0x641   : > { %v5990_v54 = vadd.f32 1.0, %v13057_v31  ;;  %8820 = vpow2.f32 %v5495_v43  ;;  %v5331_v37 = vsub.f32 0.0, %v5203_v19  ;;  %v5204_v27 = vand.u32 2147483647, %v13055_v24 }
 0x642   : > { %v7225_v42 = vadd.f32 %v7224_v35, %v7111_v49  ;;  %v5967_v50 = vadd.f32 1.0, %v5966_v62  ;;  %v13073_v48 = vsub.f32 %v4814_v46, %v4942_v21  ;;  %v13075_v5 = vsub.f32 %v4815_v8, %v4943_v53  ;;  %v9224_v21 = vld [vmem:[%s9487_s22 + $0x128] sm:$0xff]  ;;  %v15727_v62 = vld [vmem:[#allocation20_spill] sm:$0xff] }
 0x643   : > { %v8813_v6 = vpop.eup %8812  ;;  %v6857_v61 = vadd.f32 %v5953_v23, %v12924_v36  ;;  %vm13078_vm1 = vcmp.lt.f32.partialorder %v5969_v33, 0.0004427343  ;;  %v5975_v15 = vmul.f32 -0.5, %v13024_v9  ;;  %v4816_v16 = vmax.f32 %v12968_v20, 0.0 }
 0x644   : > { %v7112_v35 = vsel %vm15726_vm2, %v6856_v28, 0.0  ;;  %v5999_v46 = vadd.f32 1.0, %v13069_v45  ;;  %v4944_v29 = vmul.f32 %v9224_v21, %v12968_v20  ;;  %8822 = vpow2.f32 %v5497_v12 }
 0x645   : > { %v5962_v36 = vsel %vm13048_vm14, %v5959_v3, %v5956_v58  ;;  %8824 = vlog2.f32 %v5990_v54  ;;  %v5499_v0 = vmul.f32 1.442695, %v5331_v37  ;;  %v5332_v40 = vsub.f32 0.0, %v5204_v27  ;;  %v4373_v27 = vpop.f32.mrf.mxu0 }
 0x646   : > { %v5965_v39 = vmul.f32 0.6931472, %v8813_v6  ;;  %v4817_v63 = vmax.f32 %v12991_v55, 0.0  ;;  %v4945_v43 = vmul.f32 %v9225_v56, %v12991_v55  ;;  %v13095_v19 = vadd.f32 %v4367_v26, %v12253_v30 }
 0x647   : > { %vm15728_vm3 = vcmp.lt.s32.totalorder %v15727_v62, 1100  ;;  %v5976_v8 = vadd.f32 1.0, %v5975_v15  ;;  %v5978_v25 = vand.u32 2147483647, %v13024_v9  ;;  %v13101_v3 = vadd.f32 %v4369_v59, %v12259_v22  ;;  %v9227_v59 = vld [vmem:[%s9487_s22 + $0x140] sm:$0xff] }
 0x648   : > { %v7113_v20 = vsel %vm15728_vm3, %v6857_v61, 0.0  ;;  %v6858_v13 = vadd.f32 %v5962_v36, %v12938_v60  ;;  %v5968_v53 = vmul.f32 %v12977_v1, %v5967_v50  ;;  %v5984_v32 = vmul.f32 -0.5, %v13030_v51  ;;  %vm15731_vm5 = vmmov %vm15728_vm3 }
 0x649   : > { %8826 = vlog2.f32 %v5999_v46  ;;  %v7294_v55 = vadd.f32 %v7293_v34, %v7112_v35  ;;  %v13106_v49 = vsub.f32 %v4816_v16, %v4944_v29  ;;  %v5501_v28 = vmul.f32 1.442695, %v5332_v40  ;;  %v13108_v33 = vpop.eup %8814 }
 0x64a   : > { %8828 = vpow2.f32 %v5499_v0  ;;  %v7226_v23 = vadd.f32 %v7225_v42, %v7113_v20  ;;  %v5971_v58 = vsel %vm13078_vm1, %v5968_v53, %v5965_v39  ;;  %v13112_v12 = vsub.f32 %v4817_v63, %v4945_v43 }
 0x64b   : > { %v5205_v60 = vand.u32 2147483647, %v13095_v19  ;;  %v5977_v1 = vmul.f32 %v13024_v9, %v5976_v8  ;;  %vm13116_vm4 = vcmp.lt.f32.partialorder %v5978_v25, 0.0004427343  ;;  %v5987_v34 = vand.u32 2147483647, %v13030_v51 }
 0x64c   : > { %v5993_v54 = vmul.f32 -0.5, %v13057_v31  ;;  %v5206_v37 = vand.u32 2147483647, %v13101_v3  ;;  %v8817_v42 = vpop.eup %8816  ;;  %v7114_v50 = vsel %vm15731_vm5, %v6858_v13, 0.0  ;;  %v5985_v6 = vadd.f32 1.0, %v5984_v32  ;;  %v9226_v9 = vld [vmem:[%s9487_s22 + $0x138] sm:$0xff] }
 0x64d   : > { %v4818_v61 = vmax.f32 %v13009_v14, 0.0  ;;  %v4946_v17 = vmul.f32 %v9226_v9, %v13009_v14  ;;  %v8819_v15 = vpop.eup %8818  ;;  %v6859_v16 = vadd.f32 %v5971_v58, %v12973_v41  ;;  %v6008_v35 = vadd.f32 1.0, %v13108_v33  ;;  %v15734_v8 = vld [vmem:[#allocation21_spill] sm:$0xff] }
 0x64e   : > { %v4819_v46 = vmax.f32 %v13035_v44, 0.0  ;;  %8830 = vpow2.f32 %v5501_v28  ;;  %v13131_v21 = vpop.eup %8820  ;;  %v5996_v29 = vand.u32 2147483647, %v13057_v31  ;;  %v4947_v36 = vmul.f32 %v9227_v59, %v13035_v44  ;;  %v9229_v59 = vld [vmem:[%s9487_s22 + $0x150] sm:$0xff] }
 0x64f   : > { %v5333_v0 = vsub.f32 0.0, %v5205_v60  ;;  %v13137_v40 = vadd.f32 %v4373_v27, %v12253_v30  ;;  %v13139_v14 = vadd.f32 %v7294_v55, %v7114_v50  ;;  %vm13141_vm12 = vcmp.lt.f32.partialorder %v5987_v34, 0.0004427343  ;;  %v4375_v60 = vpop.f32.mrf.mxu0 }
 0x650   : > { %v5994_v39 = vadd.f32 1.0, %v5993_v54  ;;  %v5334_v63 = vsub.f32 0.0, %v5206_v37  ;;  %v5974_v56 = vmul.f32 0.6931472, %v8817_v42  ;;  %v5986_v43 = vmul.f32 %v13030_v51, %v5985_v6 }
 0x651   : > { %v6002_v62 = vmul.f32 -0.5, %v13069_v45  ;;  %v13147_v20 = vsub.f32 %v4818_v61, %v4946_v17  ;;  %v13149_v44 = vpop.eup %8822  ;;  %vm15735_vm15 = vcmp.lt.s32.totalorder %v15734_v8, 1100  ;;  %v5983_v13 = vmul.f32 0.6931472, %v8819_v15 }
 0x652   : > { %v7115_v25 = vsel %vm15735_vm15, %v6859_v16, 0.0  ;;  %8832 = vlog2.f32 %v6008_v35  ;;  %v6017_v53 = vadd.f32 1.0, %v13131_v21  ;;  %v8825_v32 = vpop.eup %8824  ;;  %vm13154_vm6 = vcmp.lt.f32.partialorder %v5996_v29, 0.0004427343  ;;  %v9228_v35 = vld [vmem:[%s9487_s22 + $0x148] sm:$0xff]  ;;  %vm15740_vm0 = vmmov %vm15735_vm15 }
 0x653   : > { %v13158_v28 = vsub.f32 %v4819_v46, %v4947_v36  ;;  %v5503_v51 = vmul.f32 1.442695, %v5333_v0  ;;  %v5207_v58 = vand.u32 2147483647, %v13137_v40  ;;  %v5995_v34 = vmul.f32 %v13057_v31, %v5994_v39  ;;  %v4377_v0 = vpop.f32.mrf.mxu0 }
 0x654   : > { %v6005_v54 = vand.u32 2147483647, %v13069_v45  ;;  %v4820_v37 = vmax.f32 %v13055_v24, 0.0  ;;  %v5505_v27 = vmul.f32 1.442695, %v5334_v63  ;;  %v7227_v42 = vadd.f32 %v7226_v23, %v7115_v25 }
 0x655   : > { %v5980_v50 = vsel %vm13116_vm4, %v5977_v1, %v5974_v56  ;;  %v6003_v6 = vadd.f32 1.0, %v6002_v62  ;;  %v6026_v61 = vadd.f32 1.0, %v13149_v44  ;;  %v5989_v17 = vsel %vm13141_vm12, %v5986_v43, %v5983_v13 }
 0x656   : > { %v8827_v9 = vpop.eup %8826  ;;  %v5992_v15 = vmul.f32 0.6931472, %v8825_v32  ;;  %8834 = vlog2.f32 %v6017_v53  ;;  %v13170_v31 = vadd.f32 %v4375_v60, %v12259_v22  ;;  %v4948_v23 = vmul.f32 %v9228_v35, %v13055_v24  ;;  %v15741_v60 = vld [vmem:[#allocation22_spill] sm:$0xff] }
 0x657   : > { %v13172_v16 = vpop.eup %8828  ;;  %v4821_v1 = vmax.f32 %v13095_v19, 0.0  ;;  %8836 = vpow2.f32 %v5503_v51  ;;  %v5335_v26 = vsub.f32 0.0, %v5207_v58  ;;  %v6860_v46 = vadd.f32 %v5980_v50, %v12995_v7  ;;  %v4379_v58 = vpop.f32.mrf.mxu0 }
 0x658   : > { %v6011_v29 = vmul.f32 -0.5, %v13108_v33  ;;  %v4949_v36 = vmul.f32 %v9229_v59, %v13095_v19  ;;  %8838 = vpow2.f32 %v5505_v27  ;;  %v6861_v41 = vadd.f32 %v5989_v17, %v13032_v52  ;;  %v9230_v17 = vld [vmem:[%s9487_s22 + $0x158] sm:$0xff] }
 0x659   : > { %vm13182_vm7 = vcmp.lt.f32.partialorder %v6005_v54, 0.0004427343  ;;  %v6014_v24 = vand.u32 2147483647, %v13108_v33  ;;  %8840 = vlog2.f32 %v6026_v61  ;;  %v5998_v63 = vsel %vm13154_vm6, %v5995_v34, %v5992_v15 }
 0x65a   : > { %v6001_v7 = vmul.f32 0.6931472, %v8827_v9  ;;  %v6035_v56 = vadd.f32 1.0, %v13172_v16  ;;  %v5208_v43 = vand.u32 2147483647, %v13170_v31  ;;  %v6004_v62 = vmul.f32 %v13069_v45, %v6003_v6 }
 0x65b   : > { %v13191_v19 = vpop.eup %8830  ;;  %v6020_v52 = vmul.f32 -0.5, %v13131_v21  ;;  %v13195_v25 = vsub.f32 %v4820_v37, %v4948_v23  ;;  %v5507_v13 = vmul.f32 1.442695, %v5335_v26  ;;  %v7116_v53 = vsel %vm15740_vm0, %v6860_v46, 0.0  ;;  %v4383_v46 = vpop.f32.mrf.mxu0 }
 0x65c   : > { %v6012_v32 = vadd.f32 1.0, %v6011_v29  ;;  %v6023_v55 = vand.u32 2147483647, %v13131_v21  ;;  %v13200_v51 = vsub.f32 %v4821_v1, %v4949_v36  ;;  %vm15742_vm13 = vcmp.lt.s32.totalorder %v15741_v60, 1100 }
 0x65d   : > { %v7117_v34 = vsel %vm15742_vm13, %v6861_v41, 0.0  ;;  %v6862_v45 = vadd.f32 %v5998_v63, %v13073_v48  ;;  %vm13205_vm8 = vcmp.lt.f32.partialorder %v6014_v24, 0.0004427343  ;;  %v6029_v37 = vmul.f32 -0.5, %v13149_v44  ;;  %vm15745_vm9 = vmmov %vm15742_vm13 }
 0x65e   : > { %v13211_v8 = vadd.f32 %v4377_v0, %v12253_v30  ;;  %v6007_v27 = vsel %vm13182_vm7, %v6004_v62, %v6001_v7  ;;  %8842 = vlog2.f32 %v6035_v56  ;;  %v6044_v50 = vadd.f32 1.0, %v13191_v19 }
 0x65f   : > { %v5336_v6 = vsub.f32 0.0, %v5208_v43  ;;  %v8833_v61 = vpop.eup %8832  ;;  %v6021_v9 = vadd.f32 1.0, %v6020_v52  ;;  %v4822_v48 = vmax.f32 %v13101_v3, 0.0  ;;  %v4950_v15 = vmul.f32 %v9230_v17, %v13101_v3  ;;  %v9231_v43 = vld [vmem:[%s9487_s22 + $0x160] sm:$0xff] }
 0x660   : > { %8844 = vpow2.f32 %v5507_v13  ;;  %v7296_v35 = vadd.f32 %v13139_v14, %v7116_v53  ;;  %v6013_v23 = vmul.f32 %v13108_v33, %v6012_v32  ;;  %v6032_v1 = vand.u32 2147483647, %v13149_v44  ;;  %v4385_v13 = vpop.f32.mrf.mxu0 }
 0x661   : > { %v13223_v26 = vadd.f32 %v4379_v58, %v12259_v22  ;;  %v7228_v29 = vadd.f32 %v7227_v42, %v7117_v34  ;;  %v6863_v59 = vadd.f32 %v6007_v27, %v13075_v5  ;;  %v6030_v36 = vadd.f32 1.0, %v6029_v37 }
 0x662   : > { %v5209_v0 = vand.u32 2147483647, %v13211_v8  ;;  %v7118_v3 = vsel %vm15745_vm9, %v6862_v45, 0.0  ;;  %v6010_v41 = vmul.f32 0.6931472, %v8833_v61  ;;  %8846 = vlog2.f32 %v6044_v50 }
 0x663   : > { %v5509_v14 = vmul.f32 1.442695, %v5336_v6  ;;  %v8835_v33 = vpop.eup %8834  ;;  %v6022_v39 = vmul.f32 %v13131_v21, %v6021_v9  ;;  %vm13230_vm10 = vcmp.lt.f32.partialorder %v6023_v55, 0.0004427343  ;;  %v13234_v42 = vsub.f32 %v4822_v48, %v4950_v15  ;;  %v15750_v55 = vld [vmem:[#allocation23_spill] sm:$0xff] }
 0x664   : > { %v4823_v5 = vmax.f32 %v13137_v40, 0.0  ;;  %v13237_v63 = vpop.eup %8836  ;;  %vm13239_vm14 = vcmp.lt.f32.partialorder %v6032_v1, 0.0004427343  ;;  %v6038_v56 = vmul.f32 -0.5, %v13172_v16  ;;  %v4951_v62 = vmul.f32 %v9231_v43, %v13137_v40 }
 0x665   : > { %v5210_v21 = vand.u32 2147483647, %v13223_v26  ;;  %v13248_v52 = vadd.f32 %v4383_v46, %v12253_v30  ;;  %v13250_v53 = vpop.eup %8838  ;;  %v7297_v32 = vadd.f32 %v7296_v35, %v7118_v3  ;;  %vm15751_vm11 = vcmp.lt.s32.totalorder %v15750_v55, 1100 }
 0x666   : > { %v7119_v58 = vsel %vm15751_vm11, %v6863_v59, 0.0  ;;  %v6031_v60 = vmul.f32 %v13149_v44, %v6030_v36  ;;  %v5337_v34 = vsub.f32 0.0, %v5209_v0  ;;  %v8841_v45 = vpop.eup %8840  ;;  %v6016_v37 = vsel %vm13205_vm8, %v6013_v23, %v6010_v41  ;;  %vm15754_vm2 = vmmov %vm15751_vm11 }
 0x667   : > { %v6019_v40 = vmul.f32 0.6931472, %v8835_v33  ;;  %8848 = vpow2.f32 %v5509_v14  ;;  %v5338_v27 = vsub.f32 0.0, %v5210_v21  ;;  %v6041_v50 = vand.u32 2147483647, %v13172_v16  ;;  %v9232_v14 = vld [vmem:[%s9487_s22 + $0x168] sm:$0xff] }
 0x668   : > { %v6047_v6 = vmul.f32 -0.5, %v13191_v19  ;;  %v6053_v61 = vadd.f32 1.0, %v13237_v63  ;;  %v13261_v9 = vadd.f32 %v4385_v13, %v12259_v22  ;;  %v6039_v48 = vadd.f32 1.0, %v6038_v56 }
 0x669   : > { %v6062_v44 = vadd.f32 1.0, %v13250_v53  ;;  %v13264_v17 = vsub.f32 %v4823_v5, %v4951_v62  ;;  %v5211_v54 = vand.u32 2147483647, %v13248_v52  ;;  %v7229_v15 = vadd.f32 %v7228_v29, %v7119_v58  ;;  %v4387_v5 = vpop.f32.mrf.mxu0 }
 0x66a   : > { %v6864_v35 = vadd.f32 %v6016_v37, %v13106_v49  ;;  %v6028_v23 = vmul.f32 0.6931472, %v8841_v45  ;;  %v5511_v1 = vmul.f32 1.442695, %v5337_v34  ;;  %v6025_v46 = vsel %vm13230_vm10, %v6022_v39, %v6019_v40 }
 0x66b   : > { %v6050_v59 = vand.u32 2147483647, %v13191_v19  ;;  %v4824_v36 = vmax.f32 %v13170_v31, 0.0  ;;  %v5513_v0 = vmul.f32 1.442695, %v5338_v27  ;;  %v8843_v3 = vpop.eup %8842  ;;  %v6048_v41 = vadd.f32 1.0, %v6047_v6  ;;  %v4389_v27 = vpop.f32.mrf.mxu0 }
 0x66c   : > { %8850 = vlog2.f32 %v6053_v61  ;;  %v4952_v33 = vmul.f32 %v9232_v14, %v13170_v31  ;;  %v5212_v29 = vand.u32 2147483647, %v13261_v9  ;;  %v6040_v56 = vmul.f32 %v13172_v16, %v6039_v48  ;;  %v9233_v48 = vld [vmem:[%s9487_s22 + $0x170] sm:$0xff] }
 0x66d   : > { %v13275_v49 = vpop.eup %8844  ;;  %vm13278_vm1 = vcmp.lt.f32.partialorder %v6041_v50, 0.0004427343  ;;  %8852 = vlog2.f32 %v6062_v44  ;;  %v5339_v24 = vsub.f32 0.0, %v5211_v54  ;;  %v7120_v43 = vsel %vm15754_vm2, %v6864_v35, 0.0  ;;  %v15757_v50 = vld [vmem:[#allocation24_spill] sm:$0xff] }
 0x66e   : > { %v6865_v62 = vadd.f32 %v6025_v46, %v13112_v12  ;;  %v6034_v31 = vsel %vm13239_vm14, %v6031_v60, %v6028_v23  ;;  %8854 = vpow2.f32 %v5511_v1  ;;  %v6037_v21 = vmul.f32 0.6931472, %v8843_v3 }
 0x66f   : > { %8856 = vpow2.f32 %v5513_v0  ;;  %v5340_v13 = vsub.f32 0.0, %v5212_v29  ;;  %v13288_v16 = vadd.f32 %v4387_v5, %v12253_v30  ;;  %v8847_v58 = vpop.eup %8846  ;;  %v6049_v34 = vmul.f32 %v13191_v19, %v6048_v41  ;;  %v4393_v41 = vpop.f32.mrf.mxu0 }
 0x670   : > { %vm13291_vm3 = vcmp.lt.f32.partialorder %v6050_v59, 0.0004427343  ;;  %v6071_v12 = vadd.f32 1.0, %v13275_v49  ;;  %v13296_v55 = vsub.f32 %v4824_v36, %v4952_v33  ;;  %v7298_v7 = vadd.f32 %v7297_v32, %v7120_v43  ;;  %v9234_v59 = vld [vmem:[%s9487_s22 + $0x178] sm:$0xff] }
 0x671   : > { %v6056_v60 = vmul.f32 -0.5, %v13237_v63  ;;  %v4825_v37 = vmax.f32 %v13211_v8, 0.0  ;;  %v5515_v40 = vmul.f32 1.442695, %v5339_v24  ;;  %vm15758_vm4 = vcmp.lt.s32.totalorder %v15757_v50, 1100  ;;  %v4395_v50 = vpop.f32.mrf.mxu0 }
 0x672   : > { %v7121_v6 = vsel %vm15758_vm4, %v6865_v62, 0.0  ;;  %v6866_v19 = vadd.f32 %v6034_v31, %v13147_v20  ;;  %v6065_v61 = vmul.f32 -0.5, %v13250_v53  ;;  %v4953_v44 = vmul.f32 %v9233_v48, %v13211_v8  ;;  %vm15759_vm5 = vmmov %vm15758_vm4 }
 0x673   : > { %v6043_v32 = vsel %vm13278_vm1, %v6040_v56, %v6037_v21  ;;  %v6046_v54 = vmul.f32 0.6931472, %v8847_v58  ;;  %v5517_v35 = vmul.f32 1.442695, %v5340_v13  ;;  %v5213_v23 = vand.u32 2147483647, %v13288_v16 }
 0x674   : > { %v13309_v1 = vpop.eup %8848  ;;  %8858 = vlog2.f32 %v6071_v12  ;;  %v4826_v46 = vmax.f32 %v13223_v26, 0.0  ;;  %v4954_v20 = vmul.f32 %v9234_v59, %v13223_v26  ;;  %v13315_v36 = vadd.f32 %v4389_v27, %v12259_v22  ;;  %v9235_v58 = vld [vmem:[%s9487_s22 + $0x180] sm:$0xff] }
 0x675   : > { %v7230_v0 = vadd.f32 %v7229_v15, %v7121_v6  ;;  %v6057_v8 = vadd.f32 1.0, %v6056_v60  ;;  %v6059_v3 = vand.u32 2147483647, %v13237_v63  ;;  %8860 = vpow2.f32 %v5515_v40  ;;  %v15762_v60 = vld [vmem:[#allocation25_spill] sm:$0xff] }
 0x676   : > { %v7122_v14 = vsel %vm15759_vm5, %v6866_v19, 0.0  ;;  %v6867_v33 = vadd.f32 %v6043_v32, %v13158_v28  ;;  %v6066_v29 = vadd.f32 1.0, %v6065_v61  ;;  %v6068_v5 = vand.u32 2147483647, %v13250_v53 }
 0x677   : > { %v6052_v26 = vsel %vm13291_vm3, %v6049_v34, %v6046_v54  ;;  %v6080_v56 = vadd.f32 1.0, %v13309_v1  ;;  %8862 = vpow2.f32 %v5517_v35  ;;  %v5341_v15 = vsub.f32 0.0, %v5213_v23 }
 0x678   : > { %v6074_v39 = vmul.f32 -0.5, %v13275_v49  ;;  %v13326_v24 = vsub.f32 %v4825_v37, %v4953_v44  ;;  %v5214_v43 = vand.u32 2147483647, %v13315_v36  ;;  %v13330_v62 = vadd.f32 %v4393_v41, %v12253_v30 }
 0x679   : > { %v8851_v28 = vpop.eup %8850  ;;  %v6058_v31 = vmul.f32 %v13237_v63, %v6057_v8  ;;  %vm13333_vm12 = vcmp.lt.f32.partialorder %v6059_v3, 0.0004427343  ;;  %v4827_v13 = vmax.f32 %v13248_v52, 0.0  ;;  %v4955_v34 = vmul.f32 %v9235_v58, %v13248_v52  ;;  %v4397_v3 = vpop.f32.mrf.mxu0  ;;  %v9237_v58 = vld [vmem:[%s9487_s22 + $0x190] sm:$0xff] }
 0x67a   : > { %v8853_v45 = vpop.eup %8852  ;;  %v7299_v12 = vadd.f32 %v7298_v7, %v7122_v14  ;;  %vm15763_vm15 = vcmp.lt.s32.totalorder %v15762_v60, 1100  ;;  %v6868_v40 = vadd.f32 %v6052_v26, %v13195_v25  ;;  %v13343_v27 = vsub.f32 %v4826_v46, %v4954_v20  ;;  %v9236_v20 = vld [vmem:[%s9487_s22 + $0x188] sm:$0xff] }
 0x67b   : > { %v7123_v37 = vsel %vm15763_vm15, %v6867_v33, 0.0  ;;  %v13345_v63 = vpop.eup %8854  ;;  %v6067_v6 = vmul.f32 %v13250_v53, %v6066_v29  ;;  %vm13348_vm6 = vcmp.lt.f32.partialorder %v6068_v5, 0.0004427343  ;;  %8864 = vlog2.f32 %v6080_v56  ;;  %vm15766_vm7 = vmmov %vm15763_vm15  ;;  %v9239_v29 = vld [vmem:[%s9487_s22 + $0x1a0] sm:$0xff] }
 0x67c   : > { %v5519_v52 = vmul.f32 1.442695, %v5341_v15  ;;  %v13352_v7 = vpop.eup %8856  ;;  %v6075_v61 = vadd.f32 1.0, %v6074_v39  ;;  %v6077_v48 = vand.u32 2147483647, %v13275_v49  ;;  %v5342_v25 = vsub.f32 0.0, %v5214_v43 }
 0x67d   : > { %v5215_v44 = vand.u32 2147483647, %v13330_v62  ;;  %v13356_v32 = vadd.f32 %v7230_v0, %v7123_v37  ;;  %v6055_v54 = vmul.f32 0.6931472, %v8851_v28  ;;  %v13358_v35 = vsub.f32 %v4827_v13, %v4955_v34 }
 0x67e   : > { %v13361_v53 = vadd.f32 %v4395_v50, %v12259_v22  ;;  %v7124_v23 = vsel %vm15766_vm7, %v6868_v40, 0.0  ;;  %v6089_v46 = vadd.f32 1.0, %v13345_v63  ;;  %v4828_v59 = vmax.f32 %v13261_v9, 0.0 }
 0x67f   : > { %v4956_v8 = vmul.f32 %v9236_v20, %v13261_v9  ;;  %v6064_v41 = vmul.f32 0.6931472, %v8853_v45  ;;  %v6083_v0 = vmul.f32 -0.5, %v13309_v1  ;;  %v6098_v14 = vadd.f32 1.0, %v13352_v7  ;;  %v4399_v45 = vpop.f32.mrf.mxu0 }
 0x680   : > { %8866 = vpow2.f32 %v5519_v52  ;;  %v6076_v33 = vmul.f32 %v13275_v49, %v6075_v61  ;;  %vm13372_vm0 = vcmp.lt.f32.partialorder %v6077_v48, 0.0004427343  ;;  %v5521_v5 = vmul.f32 1.442695, %v5342_v25 }
 0x681   : > { %v5343_v26 = vsub.f32 0.0, %v5215_v44  ;;  %v8859_v56 = vpop.eup %8858  ;;  %v7300_v15 = vadd.f32 %v7299_v12, %v7124_v23  ;;  %v6061_v9 = vsel %vm13333_vm12, %v6058_v31, %v6055_v54  ;;  %v5216_v39 = vand.u32 2147483647, %v13361_v53  ;;  %v4403_v20 = vpop.f32.mrf.mxu0 }
 0x682   : > { %v13380_v43 = vadd.f32 %v4397_v3, %v12253_v30  ;;  %v13382_v28 = vpop.eup %8860  ;;  %v6086_v49 = vand.u32 2147483647, %v13309_v1  ;;  %8868 = vlog2.f32 %v6089_v46  ;;  %v4829_v13 = vmax.f32 %v13288_v16, 0.0  ;;  %v9238_v46 = vld [vmem:[%s9487_s22 + $0x198] sm:$0xff] }
 0x683   : > { %v4957_v34 = vmul.f32 %v9237_v58, %v13288_v16  ;;  %v6070_v21 = vsel %vm13348_vm6, %v6067_v6, %v6064_v41  ;;  %v6084_v31 = vadd.f32 1.0, %v6083_v0  ;;  %8870 = vlog2.f32 %v6098_v14 }
 0x684   : > { %v13390_v12 = vsub.f32 %v4828_v59, %v4956_v8  ;;  %v13392_v60 = vpop.eup %8862  ;;  %v6869_v37 = vadd.f32 %v6061_v9, %v13200_v51  ;;  %v6073_v40 = vmul.f32 0.6931472, %v8859_v56  ;;  %8872 = vpow2.f32 %v5521_v5 }
 0x685   : > { %v5523_v50 = vmul.f32 1.442695, %v5343_v26  ;;  %v6107_v52 = vadd.f32 1.0, %v13382_v28  ;;  %v5344_v61 = vsub.f32 0.0, %v5216_v39  ;;  %v5217_v16 = vand.u32 2147483647, %v13380_v43 }
 0x686   : > { %v13398_v19 = vadd.f32 %v4399_v45, %v12259_v22  ;;  %v6870_v6 = vadd.f32 %v6070_v21, %v13234_v42  ;;  %vm13401_vm13 = vcmp.lt.f32.partialorder %v6086_v49, 0.0004427343  ;;  %v6092_v25 = vmul.f32 -0.5, %v13345_v63  ;;  %v15771_v42 = vld [vmem:[#allocation26_spill] sm:$0xff] }
 0x687   : > { %v13406_v51 = vsub.f32 %v4829_v13, %v4957_v34  ;;  %v6085_v44 = vmul.f32 %v13309_v1, %v6084_v31  ;;  %v6116_v54 = vadd.f32 1.0, %v13392_v60  ;;  %v4830_v23 = vmax.f32 %v13315_v36, 0.0 }
 0x688   : > { %v4958_v59 = vmul.f32 %v9238_v46, %v13315_v36  ;;  %v8865_v8 = vpop.eup %8864  ;;  %vm15772_vm8 = vcmp.lt.s32.totalorder %v15771_v42, 1100  ;;  %v6079_v41 = vsel %vm13372_vm0, %v6076_v33, %v6073_v40  ;;  %v6095_v0 = vand.u32 2147483647, %v13345_v63  ;;  %v9240_v42 = vld [vmem:[%s9487_s22 + $0x1a8] sm:$0xff] }
 0x689   : > { %v7125_v3 = vsel %vm15772_vm8, %v6869_v37, 0.0  ;;  %8874 = vpow2.f32 %v5523_v50  ;;  %v5525_v1 = vmul.f32 1.442695, %v5344_v61  ;;  %v5345_v14 = vsub.f32 0.0, %v5217_v16  ;;  %vm15773_vm9 = vmmov %vm15772_vm8 }
 0x68a   : > { %8876 = vlog2.f32 %v6107_v52  ;;  %v5218_v5 = vand.u32 2147483647, %v13398_v19  ;;  %v7126_v36 = vsel %vm15773_vm9, %v6870_v6, 0.0  ;;  %v6093_v26 = vadd.f32 1.0, %v6092_v25 }
 0x68b   : > { %v4831_v56 = vmax.f32 %v13330_v62, 0.0  ;;  %v13423_v9 = vadd.f32 %v4403_v20, %v12253_v30  ;;  %v6082_v39 = vmul.f32 0.6931472, %v8865_v8  ;;  %v6101_v33 = vmul.f32 -0.5, %v13352_v7 }
 0x68c   : > { %8878 = vlog2.f32 %v6116_v54  ;;  %v4959_v49 = vmul.f32 %v9239_v29, %v13330_v62  ;;  %v7232_v58 = vadd.f32 %v13356_v32, %v7125_v3  ;;  %v6871_v34 = vadd.f32 %v6079_v41, %v13264_v17 }
 0x68d   : > { %v13428_v13 = vpop.eup %8866  ;;  %v6104_v45 = vand.u32 2147483647, %v13352_v7  ;;  %v6110_v21 = vmul.f32 -0.5, %v13382_v28  ;;  %v13434_v31 = vsub.f32 %v4830_v23, %v4958_v59  ;;  %8880 = vpow2.f32 %v5525_v1  ;;  %v15776_v23 = vld [vmem:[#allocation27_spill] sm:$0xff] }
 0x68e   : > { %v5527_v37 = vmul.f32 1.442695, %v5345_v14  ;;  %v5346_v40 = vsub.f32 0.0, %v5218_v5  ;;  %v13436_v50 = vadd.f32 %v7300_v15, %v7126_v36  ;;  %v6094_v52 = vmul.f32 %v13345_v63, %v6093_v26  ;;  %v4405_v15 = vpop.f32.mrf.mxu0 }
 0x68f   : > { %vm13439_vm10 = vcmp.lt.f32.partialorder %v6095_v0, 0.0004427343  ;;  %v5219_v17 = vand.u32 2147483647, %v13423_v9  ;;  %v8869_v32 = vpop.eup %8868  ;;  %v6088_v61 = vsel %vm13401_vm13, %v6085_v44, %v6082_v39  ;;  %v6102_v16 = vadd.f32 1.0, %v6101_v33 }
 0x690   : > { %v6125_v6 = vadd.f32 1.0, %v13428_v13  ;;  %v13447_v25 = vsub.f32 %v4831_v56, %v4959_v49  ;;  %v8871_v54 = vpop.eup %8870  ;;  %vm15777_vm14 = vcmp.lt.s32.totalorder %v15776_v23, 1100  ;;  %vm13451_vm11 = vcmp.lt.f32.partialorder %v6104_v45, 0.0004427343  ;;  %v4407_v29 = vpop.f32.mrf.mxu0 }
 0x691   : > { %v7127_v63 = vsel %vm15777_vm14, %v6871_v34, 0.0  ;;  %v6111_v59 = vadd.f32 1.0, %v6110_v21  ;;  %v6113_v20 = vand.u32 2147483647, %v13382_v28  ;;  %v6119_v48 = vmul.f32 -0.5, %v13392_v60  ;;  %v13457_v44 = vpop.eup %8872  ;;  %vm15782_vm2 = vmmov %vm15777_vm14 }
 0x692   : > { %v4832_v8 = vmax.f32 %v13361_v53, 0.0  ;;  %v4960_v3 = vmul.f32 %v9240_v42, %v13361_v53  ;;  %8882 = vpow2.f32 %v5527_v37  ;;  %v5529_v41 = vmul.f32 1.442695, %v5346_v40 }
 0x693   : > { %v6872_v0 = vadd.f32 %v6088_v61, %v13296_v55  ;;  %v6122_v1 = vand.u32 2147483647, %v13392_v60  ;;  %v5347_v14 = vsub.f32 0.0, %v5219_v17  ;;  %v13465_v5 = vadd.f32 %v4405_v15, %v12259_v22  ;;  %v9241_v61 = vld [vmem:[%s9487_s22 + $0x1b0] sm:$0xff] }
 0x694   : > { %v13467_v36 = vadd.f32 %v7232_v58, %v7127_v63  ;;  %v6091_v26 = vmul.f32 0.6931472, %v8869_v32  ;;  %v6103_v56 = vmul.f32 %v13352_v7, %v6102_v16  ;;  %8884 = vlog2.f32 %v6125_v6 }
 0x695   : > { %v6112_v39 = vmul.f32 %v13382_v28, %v6111_v59  ;;  %vm13471_vm1 = vcmp.lt.f32.partialorder %v6113_v20, 0.0004427343  ;;  %v6120_v55 = vadd.f32 1.0, %v6119_v48  ;;  %v6134_v33 = vadd.f32 1.0, %v13457_v44  ;;  %v4409_v59 = vpop.f32.mrf.mxu0 }
 0x696   : > { %v13476_v49 = vpop.eup %8874  ;;  %v6100_v34 = vmul.f32 0.6931472, %v8871_v54  ;;  %v13478_v58 = vsub.f32 %v4832_v8, %v4960_v3  ;;  %8886 = vpow2.f32 %v5529_v41  ;;  %v5220_v7 = vand.u32 2147483647, %v13465_v5 }
 0x697   : > { %v8877_v45 = vpop.eup %8876  ;;  %v7128_v28 = vsel %vm15782_vm2, %v6872_v0, 0.0  ;;  %vm13483_vm3 = vcmp.lt.f32.partialorder %v6122_v1, 0.0004427343  ;;  %v4833_v37 = vmax.f32 %v13380_v43, 0.0  ;;  %v5531_v40 = vmul.f32 1.442695, %v5347_v14 }
 0x698   : > { %v6097_v17 = vsel %vm13439_vm10, %v6094_v52, %v6091_v26  ;;  %v6128_v32 = vmul.f32 -0.5, %v13428_v13  ;;  %v4961_v16 = vmul.f32 %v9241_v61, %v13380_v43  ;;  %v5348_v6 = vsub.f32 0.0, %v5220_v7  ;;  %v9242_v52 = vld [vmem:[%s9487_s22 + $0x1b8] sm:$0xff] }
 0x699   : > { %v8879_v15 = vpop.eup %8878  ;;  %v6131_v54 = vand.u32 2147483647, %v13428_v13  ;;  %8888 = vlog2.f32 %v6134_v33  ;;  %v6143_v23 = vadd.f32 1.0, %v13476_v49  ;;  %v4834_v63 = vmax.f32 %v13398_v19, 0.0 }
 0x69a   : > { %v6106_v20 = vsel %vm13451_vm11, %v6103_v56, %v6100_v34  ;;  %v6109_v62 = vmul.f32 0.6931472, %v8877_v45  ;;  %v4962_v48 = vmul.f32 %v9242_v52, %v13398_v19  ;;  %v13501_v8 = vadd.f32 %v4407_v29, %v12253_v30  ;;  %v13503_v43 = vpop.eup %8880  ;;  %v15785_v34 = vld [vmem:[#allocation28_spill] sm:$0xff] }
 0x69b   : > { %v6873_v42 = vadd.f32 %v6097_v17, %v13326_v24  ;;  %v6137_v3 = vmul.f32 -0.5, %v13457_v44  ;;  %8890 = vpow2.f32 %v5531_v40  ;;  %v5533_v41 = vmul.f32 1.442695, %v5348_v6  ;;  %v9243_v6 = vld [vmem:[%s9487_s22 + $0x1c0] sm:$0xff] }
 0x69c   : > { %v7302_v0 = vadd.f32 %v13436_v50, %v7128_v28  ;;  %v6118_v1 = vmul.f32 0.6931472, %v8879_v15  ;;  %v6121_v46 = vmul.f32 %v13392_v60, %v6120_v55  ;;  %v13510_v14 = vadd.f32 %v4409_v59, %v12259_v22  ;;  %v4413_v60 = vpop.f32.mrf.mxu0 }
 0x69d   : > { %v6874_v19 = vadd.f32 %v6106_v20, %v13343_v27  ;;  %v6129_v26 = vadd.f32 1.0, %v6128_v32  ;;  %8892 = vlog2.f32 %v6143_v23  ;;  %v13513_v56 = vsub.f32 %v4833_v37, %v4961_v16 }
 0x69e   : > { %v6115_v24 = vsel %vm13471_vm1, %v6112_v39, %v6109_v62  ;;  %v6152_v33 = vadd.f32 1.0, %v13503_v43  ;;  %v13518_v29 = vsub.f32 %v4834_v63, %v4962_v48  ;;  %v5221_v50 = vand.u32 2147483647, %v13501_v8  ;;  %v4415_v63 = vpop.f32.mrf.mxu0 }
 0x69f   : > { %v13521_v55 = vpop.eup %8882  ;;  %vm15786_vm4 = vcmp.lt.s32.totalorder %v15785_v34, 1100  ;;  %vm13525_vm5 = vcmp.lt.f32.partialorder %v6131_v54, 0.0004427343  ;;  %v6138_v45 = vadd.f32 1.0, %v6137_v3  ;;  %v6140_v39 = vand.u32 2147483647, %v13457_v44 }
 0x6a0   : > { %v7129_v27 = vsel %vm15786_vm4, %v6873_v42, 0.0  ;;  %8894 = vpow2.f32 %v5533_v41  ;;  %v6124_v53 = vsel %vm13483_vm3, %v6121_v46, %v6118_v1  ;;  %v4835_v28 = vmax.f32 %v13423_v9, 0.0  ;;  %vm15789_vm12 = vmmov %vm15786_vm4  ;;  %v15792_v41 = vld [vmem:[#allocation29_spill] sm:$0xff] }
 0x6a1   : > { %v5349_v37 = vsub.f32 0.0, %v5221_v50  ;;  %v5222_v40 = vand.u32 2147483647, %v13510_v14  ;;  %v8885_v17 = vpop.eup %8884  ;;  %v7130_v32 = vsel %vm15789_vm12, %v6874_v19, 0.0  ;;  %v6875_v61 = vadd.f32 %v6115_v24, %v13358_v35  ;;  %v4417_v24 = vpop.f32.mrf.mxu0 }
 0x6a2   : > { %v6146_v16 = vmul.f32 -0.5, %v13476_v49  ;;  %v4963_v15 = vmul.f32 %v9243_v6, %v13423_v9  ;;  %v6130_v54 = vmul.f32 %v13428_v13, %v6129_v26  ;;  %8896 = vlog2.f32 %v6152_v33  ;;  %v15799_v13 = vld [vmem:[#allocation30_spill] sm:$0xff] }
 0x6a3   : > { %v6161_v21 = vadd.f32 1.0, %v13521_v55  ;;  %v5350_v23 = vsub.f32 0.0, %v5222_v40  ;;  %v13542_v59 = vpop.eup %8886  ;;  %v7234_v20 = vadd.f32 %v13467_v36, %v7129_v27  ;;  %v6876_v62 = vadd.f32 %v6124_v53, %v13390_v12  ;;  %v9244_v53 = vld [vmem:[%s9487_s22 + $0x1c8] sm:$0xff] }
 0x6a4   : > { %v13547_v35 = vmul.f32 %v13457_v44, %v6138_v45  ;;  %v13550_v52 = vadd.f32 %v4413_v60, %v12253_v30  ;;  %v7303_v9 = vadd.f32 %v7302_v0, %v7130_v32  ;;  %v6127_v48 = vmul.f32 0.6931472, %v8885_v17 }
 0x6a5   : > { %vm13552_vm15 = vcmp.lt.f32.partialorder %v6140_v39, 0.0004427343  ;;  %v6149_v42 = vand.u32 2147483647, %v13476_v49  ;;  %v5535_v3 = vmul.f32 1.442695, %v5349_v37  ;;  %v13559_v12 = vsub.f32 %v4835_v28, %v4963_v15  ;;  %v4419_v15 = vpop.f32.mrf.mxu0 }
 0x6a6   : > { %vm15793_vm6 = vcmp.lt.s32.totalorder %v15792_v41, 1100  ;;  %v6147_v1 = vadd.f32 1.0, %v6146_v16  ;;  %v5537_v44 = vmul.f32 1.442695, %v5350_v23  ;;  %v8889_v46 = vpop.eup %8888  ;;  %v6155_v19 = vmul.f32 -0.5, %v13503_v43 }
 0x6a7   : > { %v7131_v36 = vsel %vm15793_vm6, %v6875_v61, 0.0  ;;  %v6158_v0 = vand.u32 2147483647, %v13503_v43  ;;  %8898 = vlog2.f32 %v6161_v21  ;;  %v6170_v26 = vadd.f32 1.0, %v13542_v59  ;;  %vm15794_vm7 = vmmov %vm15793_vm6 }
 0x6a8   : > { %v7132_v33 = vsel %vm15794_vm7, %v6876_v62, 0.0  ;;  %8900 = vpow2.f32 %v5537_v44  ;;  %v5223_v50 = vand.u32 2147483647, %v13550_v52  ;;  %v13568_v60 = vadd.f32 %v4415_v63, %v12259_v22  ;;  %v13570_v34 = vpop.eup %8890 }
 0x6a9   : > { %v6133_v27 = vsel %vm13525_vm5, %v6130_v54, %v6127_v48  ;;  %vm13574_vm0 = vcmp.lt.f32.partialorder %v6149_v42, 0.0004427343  ;;  %v4836_v39 = vmax.f32 %v13465_v5, 0.0  ;;  %v4964_v28 = vmul.f32 %v9244_v53, %v13465_v5 }
 0x6aa   : > { %8902 = vpow2.f32 %v5535_v3  ;;  %v7235_v37 = vadd.f32 %v7234_v20, %v7131_v36  ;;  %v6136_v40 = vmul.f32 0.6931472, %v8889_v46  ;;  %v5351_v17 = vsub.f32 0.0, %v5223_v50  ;;  %v8893_v61 = vpop.eup %8892  ;;  %v9245_v36 = vld [vmem:[%s9487_s22 + $0x1d0] sm:$0xff] }
 0x6ab   : > { %v5224_v32 = vand.u32 2147483647, %v13568_v60  ;;  %v13582_v16 = vadd.f32 %v7303_v9, %v7132_v33  ;;  %v6148_v7 = vmul.f32 %v13476_v49, %v6147_v1  ;;  %8904 = vlog2.f32 %v6170_v26 }
 0x6ac   : > { %v13586_v6 = vadd.f32 %v4417_v24, %v12253_v30  ;;  %v6877_v54 = vadd.f32 %v6133_v27, %v13406_v51  ;;  %v6156_v5 = vadd.f32 1.0, %v6155_v19  ;;  %v6164_v21 = vmul.f32 -0.5, %v13521_v55 }
 0x6ad   : > { %v6179_v23 = vadd.f32 1.0, %v13570_v34  ;;  %v13591_v63 = vpop.eup %8894  ;;  %v6167_v20 = vand.u32 2147483647, %v13521_v55  ;;  %v13594_v62 = vsub.f32 %v4836_v39, %v4964_v28  ;;  %v5539_v49 = vmul.f32 1.442695, %v5351_v17  ;;  %v4423_v28 = vpop.f32.mrf.mxu0 }
 0x6ae   : > { %v5352_v9 = vsub.f32 0.0, %v5224_v32  ;;  %v6142_v48 = vsel %vm13552_vm15, %v13547_v35, %v6136_v40  ;;  %v6145_v42 = vmul.f32 0.6931472, %v8893_v61  ;;  %vm13599_vm13 = vcmp.lt.f32.partialorder %v6158_v0, 0.0004427343 }
 0x6af   : > { %v4837_v3 = vmax.f32 %v13501_v8, 0.0  ;;  %v13605_v41 = vadd.f32 %v4419_v15, %v12259_v22  ;;  %v4965_v1 = vmul.f32 %v9245_v36, %v13501_v8  ;;  %8906 = vpow2.f32 %v5539_v49  ;;  %v8897_v19 = vpop.eup %8896 }
 0x6b0   : > { %v5541_v44 = vmul.f32 1.442695, %v5352_v9  ;;  %v5225_v46 = vand.u32 2147483647, %v13586_v6  ;;  %vm15800_vm8 = vcmp.lt.s32.totalorder %v15799_v13, 1100  ;;  %v6165_v0 = vadd.f32 1.0, %v6164_v21 }
 0x6b1   : > { %v7133_v35 = vsel %vm15800_vm8, %v6877_v54, 0.0  ;;  %8908 = vlog2.f32 %v6179_v23  ;;  %v6188_v26 = vadd.f32 1.0, %v13591_v63  ;;  %v6878_v24 = vadd.f32 %v6142_v48, %v13434_v31  ;;  %vm15803_vm10 = vmmov %vm15800_vm8  ;;  %v9246_v9 = vld [vmem:[%s9487_s22 + $0x1d8] sm:$0xff] }
 0x6b2   : > { %v6157_v33 = vmul.f32 %v13503_v43, %v6156_v5  ;;  %8910 = vpow2.f32 %v5541_v44  ;;  %v5353_v50 = vsub.f32 0.0, %v5225_v46  ;;  %v6151_v8 = vsel %vm13574_vm0, %v6148_v7, %v6145_v42 }
 0x6b3   : > { %v6173_v27 = vmul.f32 -0.5, %v13542_v59  ;;  %v6176_v39 = vand.u32 2147483647, %v13542_v59  ;;  %v5226_v53 = vand.u32 2147483647, %v13605_v41  ;;  %v7236_v40 = vadd.f32 %v7235_v37, %v7133_v35  ;;  %v15806_v35 = vld [vmem:[#allocation31_spill] sm:$0xff] }
 0x6b4   : > { %v6154_v17 = vmul.f32 0.6931472, %v8897_v19  ;;  %vm13620_vm9 = vcmp.lt.f32.partialorder %v6167_v20, 0.0004427343  ;;  %v13624_v31 = vsub.f32 %v4837_v3, %v4965_v1  ;;  %v8899_v43 = vpop.eup %8898  ;;  %v6166_v45 = vmul.f32 %v13521_v55, %v6165_v0  ;;  %v9247_v3 = vld [vmem:[%s9487_s22 + $0x1e0] sm:$0xff] }
 0x6b5   : > { %8912 = vlog2.f32 %v6188_v26  ;;  %v5543_v61 = vmul.f32 1.442695, %v5353_v50  ;;  %v5354_v7 = vsub.f32 0.0, %v5226_v53  ;;  %v13627_v15 = vpop.eup %8900  ;;  %v7134_v37 = vsel %vm15803_vm10, %v6878_v24, 0.0 }
 0x6b6   : > { %v6879_v54 = vadd.f32 %v6151_v8, %v13447_v25  ;;  %v4838_v5 = vmax.f32 %v13510_v14, 0.0  ;;  %v13634_v21 = vadd.f32 %v4423_v28, %v12253_v30  ;;  %v6174_v20 = vadd.f32 1.0, %v6173_v27 }
 0x6b7   : > { %v13636_v23 = vpop.eup %8902  ;;  %vm13638_vm14 = vcmp.lt.f32.partialorder %v6176_v39, 0.0004427343  ;;  %v6182_v49 = vmul.f32 -0.5, %v13570_v34  ;;  %v4966_v48 = vmul.f32 %v9246_v9, %v13510_v14  ;;  %v6160_v25 = vsel %vm13599_vm13, %v6157_v33, %v6154_v17 }
 0x6b8   : > { %v4839_v42 = vmax.f32 %v13550_v52, 0.0  ;;  %v4967_v36 = vmul.f32 %v9247_v3, %v13550_v52  ;;  %8914 = vpow2.f32 %v5543_v61  ;;  %v8905_v1 = vpop.eup %8904  ;;  %v7305_v44 = vadd.f32 %v13582_v16, %v7134_v37  ;;  %v9248_v37 = vld [vmem:[%s9487_s22 + $0x1e8] sm:$0xff] }
 0x6b9   : > { %v6163_v46 = vmul.f32 0.6931472, %v8899_v43  ;;  %v6206_v19 = vadd.f32 1.0, %v13627_v15  ;;  %v5545_v13 = vmul.f32 1.442695, %v5354_v7  ;;  %vm15807_vm11 = vcmp.lt.s32.totalorder %v15806_v35, 1100 }
 0x6ba   : > { %v7135_v0 = vsel %vm15807_vm11, %v6879_v54, 0.0  ;;  %v6185_v14 = vand.u32 2147483647, %v13570_v34  ;;  %v6197_v51 = vadd.f32 1.0, %v13636_v23  ;;  %v5227_v26 = vand.u32 2147483647, %v13634_v21  ;;  %vm15810_vm2 = vmmov %vm15807_vm11 }
 0x6bb   : > { %v6880_v24 = vadd.f32 %v6160_v25, %v13478_v58  ;;  %v6183_v52 = vadd.f32 1.0, %v6182_v49  ;;  %v13658_v33 = vsub.f32 %v4838_v5, %v4966_v48  ;;  %8916 = vpow2.f32 %v5545_v13  ;;  %v4425_v5 = vpop.f32.mrf.mxu0 }
 0x6bc   : > { %v6172_v16 = vmul.f32 0.6931472, %v8905_v1  ;;  %v6175_v50 = vmul.f32 %v13542_v59, %v6174_v20  ;;  %v13661_v8 = vsub.f32 %v4839_v42, %v4967_v36  ;;  %v5355_v27 = vsub.f32 0.0, %v5227_v26  ;;  %v13663_v39 = vpop.eup %8906 }
 0x6bd   : > { %v7237_v53 = vadd.f32 %v7236_v40, %v7135_v0  ;;  %v6169_v28 = vsel %vm13620_vm9, %v6166_v45, %v6163_v46  ;;  %v6191_v17 = vmul.f32 -0.5, %v13591_v63  ;;  %8918 = vlog2.f32 %v6206_v19  ;;  %v9250_v19 = vld [vmem:[%s9487_s22 + $0x1f8] sm:$0xff]  ;;  %v4427_v26 = vpop.f32.mrf.mxu0 }
 0x6be   : > { %v8909_v58 = vpop.eup %8908  ;;  %vm13668_vm1 = vcmp.lt.f32.partialorder %v6185_v14, 0.0004427343  ;;  %8920 = vlog2.f32 %v6197_v51  ;;  %v6215_v59 = vadd.f32 1.0, %v13663_v39  ;;  %v5547_v61 = vmul.f32 1.442695, %v5355_v27  ;;  %v15811_v0 = vld [vmem:[#allocation12_spill] sm:$0xff] }
 0x6bf   : > { %v13673_v7 = vpop.eup %8910  ;;  %v7136_v40 = vsel %vm15810_vm2, %v6880_v24, 0.0  ;;  %v6184_v32 = vmul.f32 %v13570_v34, %v6183_v52  ;;  %v4840_v45 = vmax.f32 %v13568_v60, 0.0  ;;  %v4968_v54 = vmul.f32 %v9248_v37, %v13568_v60  ;;  %v9249_v34 = vld [vmem:[%s9487_s22 + $0x1f0] sm:$0xff] }
 0x6c0   : > { %v6881_v20 = vadd.f32 %v6169_v28, %v13513_v56  ;;  %v6178_v49 = vsel %vm13638_vm14, %v6175_v50, %v6172_v16  ;;  %v6194_v9 = vand.u32 2147483647, %v13591_v63  ;;  %v4841_v48 = vmax.f32 %v13586_v6, 0.0 }
 0x6c1   : > { %v6192_v25 = vadd.f32 1.0, %v6191_v17  ;;  %v6224_v42 = vadd.f32 1.0, %v13673_v7  ;;  %v4969_v3 = vmul.f32 %v9249_v34, %v13586_v6  ;;  %8922 = vpow2.f32 %v5547_v61 }
 0x6c2   : > { %v8913_v36 = vpop.eup %8912  ;;  %v6181_v60 = vmul.f32 0.6931472, %v8909_v58  ;;  %8924 = vlog2.f32 %v6215_v59  ;;  %v4842_v56 = vmax.f32 %v13605_v41, 0.0  ;;  %v13691_v55 = vadd.f32 %v4425_v5, %v12259_v22 }
 0x6c3   : > { %v6882_v1 = vadd.f32 %v6178_v49, %v13518_v29  ;;  %v6200_v46 = vmul.f32 -0.5, %v13636_v23  ;;  %8926 = vlog2.f32 %v6224_v42  ;;  %v4970_v13 = vmul.f32 %v9250_v19, %v13605_v41 }
 0x6c4   : > { %v7306_v35 = vadd.f32 %v7305_v44, %v7136_v40  ;;  %vm15812_vm3 = vcmp.lt.s32.totalorder %v15811_v0, 1100  ;;  %vm13699_vm4 = vcmp.lt.f32.partialorder %v6194_v9, 0.0004427343  ;;  %v13703_v51 = vsub.f32 %v4840_v45, %v4968_v54  ;;  %v4429_v45 = vpop.f32.mrf.mxu0 }
 0x6c5   : > { %v7137_v6 = vsel %vm15812_vm3, %v6881_v20, 0.0  ;;  %v13705_v24 = vpop.eup %8914  ;;  %v6190_v29 = vmul.f32 0.6931472, %v8913_v36  ;;  %v6193_v52 = vmul.f32 %v13591_v63, %v6192_v25  ;;  %v6203_v16 = vand.u32 2147483647, %v13636_v23  ;;  %vm15815_vm5 = vmmov %vm15812_vm3 }
 0x6c6   : > { %v13709_v50 = vsub.f32 %v4841_v48, %v4969_v3  ;;  %v6187_v41 = vsel %vm13668_vm1, %v6184_v32, %v6181_v60  ;;  %v6209_v44 = vmul.f32 -0.5, %v13627_v15  ;;  %v6233_v27 = vadd.f32 1.0, %v13705_v24 }
 0x6c7   : > { %v5228_v28 = vand.u32 2147483647, %v13691_v55  ;;  %v13716_v17 = vadd.f32 %v7237_v53, %v7137_v6  ;;  %v7138_v58 = vsel %vm15815_vm5, %v6882_v1, 0.0  ;;  %v6201_v59 = vadd.f32 1.0, %v6200_v46  ;;  %v15818_v46 = vld [vmem:[#allocation32_spill] sm:$0xff]  ;;  %v4433_v6 = vpop.f32.mrf.mxu0 }
 0x6c8   : > { %v13720_v63 = vsub.f32 %v4842_v56, %v4970_v13  ;;  %v13722_v61 = vpop.eup %8916  ;;  %v6227_v40 = vmul.f32 -0.5, %v13673_v7  ;;  %8928 = vlog2.f32 %v6233_v27  ;;  %v4843_v43 = vmax.f32 %v13634_v21, 0.0 }
 0x6c9   : > { %v13727_v32 = vadd.f32 %v4427_v26, %v12253_v30  ;;  %v6883_v53 = vadd.f32 %v6187_v41, %v13559_v12  ;;  %v6196_v37 = vsel %vm13699_vm4, %v6193_v52, %v6190_v29  ;;  %v6212_v54 = vand.u32 2147483647, %v13627_v15 }
 0x6ca   : > { %v6242_v5 = vadd.f32 1.0, %v13722_v61  ;;  %v8919_v20 = vpop.eup %8918  ;;  %v7307_v49 = vadd.f32 %v7306_v35, %v7138_v58  ;;  %vm13734_vm12 = vcmp.lt.f32.partialorder %v6203_v16, 0.0004427343  ;;  %v6210_v48 = vadd.f32 1.0, %v6209_v44  ;;  %v9251_v35 = vld [vmem:[%s9487_s22 + $0x200] sm:$0xff] }
 0x6cb   : > { %v5356_v25 = vsub.f32 0.0, %v5228_v28  ;;  %v8921_v42 = vpop.eup %8920  ;;  %v6202_v34 = vmul.f32 %v13636_v23, %v6201_v59  ;;  %v6218_v12 = vmul.f32 -0.5, %v13663_v39  ;;  %v13741_v3 = vadd.f32 %v4429_v45, %v12259_v22 }
 0x6cc   : > { %8930 = vlog2.f32 %v6242_v5  ;;  %v6884_v36 = vadd.f32 %v6196_v37, %v13594_v62  ;;  %v6221_v60 = vand.u32 2147483647, %v13663_v39  ;;  %v6228_v56 = vadd.f32 1.0, %v6227_v40  ;;  %v4435_v5 = vpop.f32.mrf.mxu0  ;;  %v15832_v40 = vld [vmem:[#allocation34_spill] sm:$0xff] }
 0x6cd   : > { %v5229_v1 = vand.u32 2147483647, %v13727_v32  ;;  %vm15819_vm15 = vcmp.lt.s32.totalorder %v15818_v46, 1100  ;;  %v6208_v13 = vmul.f32 0.6931472, %v8919_v20  ;;  %v13756_v0 = vmul.f32 %v9251_v35, %v13634_v21 }
 0x6ce   : > { %v13748_v19 = vsel %vm15819_vm15, %v6883_v53, 0.0  ;;  %vm13750_vm6 = vcmp.lt.f32.partialorder %v6212_v54, 0.0004427343  ;;  %v13758_v62 = vpop.eup %8922  ;;  %v6199_v14 = vmul.f32 0.6931472, %v8921_v42  ;;  %v6211_v26 = vmul.f32 %v13627_v15, %v6210_v48  ;;  %vm15822_vm7 = vmmov %vm15819_vm15 }
 0x6cf   : > { %v6230_v29 = vand.u32 2147483647, %v13673_v7  ;;  %v5549_v52 = vmul.f32 1.442695, %v5356_v25  ;;  %v8925_v16 = vpop.eup %8924  ;;  %v6219_v41 = vadd.f32 1.0, %v6218_v12  ;;  %v6236_v44 = vmul.f32 -0.5, %v13705_v24 }
 0x6d0   : > { %v6251_v27 = vadd.f32 1.0, %v13758_v62  ;;  %v5230_v28 = vand.u32 2147483647, %v13741_v3  ;;  %v8927_v58 = vpop.eup %8926  ;;  %v7140_v59 = vsel %vm15822_vm7, %v6884_v36, 0.0  ;;  %vm13767_vm0 = vcmp.lt.f32.partialorder %v6221_v60, 0.0004427343 }
 0x6d1   : > { %v6229_v15 = vmul.f32 %v13673_v7, %v6228_v56  ;;  %v5357_v45 = vsub.f32 0.0, %v5229_v1  ;;  %v6214_v53 = vsel %vm13750_vm6, %v6211_v26, %v6208_v13  ;;  %v6226_v37 = vmul.f32 0.6931472, %v8927_v58 }
 0x6d2   : > { %v6245_v54 = vmul.f32 -0.5, %v13722_v61  ;;  %8932 = vlog2.f32 %v6251_v27  ;;  %v6205_v20 = vsel %vm13734_vm12, %v6202_v34, %v6199_v14  ;;  %vm13777_vm13 = vcmp.lt.f32.partialorder %v6230_v29, 0.0004427343 }
 0x6d3   : > { %8934 = vpow2.f32 %v5549_v52  ;;  %v13782_v25 = vadd.f32 %v4433_v6, %v12253_v30  ;;  %v6217_v7 = vmul.f32 0.6931472, %v8925_v16  ;;  %v6232_v42 = vsel %vm13777_vm13, %v6229_v15, %v6226_v37 }
 0x6d4   : > { %v6237_v12 = vadd.f32 1.0, %v6236_v44  ;;  %v5358_v36 = vsub.f32 0.0, %v5230_v28  ;;  %v6886_v60 = vadd.f32 %v6214_v53, %v13658_v33  ;;  %v6239_v56 = vand.u32 2147483647, %v13705_v24  ;;  %v4437_v53 = vpop.f32.mrf.mxu0 }
 0x6d5   : > { %v5551_v9 = vmul.f32 1.442695, %v5357_v45  ;;  %v13789_v34 = vadd.f32 %v4435_v5, %v12259_v22  ;;  %v8929_v1 = vpop.eup %8928  ;;  %v7308_v46 = vadd.f32 %v7307_v49, %v7140_v59  ;;  %v6885_v13 = vadd.f32 %v6205_v20, %v13624_v31  ;;  %v15827_v31 = vld [vmem:[#allocation33_spill] sm:$0xff] }
 0x6d6   : > { %v6220_v23 = vmul.f32 %v13663_v39, %v6219_v41  ;;  %v6246_v35 = vadd.f32 1.0, %v6245_v54  ;;  %v6888_v6 = vadd.f32 %v6232_v42, %v13703_v51  ;;  %v6235_v14 = vmul.f32 0.6931472, %v8929_v1  ;;  %v4439_v1 = vpop.f32.mrf.mxu0 }
 0x6d7   : > { %v6248_v26 = vand.u32 2147483647, %v13722_v61  ;;  %v5231_v33 = vand.u32 2147483647, %v13782_v25  ;;  %v6238_v52 = vmul.f32 %v13705_v24, %v6237_v12  ;;  %v6254_v16 = vmul.f32 -0.5, %v13758_v62 }
 0x6d8   : > { %v6223_v29 = vsel %vm13767_vm0, %v6220_v23, %v6217_v7  ;;  %v5553_v49 = vmul.f32 1.442695, %v5358_v36  ;;  %vm15828_vm8 = vcmp.lt.s32.totalorder %v15827_v31, 1100  ;;  %vm13802_vm9 = vcmp.lt.f32.partialorder %v6239_v56, 0.0004427343  ;;  %v15835_v56 = vld [vmem:[#allocation35_spill] sm:$0xff] }
 0x6d9   : > { %v8931_v44 = vpop.eup %8930  ;;  %v7142_v39 = vsel %vm15828_vm8, %v6886_v60, 0.0  ;;  %8936 = vpow2.f32 %v5551_v9  ;;  %v5232_v51 = vand.u32 2147483647, %v13789_v34  ;;  %vm15831_vm10 = vmmov %vm15828_vm8  ;;  %v6241_v24 = vsel %vm13802_vm9, %v6238_v52, %v6235_v14 }
 0x6da   : > { %v7141_v27 = vsel %vm15831_vm10, %v6885_v13, 0.0  ;;  %v6244_v28 = vmul.f32 0.6931472, %v8931_v44  ;;  %v6247_v58 = vmul.f32 %v13722_v61, %v6246_v35  ;;  %v6887_v59 = vadd.f32 %v6223_v29, %v13661_v8  ;;  %v15838_v44 = vld [vmem:[#allocation36_spill] sm:$0xff] }
 0x6db   : > { %vm15833_vm14 = vcmp.lt.s32.totalorder %v15832_v40, 1100  ;;  %vm6249_vm11 = vcmp.lt.f32.partialorder %v6248_v26, 0.0004427343  ;;  %v5359_v45 = vsub.f32 0.0, %v5231_v33  ;;  %v7309_v37 = vadd.f32 %v7308_v46, %v7142_v39 }
 0x6dc   : > { %v7144_v15 = vsel %vm15833_vm14, %v6888_v6, 0.0  ;;  %v6250_v54 = vsel %vm6249_vm11, %v6247_v58, %v6244_v28  ;;  %v6255_v5 = vadd.f32 1.0, %v6254_v16  ;;  %8938 = vpow2.f32 %v5553_v49  ;;  %vm15834_vm1 = vmmov %vm15833_vm14  ;;  %v4443_v16 = vpop.f32.mrf.mxu0 }
 0x6dd   : > { %v6889_v20 = vadd.f32 %v6241_v24, %v13709_v50  ;;  %v6890_v48 = vadd.f32 %v6250_v54, %v13720_v63  ;;  %v6257_v7 = vand.u32 2147483647, %v13758_v62  ;;  %v5360_v42 = vsub.f32 0.0, %v5232_v51  ;;  %v9252_v54 = vld [vmem:[%s9487_s22 + $0x208] sm:$0xff] }
 0x6de   : > { %v7239_v8 = vadd.f32 %v13716_v17, %v13748_v19  ;;  %v7310_v61 = vadd.f32 %v7309_v37, %v7144_v15  ;;  %v13821_v12 = vadd.f32 %v4437_v53, %v12253_v30  ;;  %v7143_v60 = vsel %vm15834_vm1, %v6887_v59, 0.0  ;;  %v4445_v41 = vpop.f32.mrf.mxu0 }
 0x6df   : > { %v8933_v36 = vpop.eup %8932  ;;  %vm15836_vm2 = vcmp.lt.s32.totalorder %v15835_v56, 1100  ;;  %v5555_v50 = vmul.f32 1.442695, %v5359_v45  ;;  %v6256_v17 = vmul.f32 %v13758_v62, %v6255_v5  ;;  %v5099_v35 = vsub.f32 %v4843_v43, %v13756_v0  ;;  %v9254_v56 = vld [vmem:[%s9487_s22 + $0x218] sm:$0xff] }
 0x6e0   : > { %v7146_v9 = vsel %vm15836_vm2, %v6890_v48, 0.0  ;;  %v13827_v63 = vpop.eup %8934  ;;  %v7240_v46 = vadd.f32 %v7239_v8, %v7141_v27  ;;  %v6253_v23 = vmul.f32 0.6931472, %v8933_v36  ;;  %vm15837_vm3 = vmmov %vm15836_vm2  ;;  %vm6258_vm4 = vcmp.lt.f32.partialorder %v6257_v7, 0.0004427343  ;;  %v4447_v15 = vpop.f32.mrf.mxu0  ;;  %v9253_v8 = vld [vmem:[%s9487_s22 + $0x210] sm:$0xff] }
 0x6e1   : > { %v13829_v13 = vadd.f32 %v7310_v61, %v7146_v9  ;;  %v7145_v19 = vsel %vm15837_vm3, %v6889_v20, 0.0  ;;  %v5557_v6 = vmul.f32 1.442695, %v5360_v42  ;;  %v5233_v33 = vand.u32 2147483647, %v13821_v12 }
 0x6e2   : > { %v7241_v14 = vadd.f32 %v7240_v46, %v7143_v60  ;;  %v6259_v26 = vsel %vm6258_vm4, %v6256_v17, %v6253_v23  ;;  %8940 = vpow2.f32 %v5555_v50  ;;  %v13839_v52 = vadd.f32 %v4439_v1, %v12259_v22  ;;  %v4449_v17 = vpop.f32.mrf.mxu0 }
 0x6e3   : > { %v6891_v29 = vadd.f32 %v6259_v26, %v5099_v35  ;;  %v6260_v49 = vadd.f32 1.0, %v13827_v63  ;;  %vm15839_vm5 = vcmp.lt.s32.totalorder %v15838_v44, 1100  ;;  %8942 = vpow2.f32 %v5557_v6 }
 0x6e4   : > { %v7242_v62 = vadd.f32 %v7241_v14, %v7145_v19  ;;  %v5361_v0 = vsub.f32 0.0, %v5233_v33  ;;  %v5234_v39 = vand.u32 2147483647, %v13839_v52  ;;  %v13850_v51 = vadd.f32 %v4443_v16, %v12253_v30  ;;  %vm15846_vm7 = vmmov %vm15839_vm5 }
 0x6e5   : > { %v7147_v31 = vsel %vm15839_vm5, %v6891_v29, 0.0  ;;  %8944 = vlog2.f32 %v6260_v49  ;;  %v13856_v58 = vadd.f32 %v4445_v41, %v12259_v22  ;;  %v4844_v37 = vmax.f32 %v13691_v55, 0.0 }
 0x6e6   : > { %v13844_v21 = vpop.eup %8936  ;;  %v13846_v43 = vadd.f32 %v7242_v62, %v7147_v31  ;;  %v5559_v28 = vmul.f32 1.442695, %v5361_v0  ;;  %v5362_v59 = vsub.f32 0.0, %v5234_v39  ;;  %v5235_v40 = vand.u32 2147483647, %v13850_v51  ;;  %v9256_v31 = vld [vmem:[%s9487_s22 + $0x228] sm:$0xff] }
 0x6e7   : > { %v6269_v24 = vadd.f32 1.0, %v13844_v21  ;;  %v5236_v53 = vand.u32 2147483647, %v13856_v58  ;;  %v4972_v5 = vmul.f32 %v9252_v54, %v13691_v55  ;;  %v13865_v48 = vadd.f32 %v4447_v15, %v12253_v30 }
 0x6e8   : > { %v5561_v20 = vmul.f32 1.442695, %v5362_v59  ;;  %v4845_v42 = vmax.f32 %v13727_v32, 0.0  ;;  %v4973_v61 = vmul.f32 %v9253_v8, %v13727_v32  ;;  %v5363_v36 = vsub.f32 0.0, %v5235_v40 }
 0x6e9   : > { %v13852_v27 = vpop.eup %8938  ;;  %8946 = vlog2.f32 %v6269_v24  ;;  %v4846_v60 = vmax.f32 %v13741_v3, 0.0  ;;  %v4974_v9 = vmul.f32 %v9254_v56, %v13741_v3  ;;  %v6263_v50 = vmul.f32 -0.5, %v13827_v63  ;;  %v9255_v3 = vld [vmem:[%s9487_s22 + $0x220] sm:$0xff]  ;;  %v9257_v24 = vld [vmem:[%s9487_s22 + $0x230] sm:$0xff] }
 0x6ea   : > { %v6278_v45 = vadd.f32 1.0, %v13852_v27  ;;  %8948 = vpow2.f32 %v5559_v28  ;;  %v5364_v1 = vsub.f32 0.0, %v5236_v53  ;;  %v5100_v46 = vsub.f32 %v4844_v37, %v4972_v5  ;;  %v4453_v53 = vpop.f32.mrf.mxu0 }
 0x6eb   : > { %v5237_v32 = vand.u32 2147483647, %v13865_v48  ;;  %v13880_v19 = vsub.f32 %v4845_v42, %v4973_v61  ;;  %v4847_v35 = vmax.f32 %v13782_v25, 0.0  ;;  %v4975_v6 = vmul.f32 %v9255_v3, %v13782_v25 }
 0x6ec   : > { %8950 = vlog2.f32 %v6278_v45  ;;  %v5563_v14 = vmul.f32 1.442695, %v5363_v36  ;;  %v6266_v33 = vand.u32 2147483647, %v13827_v63  ;;  %v13886_v29 = vsub.f32 %v4846_v60, %v4974_v9 }
 0x6ed   : > { %8952 = vpow2.f32 %v5561_v20  ;;  %v4848_v16 = vmax.f32 %v13789_v34, 0.0  ;;  %v6264_v49 = vadd.f32 1.0, %v6263_v50  ;;  %v4976_v0 = vmul.f32 %v9256_v31, %v13789_v34  ;;  %v15851_v31 = vld [vmem:[#allocation37_spill] sm:$0xff] }
 0x6ee   : > { %v5565_v39 = vmul.f32 1.442695, %v5364_v1  ;;  %v13893_v41 = vadd.f32 %v4449_v17, %v12259_v22  ;;  %v4849_v25 = vmax.f32 %v13821_v12, 0.0  ;;  %v4977_v28 = vmul.f32 %v9257_v24, %v13821_v12 }
 0x6ef   : > { %v13867_v7 = vpop.eup %8940  ;;  %v5365_v59 = vsub.f32 0.0, %v5237_v32  ;;  %v6272_v15 = vmul.f32 -0.5, %v13844_v21  ;;  %v13899_v45 = vsub.f32 %v4847_v35, %v4975_v6  ;;  %vm13901_vm12 = vcmp.lt.f32.partialorder %v6266_v33, 0.0004427343  ;;  %v4455_v32 = vpop.f32.mrf.mxu0  ;;  %v9259_v6 = vld [vmem:[%s9487_s22 + $0x240] sm:$0xff] }
 0x6f0   : > { %v13875_v55 = vpop.eup %8942  ;;  %v6287_v23 = vadd.f32 1.0, %v13867_v7  ;;  %v6275_v37 = vand.u32 2147483647, %v13844_v21  ;;  %v6281_v54 = vmul.f32 -0.5, %v13852_v27  ;;  %v6265_v12 = vmul.f32 %v13827_v63, %v6264_v49  ;;  %v9258_v63 = vld [vmem:[%s9487_s22 + $0x238] sm:$0xff] }
 0x6f1   : > { %v6296_v62 = vadd.f32 1.0, %v13875_v55  ;;  %v13908_v20 = vsub.f32 %v4848_v16, %v4976_v0  ;;  %v5238_v42 = vand.u32 2147483647, %v13893_v41  ;;  %v6284_v61 = vand.u32 2147483647, %v13852_v27 }
 0x6f2   : > { %v8945_v26 = vpop.eup %8944  ;;  %8954 = vlog2.f32 %v6287_v23  ;;  %v13914_v36 = vsub.f32 %v4849_v25, %v4977_v28  ;;  %v4850_v60 = vmax.f32 %v13839_v52, 0.0  ;;  %v5567_v56 = vmul.f32 1.442695, %v5365_v59 }
 0x6f3   : > { %v6262_v40 = vmul.f32 0.6931472, %v8945_v26  ;;  %8956 = vpow2.f32 %v5563_v14  ;;  %v6273_v50 = vadd.f32 1.0, %v6272_v15  ;;  %v4978_v1 = vmul.f32 %v9258_v63, %v13839_v52 }
 0x6f4   : > { %8958 = vlog2.f32 %v6296_v62  ;;  %v13922_v23 = vadd.f32 %v4453_v53, %v12253_v30  ;;  %vm13924_vm15 = vcmp.lt.f32.partialorder %v6275_v37, 0.0004427343  ;;  %v6282_v35 = vadd.f32 1.0, %v6281_v54 }
 0x6f5   : > { %8960 = vpow2.f32 %v5565_v39  ;;  %v6268_v9 = vsel %vm13901_vm12, %v6265_v12, %v6262_v40  ;;  %v4851_v3 = vmax.f32 %v13850_v51, 0.0  ;;  %v4979_v14 = vmul.f32 %v9259_v6, %v13850_v51  ;;  %v4457_v12 = vpop.f32.mrf.mxu0 }
 0x6f6   : > { %v8947_v5 = vpop.eup %8946  ;;  %v6290_v16 = vmul.f32 -0.5, %v13867_v7  ;;  %v5366_v62 = vsub.f32 0.0, %v5238_v42  ;;  %v6892_v49 = vadd.f32 %v6268_v9, %v5100_v46  ;;  %vm13933_vm6 = vcmp.lt.f32.partialorder %v6284_v61, 0.0004427343  ;;  %v9260_v9 = vld [vmem:[%s9487_s22 + $0x248] sm:$0xff] }
 0x6f7   : > { %v13911_v8 = vpop.eup %8948  ;;  %v6271_v33 = vmul.f32 0.6931472, %v8947_v5  ;;  %8962 = vpow2.f32 %v5567_v56  ;;  %v13938_v0 = vadd.f32 %v4455_v32, %v12259_v22  ;;  %v6274_v51 = vmul.f32 %v13844_v21, %v6273_v50 }
 0x6f8   : > { %v6305_v52 = vadd.f32 1.0, %v13911_v8  ;;  %v6293_v25 = vand.u32 2147483647, %v13867_v7  ;;  %v6299_v24 = vmul.f32 -0.5, %v13875_v55  ;;  %v5239_v28 = vand.u32 2147483647, %v13922_v23 }
 0x6f9   : > { %v8951_v26 = vpop.eup %8950  ;;  %v6283_v46 = vmul.f32 %v13852_v27, %v6282_v35  ;;  %v13947_v40 = vsub.f32 %v4850_v60, %v4978_v1  ;;  %v13949_v15 = vsub.f32 %v4851_v3, %v4979_v14  ;;  %v6277_v53 = vsel %vm13924_vm15, %v6274_v51, %v6271_v33  ;;  %v9261_v35 = vld [vmem:[%s9487_s22 + $0x250] sm:$0xff] }
 0x6fa   : > { %v13940_v39 = vpop.eup %8952  ;;  %v6280_v59 = vmul.f32 0.6931472, %v8951_v26  ;;  %v6291_v34 = vadd.f32 1.0, %v6290_v16  ;;  %8964 = vlog2.f32 %v6305_v52  ;;  %v5569_v21 = vmul.f32 1.442695, %v5366_v62 }
 0x6fb   : > { %v7148_v37 = vsel %vm15846_vm7, %v6892_v49, 0.0  ;;  %v6302_v54 = vand.u32 2147483647, %v13875_v55  ;;  %v6314_v5 = vadd.f32 1.0, %v13940_v39  ;;  %v5240_v27 = vand.u32 2147483647, %v13938_v0 }
 0x6fc   : > { %vm13958_vm0 = vcmp.lt.f32.partialorder %v6293_v25, 0.0004427343  ;;  %v6300_v60 = vadd.f32 1.0, %v6299_v24  ;;  %v4852_v56 = vmax.f32 %v13856_v58, 0.0  ;;  %v4980_v44 = vmul.f32 %v9260_v9, %v13856_v58  ;;  %v9262_v9 = vld [vmem:[%s9487_s22 + $0x258] sm:$0xff] }
 0x6fd   : > { %v5367_v50 = vsub.f32 0.0, %v5239_v28  ;;  %v6893_v1 = vadd.f32 %v6277_v53, %v13880_v19  ;;  %v6286_v32 = vsel %vm13933_vm6, %v6283_v46, %v6280_v59  ;;  %v4853_v17 = vmax.f32 %v13865_v48, 0.0 }
 0x6fe   : > { %v4981_v3 = vmul.f32 %v9261_v35, %v13865_v48  ;;  %v7312_v14 = vadd.f32 %v13829_v13, %v7148_v37  ;;  %v6292_v26 = vmul.f32 %v13867_v7, %v6291_v34  ;;  %8966 = vpow2.f32 %v5569_v21  ;;  %v4459_v48 = vpop.f32.mrf.mxu0 }
 0x6ff   : > { %v8955_v42 = vpop.eup %8954  ;;  %v13976_v58 = vadd.f32 %v4457_v12, %v12253_v30  ;;  %vm13980_vm13 = vcmp.lt.f32.partialorder %v6302_v54, 0.0004427343  ;;  %v6308_v16 = vmul.f32 -0.5, %v13911_v8  ;;  %8968 = vlog2.f32 %v6314_v5 }
 0x700   : > { %v13965_v63 = vpop.eup %8956  ;;  %v5368_v52 = vsub.f32 0.0, %v5240_v27  ;;  %v6894_v62 = vadd.f32 %v6286_v32, %v13886_v29  ;;  %v6301_v13 = vmul.f32 %v13875_v55, %v6300_v60  ;;  %v13987_v7 = vsub.f32 %v4852_v56, %v4980_v44  ;;  %v4463_v54 = vpop.f32.mrf.mxu0 }
 0x701   : > { %v8959_v6 = vpop.eup %8958  ;;  %v5571_v49 = vmul.f32 1.442695, %v5367_v50  ;;  %vm15852_vm8 = vcmp.lt.s32.totalorder %v15851_v31, 1100  ;;  %v6289_v25 = vmul.f32 0.6931472, %v8955_v42  ;;  %v6323_v24 = vadd.f32 1.0, %v13965_v63 }
 0x702   : > { %v13978_v33 = vpop.eup %8960  ;;  %v7149_v51 = vsel %vm15852_vm8, %v6893_v1, 0.0  ;;  %v13992_v28 = vsub.f32 %v4853_v17, %v4981_v3  ;;  %v6298_v59 = vmul.f32 0.6931472, %v8959_v6  ;;  %v6317_v46 = vmul.f32 -0.5, %v13940_v39  ;;  %vm15853_vm9 = vmmov %vm15852_vm8  ;;  %v4465_v3 = vpop.f32.mrf.mxu0 }
 0x703   : > { %v6332_v53 = vadd.f32 1.0, %v13978_v33  ;;  %v5241_v29 = vand.u32 2147483647, %v13976_v58  ;;  %v6309_v55 = vadd.f32 1.0, %v6308_v16  ;;  %v6311_v34 = vand.u32 2147483647, %v13911_v8 }
 0x704   : > { %v5573_v21 = vmul.f32 1.442695, %v5368_v52  ;;  %v13999_v37 = vadd.f32 %v4459_v48, %v12259_v22  ;;  %v14001_v5 = vpop.eup %8962  ;;  %v7244_v27 = vadd.f32 %v13846_v43, %v7149_v51  ;;  %v7150_v12 = vsel %vm15853_vm9, %v6894_v62, 0.0  ;;  %v9263_v62 = vld [vmem:[%s9487_s22 + $0x260] sm:$0xff] }
 0x705   : > { %v4854_v42 = vmax.f32 %v13893_v41, 0.0  ;;  %8970 = vpow2.f32 %v5571_v49  ;;  %v6295_v60 = vsel %vm13958_vm0, %v6292_v26, %v6289_v25  ;;  %v6320_v56 = vand.u32 2147483647, %v13940_v39 }
 0x706   : > { %8972 = vlog2.f32 %v6323_v24  ;;  %v4982_v44 = vmul.f32 %v9262_v9, %v13893_v41  ;;  %v6304_v50 = vsel %vm13980_vm13, %v6301_v13, %v6298_v59  ;;  %v6318_v1 = vadd.f32 1.0, %v6317_v46  ;;  %v15858_v59 = vld [vmem:[#allocation38_spill] sm:$0xff] }
 0x707   : > { %8974 = vlog2.f32 %v6332_v53  ;;  %v5369_v43 = vsub.f32 0.0, %v5241_v29  ;;  %v8965_v32 = vpop.eup %8964  ;;  %v6341_v17 = vadd.f32 1.0, %v14001_v5  ;;  %v5242_v61 = vand.u32 2147483647, %v13999_v37 }
 0x708   : > { %8976 = vpow2.f32 %v5573_v21  ;;  %v14017_v35 = vadd.f32 %v4463_v54, %v12253_v30  ;;  %v7313_v6 = vadd.f32 %v7312_v14, %v7150_v12  ;;  %v6895_v41 = vadd.f32 %v6295_v60, %v13899_v45  ;;  %v9264_v12 = vld [vmem:[%s9487_s22 + $0x268] sm:$0xff]  ;;  %v15865_v14 = vld [vmem:[#allocation39_spill] sm:$0xff] }
 0x709   : > { %vm14020_vm10 = vcmp.lt.f32.partialorder %v6311_v34, 0.0004427343  ;;  %v6326_v19 = vmul.f32 -0.5, %v13965_v63  ;;  %v6896_v16 = vadd.f32 %v6304_v50, %v13908_v20  ;;  %v6310_v52 = vmul.f32 %v13911_v8, %v6309_v55  ;;  %v4467_v34 = vpop.f32.mrf.mxu0 }
 0x70a   : > { %v4855_v48 = vmax.f32 %v13922_v23, 0.0  ;;  %v4983_v13 = vmul.f32 %v9263_v62, %v13922_v23  ;;  %v6307_v49 = vmul.f32 0.6931472, %v8965_v32  ;;  %vm14030_vm14 = vcmp.lt.f32.partialorder %v6320_v56, 0.0004427343 }
 0x70b   : > { %v14034_v45 = vsub.f32 %v4854_v42, %v4982_v44  ;;  %v5575_v31 = vmul.f32 1.442695, %v5369_v43  ;;  %v14037_v51 = vadd.f32 %v4465_v3, %v12259_v22  ;;  %v14039_v20 = vpop.eup %8966  ;;  %v6319_v8 = vmul.f32 %v13940_v39, %v6318_v1  ;;  %v4469_v3 = vpop.f32.mrf.mxu0 }
 0x70c   : > { %8978 = vlog2.f32 %v6341_v17  ;;  %v5370_v25 = vsub.f32 0.0, %v5242_v61  ;;  %v5243_v23 = vand.u32 2147483647, %v14017_v35  ;;  %v8969_v24 = vpop.eup %8968  ;;  %vm15859_vm11 = vcmp.lt.s32.totalorder %v15858_v59, 1100 }
 0x70d   : > { %v7151_v46 = vsel %vm15859_vm11, %v6895_v41, 0.0  ;;  %v6327_v53 = vadd.f32 1.0, %v6326_v19  ;;  %v6329_v29 = vand.u32 2147483647, %v13965_v63  ;;  %v6335_v55 = vmul.f32 -0.5, %v13978_v33  ;;  %vm15860_vm1 = vmmov %vm15859_vm11 }
 0x70e   : > { %v7152_v21 = vsel %vm15860_vm1, %v6896_v16, 0.0  ;;  %v14049_v54 = vsub.f32 %v4855_v48, %v4983_v13  ;;  %v4856_v39 = vmax.f32 %v13938_v0, 0.0  ;;  %v4984_v42 = vmul.f32 %v9264_v12, %v13938_v0 }
 0x70f   : > { %v6313_v60 = vsel %vm14020_vm10, %v6310_v52, %v6307_v49  ;;  %v6350_v56 = vadd.f32 1.0, %v14039_v20  ;;  %8980 = vpow2.f32 %v5575_v31  ;;  %v5244_v9 = vand.u32 2147483647, %v14037_v51 }
 0x710   : > { %v7245_v44 = vadd.f32 %v7244_v27, %v7151_v46  ;;  %v6316_v50 = vmul.f32 0.6931472, %v8969_v24  ;;  %v5577_v1 = vmul.f32 1.442695, %v5370_v25  ;;  %v5371_v43 = vsub.f32 0.0, %v5243_v23 }
 0x711   : > { %v6328_v32 = vmul.f32 %v13965_v63, %v6327_v53  ;;  %vm14059_vm2 = vcmp.lt.f32.partialorder %v6329_v29, 0.0004427343  ;;  %v6336_v61 = vadd.f32 1.0, %v6335_v55  ;;  %v6338_v0 = vand.u32 2147483647, %v13978_v33 }
 0x712   : > { %v14064_v41 = vpop.eup %8970  ;;  %v7314_v26 = vadd.f32 %v7313_v6, %v7152_v21  ;;  %v6897_v19 = vadd.f32 %v6313_v60, %v13914_v36  ;;  %v6344_v27 = vmul.f32 -0.5, %v14001_v5  ;;  %v14069_v16 = vadd.f32 %v4467_v34, %v12253_v30  ;;  %v9265_v34 = vld [vmem:[%s9487_s22 + $0x270] sm:$0xff] }
 0x713   : > { %v8973_v52 = vpop.eup %8972  ;;  %v6347_v63 = vand.u32 2147483647, %v14001_v5  ;;  %8982 = vlog2.f32 %v6350_v56  ;;  %v14072_v48 = vsub.f32 %v4856_v39, %v4984_v42  ;;  %v5372_v62 = vsub.f32 0.0, %v5244_v9 }
 0x714   : > { %v8975_v13 = vpop.eup %8974  ;;  %v6322_v49 = vsel %vm14030_vm14, %v6319_v8, %v6316_v50  ;;  %8984 = vpow2.f32 %v5577_v1  ;;  %v5579_v6 = vmul.f32 1.442695, %v5371_v43  ;;  %v14077_v36 = vadd.f32 %v4469_v3, %v12259_v22  ;;  %v9266_v50 = vld [vmem:[%s9487_s22 + $0x278] sm:$0xff]  ;;  %v4473_v43 = vpop.f32.mrf.mxu0 }
 0x715   : > { %v14079_v31 = vpop.eup %8976  ;;  %v6337_v25 = vmul.f32 %v13978_v33, %v6336_v61  ;;  %vm14082_vm3 = vcmp.lt.f32.partialorder %v6338_v0, 0.0004427343  ;;  %v6359_v24 = vadd.f32 1.0, %v14064_v41  ;;  %v4857_v59 = vmax.f32 %v13976_v58, 0.0  ;;  %v9267_v0 = vld [vmem:[%s9487_s22 + $0x280] sm:$0xff] }
 0x716   : > { %vm15866_vm4 = vcmp.lt.s32.totalorder %v15865_v14, 1100  ;;  %v6325_v46 = vmul.f32 0.6931472, %v8973_v52  ;;  %v6345_v53 = vadd.f32 1.0, %v6344_v27  ;;  %v5245_v29 = vand.u32 2147483647, %v14069_v16 }
 0x717   : > { %v7153_v8 = vsel %vm15866_vm4, %v6897_v19, 0.0  ;;  %v6898_v55 = vadd.f32 %v6322_v49, %v13947_v40  ;;  %vm14092_vm5 = vcmp.lt.f32.partialorder %v6347_v63, 0.0004427343  ;;  %v4985_v21 = vmul.f32 %v9265_v34, %v13976_v58  ;;  %vm15869_vm12 = vmmov %vm15866_vm4 }
 0x718   : > { %v5581_v39 = vmul.f32 1.442695, %v5372_v62  ;;  %v6334_v12 = vmul.f32 0.6931472, %v8975_v13  ;;  %v6368_v42 = vadd.f32 1.0, %v14079_v31  ;;  %8986 = vpow2.f32 %v5579_v6  ;;  %v4475_v6 = vpop.f32.mrf.mxu0 }
 0x719   : > { %v5246_v60 = vand.u32 2147483647, %v14077_v36  ;;  %v8979_v56 = vpop.eup %8978  ;;  %v14100_v9 = vadd.f32 %v7245_v44, %v7153_v8  ;;  %8988 = vlog2.f32 %v6359_v24  ;;  %v4858_v40 = vmax.f32 %v13999_v37, 0.0 }
 0x71a   : > { %v4986_v1 = vmul.f32 %v9266_v50, %v13999_v37  ;;  %v6331_v58 = vsel %vm14059_vm2, %v6328_v32, %v6325_v46  ;;  %v4859_v61 = vmax.f32 %v14017_v35, 0.0  ;;  %v4987_v3 = vmul.f32 %v9267_v0, %v14017_v35  ;;  %v4477_v50 = vpop.f32.mrf.mxu0 }
 0x71b   : > { %v5373_v19 = vsub.f32 0.0, %v5245_v29  ;;  %v7154_v44 = vsel %vm15869_vm12, %v6898_v55, 0.0  ;;  %v6353_v27 = vmul.f32 -0.5, %v14039_v20  ;;  %v6356_v52 = vand.u32 2147483647, %v14039_v20 }
 0x71c   : > { %8990 = vpow2.f32 %v5581_v39  ;;  %v14114_v63 = vpop.eup %8980  ;;  %v6340_v37 = vsel %vm14082_vm3, %v6337_v25, %v6334_v12  ;;  %v6343_v32 = vmul.f32 0.6931472, %v8979_v56  ;;  %v5374_v17 = vsub.f32 0.0, %v5246_v60  ;;  %v9268_v56 = vld [vmem:[%s9487_s22 + $0x288] sm:$0xff] }
 0x71d   : > { %8992 = vlog2.f32 %v6368_v42  ;;  %v6899_v62 = vadd.f32 %v6331_v58, %v13949_v15  ;;  %v6346_v35 = vmul.f32 %v14001_v5, %v6345_v53  ;;  %v14120_v13 = vsub.f32 %v4857_v59, %v4985_v21  ;;  %v9270_v15 = vld [vmem:[%s9487_s22 + $0x298] sm:$0xff] }
 0x71e   : > { %v14123_v49 = vadd.f32 %v4473_v43, %v12253_v30  ;;  %v7315_v24 = vadd.f32 %v7314_v26, %v7154_v44  ;;  %v6362_v14 = vmul.f32 -0.5, %v14064_v41  ;;  %v14126_v8 = vsub.f32 %v4858_v40, %v4986_v1 }
 0x71f   : > { %v5583_v23 = vmul.f32 1.442695, %v5373_v19  ;;  %v6900_v25 = vadd.f32 %v6340_v37, %v13987_v7  ;;  %v6354_v46 = vadd.f32 1.0, %v6353_v27  ;;  %vm14129_vm15 = vcmp.lt.f32.partialorder %v6356_v52, 0.0004427343  ;;  %v15872_v7 = vld [vmem:[#allocation40_spill] sm:$0xff] }
 0x720   : > { %v6377_v5 = vadd.f32 1.0, %v14114_v63  ;;  %v8983_v59 = vpop.eup %8982  ;;  %v6349_v53 = vsel %vm14092_vm5, %v6346_v35, %v6343_v32  ;;  %v14136_v26 = vsub.f32 %v4859_v61, %v4987_v3  ;;  %v5585_v29 = vmul.f32 1.442695, %v5374_v17  ;;  %v4479_v35 = vpop.f32.mrf.mxu0 }
 0x721   : > { %v14139_v55 = vadd.f32 %v4475_v6, %v12259_v22  ;;  %v14141_v34 = vpop.eup %8984  ;;  %vm15873_vm6 = vcmp.lt.s32.totalorder %v15872_v7, 1100  ;;  %v6371_v39 = vmul.f32 -0.5, %v14079_v31  ;;  %v4860_v12 = vmax.f32 %v14037_v51, 0.0 }
 0x722   : > { %v7155_v21 = vsel %vm15873_vm6, %v6899_v62, 0.0  ;;  %v5247_v42 = vand.u32 2147483647, %v14123_v49  ;;  %v6363_v60 = vadd.f32 1.0, %v6362_v14  ;;  %v6365_v33 = vand.u32 2147483647, %v14064_v41  ;;  %vm15874_vm7 = vmmov %vm15873_vm6 }
 0x723   : > { %v4988_v40 = vmul.f32 %v9268_v56, %v14037_v51  ;;  %8994 = vpow2.f32 %v5583_v23  ;;  %v7156_v1 = vsel %vm15874_vm7, %v6900_v25, 0.0  ;;  %v6901_v43 = vadd.f32 %v6349_v53, %v13992_v28 }
 0x724   : > { %v6374_v58 = vand.u32 2147483647, %v14079_v31  ;;  %8996 = vlog2.f32 %v6377_v5  ;;  %v6352_v61 = vmul.f32 0.6931472, %v8983_v59  ;;  %v6386_v0 = vadd.f32 1.0, %v14141_v34 }
 0x725   : > { %8998 = vpow2.f32 %v5585_v29  ;;  %v5248_v3 = vand.u32 2147483647, %v14139_v55  ;;  %v14157_v19 = vpop.eup %8986  ;;  %v6355_v51 = vmul.f32 %v14039_v20, %v6354_v46  ;;  %v6372_v44 = vadd.f32 1.0, %v6371_v39  ;;  %v15877_v20 = vld [vmem:[#allocation41_spill] sm:$0xff]  ;;  %v9269_v39 = vld [vmem:[%s9487_s22 + $0x290] sm:$0xff] }
 0x726   : > { %v5375_v27 = vsub.f32 0.0, %v5247_v42  ;;  %v14161_v52 = vadd.f32 %v4477_v50, %v12253_v30  ;;  %v8989_v37 = vpop.eup %8988  ;;  %v7247_v28 = vadd.f32 %v14100_v9, %v7155_v21  ;;  %v6364_v32 = vmul.f32 %v14064_v41, %v6363_v60 }
 0x727   : > { %vm14165_vm0 = vcmp.lt.f32.partialorder %v6365_v33, 0.0004427343  ;;  %v14169_v62 = vsub.f32 %v4860_v12, %v4988_v40  ;;  %v7316_v6 = vadd.f32 %v7315_v24, %v7156_v1  ;;  %vm15878_vm13 = vcmp.lt.s32.totalorder %v15877_v20, 1100  ;;  %v4483_v33 = vpop.f32.mrf.mxu0 }
 0x728   : > { %v7157_v14 = vsel %vm15878_vm13, %v6901_v43, 0.0  ;;  %vm14173_vm8 = vcmp.lt.f32.partialorder %v6374_v58, 0.0004427343  ;;  %v4861_v9 = vmax.f32 %v14069_v16, 0.0  ;;  %v6358_v25 = vsel %vm14129_vm15, %v6355_v51, %v6352_v61  ;;  %vm15881_vm9 = vmmov %vm15878_vm13 }
 0x729   : > { %v14178_v41 = vpop.eup %8990  ;;  %9000 = vlog2.f32 %v6386_v0  ;;  %v6395_v46 = vadd.f32 1.0, %v14157_v19  ;;  %v5376_v5 = vsub.f32 0.0, %v5248_v3  ;;  %v6361_v59 = vmul.f32 0.6931472, %v8989_v37 }
 0x72a   : > { %v8993_v24 = vpop.eup %8992  ;;  %v6373_v53 = vmul.f32 %v14079_v31, %v6372_v44  ;;  %v5587_v29 = vmul.f32 1.442695, %v5375_v27  ;;  %v5249_v7 = vand.u32 2147483647, %v14161_v52  ;;  %v6380_v21 = vmul.f32 -0.5, %v14114_v63 }
 0x72b   : > { %v4989_v12 = vmul.f32 %v9269_v39, %v14069_v16  ;;  %v4862_v42 = vmax.f32 %v14077_v36, 0.0  ;;  %v4990_v60 = vmul.f32 %v9270_v15, %v14077_v36  ;;  %v7248_v56 = vadd.f32 %v7247_v28, %v7157_v14  ;;  %v9271_v39 = vld [vmem:[%s9487_s22 + $0x2a0] sm:$0xff]  ;;  %v15886_v15 = vld [vmem:[#allocation42_spill] sm:$0xff] }
 0x72c   : > { %v6902_v40 = vadd.f32 %v6358_v25, %v14034_v45  ;;  %v6383_v50 = vand.u32 2147483647, %v14114_v63  ;;  %v6404_v31 = vadd.f32 1.0, %v14178_v41  ;;  %v6370_v1 = vmul.f32 0.6931472, %v8993_v24 }
 0x72d   : > { %9002 = vlog2.f32 %v6395_v46  ;;  %v5589_v43 = vmul.f32 1.442695, %v5376_v5  ;;  %v14195_v58 = vadd.f32 %v4479_v35, %v12259_v22  ;;  %v6367_v16 = vsel %vm14165_vm0, %v6364_v32, %v6361_v59  ;;  %v4485_v32 = vpop.f32.mrf.mxu0 }
 0x72e   : > { %9004 = vpow2.f32 %v5587_v29  ;;  %v5377_v61 = vsub.f32 0.0, %v5249_v7  ;;  %v14200_v36 = vadd.f32 %v4483_v33, %v12253_v30  ;;  %v6381_v0 = vadd.f32 1.0, %v6380_v21 }
 0x72f   : > { %v6389_v45 = vmul.f32 -0.5, %v14141_v34  ;;  %v14203_v3 = vsub.f32 %v4861_v9, %v4989_v12  ;;  %v14205_v51 = vsub.f32 %v4862_v42, %v4990_v60  ;;  %v7158_v27 = vsel %vm15881_vm9, %v6902_v40, 0.0  ;;  %v4487_v42 = vpop.f32.mrf.mxu0 }
 0x730   : > { %v14207_v44 = vpop.eup %8994  ;;  %vm14211_vm10 = vcmp.lt.f32.partialorder %v6383_v50, 0.0004427343  ;;  %v6392_v28 = vand.u32 2147483647, %v14141_v34  ;;  %9006 = vlog2.f32 %v6404_v31  ;;  %v6903_v35 = vadd.f32 %v6367_v16, %v14049_v54 }
 0x731   : > { %v8997_v17 = vpop.eup %8996  ;;  %v6376_v14 = vsel %vm14173_vm8, %v6373_v53, %v6370_v1  ;;  %9008 = vpow2.f32 %v5589_v43  ;;  %v5250_v9 = vand.u32 2147483647, %v14195_v58  ;;  %v6398_v25 = vmul.f32 -0.5, %v14157_v19 }
 0x732   : > { %v14220_v20 = vpop.eup %8998  ;;  %v4863_v46 = vmax.f32 %v14123_v49, 0.0  ;;  %v5591_v5 = vmul.f32 1.442695, %v5377_v61  ;;  %v5251_v24 = vand.u32 2147483647, %v14200_v36  ;;  %v7317_v59 = vadd.f32 %v7316_v6, %v7158_v27 }
 0x733   : > { %v6382_v29 = vmul.f32 %v14114_v63, %v6381_v0  ;;  %v6390_v54 = vadd.f32 1.0, %v6389_v45  ;;  %v6413_v23 = vadd.f32 1.0, %v14207_v44  ;;  %v6904_v53 = vadd.f32 %v6376_v14, %v14072_v48 }
 0x734   : > { %vm14228_vm14 = vcmp.lt.f32.partialorder %v6392_v28, 0.0004427343  ;;  %v6401_v21 = vand.u32 2147483647, %v14157_v19  ;;  %v4991_v12 = vmul.f32 %v9271_v39, %v14123_v49  ;;  %vm15887_vm11 = vcmp.lt.s32.totalorder %v15886_v15, 1100  ;;  %v4489_v39 = vpop.f32.mrf.mxu0 }
 0x735   : > { %v7159_v6 = vsel %vm15887_vm11, %v6903_v35, 0.0  ;;  %v6379_v60 = vmul.f32 0.6931472, %v8997_v17  ;;  %v6422_v63 = vadd.f32 1.0, %v14220_v20  ;;  %v5378_v33 = vsub.f32 0.0, %v5250_v9  ;;  %vm15888_vm1 = vmmov %vm15887_vm11 }
 0x736   : > { %v9001_v40 = vpop.eup %9000  ;;  %v6399_v50 = vadd.f32 1.0, %v6398_v25  ;;  %9010 = vpow2.f32 %v5591_v5  ;;  %v5379_v48 = vsub.f32 0.0, %v5251_v24  ;;  %v14239_v31 = vadd.f32 %v4485_v32, %v12259_v22  ;;  %v9272_v5 = vld [vmem:[%s9487_s22 + $0x2a8] sm:$0xff] }
 0x737   : > { %v6391_v1 = vmul.f32 %v14141_v34, %v6390_v54  ;;  %v6407_v43 = vmul.f32 -0.5, %v14178_v41  ;;  %9012 = vlog2.f32 %v6413_v23  ;;  %v14244_v49 = vadd.f32 %v4487_v42, %v12253_v30 }
 0x738   : > { %v7249_v16 = vadd.f32 %v7248_v56, %v7159_v6  ;;  %v7160_v61 = vsel %vm15888_vm1, %v6904_v53, 0.0  ;;  %v14248_v0 = vsub.f32 %v4863_v46, %v4991_v12  ;;  %v4864_v45 = vmax.f32 %v14139_v55, 0.0  ;;  %v9273_v53 = vld [vmem:[%s9487_s22 + $0x2b0] sm:$0xff] }
 0x739   : > { %v6385_v27 = vsel %vm14211_vm10, %v6382_v29, %v6379_v60  ;;  %v6388_v28 = vmul.f32 0.6931472, %v9001_v40  ;;  %vm14253_vm2 = vcmp.lt.f32.partialorder %v6401_v21, 0.0004427343  ;;  %9014 = vlog2.f32 %v6422_v63  ;;  %v15893_v40 = vld [vmem:[#allocation43_spill] sm:$0xff]  ;;  %v9275_v63 = vld [vmem:[%s9487_s22 + $0x2c0] sm:$0xff] }
 0x73a   : > { %v5593_v32 = vmul.f32 1.442695, %v5378_v33  ;;  %v9003_v56 = vpop.eup %9002  ;;  %v6400_v17 = vmul.f32 %v14157_v19, %v6399_v50  ;;  %v6410_v35 = vand.u32 2147483647, %v14178_v41  ;;  %v5595_v14 = vmul.f32 1.442695, %v5379_v48 }
 0x73b   : > { %v5252_v9 = vand.u32 2147483647, %v14239_v31  ;;  %v14260_v25 = vpop.eup %9004  ;;  %v6408_v37 = vadd.f32 1.0, %v6407_v43  ;;  %v6416_v46 = vmul.f32 -0.5, %v14207_v44  ;;  %v4992_v24 = vmul.f32 %v9272_v5, %v14139_v55 }
 0x73c   : > { %v5253_v29 = vand.u32 2147483647, %v14244_v49  ;;  %v7318_v54 = vadd.f32 %v7317_v59, %v7160_v61  ;;  %v6905_v23 = vadd.f32 %v6385_v27, %v14120_v13  ;;  %v4865_v19 = vmax.f32 %v14161_v52, 0.0  ;;  %v4493_v61 = vpop.f32.mrf.mxu0 }
 0x73d   : > { %v4993_v21 = vmul.f32 %v9273_v53, %v14161_v52  ;;  %v9007_v12 = vpop.eup %9006  ;;  %v6394_v42 = vsel %vm14228_vm14, %v6391_v1, %v6388_v28  ;;  %v6419_v15 = vand.u32 2147483647, %v14207_v44  ;;  %v6425_v6 = vmul.f32 -0.5, %v14220_v20  ;;  %v9274_v53 = vld [vmem:[%s9487_s22 + $0x2b8] sm:$0xff] }
 0x73e   : > { %9016 = vpow2.f32 %v5593_v32  ;;  %v14274_v55 = vpop.eup %9008  ;;  %v6397_v59 = vmul.f32 0.6931472, %v9003_v56  ;;  %v6431_v13 = vadd.f32 1.0, %v14260_v25  ;;  %v5380_v60 = vsub.f32 0.0, %v5252_v9 }
 0x73f   : > { %9018 = vpow2.f32 %v5595_v14  ;;  %vm14277_vm3 = vcmp.lt.f32.partialorder %v6410_v35, 0.0004427343  ;;  %v6417_v52 = vadd.f32 1.0, %v6416_v46  ;;  %v14281_v33 = vsub.f32 %v4864_v45, %v4992_v24 }
 0x740   : > { %v5381_v7 = vsub.f32 0.0, %v5253_v29  ;;  %vm15894_vm4 = vcmp.lt.s32.totalorder %v15893_v40, 1100  ;;  %v6406_v48 = vmul.f32 0.6931472, %v9007_v12  ;;  %v6409_v1 = vmul.f32 %v14178_v41, %v6408_v37 }
 0x741   : > { %v7161_v50 = vsel %vm15894_vm4, %v6905_v23, 0.0  ;;  %v6428_v43 = vand.u32 2147483647, %v14220_v20  ;;  %v6906_v27 = vadd.f32 %v6394_v42, %v14126_v8  ;;  %v6440_v28 = vadd.f32 1.0, %v14274_v55  ;;  %vm15899_vm15 = vmmov %vm15894_vm4 }
 0x742   : > { %v14289_v32 = vsub.f32 %v4865_v19, %v4993_v21  ;;  %v4866_v56 = vmax.f32 %v14195_v58, 0.0  ;;  %v6403_v45 = vsel %vm14253_vm2, %v6400_v17, %v6397_v59  ;;  %vm14294_vm5 = vcmp.lt.f32.partialorder %v6419_v15, 0.0004427343 }
 0x743   : > { %v6426_v14 = vadd.f32 1.0, %v6425_v6  ;;  %9020 = vlog2.f32 %v6431_v13  ;;  %v5597_v41 = vmul.f32 1.442695, %v5380_v60  ;;  %v14298_v9 = vpop.eup %9010  ;;  %v7250_v8 = vadd.f32 %v7249_v16, %v7161_v50  ;;  %v4495_v16 = vpop.f32.mrf.mxu0 }
 0x744   : > { %v6418_v37 = vmul.f32 %v14207_v44, %v6417_v52  ;;  %v5599_v46 = vmul.f32 1.442695, %v5381_v7  ;;  %v14302_v5 = vadd.f32 %v4489_v39, %v12259_v22  ;;  %v9013_v24 = vpop.eup %9012  ;;  %v6412_v34 = vsel %vm14277_vm3, %v6409_v1, %v6406_v48  ;;  %v15900_v7 = vld [vmem:[#allocation44_spill] sm:$0xff] }
 0x745   : > { %vm14306_vm12 = vcmp.lt.f32.partialorder %v6428_v43, 0.0004427343  ;;  %v6434_v29 = vmul.f32 -0.5, %v14260_v25  ;;  %v14312_v23 = vadd.f32 %v4493_v61, %v12253_v30  ;;  %v7162_v44 = vsel %vm15899_vm15, %v6906_v27, 0.0 }
 0x746   : > { %v6907_v19 = vadd.f32 %v6403_v45, %v14136_v26  ;;  %9022 = vlog2.f32 %v6440_v28  ;;  %v4994_v21 = vmul.f32 %v9274_v53, %v14195_v58  ;;  %v9015_v39 = vpop.eup %9014  ;;  %v6427_v12 = vmul.f32 %v14220_v20, %v6426_v14  ;;  %v4497_v20 = vpop.f32.mrf.mxu0 }
 0x747   : > { %v6449_v42 = vadd.f32 1.0, %v14298_v9  ;;  %v4867_v15 = vmax.f32 %v14200_v36, 0.0  ;;  %9024 = vpow2.f32 %v5597_v41  ;;  %v6908_v6 = vadd.f32 %v6412_v34, %v14169_v62 }
 0x748   : > { %v6415_v59 = vmul.f32 0.6931472, %v9013_v24  ;;  %9026 = vpow2.f32 %v5599_v46  ;;  %v5254_v13 = vand.u32 2147483647, %v14302_v5  ;;  %v7319_v26 = vadd.f32 %v7318_v54, %v7162_v44 }
 0x749   : > { %v6435_v60 = vadd.f32 1.0, %v6434_v29  ;;  %v4995_v58 = vmul.f32 %v9275_v63, %v14200_v36  ;;  %v5255_v52 = vand.u32 2147483647, %v14312_v23  ;;  %vm15901_vm6 = vcmp.lt.s32.totalorder %v15900_v7, 1100  ;;  %v9276_v36 = vld [vmem:[%s9487_s22 + $0x2c8] sm:$0xff]  ;;  %v4499_v29 = vpop.f32.mrf.mxu0 }
 0x74a   : > { %v7163_v40 = vsel %vm15901_vm6, %v6907_v19, 0.0  ;;  %v6424_v50 = vmul.f32 0.6931472, %v9015_v39  ;;  %v6437_v48 = vand.u32 2147483647, %v14260_v25  ;;  %v14331_v62 = vadd.f32 %v4495_v16, %v12259_v22  ;;  %vm15902_vm7 = vmmov %vm15901_vm6  ;;  %v15905_v7 = vld [vmem:[#allocation45_spill] sm:$0xff] }
 0x74b   : > { %v14333_v1 = vpop.eup %9016  ;;  %9028 = vlog2.f32 %v6449_v42  ;;  %v14335_v54 = vsub.f32 %v4866_v56, %v4994_v21  ;;  %v4868_v43 = vmax.f32 %v14239_v31, 0.0  ;;  %v4996_v61 = vmul.f32 %v9276_v36, %v14239_v31 }
 0x74c   : > { %v14340_v27 = vpop.eup %9018  ;;  %v7164_v28 = vsel %vm15902_vm7, %v6908_v6, 0.0  ;;  %v6421_v45 = vsel %vm14294_vm5, %v6418_v37, %v6415_v59  ;;  %v6443_v14 = vmul.f32 -0.5, %v14274_v55  ;;  %v5382_v41 = vsub.f32 0.0, %v5254_v13 }
 0x74d   : > { %v7251_v46 = vadd.f32 %v7250_v8, %v7163_v40  ;;  %v6436_v56 = vmul.f32 %v14260_v25, %v6435_v60  ;;  %v14348_v24 = vsub.f32 %v4867_v15, %v4995_v58  ;;  %v5383_v34 = vsub.f32 0.0, %v5255_v52  ;;  %v9277_v60 = vld [vmem:[%s9487_s22 + $0x2d0] sm:$0xff] }
 0x74e   : > { %v6430_v31 = vsel %vm14306_vm12, %v6427_v12, %v6424_v50  ;;  %vm14352_vm0 = vcmp.lt.f32.partialorder %v6437_v48, 0.0004427343  ;;  %v6446_v35 = vand.u32 2147483647, %v14274_v55  ;;  %v6458_v37 = vadd.f32 1.0, %v14333_v1 }
 0x74f   : > { %v5256_v44 = vand.u32 2147483647, %v14331_v62  ;;  %v7320_v8 = vadd.f32 %v7319_v26, %v7164_v28  ;;  %v6909_v25 = vadd.f32 %v6421_v45, %v14203_v3  ;;  %v6452_v19 = vmul.f32 -0.5, %v14298_v9  ;;  %v4503_v3 = vpop.f32.mrf.mxu0 }
 0x750   : > { %v6467_v53 = vadd.f32 1.0, %v14340_v27  ;;  %v9021_v17 = vpop.eup %9020  ;;  %v6444_v21 = vadd.f32 1.0, %v6443_v14  ;;  %v14362_v39 = vsub.f32 %v4868_v43, %v4996_v61  ;;  %v5601_v12 = vmul.f32 1.442695, %v5382_v41 }
 0x751   : > { %v14365_v42 = vadd.f32 %v4497_v20, %v12253_v30  ;;  %v6910_v15 = vadd.f32 %v6430_v31, %v14205_v51  ;;  %v4869_v6 = vmax.f32 %v14244_v49, 0.0  ;;  %v5603_v59 = vmul.f32 1.442695, %v5383_v34 }
 0x752   : > { %v14370_v13 = vadd.f32 %v4499_v29, %v12259_v22  ;;  %v6455_v26 = vand.u32 2147483647, %v14298_v9  ;;  %9030 = vlog2.f32 %v6458_v37  ;;  %v4997_v63 = vmul.f32 %v9277_v60, %v14244_v49 }
 0x753   : > { %v5384_v58 = vsub.f32 0.0, %v5256_v44  ;;  %v9023_v52 = vpop.eup %9022  ;;  %vm15906_vm13 = vcmp.lt.s32.totalorder %v15905_v7, 1100  ;;  %v6433_v40 = vmul.f32 0.6931472, %v9021_v17  ;;  %v6453_v51 = vadd.f32 1.0, %v6452_v19  ;;  %v9280_v7 = vld [vmem:[%s9487_s22 + $0x2e8] sm:$0xff] }
 0x754   : > { %v7165_v20 = vsel %vm15906_vm13, %v6909_v25, 0.0  ;;  %9032 = vlog2.f32 %v6467_v53  ;;  %v14377_v50 = vpop.eup %9024  ;;  %vm14379_vm8 = vcmp.lt.f32.partialorder %v6446_v35, 0.0004427343  ;;  %v5257_v43 = vand.u32 2147483647, %v14365_v42  ;;  %vm15909_vm9 = vmmov %vm15906_vm13 }
 0x755   : > { %9034 = vpow2.f32 %v5601_v12  ;;  %v14385_v36 = vadd.f32 %v4503_v3, %v12253_v30  ;;  %v14387_v49 = vpop.eup %9026  ;;  %v7166_v61 = vsel %vm15909_vm9, %v6910_v15, 0.0  ;;  %v6445_v28 = vmul.f32 %v14274_v55, %v6444_v21  ;;  %v9278_v12 = vld [vmem:[%s9487_s22 + $0x2d8] sm:$0xff] }
 0x756   : > { %9036 = vpow2.f32 %v5603_v59  ;;  %v5258_v45 = vand.u32 2147483647, %v14370_v13  ;;  %v7252_v14 = vadd.f32 %v7251_v46, %v7165_v20  ;;  %vm14393_vm10 = vcmp.lt.f32.partialorder %v6455_v26, 0.0004427343 }
 0x757   : > { %v14397_v34 = vsub.f32 %v4869_v6, %v4997_v63  ;;  %v5605_v29 = vmul.f32 1.442695, %v5384_v58  ;;  %v6439_v31 = vsel %vm14352_vm0, %v6436_v56, %v6433_v40  ;;  %v6442_v35 = vmul.f32 0.6931472, %v9023_v52  ;;  %v9279_v6 = vld [vmem:[%s9487_s22 + $0x2e0] sm:$0xff]  ;;  %v15912_v40 = vld [vmem:[#allocation46_spill] sm:$0xff] }
 0x758   : > { %v6454_v37 = vmul.f32 %v14298_v9, %v6453_v51  ;;  %v6476_v55 = vadd.f32 1.0, %v14377_v50  ;;  %v9029_v44 = vpop.eup %9028  ;;  %v7321_v25 = vadd.f32 %v7320_v8, %v7166_v61  ;;  %v6485_v46 = vadd.f32 1.0, %v14387_v49 }
 0x759   : > { %v5385_v19 = vsub.f32 0.0, %v5257_v43  ;;  %v5259_v53 = vand.u32 2147483647, %v14385_v36  ;;  %v6461_v17 = vmul.f32 -0.5, %v14333_v1  ;;  %v4870_v21 = vmax.f32 %v14302_v5, 0.0 }
 0x75a   : > { %v4998_v56 = vmul.f32 %v9278_v12, %v14302_v5  ;;  %v5386_v16 = vsub.f32 0.0, %v5258_v45  ;;  %v6911_v15 = vadd.f32 %v6439_v31, %v14248_v0  ;;  %v4871_v9 = vmax.f32 %v14312_v23, 0.0  ;;  %v4505_v0 = vpop.f32.mrf.mxu0 }
 0x75b   : > { %v4999_v8 = vmul.f32 %v9279_v6, %v14312_v23  ;;  %9038 = vpow2.f32 %v5605_v29  ;;  %v6448_v59 = vsel %vm14379_vm8, %v6445_v28, %v6442_v35  ;;  %v6451_v3 = vmul.f32 0.6931472, %v9029_v44 }
 0x75c   : > { %v6464_v26 = vand.u32 2147483647, %v14333_v1  ;;  %9040 = vlog2.f32 %v6476_v55  ;;  %v6470_v60 = vmul.f32 -0.5, %v14340_v27  ;;  %v5607_v5 = vmul.f32 1.442695, %v5385_v19 }
 0x75d   : > { %9042 = vlog2.f32 %v6485_v46  ;;  %v5387_v63 = vsub.f32 0.0, %v5259_v53  ;;  %v6462_v58 = vadd.f32 1.0, %v6461_v17  ;;  %v4872_v52 = vmax.f32 %v14331_v62, 0.0  ;;  %v4507_v46 = vpop.f32.mrf.mxu0 }
 0x75e   : > { %v5000_v23 = vmul.f32 %v9280_v7, %v14331_v62  ;;  %v5609_v20 = vmul.f32 1.442695, %v5386_v16  ;;  %vm15913_vm14 = vcmp.lt.s32.totalorder %v15912_v40, 1100  ;;  %v6912_v48 = vadd.f32 %v6448_v59, %v14281_v33 }
 0x75f   : > { %v7167_v51 = vsel %vm15913_vm14, %v6911_v15, 0.0  ;;  %v6479_v43 = vmul.f32 -0.5, %v14377_v50  ;;  %v14424_v61 = vsub.f32 %v4870_v21, %v4998_v56  ;;  %v9031_v28 = vpop.eup %9030  ;;  %v6457_v45 = vsel %vm14393_vm10, %v6454_v37, %v6451_v3  ;;  %vm15916_vm1 = vmmov %vm15913_vm14  ;;  %v4509_v7 = vpop.f32.mrf.mxu0 }
 0x760   : > { %v6473_v29 = vand.u32 2147483647, %v14340_v27  ;;  %v14429_v31 = vsub.f32 %v4871_v9, %v4999_v8  ;;  %v14432_v62 = vadd.f32 %v4505_v0, %v12259_v22  ;;  %vm14434_vm11 = vcmp.lt.f32.partialorder %v6464_v26, 0.0004427343 }
 0x761   : > { %v9033_v35 = vpop.eup %9032  ;;  %v6471_v33 = vadd.f32 1.0, %v6470_v60  ;;  %9044 = vpow2.f32 %v5607_v5  ;;  %v5611_v44 = vmul.f32 1.442695, %v5387_v63  ;;  %v7253_v41 = vadd.f32 %v7252_v14, %v7167_v51  ;;  %v15919_v5 = vld [vmem:[#allocation47_spill] sm:$0xff] }
 0x762   : > { %v14438_v19 = vpop.eup %9034  ;;  %v6463_v37 = vmul.f32 %v14333_v1, %v6462_v58  ;;  %v14441_v53 = vsub.f32 %v4872_v52, %v5000_v23  ;;  %9046 = vpow2.f32 %v5609_v20  ;;  %v7168_v21 = vsel %vm15916_vm1, %v6912_v48, 0.0  ;;  %v9281_v52 = vld [vmem:[%s9487_s22 + $0x2f0] sm:$0xff] }
 0x763   : > { %v14443_v17 = vpop.eup %9036  ;;  %v6913_v12 = vadd.f32 %v6457_v45, %v14289_v32  ;;  %v6480_v56 = vadd.f32 1.0, %v6479_v43  ;;  %v6482_v16 = vand.u32 2147483647, %v14377_v50  ;;  %vm14449_vm2 = vcmp.lt.f32.partialorder %v6473_v29, 0.0004427343 }
 0x764   : > { %v6488_v1 = vmul.f32 -0.5, %v14387_v49  ;;  %v5260_v14 = vand.u32 2147483647, %v14432_v62  ;;  %v14456_v9 = vadd.f32 %v4507_v46, %v12253_v30  ;;  %v6460_v6 = vmul.f32 0.6931472, %v9031_v28  ;;  %v9282_v28 = vld [vmem:[%s9487_s22 + $0x2f8] sm:$0xff] }
 0x765   : > { %v6472_v8 = vmul.f32 %v14340_v27, %v6471_v33  ;;  %v6494_v32 = vadd.f32 1.0, %v14438_v19  ;;  %9048 = vpow2.f32 %v5611_v44  ;;  %v14460_v59 = vadd.f32 %v7321_v25, %v7168_v21  ;;  %v9283_v33 = vld [vmem:[%s9487_s22 + $0x300] sm:$0xff] }
 0x766   : > { %v6469_v3 = vmul.f32 0.6931472, %v9033_v35  ;;  %v6503_v26 = vadd.f32 1.0, %v14443_v17  ;;  %v4873_v60 = vmax.f32 %v14365_v42, 0.0  ;;  %vm15920_vm3 = vcmp.lt.s32.totalorder %v15919_v5, 1100 }
 0x767   : > { %v7169_v63 = vsel %vm15920_vm3, %v6913_v12, 0.0  ;;  %v6481_v0 = vmul.f32 %v14377_v50, %v6480_v56  ;;  %vm14467_vm4 = vcmp.lt.f32.partialorder %v6482_v16, 0.0004427343  ;;  %v6491_v27 = vand.u32 2147483647, %v14387_v49  ;;  %vm15925_vm12 = vmmov %vm15920_vm3 }
 0x768   : > { %v5001_v25 = vmul.f32 %v9281_v52, %v14365_v42  ;;  %v14474_v23 = vpop.eup %9038  ;;  %v6489_v20 = vadd.f32 1.0, %v6488_v1  ;;  %v4874_v40 = vmax.f32 %v14370_v13, 0.0  ;;  %v5388_v51 = vsub.f32 0.0, %v5260_v14 }
 0x769   : > { %v5261_v48 = vand.u32 2147483647, %v14456_v9  ;;  %v9041_v50 = vpop.eup %9040  ;;  %v6466_v43 = vsel %vm14434_vm11, %v6463_v37, %v6460_v6  ;;  %9050 = vlog2.f32 %v6494_v32  ;;  %v5002_v45 = vmul.f32 %v9282_v28, %v14370_v13  ;;  %v4513_v13 = vpop.f32.mrf.mxu0 }
 0x76a   : > { %v4875_v42 = vmax.f32 %v14385_v36, 0.0  ;;  %v9043_v29 = vpop.eup %9042  ;;  %v6475_v35 = vsel %vm14449_vm2, %v6472_v8, %v6469_v3  ;;  %9052 = vlog2.f32 %v6503_v26  ;;  %v5003_v44 = vmul.f32 %v9283_v33, %v14385_v36  ;;  %v15932_v8 = vld [vmem:[#allocation48_spill] sm:$0xff] }
 0x76b   : > { %v14488_v46 = vadd.f32 %v4509_v7, %v12259_v22  ;;  %v7254_v21 = vadd.f32 %v7253_v41, %v7169_v63  ;;  %v6497_v55 = vmul.f32 -0.5, %v14438_v19  ;;  %v6512_v37 = vadd.f32 1.0, %v14474_v23 }
 0x76c   : > { %v14492_v12 = vsub.f32 %v4873_v60, %v5001_v25  ;;  %v6914_v56 = vadd.f32 %v6466_v43, %v14335_v54  ;;  %v6478_v16 = vmul.f32 0.6931472, %v9041_v50  ;;  %v5613_v15 = vmul.f32 1.442695, %v5388_v51 }
 0x76d   : > { %v5389_v1 = vsub.f32 0.0, %v5261_v48  ;;  %v6915_v14 = vadd.f32 %v6475_v35, %v14348_v24  ;;  %v6487_v6 = vmul.f32 0.6931472, %v9043_v29  ;;  %v6490_v36 = vmul.f32 %v14387_v49, %v6489_v20 }
 0x76e   : > { %vm14497_vm5 = vcmp.lt.f32.partialorder %v6491_v27, 0.0004427343  ;;  %v14501_v41 = vpop.eup %9044  ;;  %v6506_v32 = vmul.f32 -0.5, %v14443_v17  ;;  %v14504_v3 = vsub.f32 %v4874_v40, %v5002_v45  ;;  %v14506_v26 = vsub.f32 %v4875_v42, %v5003_v44  ;;  %v4515_v27 = vpop.f32.mrf.mxu0 }
 0x76f   : > { %v5262_v54 = vand.u32 2147483647, %v14488_v46  ;;  %v14509_v60 = vpop.eup %9046  ;;  %v6498_v24 = vadd.f32 1.0, %v6497_v55  ;;  %v6500_v63 = vand.u32 2147483647, %v14438_v19  ;;  %9054 = vlog2.f32 %v6512_v37 }
 0x770   : > { %v14513_v49 = vadd.f32 %v4513_v13, %v12253_v30  ;;  %v7170_v52 = vsel %vm15925_vm12, %v6914_v56, 0.0  ;;  %v6484_v25 = vsel %vm14467_vm4, %v6481_v0, %v6478_v16  ;;  %9056 = vpow2.f32 %v5613_v15  ;;  %v4517_v35 = vpop.f32.mrf.mxu0 }
 0x771   : > { %v5615_v7 = vmul.f32 1.442695, %v5389_v1  ;;  %vm15926_vm15 = vcmp.lt.s32.totalorder %v11497_v18, 1100  ;;  %v6493_v40 = vsel %vm14497_vm5, %v6490_v36, %v6487_v6  ;;  %v6509_v51 = vand.u32 2147483647, %v14443_v17 }
 0x772   : > { %v7171_v20 = vsel %vm15926_vm15, %v6915_v14, 0.0  ;;  %v6521_v48 = vadd.f32 1.0, %v14501_v41  ;;  %v14525_v50 = vpop.eup %9048  ;;  %v6507_v43 = vadd.f32 1.0, %v6506_v32  ;;  %v6530_v5 = vadd.f32 1.0, %v14509_v60  ;;  %vm15931_vm0 = vmmov %vm15926_vm15  ;;  %v9284_v14 = vld [vmem:[%s9487_s22 + $0x308] sm:$0xff] }
 0x773   : > { %v4876_v58 = vmax.f32 %v14432_v62, 0.0  ;;  %v5390_v0 = vsub.f32 0.0, %v5262_v54  ;;  %v7323_v28 = vadd.f32 %v14460_v59, %v7170_v52  ;;  %v6916_v45 = vadd.f32 %v6484_v25, %v14362_v39 }
 0x774   : > { %v6499_v42 = vmul.f32 %v14438_v19, %v6498_v24  ;;  %v5263_v29 = vand.u32 2147483647, %v14513_v49  ;;  %v7255_v33 = vadd.f32 %v7254_v21, %v7171_v20  ;;  %v6917_v44 = vadd.f32 %v6493_v40, %v14397_v34  ;;  %v9285_v24 = vld [vmem:[%s9487_s22 + $0x310] sm:$0xff] }
 0x775   : > { %vm14534_vm6 = vcmp.lt.f32.partialorder %v6500_v63, 0.0004427343  ;;  %v6515_v37 = vmul.f32 -0.5, %v14474_v23  ;;  %9058 = vpow2.f32 %v5615_v7  ;;  %vm14539_vm7 = vcmp.lt.f32.partialorder %v6509_v51, 0.0004427343 }
 0x776   : > { %9060 = vlog2.f32 %v6521_v48  ;;  %v6539_v39 = vadd.f32 1.0, %v14525_v50  ;;  %v14545_v19 = vadd.f32 %v4515_v27, %v12259_v22  ;;  %v9051_v34 = vpop.eup %9050  ;;  %v6508_v21 = vmul.f32 %v14443_v17, %v6507_v43  ;;  %v4519_v27 = vpop.f32.mrf.mxu0 }
 0x777   : > { %9062 = vlog2.f32 %v6530_v5  ;;  %v5617_v13 = vmul.f32 1.442695, %v5390_v0  ;;  %v14549_v56 = vadd.f32 %v4517_v35, %v12253_v30  ;;  %v9053_v16 = vpop.eup %9052  ;;  %v7172_v15 = vsel %vm15931_vm0, %v6916_v45, 0.0 }
 0x778   : > { %v6518_v1 = vand.u32 2147483647, %v14474_v23  ;;  %v5004_v6 = vmul.f32 %v9284_v14, %v14432_v62  ;;  %v5391_v36 = vsub.f32 0.0, %v5263_v29  ;;  %vm15933_vm13 = vcmp.lt.s32.totalorder %v15932_v8, 1100 }
 0x779   : > { %v7173_v32 = vsel %vm15933_vm13, %v6917_v44, 0.0  ;;  %v6516_v54 = vadd.f32 1.0, %v6515_v37  ;;  %v4877_v17 = vmax.f32 %v14456_v9, 0.0  ;;  %v5005_v63 = vmul.f32 %v9285_v24, %v14456_v9  ;;  %vm15940_vm14 = vmmov %vm15933_vm13 }
 0x77a   : > { %v6496_v52 = vmul.f32 0.6931472, %v9051_v34  ;;  %v6524_v18 = vmul.f32 -0.5, %v14501_v41  ;;  %9064 = vlog2.f32 %v6539_v39  ;;  %v5264_v25 = vand.u32 2147483647, %v14545_v19  ;;  %v4523_v34 = vpop.f32.mrf.mxu0 }
 0x77b   : > { %v6505_v7 = vmul.f32 0.6931472, %v9053_v16  ;;  %v6533_v62 = vmul.f32 -0.5, %v14509_v60  ;;  %9066 = vpow2.f32 %v5617_v13  ;;  %v5265_v20 = vand.u32 2147483647, %v14549_v56 }
 0x77c   : > { %v7324_v40 = vadd.f32 %v7323_v28, %v7172_v15  ;;  %vm14565_vm8 = vcmp.lt.f32.partialorder %v6518_v1, 0.0004427343  ;;  %v5619_v48 = vmul.f32 1.442695, %v5391_v36  ;;  %v14570_v9 = vadd.f32 %v4519_v27, %v12259_v22  ;;  %v9055_v43 = vpop.eup %9054 }
 0x77d   : > { %v14572_v5 = vadd.f32 %v7255_v33, %v7173_v32  ;;  %v6517_v0 = vmul.f32 %v14474_v23, %v6516_v54  ;;  %v6527_v45 = vand.u32 2147483647, %v14501_v41  ;;  %v14576_v29 = vsub.f32 %v4876_v58, %v5004_v6  ;;  %v14578_v35 = vpop.eup %9056  ;;  %v9286_v32 = vld [vmem:[%s9487_s22 + $0x318] sm:$0xff] }
 0x77e   : > { %v6502_v28 = vsel %vm14534_vm6, %v6499_v42, %v6496_v52  ;;  %v6525_v44 = vadd.f32 1.0, %v6524_v18  ;;  %v14582_v37 = vsub.f32 %v4877_v17, %v5005_v63  ;;  %v5392_v39 = vsub.f32 0.0, %v5264_v25 }
 0x77f   : > { %v6511_v33 = vsel %vm14539_vm7, %v6508_v21, %v6505_v7  ;;  %v6534_v13 = vadd.f32 1.0, %v6533_v62  ;;  %v6536_v23 = vand.u32 2147483647, %v14509_v60  ;;  %v5393_v16 = vsub.f32 0.0, %v5265_v20  ;;  %v4525_v62 = vpop.f32.mrf.mxu0 }
 0x780   : > { %v6514_v58 = vmul.f32 0.6931472, %v9055_v43  ;;  %v6542_v15 = vmul.f32 -0.5, %v14525_v50  ;;  %9068 = vpow2.f32 %v5619_v48  ;;  %v5266_v55 = vand.u32 2147483647, %v14570_v9 }
 0x781   : > { %v6918_v42 = vadd.f32 %v6502_v28, %v14424_v61  ;;  %v6548_v1 = vadd.f32 1.0, %v14578_v35  ;;  %v4878_v14 = vmax.f32 %v14488_v46, 0.0  ;;  %v14593_v59 = vadd.f32 %v4523_v34, %v12253_v30 }
 0x782   : > { %v14595_v21 = vpop.eup %9058  ;;  %v6919_v6 = vadd.f32 %v6511_v33, %v14429_v31  ;;  %v6545_v36 = vand.u32 2147483647, %v14525_v50  ;;  %v5006_v54 = vmul.f32 %v9286_v32, %v14488_v46  ;;  %v5621_v17 = vmul.f32 1.442695, %v5392_v39 }
 0x783   : > { %v9061_v24 = vpop.eup %9060  ;;  %v6526_v61 = vmul.f32 %v14501_v41, %v6525_v44  ;;  %vm14602_vm9 = vcmp.lt.f32.partialorder %v6527_v45, 0.0004427343  ;;  %vm14606_vm10 = vcmp.lt.f32.partialorder %v6536_v23, 0.0004427343  ;;  %v5623_v52 = vmul.f32 1.442695, %v5393_v16  ;;  %v4527_v23 = vpop.f32.mrf.mxu0 }
 0x784   : > { %v9063_v18 = vpop.eup %9062  ;;  %v6520_v31 = vsel %vm14565_vm8, %v6517_v0, %v6514_v58  ;;  %v6535_v25 = vmul.f32 %v14509_v60, %v6534_v13  ;;  %v6543_v46 = vadd.f32 1.0, %v6542_v15  ;;  %v5394_v7 = vsub.f32 0.0, %v5266_v55  ;;  %v9287_v58 = vld [vmem:[%s9487_s22 + $0x320] sm:$0xff] }
 0x785   : > { %v7174_v41 = vsel %vm15940_vm14, %v6918_v42, 0.0  ;;  %9070 = vlog2.f32 %v6548_v1  ;;  %v6557_v20 = vadd.f32 1.0, %v14595_v21  ;;  %v5267_v48 = vand.u32 2147483647, %v14593_v59  ;;  %v9288_v1 = vld [vmem:[%s9487_s22 + $0x328] sm:$0xff] }
 0x786   : > { %vm15941_vm11 = vcmp.lt.s32.totalorder %v11540_v38, 1100  ;;  %vm14619_vm1 = vcmp.lt.f32.partialorder %v6545_v36, 0.0004427343  ;;  %v14623_v60 = vsub.f32 %v4878_v14, %v5006_v54  ;;  %9072 = vpow2.f32 %v5621_v17 }
 0x787   : > { %v7175_v43 = vsel %vm15941_vm11, %v6919_v6, 0.0  ;;  %v9065_v51 = vpop.eup %9064  ;;  %v6920_v8 = vadd.f32 %v6520_v31, %v14441_v53  ;;  %v6523_v0 = vmul.f32 0.6931472, %v9061_v24  ;;  %v6532_v28 = vmul.f32 0.6931472, %v9063_v18  ;;  %vm15944_vm2 = vmmov %vm15941_vm11 }
 0x788   : > { %9074 = vpow2.f32 %v5623_v52  ;;  %v14626_v44 = vpop.eup %9066  ;;  %v7325_v39 = vadd.f32 %v7324_v40, %v7174_v41  ;;  %v4879_v34 = vmax.f32 %v14513_v49, 0.0  ;;  %v5625_v33 = vmul.f32 1.442695, %v5394_v7 }
 0x789   : > { %v14630_v13 = vadd.f32 %v4525_v62, %v12259_v22  ;;  %v6544_v16 = vmul.f32 %v14525_v50, %v6543_v46  ;;  %9076 = vlog2.f32 %v6557_v20  ;;  %v5007_v53 = vmul.f32 %v9287_v58, %v14513_v49 }
 0x78a   : > { %v5395_v15 = vsub.f32 0.0, %v5267_v48  ;;  %v7257_v55 = vadd.f32 %v14572_v5, %v7175_v43  ;;  %v6541_v42 = vmul.f32 0.6931472, %v9065_v51  ;;  %v4880_v40 = vmax.f32 %v14545_v19, 0.0 }
 0x78b   : > { %v5008_v14 = vmul.f32 %v9288_v1, %v14545_v19  ;;  %v7176_v6 = vsel %vm15944_vm2, %v6920_v8, 0.0  ;;  %v6529_v50 = vsel %vm14602_vm9, %v6526_v61, %v6523_v0  ;;  %v6538_v36 = vsel %vm14606_vm10, %v6535_v25, %v6532_v28  ;;  %v4529_v19 = vpop.f32.mrf.mxu0  ;;  %v9289_v61 = vld [vmem:[%s9487_s22 + $0x330] sm:$0xff]  ;;  %v15945_v8 = vld [vmem:[#allocation49_spill] sm:$0xff] }
 0x78c   : > { %v6566_v49 = vadd.f32 1.0, %v14626_v44  ;;  %v6551_v5 = vmul.f32 -0.5, %v14578_v35  ;;  %9078 = vpow2.f32 %v5625_v33  ;;  %v5268_v32 = vand.u32 2147483647, %v14630_v13 }
 0x78d   : > { %v14649_v54 = vadd.f32 %v4527_v23, %v12253_v30  ;;  %v14651_v17 = vpop.eup %9068  ;;  %v14653_v38 = vsub.f32 %v4879_v34, %v5007_v53  ;;  %v4881_v24 = vmax.f32 %v14549_v56, 0.0  ;;  %v5009_v63 = vmul.f32 %v9289_v61, %v14549_v56  ;;  %v4533_v48 = vpop.f32.mrf.mxu0 }
 0x78e   : > { %v5627_v27 = vmul.f32 1.442695, %v5395_v15  ;;  %v6921_v52 = vadd.f32 %v6529_v50, %v14492_v12  ;;  %v6922_v18 = vadd.f32 %v6538_v36, %v14504_v3  ;;  %v6547_v31 = vsel %vm14619_vm1, %v6544_v16, %v6541_v42  ;;  %v9290_v16 = vld [vmem:[%s9487_s22 + $0x338] sm:$0xff]  ;;  %v15950_v50 = vld [vmem:[#allocation50_spill] sm:$0xff] }
 0x78f   : > { %v6560_v25 = vmul.f32 -0.5, %v14595_v21  ;;  %v7326_v46 = vadd.f32 %v7325_v39, %v7176_v6  ;;  %v6554_v7 = vand.u32 2147483647, %v14578_v35  ;;  %9080 = vlog2.f32 %v6566_v49 }
 0x790   : > { %v14664_v62 = vsub.f32 %v4880_v40, %v5008_v14  ;;  %v6552_v41 = vadd.f32 1.0, %v6551_v5  ;;  %v6575_v20 = vadd.f32 1.0, %v14651_v17  ;;  %v5396_v56 = vsub.f32 0.0, %v5268_v32 }
 0x791   : > { %v5269_v12 = vand.u32 2147483647, %v14649_v54  ;;  %v6923_v3 = vadd.f32 %v6547_v31, %v14506_v26  ;;  %v14669_v43 = vsub.f32 %v4881_v24, %v5009_v63  ;;  %9082 = vpow2.f32 %v5627_v27  ;;  %v4535_v24 = vpop.f32.mrf.mxu0 }
 0x792   : > { %v14672_v45 = vadd.f32 %v4529_v19, %v12259_v22  ;;  %v9071_v51 = vpop.eup %9070  ;;  %vm15946_vm3 = vcmp.lt.s32.totalorder %v15945_v8, 1100  ;;  %v6561_v39 = vadd.f32 1.0, %v6560_v25  ;;  %v6563_v34 = vand.u32 2147483647, %v14595_v21 }
 0x793   : > { %v7177_v0 = vsel %vm15946_vm3, %v6921_v52, 0.0  ;;  %vm15947_vm4 = vmmov %vm15946_vm3  ;;  %v14679_v33 = vpop.eup %9072  ;;  %vm14681_vm5 = vcmp.lt.f32.partialorder %v6554_v7, 0.0004427343  ;;  %v4882_v23 = vmax.f32 %v14570_v9, 0.0  ;;  %v5010_v58 = vmul.f32 %v9290_v16, %v14570_v9 }
 0x794   : > { %v7178_v28 = vsel %vm15947_vm4, %v6922_v18, 0.0  ;;  %v14689_v53 = vadd.f32 %v4533_v48, %v12253_v30  ;;  %v6553_v42 = vmul.f32 %v14578_v35, %v6552_v41  ;;  %9084 = vlog2.f32 %v6575_v20 }
 0x795   : > { %v14691_v15 = vpop.eup %9074  ;;  %v5629_v40 = vmul.f32 1.442695, %v5396_v56  ;;  %v5397_v1 = vsub.f32 0.0, %v5269_v12  ;;  %v7258_v14 = vadd.f32 %v7257_v55, %v7177_v0  ;;  %v14694_v6 = vadd.f32 %v7326_v46, %v7178_v28  ;;  %v9291_v12 = vld [vmem:[%s9487_s22 + $0x340] sm:$0xff] }
 0x796   : > { %vm15951_vm12 = vcmp.lt.s32.totalorder %v15950_v50, 1100  ;;  %v5270_v49 = vand.u32 2147483647, %v14672_v45  ;;  %v9077_v5 = vpop.eup %9076  ;;  %v6562_v9 = vmul.f32 %v14595_v21, %v6561_v39  ;;  %vm14700_vm15 = vcmp.lt.f32.partialorder %v6563_v34, 0.0004427343  ;;  %v9292_v34 = vld [vmem:[%s9487_s22 + $0x348] sm:$0xff] }
 0x797   : > { %v7179_v36 = vsel %vm15951_vm12, %v6923_v3, 0.0  ;;  %v6569_v35 = vmul.f32 -0.5, %v14626_v44  ;;  %v6584_v19 = vadd.f32 1.0, %v14679_v33  ;;  %v6550_v55 = vmul.f32 0.6931472, %v9071_v51  ;;  %vm15958_vm0 = vmmov %vm15951_vm12 }
 0x798   : > { %v6593_v61 = vadd.f32 1.0, %v14691_v15  ;;  %v14707_v63 = vsub.f32 %v4882_v23, %v5010_v58  ;;  %v5271_v27 = vand.u32 2147483647, %v14689_v53  ;;  %v14710_v52 = vadd.f32 %v7258_v14, %v7179_v36 }
 0x799   : > { %v6572_v21 = vand.u32 2147483647, %v14626_v44  ;;  %9086 = vpow2.f32 %v5629_v40  ;;  %v5631_v18 = vmul.f32 1.442695, %v5397_v1  ;;  %v14713_v31 = vpop.eup %9078  ;;  %v6559_v25 = vmul.f32 0.6931472, %v9077_v5 }
 0x79a   : > { %v4883_v46 = vmax.f32 %v14593_v59, 0.0  ;;  %v5398_v7 = vsub.f32 0.0, %v5270_v49  ;;  %v14717_v41 = vadd.f32 %v4535_v24, %v12259_v22  ;;  %v6570_v20 = vadd.f32 1.0, %v6569_v35 }
 0x79b   : > { %v6578_v56 = vmul.f32 -0.5, %v14651_v17  ;;  %9088 = vlog2.f32 %v6584_v19  ;;  %v5011_v48 = vmul.f32 %v9291_v12, %v14593_v59  ;;  %v6556_v3 = vsel %vm14681_vm5, %v6553_v42, %v6550_v55 }
 0x79c   : > { %v6581_v51 = vand.u32 2147483647, %v14651_v17  ;;  %9090 = vlog2.f32 %v6593_v61  ;;  %v5399_v8 = vsub.f32 0.0, %v5271_v27  ;;  %v9081_v0 = vpop.eup %9080  ;;  %v6602_v28 = vadd.f32 1.0, %v14713_v31 }
 0x79d   : > { %v4884_v39 = vmax.f32 %v14630_v13, 0.0  ;;  %v5012_v23 = vmul.f32 %v9292_v34, %v14630_v13  ;;  %9092 = vpow2.f32 %v5631_v18  ;;  %v6565_v16 = vsel %vm14700_vm15, %v6562_v9, %v6559_v25  ;;  %v4537_v13 = vpop.f32.mrf.mxu0  ;;  %v9293_v25 = vld [vmem:[%s9487_s22 + $0x350] sm:$0xff] }
 0x79e   : > { %vm14731_vm6 = vcmp.lt.f32.partialorder %v6572_v21, 0.0004427343  ;;  %v5633_v26 = vmul.f32 1.442695, %v5398_v7  ;;  %v5272_v58 = vand.u32 2147483647, %v14717_v41  ;;  %v14736_v42 = vpop.eup %9082  ;;  %v6924_v40 = vadd.f32 %v6556_v3, %v14576_v29 }
 0x79f   : > { %v6571_v1 = vmul.f32 %v14626_v44, %v6570_v20  ;;  %v6579_v14 = vadd.f32 1.0, %v6578_v56  ;;  %v14740_v36 = vsub.f32 %v4883_v46, %v5011_v48  ;;  %v6568_v49 = vmul.f32 0.6931472, %v9081_v0  ;;  %v4539_v3 = vpop.f32.mrf.mxu0 }
 0x7a0   : > { %vm14742_vm7 = vcmp.lt.f32.partialorder %v6581_v51, 0.0004427343  ;;  %v6587_v9 = vmul.f32 -0.5, %v14679_v33  ;;  %v6596_v32 = vmul.f32 -0.5, %v14691_v15  ;;  %v5635_v35 = vmul.f32 1.442695, %v5399_v8 }
 0x7a1   : > { %v6925_v19 = vadd.f32 %v6565_v16, %v14582_v37  ;;  %9094 = vlog2.f32 %v6602_v28  ;;  %v14749_v29 = vsub.f32 %v4884_v39, %v5012_v23  ;;  %v4885_v44 = vmax.f32 %v14649_v54, 0.0  ;;  %v9085_v24 = vpop.eup %9084  ;;  %v9294_v23 = vld [vmem:[%s9487_s22 + $0x358] sm:$0xff] }
 0x7a2   : > { %v6611_v55 = vadd.f32 1.0, %v14736_v42  ;;  %9096 = vpow2.f32 %v5633_v26  ;;  %v5400_v61 = vsub.f32 0.0, %v5272_v58  ;;  %v14754_v27 = vadd.f32 %v4537_v13, %v12253_v30  ;;  %v4543_v13 = vpop.f32.mrf.mxu0 }
 0x7a3   : > { %v7180_v21 = vsel %vm15958_vm0, %v6924_v40, 0.0  ;;  %v6580_v18 = vmul.f32 %v14651_v17, %v6579_v14  ;;  %v6590_v37 = vand.u32 2147483647, %v14679_v33  ;;  %v5013_v46 = vmul.f32 %v9293_v25, %v14649_v54 }
 0x7a4   : > { %v6574_v7 = vsel %vm14731_vm6, %v6571_v1, %v6568_v49  ;;  %v6588_v20 = vadd.f32 1.0, %v6587_v9  ;;  %v6597_v56 = vadd.f32 1.0, %v6596_v32  ;;  %9098 = vpow2.f32 %v5635_v35 }
 0x7a5   : > { %vm15959_vm13 = vcmp.lt.s32.totalorder %v11619_v11, 1100  ;;  %v6577_v48 = vmul.f32 0.6931472, %v9085_v24  ;;  %v6599_v50 = vand.u32 2147483647, %v14691_v15  ;;  %v4886_v17 = vmax.f32 %v14672_v45, 0.0 }
 0x7a6   : > { %v7181_v12 = vsel %vm15959_vm13, %v6925_v19, 0.0  ;;  %v14768_v51 = vpop.eup %9086  ;;  %v6605_v54 = vmul.f32 -0.5, %v14713_v31  ;;  %9100 = vlog2.f32 %v6611_v55  ;;  %v5637_v8 = vmul.f32 1.442695, %v5400_v61  ;;  %vm15964_vm10 = vmmov %vm15959_vm13  ;;  %v9295_v19 = vld [vmem:[%s9487_s22 + $0x360] sm:$0xff] }
 0x7a7   : > { %v5273_v0 = vand.u32 2147483647, %v14754_v27  ;;  %v7328_v28 = vadd.f32 %v14694_v6, %v7180_v21  ;;  %v6926_v39 = vadd.f32 %v6574_v7, %v14623_v60  ;;  %vm14774_vm8 = vcmp.lt.f32.partialorder %v6590_v37, 0.0004427343 }
 0x7a8   : > { %v5014_v16 = vmul.f32 %v9294_v23, %v14672_v45  ;;  %v9089_v59 = vpop.eup %9088  ;;  %v14781_v26 = vadd.f32 %v14710_v52, %v7181_v12  ;;  %v6589_v58 = vmul.f32 %v14679_v33, %v6588_v20  ;;  %v6598_v40 = vmul.f32 %v14691_v15, %v6597_v56  ;;  %v4545_v20 = vpop.f32.mrf.mxu0 }
 0x7a9   : > { %v14785_v1 = vsub.f32 %v4885_v44, %v5013_v46  ;;  %v9091_v6 = vpop.eup %9090  ;;  %v6583_v60 = vsel %vm14742_vm7, %v6580_v18, %v6577_v48  ;;  %vm14789_vm9 = vcmp.lt.f32.partialorder %v6599_v50, 0.0004427343  ;;  %v6608_v45 = vand.u32 2147483647, %v14713_v31 }
 0x7aa   : > { %v6620_v52 = vadd.f32 1.0, %v14768_v51  ;;  %v14795_v49 = vpop.eup %9092  ;;  %v6606_v33 = vadd.f32 1.0, %v6605_v54  ;;  %9102 = vpow2.f32 %v5637_v8  ;;  %v5401_v15 = vsub.f32 0.0, %v5273_v0  ;;  %v9296_v54 = vld [vmem:[%s9487_s22 + $0x368] sm:$0xff] }
 0x7ab   : > { %v14798_v9 = vadd.f32 %v4539_v3, %v12259_v22  ;;  %v7182_v5 = vsel %vm15964_vm10, %v6926_v39, 0.0  ;;  %v6614_v32 = vmul.f32 -0.5, %v14736_v42  ;;  %v4887_v35 = vmax.f32 %v14689_v53, 0.0 }
 0x7ac   : > { %v5015_v44 = vmul.f32 %v9295_v19, %v14689_v53  ;;  %v6927_v24 = vadd.f32 %v6583_v60, %v14653_v38  ;;  %v6586_v55 = vmul.f32 0.6931472, %v9089_v59  ;;  %v14807_v61 = vsub.f32 %v4886_v17, %v5014_v16  ;;  %v9297_v16 = vld [vmem:[%s9487_s22 + $0x370] sm:$0xff]  ;;  %v4547_v60 = vpop.f32.mrf.mxu0 }
 0x7ad   : > { %v14810_v21 = vadd.f32 %v4543_v13, %v12253_v30  ;;  %v6595_v18 = vmul.f32 0.6931472, %v9091_v6  ;;  %vm14812_vm14 = vcmp.lt.f32.partialorder %v6608_v45, 0.0004427343  ;;  %9104 = vlog2.f32 %v6620_v52 }
 0x7ae   : > { %v6629_v11 = vadd.f32 1.0, %v14795_v49  ;;  %v9095_v25 = vpop.eup %9094  ;;  %v14817_v46 = vadd.f32 %v7328_v28, %v7182_v5  ;;  %v6607_v38 = vmul.f32 %v14713_v31, %v6606_v33  ;;  %v5639_v53 = vmul.f32 1.442695, %v5401_v15 }
 0x7af   : > { %v5274_v7 = vand.u32 2147483647, %v14798_v9  ;;  %v14821_v56 = vpop.eup %9096  ;;  %v6615_v12 = vadd.f32 1.0, %v6614_v32  ;;  %v6617_v48 = vand.u32 2147483647, %v14736_v42  ;;  %v14824_v50 = vsub.f32 %v4887_v35, %v5015_v44 }
 0x7b0   : > { %v4888_v17 = vmax.f32 %v14717_v41, 0.0  ;;  %vm15967_vm11 = vcmp.lt.s32.totalorder %v11656_v47, 1100  ;;  %v6592_v31 = vsel %vm14774_vm8, %v6589_v58, %v6586_v55  ;;  %v5016_v8 = vmul.f32 %v9296_v54, %v14717_v41 }
 0x7b1   : > { %v7183_v3 = vsel %vm15967_vm11, %v6927_v24, 0.0  ;;  %v5275_v0 = vand.u32 2147483647, %v14810_v21  ;;  %v14834_v28 = vpop.eup %9098  ;;  %v6601_v39 = vsel %vm14789_vm9, %v6598_v40, %v6595_v18  ;;  %9106 = vlog2.f32 %v6629_v11  ;;  %v4549_v24 = vpop.f32.mrf.mxu0  ;;  %vm15970_vm2 = vmmov %vm15967_vm11 }
 0x7b2   : > { %v4889_v23 = vmax.f32 %v14754_v27, 0.0  ;;  %v5017_v59 = vmul.f32 %v9297_v16, %v14754_v27  ;;  %v6604_v6 = vmul.f32 0.6931472, %v9095_v25  ;;  %v6638_v34 = vadd.f32 1.0, %v14821_v56 }
 0x7b3   : > { %9108 = vpow2.f32 %v5639_v53  ;;  %v5402_v58 = vsub.f32 0.0, %v5274_v7  ;;  %v9101_v41 = vpop.eup %9100  ;;  %v6928_v45 = vadd.f32 %v6592_v31, %v14664_v62  ;;  %vm14843_vm1 = vcmp.lt.f32.partialorder %v6617_v48, 0.0004427343 }
 0x7b4   : > { %v6623_v40 = vmul.f32 -0.5, %v14768_v51  ;;  %v6626_v14 = vand.u32 2147483647, %v14768_v51  ;;  %v6929_v13 = vadd.f32 %v6601_v39, %v14669_v43  ;;  %v6647_v27 = vadd.f32 1.0, %v14834_v28 }
 0x7b5   : > { %v5403_v33 = vsub.f32 0.0, %v5275_v0  ;;  %v14852_v15 = vadd.f32 %v4545_v20, %v12259_v22  ;;  %v7261_v5 = vadd.f32 %v14781_v26, %v7183_v3  ;;  %v6616_v62 = vmul.f32 %v14736_v42, %v6615_v12  ;;  %v9298_v12 = vld [vmem:[%s9487_s22 + $0x378] sm:$0xff] }
 0x7b6   : > { %v14856_v32 = vsub.f32 %v4888_v17, %v5016_v8  ;;  %v14858_v35 = vsub.f32 %v4889_v23, %v5017_v59  ;;  %v6610_v19 = vsel %vm14812_vm14, %v6607_v38, %v6604_v6  ;;  %v6613_v44 = vmul.f32 0.6931472, %v9101_v41  ;;  %v4553_v8 = vpop.f32.mrf.mxu0 }
 0x7b7   : > { %9110 = vlog2.f32 %v6638_v34  ;;  %v5641_v43 = vmul.f32 1.442695, %v5402_v58  ;;  %v14862_v55 = vpop.eup %9102  ;;  %v7184_v18 = vsel %vm15970_vm2, %v6928_v45, 0.0  ;;  %v6624_v26 = vadd.f32 1.0, %v6623_v40 }
 0x7b8   : > { %v6632_v42 = vmul.f32 -0.5, %v14795_v49  ;;  %v14868_v11 = vadd.f32 %v4547_v60, %v12253_v30  ;;  %vm15971_vm3 = vcmp.lt.s32.totalorder %v11673_v2, 1100  ;;  %vm14872_vm4 = vcmp.lt.f32.partialorder %v6626_v14, 0.0004427343 }
 0x7b9   : > { %v7185_v37 = vsel %vm15971_vm3, %v6929_v13, 0.0  ;;  %9112 = vlog2.f32 %v6647_v27  ;;  %v5643_v38 = vmul.f32 1.442695, %v5403_v33  ;;  %v5276_v53 = vand.u32 2147483647, %v14852_v15  ;;  %vm15974_vm5 = vmmov %vm15971_vm3 }
 0x7ba   : > { %v6930_v47 = vadd.f32 %v6610_v19, %v14707_v63  ;;  %v6635_v7 = vand.u32 2147483647, %v14795_v49  ;;  %v4890_v20 = vmax.f32 %v14798_v9, 0.0  ;;  %v5018_v48 = vmul.f32 %v9298_v12, %v14798_v9  ;;  %v9105_v17 = vpop.eup %9104 }
 0x7bb   : > { %v6619_v3 = vsel %vm14843_vm1, %v6616_v62, %v6613_v44  ;;  %v6641_v31 = vmul.f32 -0.5, %v14821_v56  ;;  %v6656_v54 = vadd.f32 1.0, %v14862_v55  ;;  %9114 = vpow2.f32 %v5641_v43 }
 0x7bc   : > { %v7330_v0 = vadd.f32 %v14817_v46, %v7184_v18  ;;  %v6633_v63 = vadd.f32 1.0, %v6632_v42  ;;  %v5277_v39 = vand.u32 2147483647, %v14868_v11  ;;  %v14889_v23 = vadd.f32 %v4549_v24, %v12259_v22 }
 0x7bd   : > { %v7262_v16 = vadd.f32 %v7261_v5, %v7185_v37  ;;  %v6625_v9 = vmul.f32 %v14768_v51, %v6624_v26  ;;  %9116 = vpow2.f32 %v5643_v38  ;;  %v5404_v59 = vsub.f32 0.0, %v5276_v53  ;;  %v4555_v51 = vpop.f32.mrf.mxu0  ;;  %v9299_v37 = vld [vmem:[%s9487_s22 + $0x380] sm:$0xff] }
 0x7be   : > { %v7186_v6 = vsel %vm15974_vm5, %v6930_v47, 0.0  ;;  %v6931_v34 = vadd.f32 %v6619_v3, %v14740_v36  ;;  %v6622_v58 = vmul.f32 0.6931472, %v9105_v17  ;;  %v6644_v60 = vand.u32 2147483647, %v14821_v56  ;;  %v9107_v46 = vpop.eup %9106  ;;  %v9300_v3 = vld [vmem:[%s9487_s22 + $0x388] sm:$0xff] }
 0x7bf   : > { %vm14896_vm12 = vcmp.lt.f32.partialorder %v6635_v7, 0.0004427343  ;;  %v6642_v45 = vadd.f32 1.0, %v6641_v31  ;;  %9118 = vlog2.f32 %v6656_v54  ;;  %v14900_v52 = vsub.f32 %v4890_v20, %v5018_v48  ;;  %v4557_v25 = vpop.f32.mrf.mxu0 }
 0x7c0   : > { %v14902_v40 = vpop.eup %9108  ;;  %v6634_v2 = vmul.f32 %v14795_v49, %v6633_v63  ;;  %v6650_v36 = vmul.f32 -0.5, %v14834_v28  ;;  %v5405_v14 = vsub.f32 0.0, %v5277_v39  ;;  %v5278_v13 = vand.u32 2147483647, %v14889_v23 }
 0x7c1   : > { %v14907_v27 = vadd.f32 %v7330_v0, %v7186_v6  ;;  %v6653_v33 = vand.u32 2147483647, %v14834_v28  ;;  %v4891_v5 = vmax.f32 %v14810_v21, 0.0  ;;  %v5645_v62 = vmul.f32 1.442695, %v5404_v59 }
 0x7c2   : > { %vm15977_vm15 = vcmp.lt.s32.totalorder %v11717_v57, 1100  ;;  %v6628_v44 = vsel %vm14872_vm4, %v6625_v9, %v6622_v58  ;;  %vm14915_vm6 = vcmp.lt.f32.partialorder %v6644_v60, 0.0004427343  ;;  %v6659_v43 = vmul.f32 -0.5, %v14862_v55 }
 0x7c3   : > { %v7187_v19 = vsel %vm15977_vm15, %v6931_v34, 0.0  ;;  %v14921_v24 = vadd.f32 %v4553_v8, %v12253_v30  ;;  %v6631_v18 = vmul.f32 0.6931472, %v9107_v46  ;;  %v6643_v26 = vmul.f32 %v14821_v56, %v6642_v45  ;;  %vm15982_vm0 = vmmov %vm15977_vm15 }
 0x7c4   : > { %v6665_v42 = vadd.f32 1.0, %v14902_v40  ;;  %v5019_v38 = vmul.f32 %v9299_v37, %v14810_v21  ;;  %v9111_v53 = vpop.eup %9110  ;;  %v6651_v47 = vadd.f32 1.0, %v6650_v36  ;;  %v5647_v7 = vmul.f32 1.442695, %v5405_v14 }
 0x7c5   : > { %v5406_v20 = vsub.f32 0.0, %v5278_v13  ;;  %v14928_v12 = vadd.f32 %v4555_v51, %v12259_v22  ;;  %v6932_v48 = vadd.f32 %v6628_v44, %v14749_v29  ;;  %v4892_v17 = vmax.f32 %v14852_v15, 0.0  ;;  %v4559_v29 = vpop.f32.mrf.mxu0 }
 0x7c6   : > { %v5020_v56 = vmul.f32 %v9300_v3, %v14852_v15  ;;  %9120 = vpow2.f32 %v5645_v62  ;;  %v9113_v31 = vpop.eup %9112  ;;  %v7263_v54 = vadd.f32 %v7262_v16, %v7187_v19  ;;  %v6660_v8 = vadd.f32 1.0, %v6659_v43 }
 0x7c7   : > { %v6662_v21 = vand.u32 2147483647, %v14862_v55  ;;  %v5279_v0 = vand.u32 2147483647, %v14921_v24  ;;  %v6637_v63 = vsel %vm14896_vm12, %v6634_v2, %v6631_v18  ;;  %v6640_v39 = vmul.f32 0.6931472, %v9111_v53 }
 0x7c8   : > { %vm14938_vm7 = vcmp.lt.f32.partialorder %v6653_v33, 0.0004427343  ;;  %9122 = vlog2.f32 %v6665_v42  ;;  %v14942_v59 = vpop.eup %9114  ;;  %v14944_v15 = vsub.f32 %v4891_v5, %v5019_v38  ;;  %v5649_v16 = vmul.f32 1.442695, %v5406_v20  ;;  %v9301_v5 = vld [vmem:[%s9487_s22 + $0x390] sm:$0xff] }
 0x7c9   : > { %9124 = vpow2.f32 %v5647_v7  ;;  %v5280_v6 = vand.u32 2147483647, %v14928_v12  ;;  %v7188_v34 = vsel %vm15982_vm0, %v6932_v48, 0.0  ;;  %v6649_v58 = vmul.f32 0.6931472, %v9113_v31 }
 0x7ca   : > { %v6652_v60 = vmul.f32 %v14834_v28, %v6651_v47  ;;  %v14950_v46 = vsub.f32 %v4892_v17, %v5020_v56  ;;  %v14952_v41 = vpop.eup %9116  ;;  %v6933_v45 = vadd.f32 %v6637_v63, %v14785_v1  ;;  %v6661_v51 = vmul.f32 %v14862_v55, %v6660_v8  ;;  %v4563_v1 = vpop.f32.mrf.mxu0 }
 0x7cb   : > { %vm14956_vm13 = vcmp.lt.f32.partialorder %v6662_v21, 0.0004427343  ;;  %v6668_v36 = vmul.f32 -0.5, %v14902_v40  ;;  %v5407_v57 = vsub.f32 0.0, %v5279_v0  ;;  %v6646_v14 = vsel %vm14915_vm6, %v6643_v26, %v6640_v39  ;;  %v9302_v26 = vld [vmem:[%s9487_s22 + $0x398] sm:$0xff] }
 0x7cc   : > { %v6674_v28 = vadd.f32 1.0, %v14942_v59  ;;  %v4893_v13 = vmax.f32 %v14868_v11, 0.0  ;;  %v14966_v33 = vadd.f32 %v4557_v25, %v12253_v30  ;;  %v9119_v55 = vpop.eup %9118  ;;  %v5021_v62 = vmul.f32 %v9301_v5, %v14868_v11  ;;  %v4565_v20 = vpop.f32.mrf.mxu0 }
 0x7cd   : > { %v4894_v19 = vmax.f32 %v14889_v23, 0.0  ;;  %9126 = vpow2.f32 %v5649_v16  ;;  %v5408_v44 = vsub.f32 0.0, %v5280_v6  ;;  %v6655_v49 = vsel %vm14938_vm7, %v6652_v60, %v6649_v58 }
 0x7ce   : > { %v6671_v43 = vand.u32 2147483647, %v14902_v40  ;;  %v6683_v18 = vadd.f32 1.0, %v14952_v41  ;;  %v5022_v42 = vmul.f32 %v9302_v26, %v14889_v23  ;;  %vm15985_vm8 = vcmp.lt.s32.totalorder %v11730_v10, 1100  ;;  %v4567_v9 = vpop.f32.mrf.mxu0 }
 0x7cf   : > { %v7189_v37 = vsel %vm15985_vm8, %v6933_v45, 0.0  ;;  %v6934_v38 = vadd.f32 %v6646_v14, %v14807_v61  ;;  %v6669_v11 = vadd.f32 1.0, %v6668_v36  ;;  %v5651_v25 = vmul.f32 1.442695, %v5407_v57  ;;  %vm15986_vm9 = vmmov %vm15985_vm8  ;;  %v9303_v57 = vld [vmem:[%s9487_s22 + $0x3a0] sm:$0xff] }
 0x7d0   : > { %v6658_v53 = vmul.f32 0.6931472, %v9119_v55  ;;  %9128 = vlog2.f32 %v6674_v28  ;;  %v6677_v47 = vmul.f32 -0.5, %v14942_v59  ;;  %v5281_v7 = vand.u32 2147483647, %v14966_v33 }
 0x7d1   : > { %v7332_v48 = vadd.f32 %v14907_v27, %v7188_v34  ;;  %v6935_v17 = vadd.f32 %v6655_v49, %v14824_v50  ;;  %v14984_v3 = vsub.f32 %v4893_v13, %v5021_v62  ;;  %v5653_v23 = vmul.f32 1.442695, %v5408_v44 }
 0x7d2   : > { %v7264_v56 = vadd.f32 %v7263_v54, %v7189_v37  ;;  %9130 = vlog2.f32 %v6683_v18  ;;  %v14986_v31 = vsub.f32 %v4894_v19, %v5022_v42  ;;  %v14989_v61 = vadd.f32 %v4563_v1, %v12253_v30  ;;  %v9304_v18 = vld [vmem:[%s9487_s22 + $0x3a8] sm:$0xff]  ;;  %v4569_v42 = vpop.f32.mrf.mxu0 }
 0x7d3   : > { %v14991_v8 = vpop.eup %9120  ;;  %v7190_v21 = vsel %vm15986_vm9, %v6934_v38, 0.0  ;;  %v14996_v0 = vmul.f32 %v14902_v40, %v6669_v11  ;;  %9132 = vpow2.f32 %v5651_v25  ;;  %v14999_v50 = vadd.f32 %v4559_v29, %v12259_v22  ;;  %v15989_v40 = vld [vmem:[#allocation51_spill] sm:$0xff] }
 0x7d4   : > { %v6664_v27 = vsel %vm14956_vm13, %v6661_v51, %v6658_v53  ;;  %vm15003_vm10 = vcmp.lt.f32.partialorder %v6671_v43, 0.0004427343  ;;  %v6678_v63 = vadd.f32 1.0, %v6677_v47  ;;  %v6680_v39 = vand.u32 2147483647, %v14942_v59 }
 0x7d5   : > { %v5409_v10 = vsub.f32 0.0, %v5281_v7  ;;  %v9123_v16 = vpop.eup %9122  ;;  %vm15990_vm14 = vcmp.lt.s32.totalorder %v15989_v40, 1100  ;;  %v6686_v29 = vmul.f32 -0.5, %v14952_v41  ;;  %9134 = vpow2.f32 %v5653_v23 }
 0x7d6   : > { %v7191_v6 = vsel %vm15990_vm14, %v6935_v17, 0.0  ;;  %v15012_v34 = vadd.f32 %v4565_v20, %v12259_v22  ;;  %v15014_v58 = vpop.eup %9124  ;;  %v7333_v60 = vadd.f32 %v7332_v48, %v7190_v21  ;;  %v6692_v45 = vadd.f32 1.0, %v14991_v8  ;;  %vm15991_vm11 = vmmov %vm15990_vm14  ;;  %v9305_v20 = vld [vmem:[%s9487_s22 + $0x3b0] sm:$0xff] }
 0x7d7   : > { %v4895_v51 = vmax.f32 %v14921_v24, 0.0  ;;  %v5283_v2 = vand.u32 2147483647, %v14989_v61  ;;  %v6936_v36 = vadd.f32 %v6664_v27, %v14856_v32  ;;  %v5023_v14 = vmul.f32 %v9303_v57, %v14921_v24 }
 0x7d8   : > { %v5282_v28 = vand.u32 2147483647, %v14999_v50  ;;  %v15024_v13 = vadd.f32 %v4567_v9, %v12253_v30  ;;  %v15026_v1 = vadd.f32 %v7264_v56, %v7191_v6  ;;  %v15029_v55 = vmul.f32 %v14942_v59, %v6678_v63 }
 0x7d9   : > { %v6689_v5 = vand.u32 2147483647, %v14952_v41  ;;  %v5655_v62 = vmul.f32 1.442695, %v5409_v10  ;;  %v6667_v19 = vmul.f32 0.6931472, %v9123_v16  ;;  %9136 = vlog2.f32 %v6692_v45 }
 0x7da   : > { %v6687_v44 = vadd.f32 1.0, %v6686_v29  ;;  %v6701_v32 = vadd.f32 1.0, %v15014_v58  ;;  %v5284_v24 = vand.u32 2147483647, %v15012_v34  ;;  %v15034_v49 = vpop.eup %9126  ;;  %v4896_v43 = vmax.f32 %v14928_v12, 0.0 }
 0x7db   : > { %v5024_v26 = vmul.f32 %v9304_v18, %v14928_v12  ;;  %v5411_v59 = vsub.f32 0.0, %v5283_v2  ;;  %v7192_v37 = vsel %vm15991_vm11, %v6936_v36, 0.0  ;;  %vm15041_vm1 = vcmp.lt.f32.partialorder %v6680_v39, 0.0004427343 }
 0x7dc   : > { %v6695_v11 = vmul.f32 -0.5, %v14991_v8  ;;  %v5410_v25 = vsub.f32 0.0, %v5282_v28  ;;  %v5285_v53 = vand.u32 2147483647, %v15024_v13  ;;  %v15047_v47 = vsub.f32 %v4895_v51, %v5023_v14 }
 0x7dd   : > { %v4897_v7 = vmax.f32 %v14966_v33, 0.0  ;;  %v5025_v12 = vmul.f32 %v9305_v20, %v14966_v33  ;;  %9138 = vpow2.f32 %v5655_v62  ;;  %v9129_v48 = vpop.eup %9128  ;;  %v6673_v17 = vsel %vm15003_vm10, %v14996_v0, %v6667_v19  ;;  %v4573_v33 = vpop.f32.mrf.mxu0  ;;  %v15996_v19 = vld [vmem:[#allocation52_spill] sm:$0xff] }
 0x7de   : > { %9140 = vlog2.f32 %v6701_v32  ;;  %v6710_v23 = vadd.f32 1.0, %v15034_v49  ;;  %v5412_v56 = vsub.f32 0.0, %v5284_v24  ;;  %v15056_v21 = vadd.f32 %v7333_v60, %v7192_v37 }
 0x7df   : > { %v6688_v27 = vmul.f32 %v14952_v41, %v6687_v44  ;;  %vm15059_vm2 = vcmp.lt.f32.partialorder %v6689_v5, 0.0004427343  ;;  %v5659_v39 = vmul.f32 1.442695, %v5411_v59  ;;  %v9131_v10 = vpop.eup %9130  ;;  %v6696_v9 = vadd.f32 1.0, %v6695_v11  ;;  %v4575_v18 = vpop.f32.mrf.mxu0 }
 0x7e0   : > { %v15063_v16 = vsub.f32 %v4896_v43, %v5024_v26  ;;  %v5657_v54 = vmul.f32 1.442695, %v5410_v25  ;;  %v5413_v0 = vsub.f32 0.0, %v5285_v53  ;;  %v15065_v40 = vpop.eup %9132  ;;  %v6937_v6 = vadd.f32 %v6673_v17, %v14858_v35 }
 0x7e1   : > { %v6676_v29 = vmul.f32 0.6931472, %v9129_v48  ;;  %v6698_v60 = vand.u32 2147483647, %v14991_v8  ;;  %v15069_v41 = vsub.f32 %v4897_v7, %v5025_v12  ;;  %9142 = vlog2.f32 %v6710_v23  ;;  %v9306_v48 = vld [vmem:[%s9487_s22 + $0x3b8] sm:$0xff] }
 0x7e2   : > { %v5661_v45 = vmul.f32 1.442695, %v5412_v56  ;;  %v15072_v51 = vadd.f32 %v4569_v42, %v12259_v22  ;;  %v15075_v2 = vadd.f32 %v4573_v33, %v12253_v30  ;;  %v15077_v36 = vpop.eup %9134  ;;  %v6685_v57 = vmul.f32 0.6931472, %v9131_v10 }
 0x7e3   : > { %v6704_v14 = vmul.f32 -0.5, %v15014_v58  ;;  %9144 = vpow2.f32 %v5659_v39  ;;  %v5663_v35 = vmul.f32 1.442695, %v5413_v0  ;;  %v15081_v28 = vmul.f32 %v14991_v8, %v6696_v9 }
 0x7e4   : > { %v6719_v5 = vadd.f32 1.0, %v15065_v40  ;;  %v4898_v62 = vmax.f32 %v14999_v50, 0.0  ;;  %9146 = vpow2.f32 %v5657_v54  ;;  %vm15997_vm3 = vcmp.lt.s32.totalorder %v15996_v19, 1100  ;;  %v9307_v54 = vld [vmem:[%s9487_s22 + $0x3c0] sm:$0xff] }
 0x7e5   : > { %v7193_v44 = vsel %vm15997_vm3, %v6937_v6, 0.0  ;;  %v6682_v32 = vsel %vm15041_vm1, %v15029_v55, %v6676_v29  ;;  %v6707_v24 = vand.u32 2147483647, %v15014_v58  ;;  %v5286_v43 = vand.u32 2147483647, %v15072_v51  ;;  %vm16002_vm12 = vmmov %vm15997_vm3  ;;  %v4577_v6 = vpop.f32.mrf.mxu0 }
 0x7e6   : > { %vm15092_vm4 = vcmp.lt.f32.partialorder %v6698_v60, 0.0004427343  ;;  %v6713_v26 = vmul.f32 -0.5, %v15034_v49  ;;  %v6728_v59 = vadd.f32 1.0, %v15077_v36  ;;  %9148 = vpow2.f32 %v5661_v45  ;;  %v9137_v11 = vpop.eup %9136 }
 0x7e7   : > { %v5287_v42 = vand.u32 2147483647, %v15075_v2  ;;  %v6691_v55 = vsel %vm15059_vm2, %v6688_v27, %v6685_v57  ;;  %v6705_v37 = vadd.f32 1.0, %v6704_v14  ;;  %9150 = vpow2.f32 %v5663_v35 }
 0x7e8   : > { %v5414_v38 = vsub.f32 0.0, %v5286_v43  ;;  %v6938_v25 = vadd.f32 %v6682_v32, %v14900_v52  ;;  %9152 = vlog2.f32 %v6719_v5  ;;  %v15103_v7 = vadd.f32 %v4575_v18, %v12259_v22 }
 0x7e9   : > { %v5415_v53 = vsub.f32 0.0, %v5287_v42  ;;  %v7266_v20 = vadd.f32 %v15026_v1, %v7193_v44  ;;  %vm15106_vm5 = vcmp.lt.f32.partialorder %v6707_v24, 0.0004427343  ;;  %v5026_v17 = vmul.f32 %v9306_v48, %v14999_v50 }
 0x7ea   : > { %v5665_v23 = vmul.f32 1.442695, %v5414_v38  ;;  %v15112_v56 = vpop.eup %9138  ;;  %v6939_v52 = vadd.f32 %v6691_v55, %v14944_v15  ;;  %v6714_v27 = vadd.f32 1.0, %v6713_v26  ;;  %v6716_v63 = vand.u32 2147483647, %v15034_v49  ;;  %v4579_v26 = vpop.f32.mrf.mxu0 }
 0x7eb   : > { %9154 = vlog2.f32 %v6728_v59  ;;  %v9141_v39 = vpop.eup %9140  ;;  %v6694_v1 = vmul.f32 0.6931472, %v9137_v11  ;;  %v6706_v33 = vmul.f32 %v15014_v58, %v6705_v37  ;;  %v5667_v10 = vmul.f32 1.442695, %v5415_v53  ;;  %v9308_v58 = vld [vmem:[%s9487_s22 + $0x3c8] sm:$0xff] }
 0x7ec   : > { %9156 = vpow2.f32 %v5665_v23  ;;  %v7194_v9 = vsel %vm16002_vm12, %v6938_v25, 0.0  ;;  %v4899_v50 = vmax.f32 %v14989_v61, 0.0  ;;  %v5027_v0 = vmul.f32 %v9307_v54, %v14989_v61  ;;  %v9309_v23 = vld [vmem:[%s9487_s22 + $0x3d0] sm:$0xff] }
 0x7ed   : > { %v5288_v15 = vand.u32 2147483647, %v15103_v7  ;;  %v6737_v29 = vadd.f32 1.0, %v15112_v56  ;;  %v15124_v60 = vsub.f32 %v4898_v62, %v5026_v17  ;;  %v4900_v45 = vmax.f32 %v15012_v34, 0.0 }
 0x7ee   : > { %v5028_v57 = vmul.f32 %v9308_v58, %v15012_v34  ;;  %vm16003_vm15 = vcmp.lt.s32.totalorder %v11834_v4, 1100  ;;  %v6703_v35 = vmul.f32 0.6931472, %v9141_v39  ;;  %v6715_v5 = vmul.f32 %v15034_v49, %v6714_v27  ;;  %v9143_v19 = vpop.eup %9142 }
 0x7ef   : > { %v7195_v14 = vsel %vm16003_vm15, %v6939_v52, 0.0  ;;  %vm15132_vm6 = vcmp.lt.f32.partialorder %v6716_v63, 0.0004427343  ;;  %v7335_v44 = vadd.f32 %v15056_v21, %v7194_v9  ;;  %v6700_v62 = vsel %vm15092_vm4, %v15081_v28, %v6694_v1  ;;  %vm16008_vm0 = vmmov %vm16003_vm15 }
 0x7f0   : > { %9158 = vpow2.f32 %v5667_v10  ;;  %v15141_v34 = vadd.f32 %v4577_v6, %v12253_v30  ;;  %v15143_v32 = vpop.eup %9144  ;;  %v6722_v24 = vmul.f32 -0.5, %v15065_v40  ;;  %v6725_v49 = vand.u32 2147483647, %v15065_v40 }
 0x7f1   : > { %v15147_v43 = vsub.f32 %v4899_v50, %v5027_v0  ;;  %v5416_v18 = vsub.f32 0.0, %v5288_v15  ;;  %v15149_v59 = vpop.eup %9146  ;;  %v7267_v21 = vadd.f32 %v7266_v20, %v7195_v14  ;;  %9160 = vlog2.f32 %v6737_v29 }
 0x7f2   : > { %v15151_v28 = vsub.f32 %v4900_v45, %v5028_v57  ;;  %v4901_v30 = vmax.f32 %v15024_v13, 0.0  ;;  %v6940_v8 = vadd.f32 %v6700_v62, %v14950_v46  ;;  %v6709_v42 = vsel %vm15106_vm5, %v6706_v33, %v6703_v35  ;;  %v16009_v45 = vld [vmem:[#allocation53_spill] sm:$0xff] }
 0x7f3   : > { %v6712_v55 = vmul.f32 0.6931472, %v9143_v19  ;;  %v6731_v37 = vmul.f32 -0.5, %v15077_v36  ;;  %v15158_v38 = vpop.eup %9148  ;;  %v6755_v11 = vadd.f32 1.0, %v15143_v32  ;;  %v5669_v25 = vmul.f32 1.442695, %v5416_v18 }
 0x7f4   : > { %v5289_v53 = vand.u32 2147483647, %v15141_v34  ;;  %v15163_v20 = vadd.f32 %v4579_v26, %v12259_v22  ;;  %v15165_v48 = vpop.eup %9150  ;;  %v6723_v17 = vadd.f32 1.0, %v6722_v24  ;;  %vm15167_vm7 = vcmp.lt.f32.partialorder %v6725_v49, 0.0004427343 }
 0x7f5   : > { %v6746_v12 = vadd.f32 1.0, %v15149_v59  ;;  %v5029_v52 = vmul.f32 %v9309_v23, %v15024_v13  ;;  %v9153_v27 = vpop.eup %9152  ;;  %v6941_v63 = vadd.f32 %v6709_v42, %v14984_v3  ;;  %v6734_v39 = vand.u32 2147483647, %v15077_v36 }
 0x7f6   : > { %9162 = vpow2.f32 %v5669_v25  ;;  %v5417_v22 = vsub.f32 0.0, %v5289_v53  ;;  %v7196_v1 = vsel %vm16008_vm0, %v6940_v8, 0.0  ;;  %v6732_v33 = vadd.f32 1.0, %v6731_v37  ;;  %v9310_v25 = vld [vmem:[%s9487_s22 + $0x3d8] sm:$0xff] }
 0x7f7   : > { %v6764_v10 = vadd.f32 1.0, %v15158_v38  ;;  %v5290_v9 = vand.u32 2147483647, %v15163_v20  ;;  %v6718_v54 = vsel %vm15132_vm6, %v6715_v5, %v6712_v55  ;;  %9164 = vlog2.f32 %v6755_v11 }
 0x7f8   : > { %v9155_v50 = vpop.eup %9154  ;;  %v6773_v13 = vadd.f32 1.0, %v15165_v48  ;;  %v5671_v3 = vmul.f32 1.442695, %v5417_v22  ;;  %v6721_v15 = vmul.f32 0.6931472, %v9153_v27  ;;  %v6724_v6 = vmul.f32 %v15065_v40, %v6723_v17 }
 0x7f9   : > { %v15183_v0 = vpop.eup %9156  ;;  %9166 = vlog2.f32 %v6746_v12  ;;  %v5418_v4 = vsub.f32 0.0, %v5290_v9  ;;  %v7336_v29 = vadd.f32 %v7335_v44, %v7196_v1  ;;  %vm16010_vm13 = vcmp.lt.s32.totalorder %v16009_v45, 1100  ;;  %v9311_v12 = vld [vmem:[%s9487_s22 + $0x3e0] sm:$0xff] }
 0x7fa   : > { %v7197_v58 = vsel %vm16010_vm13, %v6941_v63, 0.0  ;;  %v6740_v57 = vmul.f32 -0.5, %v15112_v56  ;;  %9168 = vpow2.f32 %v5671_v3  ;;  %v6942_v14 = vadd.f32 %v6718_v54, %v14986_v31  ;;  %vm16013_vm9 = vmmov %vm16010_vm13 }
 0x7fb   : > { %9170 = vlog2.f32 %v6764_v10  ;;  %v6782_v35 = vadd.f32 1.0, %v15183_v0  ;;  %v5673_v5 = vmul.f32 1.442695, %v5418_v4  ;;  %v6730_v61 = vmul.f32 0.6931472, %v9155_v50  ;;  %v16016_v10 = vld [vmem:[#allocation54_spill] sm:$0xff] }
 0x7fc   : > { %v6733_v19 = vmul.f32 %v15077_v36, %v6732_v33  ;;  %vm15192_vm8 = vcmp.lt.f32.partialorder %v6734_v39, 0.0004427343  ;;  %9172 = vlog2.f32 %v6773_v13  ;;  %v6727_v62 = vsel %vm15167_vm7, %v6724_v6, %v6721_v15  ;;  %v9312_v15 = vld [vmem:[%s9487_s22 + $0x3e8] sm:$0xff] }
 0x7fd   : > { %v15196_v44 = vpop.eup %9158  ;;  %v6743_v31 = vand.u32 2147483647, %v15112_v56  ;;  %v6749_v24 = vmul.f32 -0.5, %v15149_v59  ;;  %9174 = vpow2.f32 %v5673_v5  ;;  %v7268_v49 = vadd.f32 %v7267_v21, %v7197_v58 }
 0x7fe   : > { %v6741_v18 = vadd.f32 1.0, %v6740_v57  ;;  %v15202_v36 = vsub.f32 %v4901_v30, %v5029_v52  ;;  %v6791_v26 = vadd.f32 1.0, %v15196_v44  ;;  %v9161_v8 = vpop.eup %9160  ;;  %v7198_v42 = vsel %vm16013_vm9, %v6942_v14, 0.0 }
 0x7ff   : > { %v6758_v55 = vmul.f32 -0.5, %v15143_v32  ;;  %v4902_v37 = vmax.f32 %v15072_v51, 0.0  ;;  %9176 = vlog2.f32 %v6782_v35  ;;  %v6943_v11 = vadd.f32 %v6727_v62, %v15047_v47 }
 0x800   : > { %v6736_v21 = vsel %vm15192_vm8, %v6733_v19, %v6730_v61  ;;  %v5030_v30 = vmul.f32 %v9310_v25, %v15072_v51  ;;  %9178 = vlog2.f32 %v6791_v26  ;;  %vm15214_vm10 = vcmp.lt.f32.partialorder %v6743_v31, 0.0004427343 }
 0x801   : > { %v6750_v17 = vadd.f32 1.0, %v6749_v24  ;;  %v4903_v46 = vmax.f32 %v15075_v2, 0.0  ;;  %v5031_v23 = vmul.f32 %v9311_v12, %v15075_v2  ;;  %v6739_v52 = vmul.f32 0.6931472, %v9161_v8 }
 0x802   : > { %v6742_v47 = vmul.f32 %v15112_v56, %v6741_v18  ;;  %v6752_v27 = vand.u32 2147483647, %v15149_v59  ;;  %v6761_v63 = vand.u32 2147483647, %v15143_v32  ;;  %v7337_v39 = vadd.f32 %v7336_v29, %v7198_v42 }
 0x803   : > { %v15224_v51 = vpop.eup %9162  ;;  %v6944_v22 = vadd.f32 %v6736_v21, %v15063_v16  ;;  %v6759_v1 = vadd.f32 1.0, %v6758_v55  ;;  %v6767_v33 = vmul.f32 -0.5, %v15158_v38  ;;  %vm16017_vm14 = vcmp.lt.s32.totalorder %v16016_v10, 1100 }
 0x804   : > { %v7199_v9 = vsel %vm16017_vm14, %v6943_v11, 0.0  ;;  %v6770_v2 = vand.u32 2147483647, %v15158_v38  ;;  %v15231_v50 = vsub.f32 %v4902_v37, %v5030_v30  ;;  %v6800_v56 = vadd.f32 1.0, %v15224_v51  ;;  %v9165_v54 = vpop.eup %9164  ;;  %vm16022_vm2 = vmmov %vm16017_vm14 }
 0x805   : > { %v15235_v13 = vmul.f32 %v15149_v59, %v6750_v17  ;;  %v15237_v3 = vsub.f32 %v4903_v46, %v5031_v23  ;;  %v4904_v16 = vmax.f32 %v15103_v7, 0.0  ;;  %v5032_v6 = vmul.f32 %v9312_v15, %v15103_v7 }
 0x806   : > { %v9167_v4 = vpop.eup %9166  ;;  %v6745_v29 = vsel %vm15214_vm10, %v6742_v47, %v6739_v52  ;;  %vm15244_vm11 = vcmp.lt.f32.partialorder %v6752_v27, 0.0004427343  ;;  %vm15248_vm1 = vcmp.lt.f32.partialorder %v6761_v63, 0.0004427343  ;;  %v6776_v59 = vmul.f32 -0.5, %v15165_v48  ;;  %v16025_v52 = vld [vmem:[#allocation55_spill] sm:$0xff] }
 0x807   : > { %9180 = vlog2.f32 %v6800_v56  ;;  %v15253_v57 = vpop.eup %9168  ;;  %v7269_v14 = vadd.f32 %v7268_v49, %v7199_v9  ;;  %v7200_v7 = vsel %vm16022_vm2, %v6944_v22, 0.0  ;;  %v6760_v35 = vmul.f32 %v15143_v32, %v6759_v1 }
 0x808   : > { %v6768_v5 = vadd.f32 1.0, %v6767_v33  ;;  %v9171_v61 = vpop.eup %9170  ;;  %v6757_v19 = vmul.f32 0.6931472, %v9165_v54  ;;  %vm15258_vm3 = vcmp.lt.f32.partialorder %v6770_v2, 0.0004427343  ;;  %v6794_v62 = vmul.f32 -0.5, %v15196_v44 }
 0x809   : > { %v6809_v31 = vadd.f32 1.0, %v15253_v57  ;;  %v9173_v24 = vpop.eup %9172  ;;  %v6945_v18 = vadd.f32 %v6745_v29, %v15069_v41  ;;  %v6785_v49 = vmul.f32 -0.5, %v15183_v0  ;;  %v15266_v26 = vsub.f32 %v4904_v16, %v5032_v6 }
 0x80a   : > { %v4905_v32 = vmax.f32 %v15141_v34, 0.0  ;;  %v15269_v8 = vpop.eup %9174  ;;  %v15271_v42 = vadd.f32 %v7337_v39, %v7200_v7  ;;  %v6777_v55 = vadd.f32 1.0, %v6776_v59  ;;  %v6779_v37 = vand.u32 2147483647, %v15165_v48 }
 0x80b   : > { %9182 = vlog2.f32 %v6809_v31  ;;  %v6748_v11 = vmul.f32 0.6931472, %v9167_v4  ;;  %v6766_v21 = vmul.f32 0.6931472, %v9171_v61  ;;  %v6769_v25 = vmul.f32 %v15158_v38, %v6768_v5  ;;  %v16033_v5 = vld [vmem:[#allocation56_spill] sm:$0xff] }
 0x80c   : > { %v6818_v41 = vadd.f32 1.0, %v15269_v8  ;;  %v9177_v30 = vpop.eup %9176  ;;  %v6763_v53 = vsel %vm15248_vm1, %v6760_v35, %v6757_v19  ;;  %v6775_v17 = vmul.f32 0.6931472, %v9173_v24  ;;  %v6795_v46 = vadd.f32 1.0, %v6794_v62 }
 0x80d   : > { %v6803_v12 = vmul.f32 -0.5, %v15224_v51  ;;  %v9179_v23 = vpop.eup %9178  ;;  %vm16026_vm4 = vcmp.lt.s32.totalorder %v16025_v52, 1100  ;;  %v6786_v27 = vadd.f32 1.0, %v6785_v49  ;;  %v6797_v63 = vand.u32 2147483647, %v15196_v44  ;;  %v9314_v49 = vld [vmem:[%s9487_s22 + $0x3f8] sm:$0xff] }
 0x80e   : > { %v7201_v47 = vsel %vm16026_vm4, %v6945_v18, 0.0  ;;  %9184 = vlog2.f32 %v6818_v41  ;;  %v6778_v38 = vmul.f32 %v15165_v48, %v6777_v55  ;;  %vm15283_vm5 = vcmp.lt.f32.partialorder %v6779_v37, 0.0004427343  ;;  %vm16035_vm0 = vmmov %vm16026_vm4 }
 0x80f   : > { %v6788_v22 = vand.u32 2147483647, %v15183_v0  ;;  %v6793_v1 = vmul.f32 0.6931472, %v9179_v23  ;;  %v6754_v33 = vsel %vm15244_vm11, %v15235_v13, %v6748_v11  ;;  %v6947_v10 = vadd.f32 %v6763_v53, %v15147_v43  ;;  %v9313_v13 = vld [vmem:[%s9487_s22 + $0x3f0] sm:$0xff] }
 0x810   : > { %v6772_v9 = vsel %vm15258_vm3, %v6769_v25, %v6766_v21  ;;  %v6784_v2 = vmul.f32 0.6931472, %v9177_v30  ;;  %v6781_v48 = vsel %vm15283_vm5, %v6778_v38, %v6775_v17  ;;  %v6796_v56 = vmul.f32 %v15196_v44, %v6795_v46  ;;  %v16039_v46 = vld [vmem:[#allocation58_spill] sm:$0xff] }
 0x811   : > { %v6804_v54 = vadd.f32 1.0, %v6803_v12  ;;  %v6812_v16 = vmul.f32 -0.5, %v15253_v57  ;;  %v6787_v15 = vmul.f32 %v15183_v0, %v6786_v27  ;;  %vm15299_vm12 = vcmp.lt.f32.partialorder %v6797_v63, 0.0004427343 }
 0x812   : > { %v6806_v43 = vand.u32 2147483647, %v15224_v51  ;;  %v5033_v4 = vmul.f32 %v9313_v13, %v15141_v34  ;;  %v7270_v29 = vadd.f32 %v7269_v14, %v7201_v47  ;;  %v6946_v45 = vadd.f32 %v6754_v33, %v15124_v60 }
 0x813   : > { %vm15307_vm15 = vcmp.lt.f32.partialorder %v6788_v22, 0.0004427343  ;;  %v6799_v44 = vsel %vm15299_vm12, %v6796_v56, %v6793_v1  ;;  %v6948_v59 = vadd.f32 %v6772_v9, %v15151_v28  ;;  %v6949_v7 = vadd.f32 %v6781_v48, %v15202_v36 }
 0x814   : > { %v9181_v0 = vpop.eup %9180  ;;  %v6790_v35 = vsel %vm15307_vm15, %v6787_v15, %v6784_v2  ;;  %v6821_v14 = vmul.f32 -0.5, %v15269_v8  ;;  %vm16034_vm6 = vcmp.lt.s32.totalorder %v16033_v5, 1100  ;;  %v6805_v19 = vmul.f32 %v15224_v51, %v6804_v54 }
 0x815   : > { %v7203_v60 = vsel %vm16034_vm6, %v6947_v10, 0.0  ;;  %v6802_v61 = vmul.f32 0.6931472, %v9181_v0  ;;  %v6813_v40 = vadd.f32 1.0, %v6812_v16  ;;  %v6951_v62 = vadd.f32 %v6799_v44, %v15237_v3  ;;  %vm16036_vm13 = vmmov %vm16034_vm6  ;;  %v16037_v3 = vld [vmem:[#allocation57_spill] sm:$0xff] }
 0x816   : > { %vm6807_vm7 = vcmp.lt.f32.partialorder %v6806_v43, 0.0004427343  ;;  %v6815_v31 = vand.u32 2147483647, %v15253_v57  ;;  %v4906_v28 = vmax.f32 %v15163_v20, 0.0  ;;  %v7202_v36 = vsel %vm16035_vm0, %v6946_v45, 0.0 }
 0x817   : > { %v6950_v24 = vadd.f32 %v6790_v35, %v15231_v50  ;;  %v6808_v18 = vsel %vm6807_vm7, %v6805_v19, %v6802_v61  ;;  %v5034_v55 = vmul.f32 %v9314_v49, %v15163_v20  ;;  %v7271_v11 = vadd.f32 %v7270_v29, %v7203_v60  ;;  %v16046_v35 = vld [vmem:[#allocation9_spill] sm:$0xff]  ;;  %v7211_v61 = vld [vmem:[#allocation2] sm:$0x3] }
 0x818   : > { %v9183_v37 = vpop.eup %9182  ;;  %v7204_v51 = vsel %vm16036_vm13, %v6948_v59, 0.0  ;;  %vm16038_vm8 = vcmp.lt.s32.totalorder %v16037_v3, 1100  ;;  %v6822_v25 = vadd.f32 1.0, %v6821_v14  ;;  %v6952_v41 = vadd.f32 %v6808_v18, %v15266_v26 }
 0x819   : > { %v7205_v21 = vsel %vm16038_vm8, %v6949_v7, 0.0  ;;  %v6811_v30 = vmul.f32 0.6931472, %v9183_v37  ;;  %v6814_v53 = vmul.f32 %v15253_v57, %v6813_v40  ;;  %v6824_v50 = vand.u32 2147483647, %v15269_v8  ;;  %vm16041_vm14 = vmmov %vm16038_vm8 }
 0x81a   : > { %v7339_v17 = vadd.f32 %v15271_v42, %v7202_v36  ;;  %vm16040_vm9 = vcmp.lt.s32.totalorder %v16039_v46, 1100  ;;  %v5161_v12 = vsub.f32 %v4905_v32, %v5033_v4  ;;  %vm6816_vm10 = vcmp.lt.f32.partialorder %v6815_v31, 0.0004427343  ;;  %v16043_v32 = vld [vmem:[#allocation59_spill] sm:$0xff] }
 0x81b   : > { %v7207_v20 = vsel %vm16040_vm9, %v6951_v62, 0.0  ;;  %v9185_v23 = vpop.eup %9184  ;;  %v7272_v52 = vadd.f32 %v7271_v11, %v7205_v21  ;;  %v7206_v47 = vsel %vm16041_vm14, %v6950_v24, 0.0  ;;  %v6817_v26 = vsel %vm6816_vm10, %v6814_v53, %v6811_v30  ;;  %vm16042_vm11 = vmmov %vm16040_vm9 }
 0x81c   : > { %v7340_v27 = vadd.f32 %v7339_v17, %v7204_v51  ;;  %v6953_v63 = vadd.f32 %v6817_v26, %v5161_v12  ;;  %v6820_v57 = vmul.f32 0.6931472, %v9185_v23  ;;  %v6823_v38 = vmul.f32 %v15269_v8, %v6822_v25 }
 0x81d   : > { %v7273_v39 = vadd.f32 %v7272_v52, %v7207_v20  ;;  %v7208_v42 = vsel %vm16042_vm11, %v6952_v41, 0.0  ;;  %v5162_v22 = vsub.f32 %v4906_v28, %v5034_v55  ;;  %vm6825_vm1 = vcmp.lt.f32.partialorder %v6824_v50, 0.0004427343 }
 0x81e   : > { %v7341_v34 = vadd.f32 %v7340_v27, %v7206_v47  ;;  %vm16044_vm2 = vcmp.lt.s32.totalorder %v16043_v32, 1100  ;;  %v6826_v33 = vsel %vm6825_vm1, %v6823_v38, %v6820_v57  ;;  %v9357_v43 = vmov 1966171168  }
 0x81f   : > { %v7209_v1 = vsel %vm16044_vm2, %v6953_v63, 0.0  ;;  %v6954_v9 = vadd.f32 %v6826_v33, %v5162_v22  ;;  %vm16045_vm3 = vmmov %vm16044_vm2  ;;  %v7354_v13 = vunpack.c.l.s4 %v9357_v43  ;;  %v16047_v40 = vlaneseq }
 0x820   : > { %v7274_v10 = vadd.f32 %v7273_v39, %v7209_v1  ;;  %v7342_v2 = vadd.f32 %v7341_v34, %v7208_v42 }
 0x821   : > { %v7210_v56 = vsel %vm16045_vm3, %v6954_v9, 0.0  ;;  %v7355_v44 = vunpack.c.0.s8 %v7354_v13  ;;  %vm7371_vm4 = vcmp.lt.s32.totalorder %v16047_v40, 256 }
 0x822   : > { %v7275_v48 = vrot.slane %v7274_v10, 4  ;;  %v7343_v54 = vadd.f32 %v7342_v2, %v7210_v56 }
 0x823   : > { %v7358_v14 = vsub.s32 %v7355_v44, %v16046_v35 }
 0x824   : > { %v7276_v8 = vadd.f32 %v7275_v48, %v7274_v10  ;;  %v7344_v16 = vrot.slane %v7343_v54, 4 }
 0x826   : > { %v7277_v15 = vrot.slane %v7276_v8, 2  ;;  %v7345_v6 = vadd.f32 %v7344_v16, %v7343_v54 }
 0x828   : > { %v7278_v4 = vadd.f32 %v7277_v15, %v7276_v8  ;;  %v7346_v29 = vrot.slane %v7345_v6, 2 }
 0x82a   : > { %v7279_v45 = vrot.slane %v7278_v4, 1  ;;  %v7347_v58 = vadd.f32 %v7346_v29, %v7345_v6 }
 0x82c   : > { %v7348_v0 = vrot.slane %v7347_v58, 1  ;;  %v7280_v59 = vadd.f32 %v7279_v45, %v7278_v4 }
 0x82e   : > { %v7349_v7 = vadd.f32 %v7348_v0, %v7347_v58 }
 0x830   : > { %v7352_v5 = vcombine.low %v7280_v59, %v7349_v7 }
 0x832   : > { %v7359_v60 = vrot.slane %v7352_v5, %v7358_v14 }
 0x834   : > { %v7366_v19 = vrot.slane %v7359_v60, %v7358_v14  ;;  %7897 = sbr.rel (%p8175_p8) target bundleno = 2323 (0x913), region = 84 }
 0x836   : > { %v7368_v62 = vadd.f32 %v7366_v19, %v7211_v61 }
 0x838   : > { %7373 = vst.msk [vmem:[#allocation2] sm:$0x3] %vm7371_vm4, %v7368_v62 }
 0x839   : > { %vm7910_vm5 = vcmask 1040384   ;;  %v16048_v28 = vld [vmem:[#allocation11_spill] sm:$0xff]  ;;  %v16049_v24 = vld [vmem:[#allocation10_spill] sm:$0xff]  ;;  %v7926_v11 = vld [vmem:[#allocation3] sm:$0x1]  ;;  %vm7924_vm12 = vcmask 0  }
 0x83a   : > { %v7927_v51 = vsel %vm7910_vm5, %v7926_v11, 0.0 }
 0x83f   : > { %v7898_v31 = vld [vmem:[#allocation2] sm:$0x3] }
 0x840   : > { %v7903_v36 = vrot.slane %v7898_v31, %v16048_v28  ;;  %v7907_v18 = vrot.slane %v7898_v31, %v16049_v24 }
 0x842   : > { %v7911_v49 = vsel %vm7910_vm5, %v7903_v36, 0.0  ;;  %v7912_v55 = vsel %vm7910_vm5, %v7907_v18, 0.0 }
 0x843   : > { %v7913_v37 = vadd.f32 %v7912_v55, %v7911_v49 }
 0x845   : > { %7914 = vadd.xlane.f32.xlu0 %v7913_v37 }
 0x849   : > { %7928 = vadd.xlane.f32.xlu0 %v7927_v51 }
 0x8ce   : > { %v7915_v3 = vpop.xlane.xlu0 %7914 }
 0x8cf   : > { %v7916_v21 = vrot.slane %v7915_v3, 4 }
 0x8d1   : > { %v7917_v25 = vadd.f32 %v7916_v21, %v7915_v3 }
 0x8d2   : > { %v7929_v41 = vpop.xlane.xlu0 %7928 }
 0x8d3   : > { %v7918_v30 = vrot.slane %v7917_v25, 2  ;;  %v7930_v53 = vrot.slane %v7929_v41, 4 }
 0x8d5   : > { %v7931_v50 = vadd.f32 %v7930_v53, %v7929_v41  ;;  %v7919_v17 = vadd.f32 %v7918_v30, %v7917_v25 }
 0x8d7   : > { %v7932_v46 = vrot.slane %v7931_v50, 2  ;;  %v7920_v20 = vrot.slane %v7919_v17, 1 }
 0x8d9   : > { %v7933_v12 = vadd.f32 %v7932_v46, %v7931_v50  ;;  %v7921_v23 = vadd.f32 %v7920_v20, %v7919_v17 }
 0x8db   : > { %8331 = vpush %v7921_v23  ;;  %v7934_v52 = vrot.slane %v7933_v12, 1 }
 0x8dd   : > { %v7935_v47 = vadd.f32 %v7934_v52, %v7933_v12 }
 0x8df   : > { %8333 = vpush %v7935_v47 }
 0x90c   : > { %s8332_s18 = spop %8331 }
 0x90d   : > { %v7923_v26 = vstv %s8332_s18 }
 0x90e   : > { %7925 = vst.msk [vmem:[%s563_s30] sm:$0x1] %vm7924_vm12, %v7923_v26 }
 0x910   : > { %s8334_s13 = spop %8333 }
 0x911   : > { %v7937_v27 = vstv %s8334_s13 }
 0x912   : > { %7938 = vst.msk [vmem:[%s566_s24] sm:$0x1] %vm7924_vm12, %v7937_v27 }
 0x913 PF: > { %s16050_s26 = sld [smem:[#allocation6_spill]] }
 0x914   : > { %s16051_s18 = sld [smem:[#allocation4_spill]] }
 0x915   : > { %s16052_s19 = sld [smem:[#allocation5_spill]] }
 0x916   : > { %s16053_s20 = sld [smem:[#allocation7_spill]] }
 0x917   : > { %s16054_s21 = sld [smem:[#allocation8_spill]] }
 0x919   : > { %s26_s22 = sadd.s32 1, %s16050_s26  }
 0x91a   : > { %p23_p9 = scmp.ge.s32.totalorder %s26_s22, 6  }
 0x91c   :  { %25 = sbr.rel (!%p23_p9) target bundleno = 4 (0x4), region = 129 }

</bundles_post_ra>
